<compile_context>
chip_gen: v7x
topology: tpu7x:2x2x1
jax: 0.10.0
libtpu: 0.0.40
codegen_flags: <defaults>
</compile_context>

<pallas_src>
import jax
import jax.numpy as jnp
from jax.experimental import pallas as pl
from jax.experimental.pallas import tpu as pltpu

BN_EPS = 1e-5
H = 64            # LSTM hidden size
H2 = 2 * H        # fused fwd+rev state width (128)
G = 4 * H         # per-direction fused gate width (256)
G2 = 2 * G        # fwd+rev fused gate width (512)


# ----------------------------------------------------------------------------
# Fused forward kernel
# ----------------------------------------------------------------------------
def fused_kernel(
    xcol_ref, xcat_ref,                      # (T*Bp,40) bf16 conv1 im2col ; (T*Bp,16) bf16 [x(t)|x(T-1-t)]
    w1_ref, b1_ref, w2_ref, b2_ref,          # conv im2col weights (BN folded): (40,32)bf16,(1,32),(96,64)bf16,(1,64)
    wih0_ref, whh0_ref, b0_ref,              # LSTM layer 0 fwd+rev fused: (16,512)bf16,(128,512)f32,(1,512)
    wih1f_ref, whh1f_ref, b1f_ref,           # LSTM layer 1 fwd: (128,256)bf16,(64,256)f32,(1,256)
    wih1b_ref, b1b_ref,                      # LSTM layer 1 rev (single zero-state step, no Whh): (128,256)bf16,(1,256)
    fw1_ref, fb1_ref, fw2_ref, fb2_ref,      # adapter: (192,64),(1,64),(64,5),(1,5)
    out_ref,                                 # (Bp, 5)
    projc_scr,                               # (T*Bp, 512) layer-0 fused gate pre-activations
    proj1_scr,                               # (T*Bp, 256) layer-1 fwd gate pre-activations
    seqf_scr, seqb_scr,                      # (T*Bp, 64)  layer-0 hidden sequences (time-aligned)
):
    Bp = out_ref.shape[0]
    T = seqf_scr.shape[0] // Bp
    T2 = T // 2

    # ------------------------------------------------------------------
    # Hoisted LSTM layer-0 input projection (both directions, all t, one
    # matmul).  projc row block t = fused gate pre-activations for
    # (fwd step t, rev step t) in column layout [i_f i_b f_f f_b o_f o_b g_f g_b].
    # ------------------------------------------------------------------
    projc_scr[...] = (
        jnp.dot(xcat_ref[...], wih0_ref[...], preferred_element_type=jnp.float32)
        + b0_ref[...])

    # ------------------------------------------------------------------
    # CNN branch (im2col -> single matmul per conv); scheduled freely under
    # the LSTM recurrence since the kernel is one basic block.
    # ------------------------------------------------------------------
    h1 = jnp.maximum(
        jnp.dot(xcol_ref[...], w1_ref[...], preferred_element_type=jnp.float32)
        + b1_ref[...], 0.0)                                    # (T*Bp, 32), BN folded

    # MaxPool1d(2): tile-preserving reshape + one vector max (no store loop).
    h1r = h1[0:2 * T2 * Bp, :].reshape(T2, 2 * Bp, 32)
    pooled = jnp.maximum(h1r[:, 0:Bp, :], h1r[:, Bp:2 * Bp, :]).reshape(T2 * Bp, 32)

    # Conv2 im2col (k=3, pad=1): shifted row blocks packed along lanes.
    zero_blk = jnp.zeros((Bp, 32), jnp.float32)
    p_prev = jnp.concatenate([zero_blk, pooled[0:(T2 - 1) * Bp, :]], axis=0)
    p_next = jnp.concatenate([pooled[Bp:T2 * Bp, :], zero_blk], axis=0)
    pcol = jnp.concatenate([p_prev, pooled, p_next], axis=1).astype(jnp.bfloat16)
    h2 = jnp.maximum(
        jnp.dot(pcol, w2_ref[...], preferred_element_type=jnp.float32)
        + b2_ref[...], 0.0)                                    # (T2*Bp, 64), BN folded

    # AdaptiveMaxPool1d(1): running max over time blocks.
    cnn_feat = h2[0:Bp, :]
    for q in range(1, T2):
        cnn_feat = jnp.maximum(cnn_feat, h2[q * Bp:(q + 1) * Bp, :])

    # ------------------------------------------------------------------
    # LSTM layer 0: fused fwd+rev recurrence, fully unrolled, state in vregs.
    # hc/cc layout: lanes [0:64] = forward, [64:128] = reverse; gate layout
    # [I(128) | F(128) | O(128) | G(128)], each 128-block = [fwd | rev].
    # ------------------------------------------------------------------
    hc = jnp.zeros((Bp, H2), jnp.float32)
    cc = jnp.zeros((Bp, H2), jnp.float32)
    hb0_last = None
    for t in range(T):
        r = t * Bp
        gates = projc_scr[r:r + Bp, :] + jnp.dot(
            hc, whh0_ref[...], preferred_element_type=jnp.float32)   # (Bp, 512)
        sig = jax.nn.sigmoid(gates[:, 0:3 * H2])                     # i,f,o contiguous
        i_g = sig[:, 0:H2]
        f_g = sig[:, H2:2 * H2]
        o_g = sig[:, 2 * H2:3 * H2]
        g_g = jnp.tanh(gates[:, 3 * H2:4 * H2])
        cc = f_g * cc + i_g * g_g
        hc = o_g * jnp.tanh(cc)
        # Time-aligned sequence stores (off the carried dependency chain).
        seqf_scr[r:r + Bp, :] = hc[:, 0:H]                           # h_f(t)
        seqb_scr[(T - 1 - t) * Bp:(T - t) * Bp, :] = hc[:, H:H2]     # h_b(T-1-t)
        if t == 0:
            hb0_last = hc[:, H:H2]                                   # h_b^(0)(T-1)
    hf0_last = hc[:, 0:H]                                            # h_f^(0)(T-1)

    # ------------------------------------------------------------------
    # LSTM layer 1.  Input at time t is [h_f^(0)(t) | h_b^(0)(t)], realized
    # as split matmuls against row blocks of Wih (no lane concatenation).
    # ------------------------------------------------------------------
    seqf_b = seqf_scr[...].astype(jnp.bfloat16)
    seqb_b = seqb_scr[...].astype(jnp.bfloat16)
    proj1_scr[...] = (
        jnp.dot(seqf_b, wih1f_ref[0:H, :], preferred_element_type=jnp.float32)
        + jnp.dot(seqb_b, wih1f_ref[H:2 * H, :], preferred_element_type=jnp.float32)
        + b1f_ref[...])

    # Reverse direction: only its hidden at t = T-1 is consumed, which is a
    # single cell step from zero state (f-gate irrelevant) -> no recurrence.
    pre_b1 = (
        jnp.dot(hf0_last.astype(jnp.bfloat16), wih1b_ref[0:H, :],
                preferred_element_type=jnp.float32)
        + jnp.dot(hb0_last.astype(jnp.bfloat16), wih1b_ref[H:2 * H, :],
                  preferred_element_type=jnp.float32)
        + b1b_ref[...])                                              # [i,f,o,g] order
    i_b1 = jax.nn.sigmoid(pre_b1[:, 0:H])
    o_b1 = jax.nn.sigmoid(pre_b1[:, 2 * H:3 * H])
    g_b1 = jnp.tanh(pre_b1[:, 3 * H:4 * H])
    hb1_last = o_b1 * jnp.tanh(i_b1 * g_b1)                          # h_b^(1)(T-1)

    # Forward recurrence, fully unrolled, state in vregs; only final h used.
    h1f = jnp.zeros((Bp, H), jnp.float32)
    c1f = jnp.zeros((Bp, H), jnp.float32)
    for t in range(T):
        r = t * Bp
        gates = proj1_scr[r:r + Bp, :] + jnp.dot(
            h1f, whh1f_ref[...], preferred_element_type=jnp.float32)  # (Bp, 256)
        sig = jax.nn.sigmoid(gates[:, 0:3 * H])
        i_g = sig[:, 0:H]
        f_g = sig[:, H:2 * H]
        o_g = sig[:, 2 * H:3 * H]
        g_g = jnp.tanh(gates[:, 3 * H:4 * H])
        c1f = f_g * c1f + i_g * g_g
        h1f = o_g * jnp.tanh(c1f)                                    # h_f^(1)(t)

    # ------------------------------------------------------------------
    # Adapter head: features = [cnn | lstm_fwd_last | lstm_rev_last] realized
    # as three split matmuls against fc1 weight row blocks.
    # ------------------------------------------------------------------
    hid = jnp.maximum(
        jnp.dot(cnn_feat, fw1_ref[0:64, :], preferred_element_type=jnp.float32)
        + jnp.dot(h1f, fw1_ref[64:128, :], preferred_element_type=jnp.float32)
        + jnp.dot(hb1_last, fw1_ref[128:192, :], preferred_element_type=jnp.float32)
        + fb1_ref[...], 0.0)
    # TODO(synk): Dropout(0.5) is identity in eval mode; training RNG not implemented.
    logits = (jnp.dot(hid, fw2_ref[...], preferred_element_type=jnp.float32)
              + fb2_ref[...])
    out_ref[...] = jax.nn.sigmoid(logits) * 90.0


# ----------------------------------------------------------------------------
# Host wrapper: layout prep + single pallas_call
# ----------------------------------------------------------------------------
def _round_up(n, m):
    return ((n + m - 1) // m) * m


@jax.jit
def transfer_learning_forward(x, params):
    """x: (B, 8, T) float32 in PyTorch NCW layout -> (B, 5)."""
    B, C, T = x.shape
    Bp = max(8, _round_up(B, 8))          # pad batch to a full sublane group

    x_tbc = jnp.transpose(x, (2, 0, 1))                         # (T, B, C)
    x_tbc = jnp.pad(x_tbc, ((0, 0), (0, Bp - B), (0, 0)))       # (T, Bp, C)

    # Conv1 im2col: row t*Bp+b packs the 5 taps [x(t-2)..x(t+2)] (zero pad).
    x_tp = jnp.pad(x_tbc, ((2, 2), (0, 0), (0, 0)))
    xcol = jnp.concatenate([x_tp[k:k + T] for k in range(5)], axis=-1)
    xcol = xcol.reshape(T * Bp, 5 * C).astype(jnp.bfloat16)

    # Fused layer-0 LSTM input: row t*Bp+b = [x(t) | x(T-1-t)].
    xcat = jnp.concatenate([x_tbc, x_tbc[::-1]], axis=-1)
    xcat = xcat.reshape(T * Bp, 2 * C).astype(jnp.bfloat16)

    w1, b1 = params['conv1']
    w2, b2 = params['conv2']
    wih0, whh0, b0 = params['lstm0']
    wih1f, whh1f, b1f = params['lstm1_f']
    wih1b, b1b = params['lstm1_b']
    fw1, fb1 = params['fc1']
    fw2, fb2 = params['fc2']

    out = pl.pallas_call(
        fused_kernel,
        out_shape=jax.ShapeDtypeStruct((Bp, 5), jnp.float32),
        scratch_shapes=[
            pltpu.VMEM((T * Bp, G2), jnp.float32),   # layer-0 fused gate pre-acts
            pltpu.VMEM((T * Bp, G), jnp.float32),    # layer-1 fwd gate pre-acts
            pltpu.VMEM((T * Bp, H), jnp.float32),    # layer-0 fwd sequence
            pltpu.VMEM((T * Bp, H), jnp.float32),    # layer-0 rev sequence
        ],
    )(xcol, xcat,
      w1, b1, w2, b2,
      wih0, whh0, b0,
      wih1f, whh1f, b1f,
      wih1b, b1b,
      fw1, fb1, fw2, fb2)
    return out[:B]


# ----------------------------------------------------------------------------
# Host-side weight packing helpers
# ----------------------------------------------------------------------------
def _reorder_gates(w):
    # PyTorch fused-gate order [i,f,g,o] -> kernel order [i,f,o,g] (last axis).
    i, f, g, o = jnp.split(w, 4, axis=-1)
    return jnp.concatenate([i, f, o, g], axis=-1)


def _interleave_dirs(wf, wb):
    # Per-gate fwd/rev interleave: two (...,4H) in [i,f,o,g] -> (...,8H) in
    # [i_f i_b f_f f_b o_f o_b g_f g_b].
    fparts = jnp.split(wf, 4, axis=-1)
    bparts = jnp.split(wb, 4, axis=-1)
    out = []
    for pf, pb in zip(fparts, bparts):
        out.append(pf)
        out.append(pb)
    return jnp.concatenate(out, axis=-1)


def _blockdiag_dirs(wf, wb):
    # Per-gate block-diagonal fwd/rev fusion: wf (Rf,4H), wb (Rb,4H) in
    # [i,f,o,g] -> (Rf+Rb, 8H); row block 0 feeds only fwd gate columns,
    # row block 1 only rev gate columns.  Column layout matches _interleave_dirs.
    Hh = wf.shape[1] // 4
    zf = jnp.zeros((wf.shape[0], Hh), wf.dtype)
    zb = jnp.zeros((wb.shape[0], Hh), wb.dtype)
    cols = []
    for gi in range(4):
        cols.append(jnp.concatenate([wf[:, gi * Hh:(gi + 1) * Hh], zb], axis=0))
        cols.append(jnp.concatenate([zf, wb[:, gi * Hh:(gi + 1) * Hh]], axis=0))
    return jnp.concatenate(cols, axis=1)


# ----------------------------------------------------------------------------
# Deterministic parameter construction (synthetic init, not a checkpoint load)
# ----------------------------------------------------------------------------
def conv_params(key, cin, cout, k):
    k1, k2 = jax.random.split(key)
    std = (2.0 / (cout * k)) ** 0.5                       # kaiming fan_out
    w = jax.random.normal(k1, (cout, cin, k), jnp.float32) * std
    s = 1.0 / (cin * k) ** 0.5
    b = jax.random.uniform(k2, (cout,), jnp.float32, -s, s)
    # TODO(synk): fold eval-mode BatchNorm1d at init (mean=0, var=1, gamma=1,
    # beta=0); real checkpoints must fold actual running stats.
    bn_scale = 1.0 / (1.0 + BN_EPS) ** 0.5
    w_col = (jnp.transpose(w, (2, 1, 0)) * bn_scale).reshape(k * cin, cout)
    return w_col.astype(jnp.bfloat16), (b * bn_scale).reshape(1, cout)


def lstm_dir_params(key, input_size, hidden):
    k1, k2, k3, k4 = jax.random.split(key, 4)
    s = 1.0 / hidden ** 0.5
    w_ih = jax.random.uniform(k1, (4 * hidden, input_size), jnp.float32, -s, s)
    w_hh = jax.random.uniform(k2, (4 * hidden, hidden), jnp.float32, -s, s)
    b_ih = jax.random.uniform(k3, (4 * hidden,), jnp.float32, -s, s)
    b_hh = jax.random.uniform(k4, (4 * hidden,), jnp.float32, -s, s)
    # Transposed fused-gate layout (I,4H)/(H,4H), biases summed, gate order
    # reordered from PyTorch [i,f,g,o] to kernel [i,f,o,g].
    return (_reorder_gates(w_ih.T), _reorder_gates(w_hh.T),
            _reorder_gates((b_ih + b_hh).reshape(1, 4 * hidden)))


def linear_params(key, fin, fout):
    k1, k2 = jax.random.split(key)
    s = 1.0 / fin ** 0.5
    w = jax.random.uniform(k1, (fout, fin), jnp.float32, -s, s)
    b = jax.random.uniform(k2, (fout,), jnp.float32, -s, s)
    return w.T, b.reshape(1, fout)


def make_params(key):
    ks = jax.random.split(key, 8)
    w1, b1 = conv_params(ks[0], 8, 32, 5)
    w2, b2 = conv_params(ks[1], 32, 64, 3)
    wih_f0, whh_f0, b_f0 = lstm_dir_params(ks[2], 8, H)
    wih_b0, whh_b0, b_b0 = lstm_dir_params(ks[3], 8, H)
    wih_f1, whh_f1, b_f1 = lstm_dir_params(ks[4], 2 * H, H)
    wih_b1, _whh_b1, b_b1 = lstm_dir_params(ks[5], 2 * H, H)   # Whh unused: 1-step reverse
    fw1, fb1 = linear_params(ks[6], 192, 64)
    fw2, fb2 = linear_params(ks[7], 64, 5)
    return dict(
        conv1=(w1, b1),
        conv2=(w2, b2),
        lstm0=(_blockdiag_dirs(wih_f0, wih_b0).astype(jnp.bfloat16),   # (16, 512)
               _blockdiag_dirs(whh_f0, whh_b0),                        # (128, 512) f32
               _interleave_dirs(b_f0, b_b0)),                          # (1, 512)
        lstm1_f=(wih_f1.astype(jnp.bfloat16), whh_f1, b_f1),           # (128,256),(64,256),(1,256)
        lstm1_b=(wih_b1.astype(jnp.bfloat16), b_b1),                   # (128,256),(1,256)
        fc1=(fw1, fb1),
        fc2=(fw2, fb2),
    )


if __name__ == "__main__":
    key = jax.random.PRNGKey(0)
    pkey, xkey = jax.random.split(key)
    params = make_params(pkey)

    B, C, T = 2, 8, 16
    x = jax.random.normal(xkey, (B, C, T), jnp.float32)

    out = transfer_learning_forward(x, params)
    jax.block_until_ready(out)
    assert out.shape == (B, 5)
    assert bool(jnp.all(jnp.isfinite(out)))
    assert bool(jnp.all(out >= 0.0)) and bool(jnp.all(out <= 90.0))
    print("KERNEL_OK")
</pallas_src>

<mosaic_0001>
module attributes {stable_mosaic.version = 11 : i64} {
  func.func @fused_kernel(%arg0: memref<128x40xbf16, #tpu.memory_space<vmem>>, %arg1: memref<128x16xbf16, #tpu.memory_space<vmem>>, %arg2: memref<40x32xbf16, #tpu.memory_space<vmem>>, %arg3: memref<1x32xf32, #tpu.memory_space<vmem>>, %arg4: memref<96x64xbf16, #tpu.memory_space<vmem>>, %arg5: memref<1x64xf32, #tpu.memory_space<vmem>>, %arg6: memref<16x512xbf16, #tpu.memory_space<vmem>>, %arg7: memref<128x512xf32, #tpu.memory_space<vmem>>, %arg8: memref<1x512xf32, #tpu.memory_space<vmem>>, %arg9: memref<128x256xbf16, #tpu.memory_space<vmem>>, %arg10: memref<64x256xf32, #tpu.memory_space<vmem>>, %arg11: memref<1x256xf32, #tpu.memory_space<vmem>>, %arg12: memref<128x256xbf16, #tpu.memory_space<vmem>>, %arg13: memref<1x256xf32, #tpu.memory_space<vmem>>, %arg14: memref<192x64xf32, #tpu.memory_space<vmem>>, %arg15: memref<1x64xf32, #tpu.memory_space<vmem>>, %arg16: memref<64x5xf32, #tpu.memory_space<vmem>>, %arg17: memref<1x5xf32, #tpu.memory_space<vmem>>, %arg18: memref<8x5xf32, #tpu.memory_space<vmem>>, %arg19: memref<128x512xf32, #tpu.memory_space<vmem>>, %arg20: memref<128x256xf32, #tpu.memory_space<vmem>>, %arg21: memref<128x64xf32, #tpu.memory_space<vmem>>, %arg22: memref<128x64xf32, #tpu.memory_space<vmem>>) attributes {dimension_semantics = [], scalar_prefetch = 0 : i64, scratch_operands = 4 : i64, tpu.core_type = #tpu.core_type<tc>} {
    %c0 = arith.constant 0 : index
    %c0_0 = arith.constant 0 : index
    %0 = vector.load %arg1[%c0, %c0_0] : memref<128x16xbf16, #tpu.memory_space<vmem>>, vector<128x16xbf16>
    %c0_1 = arith.constant 0 : index
    %c0_2 = arith.constant 0 : index
    %1 = vector.load %arg6[%c0_1, %c0_2] : memref<16x512xbf16, #tpu.memory_space<vmem>>, vector<16x512xbf16>
    %cst = arith.constant dense<0.000000e+00> : vector<128x512xf32>
    %2 = tpu.matmul %0, %1, %cst {dimension_numbers = #tpu.dot_dimension_numbers<[1], [0], [0], [1], [0, 0, 1, 1], [], []>} : vector<128x16xbf16>, vector<16x512xbf16>, vector<128x512xf32> -> vector<128x512xf32>
    %c0_3 = arith.constant 0 : index
    %c0_4 = arith.constant 0 : index
    %3 = vector.load %arg8[%c0_3, %c0_4] : memref<1x512xf32, #tpu.memory_space<vmem>>, vector<1x512xf32>
    %4 = vector.broadcast %3 : vector<1x512xf32> to vector<128x512xf32>
    %5 = arith.addf %2, %4 : vector<128x512xf32>
    %c0_5 = arith.constant 0 : index
    %c0_6 = arith.constant 0 : index
    %6 = vector.load %arg19[%c0_5, %c0_6] : memref<128x512xf32, #tpu.memory_space<vmem>>, vector<128x512xf32>
    tpu.vector_store %arg19[%c0_5, %c0_6], %5 {strides = array<i32>} : memref<128x512xf32, #tpu.memory_space<vmem>>, vector<128x512xf32>,
    %c0_7 = arith.constant 0 : index
    %c0_8 = arith.constant 0 : index
    %7 = vector.load %arg0[%c0_7, %c0_8] : memref<128x40xbf16, #tpu.memory_space<vmem>>, vector<128x40xbf16>
    %c0_9 = arith.constant 0 : index
    %c0_10 = arith.constant 0 : index
    %8 = vector.load %arg2[%c0_9, %c0_10] : memref<40x32xbf16, #tpu.memory_space<vmem>>, vector<40x32xbf16>
    %cst_11 = arith.constant dense<0.000000e+00> : vector<128x32xf32>
    %9 = tpu.matmul %7, %8, %cst_11 {dimension_numbers = #tpu.dot_dimension_numbers<[1], [0], [0], [1], [0, 0, 1, 1], [], []>} : vector<128x40xbf16>, vector<40x32xbf16>, vector<128x32xf32> -> vector<128x32xf32>
    %c0_12 = arith.constant 0 : index
    %c0_13 = arith.constant 0 : index
    %10 = vector.load %arg3[%c0_12, %c0_13] : memref<1x32xf32, #tpu.memory_space<vmem>>, vector<1x32xf32>
    %11 = vector.broadcast %10 : vector<1x32xf32> to vector<128x32xf32>
    %12 = arith.addf %9, %11 : vector<128x32xf32>
    %cst_14 = arith.constant 0.000000e+00 : f32
    %13 = vector.broadcast %cst_14 : f32 to vector<128x32xf32>
    %14 = arith.maximumf %12, %13 : vector<128x32xf32>
    %15 = vector.shape_cast %14 : vector<128x32xf32> to vector<8x16x32xf32>
    %16 = vector.extract_strided_slice %15 {offsets = [0, 0, 0], sizes = [8, 8, 32], strides = [1, 1, 1]} : vector<8x16x32xf32> to vector<8x8x32xf32>
    %17 = vector.extract_strided_slice %15 {offsets = [0, 8, 0], sizes = [8, 8, 32], strides = [1, 1, 1]} : vector<8x16x32xf32> to vector<8x8x32xf32>
    %18 = arith.maximumf %16, %17 : vector<8x8x32xf32>
    %19 = vector.shape_cast %18 : vector<8x8x32xf32> to vector<64x32xf32>
    %cst_15 = arith.constant 0.000000e+00 : f32
    %20 = vector.broadcast %cst_15 : f32 to vector<8x32xf32>
    %21 = vector.extract_strided_slice %19 {offsets = [0, 0], sizes = [56, 32], strides = [1, 1]} : vector<64x32xf32> to vector<56x32xf32>
    %22 = tpu.concatenate %20, %21 in 0 : vector<8x32xf32>, vector<56x32xf32> -> vector<64x32xf32>
    %23 = vector.extract_strided_slice %19 {offsets = [8, 0], sizes = [56, 32], strides = [1, 1]} : vector<64x32xf32> to vector<56x32xf32>
    %24 = tpu.concatenate %23, %20 in 0 : vector<56x32xf32>, vector<8x32xf32> -> vector<64x32xf32>
    %25 = tpu.concatenate %22, %19, %24 in 1 : vector<64x32xf32>, vector<64x32xf32>, vector<64x32xf32> -> vector<64x96xf32>
    %26 = arith.truncf %25 : vector<64x96xf32> to vector<64x96xbf16>
    %c0_16 = arith.constant 0 : index
    %c0_17 = arith.constant 0 : index
    %27 = vector.load %arg4[%c0_16, %c0_17] : memref<96x64xbf16, #tpu.memory_space<vmem>>, vector<96x64xbf16>
    %cst_18 = arith.constant dense<0.000000e+00> : vector<64x64xf32>
    %28 = tpu.matmul %26, %27, %cst_18 {dimension_numbers = #tpu.dot_dimension_numbers<[1], [0], [0], [1], [0, 0, 1, 1], [], []>} : vector<64x96xbf16>, vector<96x64xbf16>, vector<64x64xf32> -> vector<64x64xf32>
    %c0_19 = arith.constant 0 : index
    %c0_20 = arith.constant 0 : index
    %29 = vector.load %arg5[%c0_19, %c0_20] : memref<1x64xf32, #tpu.memory_space<vmem>>, vector<1x64xf32>
    %30 = vector.broadcast %29 : vector<1x64xf32> to vector<64x64xf32>
    %31 = arith.addf %28, %30 : vector<64x64xf32>
    %cst_21 = arith.constant 0.000000e+00 : f32
    %32 = vector.broadcast %cst_21 : f32 to vector<64x64xf32>
    %33 = arith.maximumf %31, %32 : vector<64x64xf32>
    %34 = vector.extract_strided_slice %33 {offsets = [0, 0], sizes = [8, 64], strides = [1, 1]} : vector<64x64xf32> to vector<8x64xf32>
    %35 = vector.extract_strided_slice %33 {offsets = [8, 0], sizes = [8, 64], strides = [1, 1]} : vector<64x64xf32> to vector<8x64xf32>
    %36 = arith.maximumf %34, %35 : vector<8x64xf32>
    %37 = vector.extract_strided_slice %33 {offsets = [16, 0], sizes = [8, 64], strides = [1, 1]} : vector<64x64xf32> to vector<8x64xf32>
    %38 = arith.maximumf %36, %37 : vector<8x64xf32>
    %39 = vector.extract_strided_slice %33 {offsets = [24, 0], sizes = [8, 64], strides = [1, 1]} : vector<64x64xf32> to vector<8x64xf32>
    %40 = arith.maximumf %38, %39 : vector<8x64xf32>
    %41 = vector.extract_strided_slice %33 {offsets = [32, 0], sizes = [8, 64], strides = [1, 1]} : vector<64x64xf32> to vector<8x64xf32>
    %42 = arith.maximumf %40, %41 : vector<8x64xf32>
    %43 = vector.extract_strided_slice %33 {offsets = [40, 0], sizes = [8, 64], strides = [1, 1]} : vector<64x64xf32> to vector<8x64xf32>
    %44 = arith.maximumf %42, %43 : vector<8x64xf32>
    %45 = vector.extract_strided_slice %33 {offsets = [48, 0], sizes = [8, 64], strides = [1, 1]} : vector<64x64xf32> to vector<8x64xf32>
    %46 = arith.maximumf %44, %45 : vector<8x64xf32>
    %47 = vector.extract_strided_slice %33 {offsets = [56, 0], sizes = [8, 64], strides = [1, 1]} : vector<64x64xf32> to vector<8x64xf32>
    %48 = arith.maximumf %46, %47 : vector<8x64xf32>
    %cst_22 = arith.constant 0.000000e+00 : f32
    %49 = vector.broadcast %cst_22 : f32 to vector<8x128xf32>
    %cst_23 = arith.constant 0.000000e+00 : f32
    %50 = vector.broadcast %cst_23 : f32 to vector<8x128xf32>
    %c0_24 = arith.constant 0 : index
    %c0_25 = arith.constant 0 : index
    %51 = vector.load %arg19[%c0_24, %c0_25] : memref<128x512xf32, #tpu.memory_space<vmem>>, vector<8x512xf32>
    %c0_26 = arith.constant 0 : index
    %c0_27 = arith.constant 0 : index
    %52 = vector.load %arg7[%c0_26, %c0_27] : memref<128x512xf32, #tpu.memory_space<vmem>>, vector<128x512xf32>
    %cst_28 = arith.constant dense<0.000000e+00> : vector<8x512xf32>
    %53 = tpu.matmul %49, %52, %cst_28 {dimension_numbers = #tpu.dot_dimension_numbers<[1], [0], [0], [1], [0, 0, 1, 1], [], []>} : vector<8x128xf32>, vector<128x512xf32>, vector<8x512xf32> -> vector<8x512xf32>
    %54 = arith.addf %51, %53 : vector<8x512xf32>
    %55 = vector.extract_strided_slice %54 {offsets = [0, 0], sizes = [8, 384], strides = [1, 1]} : vector<8x512xf32> to vector<8x384xf32>
    %56 = arith.negf %55 : vector<8x384xf32>
    %57 = math.exp %56 : vector<8x384xf32>
    %cst_29 = arith.constant 1.000000e+00 : f32
    %58 = vector.broadcast %cst_29 : f32 to vector<8x384xf32>
    %59 = arith.addf %58, %57 : vector<8x384xf32>
    %60 = arith.divf %58, %59 : vector<8x384xf32>
    %61 = vector.extract_strided_slice %60 {offsets = [0, 0], sizes = [8, 128], strides = [1, 1]} : vector<8x384xf32> to vector<8x128xf32>
    %62 = vector.extract_strided_slice %60 {offsets = [0, 128], sizes = [8, 128], strides = [1, 1]} : vector<8x384xf32> to vector<8x128xf32>
    %63 = vector.extract_strided_slice %60 {offsets = [0, 256], sizes = [8, 128], strides = [1, 1]} : vector<8x384xf32> to vector<8x128xf32>
    %64 = vector.extract_strided_slice %54 {offsets = [0, 384], sizes = [8, 128], strides = [1, 1]} : vector<8x512xf32> to vector<8x128xf32>
    %65 = math.tanh %64 : vector<8x128xf32>
    %66 = arith.mulf %62, %50 : vector<8x128xf32>
    %67 = arith.mulf %61, %65 : vector<8x128xf32>
    %68 = arith.addf %66, %67 : vector<8x128xf32>
    %69 = math.tanh %68 : vector<8x128xf32>
    %70 = arith.mulf %63, %69 : vector<8x128xf32>
    %71 = vector.extract_strided_slice %70 {offsets = [0, 0], sizes = [8, 64], strides = [1, 1]} : vector<8x128xf32> to vector<8x64xf32>
    %c0_30 = arith.constant 0 : index
    %c0_31 = arith.constant 0 : index
    %72 = vector.load %arg21[%c0_30, %c0_31] : memref<128x64xf32, #tpu.memory_space<vmem>>, vector<8x64xf32>
    tpu.vector_store %arg21[%c0_30, %c0_31], %71 {strides = array<i32>} : memref<128x64xf32, #tpu.memory_space<vmem>>, vector<8x64xf32>,
    %73 = vector.extract_strided_slice %70 {offsets = [0, 64], sizes = [8, 64], strides = [1, 1]} : vector<8x128xf32> to vector<8x64xf32>
    %c120 = arith.constant 120 : index
    %c0_32 = arith.constant 0 : index
    %74 = vector.load %arg22[%c120, %c0_32] : memref<128x64xf32, #tpu.memory_space<vmem>>, vector<8x64xf32>
    tpu.vector_store %arg22[%c120, %c0_32], %73 {strides = array<i32>} : memref<128x64xf32, #tpu.memory_space<vmem>>, vector<8x64xf32>,
    %75 = vector.extract_strided_slice %70 {offsets = [0, 64], sizes = [8, 64], strides = [1, 1]} : vector<8x128xf32> to vector<8x64xf32>
    %c8 = arith.constant 8 : index
    %c0_33 = arith.constant 0 : index
    %76 = vector.load %arg19[%c8, %c0_33] : memref<128x512xf32, #tpu.memory_space<vmem>>, vector<8x512xf32>
    %c0_34 = arith.constant 0 : index
    %c0_35 = arith.constant 0 : index
    %77 = vector.load %arg7[%c0_34, %c0_35] : memref<128x512xf32, #tpu.memory_space<vmem>>, vector<128x512xf32>
    %cst_36 = arith.constant dense<0.000000e+00> : vector<8x512xf32>
    %78 = tpu.matmul %70, %77, %cst_36 {dimension_numbers = #tpu.dot_dimension_numbers<[1], [0], [0], [1], [0, 0, 1, 1], [], []>} : vector<8x128xf32>, vector<128x512xf32>, vector<8x512xf32> -> vector<8x512xf32>
    %79 = arith.addf %76, %78 : vector<8x512xf32>
    %80 = vector.extract_strided_slice %79 {offsets = [0, 0], sizes = [8, 384], strides = [1, 1]} : vector<8x512xf32> to vector<8x384xf32>
    %81 = arith.negf %80 : vector<8x384xf32>
    %82 = math.exp %81 : vector<8x384xf32>
    %cst_37 = arith.constant 1.000000e+00 : f32
    %83 = vector.broadcast %cst_37 : f32 to vector<8x384xf32>
    %84 = arith.addf %83, %82 : vector<8x384xf32>
    %85 = arith.divf %83, %84 : vector<8x384xf32>
    %86 = vector.extract_strided_slice %85 {offsets = [0, 0], sizes = [8, 128], strides = [1, 1]} : vector<8x384xf32> to vector<8x128xf32>
    %87 = vector.extract_strided_slice %85 {offsets = [0, 128], sizes = [8, 128], strides = [1, 1]} : vector<8x384xf32> to vector<8x128xf32>
    %88 = vector.extract_strided_slice %85 {offsets = [0, 256], sizes = [8, 128], strides = [1, 1]} : vector<8x384xf32> to vector<8x128xf32>
    %89 = vector.extract_strided_slice %79 {offsets = [0, 384], sizes = [8, 128], strides = [1, 1]} : vector<8x512xf32> to vector<8x128xf32>
    %90 = math.tanh %89 : vector<8x128xf32>
    %91 = arith.mulf %87, %68 : vector<8x128xf32>
    %92 = arith.mulf %86, %90 : vector<8x128xf32>
    %93 = arith.addf %91, %92 : vector<8x128xf32>
    %94 = math.tanh %93 : vector<8x128xf32>
    %95 = arith.mulf %88, %94 : vector<8x128xf32>
    %96 = vector.extract_strided_slice %95 {offsets = [0, 0], sizes = [8, 64], strides = [1, 1]} : vector<8x128xf32> to vector<8x64xf32>
    %c8_38 = arith.constant 8 : index
    %c0_39 = arith.constant 0 : index
    %97 = vector.load %arg21[%c8_38, %c0_39] : memref<128x64xf32, #tpu.memory_space<vmem>>, vector<8x64xf32>
    tpu.vector_store %arg21[%c8_38, %c0_39], %96 {strides = array<i32>} : memref<128x64xf32, #tpu.memory_space<vmem>>, vector<8x64xf32>,
    %98 = vector.extract_strided_slice %95 {offsets = [0, 64], sizes = [8, 64], strides = [1, 1]} : vector<8x128xf32> to vector<8x64xf32>
    %c112 = arith.constant 112 : index
    %c0_40 = arith.constant 0 : index
    %99 = vector.load %arg22[%c112, %c0_40] : memref<128x64xf32, #tpu.memory_space<vmem>>, vector<8x64xf32>
    tpu.vector_store %arg22[%c112, %c0_40], %98 {strides = array<i32>} : memref<128x64xf32, #tpu.memory_space<vmem>>, vector<8x64xf32>,
    %c16 = arith.constant 16 : index
    %c0_41 = arith.constant 0 : index
    %100 = vector.load %arg19[%c16, %c0_41] : memref<128x512xf32, #tpu.memory_space<vmem>>, vector<8x512xf32>
    %c0_42 = arith.constant 0 : index
    %c0_43 = arith.constant 0 : index
    %101 = vector.load %arg7[%c0_42, %c0_43] : memref<128x512xf32, #tpu.memory_space<vmem>>, vector<128x512xf32>
    %cst_44 = arith.constant dense<0.000000e+00> : vector<8x512xf32>
    %102 = tpu.matmul %95, %101, %cst_44 {dimension_numbers = #tpu.dot_dimension_numbers<[1], [0], [0], [1], [0, 0, 1, 1], [], []>} : vector<8x128xf32>, vector<128x512xf32>, vector<8x512xf32> -> vector<8x512xf32>
    %103 = arith.addf %100, %102 : vector<8x512xf32>
    %104 = vector.extract_strided_slice %103 {offsets = [0, 0], sizes = [8, 384], strides = [1, 1]} : vector<8x512xf32> to vector<8x384xf32>
    %105 = arith.negf %104 : vector<8x384xf32>
    %106 = math.exp %105 : vector<8x384xf32>
    %cst_45 = arith.constant 1.000000e+00 : f32
    %107 = vector.broadcast %cst_45 : f32 to vector<8x384xf32>
    %108 = arith.addf %107, %106 : vector<8x384xf32>
    %109 = arith.divf %107, %108 : vector<8x384xf32>
    %110 = vector.extract_strided_slice %109 {offsets = [0, 0], sizes = [8, 128], strides = [1, 1]} : vector<8x384xf32> to vector<8x128xf32>
    %111 = vector.extract_strided_slice %109 {offsets = [0, 128], sizes = [8, 128], strides = [1, 1]} : vector<8x384xf32> to vector<8x128xf32>
    %112 = vector.extract_strided_slice %109 {offsets = [0, 256], sizes = [8, 128], strides = [1, 1]} : vector<8x384xf32> to vector<8x128xf32>
    %113 = vector.extract_strided_slice %103 {offsets = [0, 384], sizes = [8, 128], strides = [1, 1]} : vector<8x512xf32> to vector<8x128xf32>
    %114 = math.tanh %113 : vector<8x128xf32>
    %115 = arith.mulf %111, %93 : vector<8x128xf32>
    %116 = arith.mulf %110, %114 : vector<8x128xf32>
    %117 = arith.addf %115, %116 : vector<8x128xf32>
    %118 = math.tanh %117 : vector<8x128xf32>
    %119 = arith.mulf %112, %118 : vector<8x128xf32>
    %120 = vector.extract_strided_slice %119 {offsets = [0, 0], sizes = [8, 64], strides = [1, 1]} : vector<8x128xf32> to vector<8x64xf32>
    %c16_46 = arith.constant 16 : index
    %c0_47 = arith.constant 0 : index
    %121 = vector.load %arg21[%c16_46, %c0_47] : memref<128x64xf32, #tpu.memory_space<vmem>>, vector<8x64xf32>
    tpu.vector_store %arg21[%c16_46, %c0_47], %120 {strides = array<i32>} : memref<128x64xf32, #tpu.memory_space<vmem>>, vector<8x64xf32>,
    %122 = vector.extract_strided_slice %119 {offsets = [0, 64], sizes = [8, 64], strides = [1, 1]} : vector<8x128xf32> to vector<8x64xf32>
    %c104 = arith.constant 104 : index
    %c0_48 = arith.constant 0 : index
    %123 = vector.load %arg22[%c104, %c0_48] : memref<128x64xf32, #tpu.memory_space<vmem>>, vector<8x64xf32>
    tpu.vector_store %arg22[%c104, %c0_48], %122 {strides = array<i32>} : memref<128x64xf32, #tpu.memory_space<vmem>>, vector<8x64xf32>,
    %c24 = arith.constant 24 : index
    %c0_49 = arith.constant 0 : index
    %124 = vector.load %arg19[%c24, %c0_49] : memref<128x512xf32, #tpu.memory_space<vmem>>, vector<8x512xf32>
    %c0_50 = arith.constant 0 : index
    %c0_51 = arith.constant 0 : index
    %125 = vector.load %arg7[%c0_50, %c0_51] : memref<128x512xf32, #tpu.memory_space<vmem>>, vector<128x512xf32>
    %cst_52 = arith.constant dense<0.000000e+00> : vector<8x512xf32>
    %126 = tpu.matmul %119, %125, %cst_52 {dimension_numbers = #tpu.dot_dimension_numbers<[1], [0], [0], [1], [0, 0, 1, 1], [], []>} : vector<8x128xf32>, vector<128x512xf32>, vector<8x512xf32> -> vector<8x512xf32>
    %127 = arith.addf %124, %126 : vector<8x512xf32>
    %128 = vector.extract_strided_slice %127 {offsets = [0, 0], sizes = [8, 384], strides = [1, 1]} : vector<8x512xf32> to vector<8x384xf32>
    %129 = arith.negf %128 : vector<8x384xf32>
    %130 = math.exp %129 : vector<8x384xf32>
    %cst_53 = arith.constant 1.000000e+00 : f32
    %131 = vector.broadcast %cst_53 : f32 to vector<8x384xf32>
    %132 = arith.addf %131, %130 : vector<8x384xf32>
    %133 = arith.divf %131, %132 : vector<8x384xf32>
    %134 = vector.extract_strided_slice %133 {offsets = [0, 0], sizes = [8, 128], strides = [1, 1]} : vector<8x384xf32> to vector<8x128xf32>
    %135 = vector.extract_strided_slice %133 {offsets = [0, 128], sizes = [8, 128], strides = [1, 1]} : vector<8x384xf32> to vector<8x128xf32>
    %136 = vector.extract_strided_slice %133 {offsets = [0, 256], sizes = [8, 128], strides = [1, 1]} : vector<8x384xf32> to vector<8x128xf32>
    %137 = vector.extract_strided_slice %127 {offsets = [0, 384], sizes = [8, 128], strides = [1, 1]} : vector<8x512xf32> to vector<8x128xf32>
    %138 = math.tanh %137 : vector<8x128xf32>
    %139 = arith.mulf %135, %117 : vector<8x128xf32>
    %140 = arith.mulf %134, %138 : vector<8x128xf32>
    %141 = arith.addf %139, %140 : vector<8x128xf32>
    %142 = math.tanh %141 : vector<8x128xf32>
    %143 = arith.mulf %136, %142 : vector<8x128xf32>
    %144 = vector.extract_strided_slice %143 {offsets = [0, 0], sizes = [8, 64], strides = [1, 1]} : vector<8x128xf32> to vector<8x64xf32>
    %c24_54 = arith.constant 24 : index
    %c0_55 = arith.constant 0 : index
    %145 = vector.load %arg21[%c24_54, %c0_55] : memref<128x64xf32, #tpu.memory_space<vmem>>, vector<8x64xf32>
    tpu.vector_store %arg21[%c24_54, %c0_55], %144 {strides = array<i32>} : memref<128x64xf32, #tpu.memory_space<vmem>>, vector<8x64xf32>,
    %146 = vector.extract_strided_slice %143 {offsets = [0, 64], sizes = [8, 64], strides = [1, 1]} : vector<8x128xf32> to vector<8x64xf32>
    %c96 = arith.constant 96 : index
    %c0_56 = arith.constant 0 : index
    %147 = vector.load %arg22[%c96, %c0_56] : memref<128x64xf32, #tpu.memory_space<vmem>>, vector<8x64xf32>
    tpu.vector_store %arg22[%c96, %c0_56], %146 {strides = array<i32>} : memref<128x64xf32, #tpu.memory_space<vmem>>, vector<8x64xf32>,
    %c32 = arith.constant 32 : index
    %c0_57 = arith.constant 0 : index
    %148 = vector.load %arg19[%c32, %c0_57] : memref<128x512xf32, #tpu.memory_space<vmem>>, vector<8x512xf32>
    %c0_58 = arith.constant 0 : index
    %c0_59 = arith.constant 0 : index
    %149 = vector.load %arg7[%c0_58, %c0_59] : memref<128x512xf32, #tpu.memory_space<vmem>>, vector<128x512xf32>
    %cst_60 = arith.constant dense<0.000000e+00> : vector<8x512xf32>
    %150 = tpu.matmul %143, %149, %cst_60 {dimension_numbers = #tpu.dot_dimension_numbers<[1], [0], [0], [1], [0, 0, 1, 1], [], []>} : vector<8x128xf32>, vector<128x512xf32>, vector<8x512xf32> -> vector<8x512xf32>
    %151 = arith.addf %148, %150 : vector<8x512xf32>
    %152 = vector.extract_strided_slice %151 {offsets = [0, 0], sizes = [8, 384], strides = [1, 1]} : vector<8x512xf32> to vector<8x384xf32>
    %153 = arith.negf %152 : vector<8x384xf32>
    %154 = math.exp %153 : vector<8x384xf32>
    %cst_61 = arith.constant 1.000000e+00 : f32
    %155 = vector.broadcast %cst_61 : f32 to vector<8x384xf32>
    %156 = arith.addf %155, %154 : vector<8x384xf32>
    %157 = arith.divf %155, %156 : vector<8x384xf32>
    %158 = vector.extract_strided_slice %157 {offsets = [0, 0], sizes = [8, 128], strides = [1, 1]} : vector<8x384xf32> to vector<8x128xf32>
    %159 = vector.extract_strided_slice %157 {offsets = [0, 128], sizes = [8, 128], strides = [1, 1]} : vector<8x384xf32> to vector<8x128xf32>
    %160 = vector.extract_strided_slice %157 {offsets = [0, 256], sizes = [8, 128], strides = [1, 1]} : vector<8x384xf32> to vector<8x128xf32>
    %161 = vector.extract_strided_slice %151 {offsets = [0, 384], sizes = [8, 128], strides = [1, 1]} : vector<8x512xf32> to vector<8x128xf32>
    %162 = math.tanh %161 : vector<8x128xf32>
    %163 = arith.mulf %159, %141 : vector<8x128xf32>
    %164 = arith.mulf %158, %162 : vector<8x128xf32>
    %165 = arith.addf %163, %164 : vector<8x128xf32>
    %166 = math.tanh %165 : vector<8x128xf32>
    %167 = arith.mulf %160, %166 : vector<8x128xf32>
    %168 = vector.extract_strided_slice %167 {offsets = [0, 0], sizes = [8, 64], strides = [1, 1]} : vector<8x128xf32> to vector<8x64xf32>
    %c32_62 = arith.constant 32 : index
    %c0_63 = arith.constant 0 : index
    %169 = vector.load %arg21[%c32_62, %c0_63] : memref<128x64xf32, #tpu.memory_space<vmem>>, vector<8x64xf32>
    tpu.vector_store %arg21[%c32_62, %c0_63], %168 {strides = array<i32>} : memref<128x64xf32, #tpu.memory_space<vmem>>, vector<8x64xf32>,
    %170 = vector.extract_strided_slice %167 {offsets = [0, 64], sizes = [8, 64], strides = [1, 1]} : vector<8x128xf32> to vector<8x64xf32>
    %c88 = arith.constant 88 : index
    %c0_64 = arith.constant 0 : index
    %171 = vector.load %arg22[%c88, %c0_64] : memref<128x64xf32, #tpu.memory_space<vmem>>, vector<8x64xf32>
    tpu.vector_store %arg22[%c88, %c0_64], %170 {strides = array<i32>} : memref<128x64xf32, #tpu.memory_space<vmem>>, vector<8x64xf32>,
    %c40 = arith.constant 40 : index
    %c0_65 = arith.constant 0 : index
    %172 = vector.load %arg19[%c40, %c0_65] : memref<128x512xf32, #tpu.memory_space<vmem>>, vector<8x512xf32>
    %c0_66 = arith.constant 0 : index
    %c0_67 = arith.constant 0 : index
    %173 = vector.load %arg7[%c0_66, %c0_67] : memref<128x512xf32, #tpu.memory_space<vmem>>, vector<128x512xf32>
    %cst_68 = arith.constant dense<0.000000e+00> : vector<8x512xf32>
    %174 = tpu.matmul %167, %173, %cst_68 {dimension_numbers = #tpu.dot_dimension_numbers<[1], [0], [0], [1], [0, 0, 1, 1], [], []>} : vector<8x128xf32>, vector<128x512xf32>, vector<8x512xf32> -> vector<8x512xf32>
    %175 = arith.addf %172, %174 : vector<8x512xf32>
    %176 = vector.extract_strided_slice %175 {offsets = [0, 0], sizes = [8, 384], strides = [1, 1]} : vector<8x512xf32> to vector<8x384xf32>
    %177 = arith.negf %176 : vector<8x384xf32>
    %178 = math.exp %177 : vector<8x384xf32>
    %cst_69 = arith.constant 1.000000e+00 : f32
    %179 = vector.broadcast %cst_69 : f32 to vector<8x384xf32>
    %180 = arith.addf %179, %178 : vector<8x384xf32>
    %181 = arith.divf %179, %180 : vector<8x384xf32>
    %182 = vector.extract_strided_slice %181 {offsets = [0, 0], sizes = [8, 128], strides = [1, 1]} : vector<8x384xf32> to vector<8x128xf32>
    %183 = vector.extract_strided_slice %181 {offsets = [0, 128], sizes = [8, 128], strides = [1, 1]} : vector<8x384xf32> to vector<8x128xf32>
    %184 = vector.extract_strided_slice %181 {offsets = [0, 256], sizes = [8, 128], strides = [1, 1]} : vector<8x384xf32> to vector<8x128xf32>
    %185 = vector.extract_strided_slice %175 {offsets = [0, 384], sizes = [8, 128], strides = [1, 1]} : vector<8x512xf32> to vector<8x128xf32>
    %186 = math.tanh %185 : vector<8x128xf32>
    %187 = arith.mulf %183, %165 : vector<8x128xf32>
    %188 = arith.mulf %182, %186 : vector<8x128xf32>
    %189 = arith.addf %187, %188 : vector<8x128xf32>
    %190 = math.tanh %189 : vector<8x128xf32>
    %191 = arith.mulf %184, %190 : vector<8x128xf32>
    %192 = vector.extract_strided_slice %191 {offsets = [0, 0], sizes = [8, 64], strides = [1, 1]} : vector<8x128xf32> to vector<8x64xf32>
    %c40_70 = arith.constant 40 : index
    %c0_71 = arith.constant 0 : index
    %193 = vector.load %arg21[%c40_70, %c0_71] : memref<128x64xf32, #tpu.memory_space<vmem>>, vector<8x64xf32>
    tpu.vector_store %arg21[%c40_70, %c0_71], %192 {strides = array<i32>} : memref<128x64xf32, #tpu.memory_space<vmem>>, vector<8x64xf32>,
    %194 = vector.extract_strided_slice %191 {offsets = [0, 64], sizes = [8, 64], strides = [1, 1]} : vector<8x128xf32> to vector<8x64xf32>
    %c80 = arith.constant 80 : index
    %c0_72 = arith.constant 0 : index
    %195 = vector.load %arg22[%c80, %c0_72] : memref<128x64xf32, #tpu.memory_space<vmem>>, vector<8x64xf32>
    tpu.vector_store %arg22[%c80, %c0_72], %194 {strides = array<i32>} : memref<128x64xf32, #tpu.memory_space<vmem>>, vector<8x64xf32>,
    %c48 = arith.constant 48 : index
    %c0_73 = arith.constant 0 : index
    %196 = vector.load %arg19[%c48, %c0_73] : memref<128x512xf32, #tpu.memory_space<vmem>>, vector<8x512xf32>
    %c0_74 = arith.constant 0 : index
    %c0_75 = arith.constant 0 : index
    %197 = vector.load %arg7[%c0_74, %c0_75] : memref<128x512xf32, #tpu.memory_space<vmem>>, vector<128x512xf32>
    %cst_76 = arith.constant dense<0.000000e+00> : vector<8x512xf32>
    %198 = tpu.matmul %191, %197, %cst_76 {dimension_numbers = #tpu.dot_dimension_numbers<[1], [0], [0], [1], [0, 0, 1, 1], [], []>} : vector<8x128xf32>, vector<128x512xf32>, vector<8x512xf32> -> vector<8x512xf32>
    %199 = arith.addf %196, %198 : vector<8x512xf32>
    %200 = vector.extract_strided_slice %199 {offsets = [0, 0], sizes = [8, 384], strides = [1, 1]} : vector<8x512xf32> to vector<8x384xf32>
    %201 = arith.negf %200 : vector<8x384xf32>
    %202 = math.exp %201 : vector<8x384xf32>
    %cst_77 = arith.constant 1.000000e+00 : f32
    %203 = vector.broadcast %cst_77 : f32 to vector<8x384xf32>
    %204 = arith.addf %203, %202 : vector<8x384xf32>
    %205 = arith.divf %203, %204 : vector<8x384xf32>
    %206 = vector.extract_strided_slice %205 {offsets = [0, 0], sizes = [8, 128], strides = [1, 1]} : vector<8x384xf32> to vector<8x128xf32>
    %207 = vector.extract_strided_slice %205 {offsets = [0, 128], sizes = [8, 128], strides = [1, 1]} : vector<8x384xf32> to vector<8x128xf32>
    %208 = vector.extract_strided_slice %205 {offsets = [0, 256], sizes = [8, 128], strides = [1, 1]} : vector<8x384xf32> to vector<8x128xf32>
    %209 = vector.extract_strided_slice %199 {offsets = [0, 384], sizes = [8, 128], strides = [1, 1]} : vector<8x512xf32> to vector<8x128xf32>
    %210 = math.tanh %209 : vector<8x128xf32>
    %211 = arith.mulf %207, %189 : vector<8x128xf32>
    %212 = arith.mulf %206, %210 : vector<8x128xf32>
    %213 = arith.addf %211, %212 : vector<8x128xf32>
    %214 = math.tanh %213 : vector<8x128xf32>
    %215 = arith.mulf %208, %214 : vector<8x128xf32>
    %216 = vector.extract_strided_slice %215 {offsets = [0, 0], sizes = [8, 64], strides = [1, 1]} : vector<8x128xf32> to vector<8x64xf32>
    %c48_78 = arith.constant 48 : index
    %c0_79 = arith.constant 0 : index
    %217 = vector.load %arg21[%c48_78, %c0_79] : memref<128x64xf32, #tpu.memory_space<vmem>>, vector<8x64xf32>
    tpu.vector_store %arg21[%c48_78, %c0_79], %216 {strides = array<i32>} : memref<128x64xf32, #tpu.memory_space<vmem>>, vector<8x64xf32>,
    %218 = vector.extract_strided_slice %215 {offsets = [0, 64], sizes = [8, 64], strides = [1, 1]} : vector<8x128xf32> to vector<8x64xf32>
    %c72 = arith.constant 72 : index
    %c0_80 = arith.constant 0 : index
    %219 = vector.load %arg22[%c72, %c0_80] : memref<128x64xf32, #tpu.memory_space<vmem>>, vector<8x64xf32>
    tpu.vector_store %arg22[%c72, %c0_80], %218 {strides = array<i32>} : memref<128x64xf32, #tpu.memory_space<vmem>>, vector<8x64xf32>,
    %c56 = arith.constant 56 : index
    %c0_81 = arith.constant 0 : index
    %220 = vector.load %arg19[%c56, %c0_81] : memref<128x512xf32, #tpu.memory_space<vmem>>, vector<8x512xf32>
    %c0_82 = arith.constant 0 : index
    %c0_83 = arith.constant 0 : index
    %221 = vector.load %arg7[%c0_82, %c0_83] : memref<128x512xf32, #tpu.memory_space<vmem>>, vector<128x512xf32>
    %cst_84 = arith.constant dense<0.000000e+00> : vector<8x512xf32>
    %222 = tpu.matmul %215, %221, %cst_84 {dimension_numbers = #tpu.dot_dimension_numbers<[1], [0], [0], [1], [0, 0, 1, 1], [], []>} : vector<8x128xf32>, vector<128x512xf32>, vector<8x512xf32> -> vector<8x512xf32>
    %223 = arith.addf %220, %222 : vector<8x512xf32>
    %224 = vector.extract_strided_slice %223 {offsets = [0, 0], sizes = [8, 384], strides = [1, 1]} : vector<8x512xf32> to vector<8x384xf32>
    %225 = arith.negf %224 : vector<8x384xf32>
    %226 = math.exp %225 : vector<8x384xf32>
    %cst_85 = arith.constant 1.000000e+00 : f32
    %227 = vector.broadcast %cst_85 : f32 to vector<8x384xf32>
    %228 = arith.addf %227, %226 : vector<8x384xf32>
    %229 = arith.divf %227, %228 : vector<8x384xf32>
    %230 = vector.extract_strided_slice %229 {offsets = [0, 0], sizes = [8, 128], strides = [1, 1]} : vector<8x384xf32> to vector<8x128xf32>
    %231 = vector.extract_strided_slice %229 {offsets = [0, 128], sizes = [8, 128], strides = [1, 1]} : vector<8x384xf32> to vector<8x128xf32>
    %232 = vector.extract_strided_slice %229 {offsets = [0, 256], sizes = [8, 128], strides = [1, 1]} : vector<8x384xf32> to vector<8x128xf32>
    %233 = vector.extract_strided_slice %223 {offsets = [0, 384], sizes = [8, 128], strides = [1, 1]} : vector<8x512xf32> to vector<8x128xf32>
    %234 = math.tanh %233 : vector<8x128xf32>
    %235 = arith.mulf %231, %213 : vector<8x128xf32>
    %236 = arith.mulf %230, %234 : vector<8x128xf32>
    %237 = arith.addf %235, %236 : vector<8x128xf32>
    %238 = math.tanh %237 : vector<8x128xf32>
    %239 = arith.mulf %232, %238 : vector<8x128xf32>
    %240 = vector.extract_strided_slice %239 {offsets = [0, 0], sizes = [8, 64], strides = [1, 1]} : vector<8x128xf32> to vector<8x64xf32>
    %c56_86 = arith.constant 56 : index
    %c0_87 = arith.constant 0 : index
    %241 = vector.load %arg21[%c56_86, %c0_87] : memref<128x64xf32, #tpu.memory_space<vmem>>, vector<8x64xf32>
    tpu.vector_store %arg21[%c56_86, %c0_87], %240 {strides = array<i32>} : memref<128x64xf32, #tpu.memory_space<vmem>>, vector<8x64xf32>,
    %242 = vector.extract_strided_slice %239 {offsets = [0, 64], sizes = [8, 64], strides = [1, 1]} : vector<8x128xf32> to vector<8x64xf32>
    %c64 = arith.constant 64 : index
    %c0_88 = arith.constant 0 : index
    %243 = vector.load %arg22[%c64, %c0_88] : memref<128x64xf32, #tpu.memory_space<vmem>>, vector<8x64xf32>
    tpu.vector_store %arg22[%c64, %c0_88], %242 {strides = array<i32>} : memref<128x64xf32, #tpu.memory_space<vmem>>, vector<8x64xf32>,
    %c64_89 = arith.constant 64 : index
    %c0_90 = arith.constant 0 : index
    %244 = vector.load %arg19[%c64_89, %c0_90] : memref<128x512xf32, #tpu.memory_space<vmem>>, vector<8x512xf32>
    %c0_91 = arith.constant 0 : index
    %c0_92 = arith.constant 0 : index
    %245 = vector.load %arg7[%c0_91, %c0_92] : memref<128x512xf32, #tpu.memory_space<vmem>>, vector<128x512xf32>
    %cst_93 = arith.constant dense<0.000000e+00> : vector<8x512xf32>
    %246 = tpu.matmul %239, %245, %cst_93 {dimension_numbers = #tpu.dot_dimension_numbers<[1], [0], [0], [1], [0, 0, 1, 1], [], []>} : vector<8x128xf32>, vector<128x512xf32>, vector<8x512xf32> -> vector<8x512xf32>
    %247 = arith.addf %244, %246 : vector<8x512xf32>
    %248 = vector.extract_strided_slice %247 {offsets = [0, 0], sizes = [8, 384], strides = [1, 1]} : vector<8x512xf32> to vector<8x384xf32>
    %249 = arith.negf %248 : vector<8x384xf32>
    %250 = math.exp %249 : vector<8x384xf32>
    %cst_94 = arith.constant 1.000000e+00 : f32
    %251 = vector.broadcast %cst_94 : f32 to vector<8x384xf32>
    %252 = arith.addf %251, %250 : vector<8x384xf32>
    %253 = arith.divf %251, %252 : vector<8x384xf32>
    %254 = vector.extract_strided_slice %253 {offsets = [0, 0], sizes = [8, 128], strides = [1, 1]} : vector<8x384xf32> to vector<8x128xf32>
    %255 = vector.extract_strided_slice %253 {offsets = [0, 128], sizes = [8, 128], strides = [1, 1]} : vector<8x384xf32> to vector<8x128xf32>
    %256 = vector.extract_strided_slice %253 {offsets = [0, 256], sizes = [8, 128], strides = [1, 1]} : vector<8x384xf32> to vector<8x128xf32>
    %257 = vector.extract_strided_slice %247 {offsets = [0, 384], sizes = [8, 128], strides = [1, 1]} : vector<8x512xf32> to vector<8x128xf32>
    %258 = math.tanh %257 : vector<8x128xf32>
    %259 = arith.mulf %255, %237 : vector<8x128xf32>
    %260 = arith.mulf %254, %258 : vector<8x128xf32>
    %261 = arith.addf %259, %260 : vector<8x128xf32>
    %262 = math.tanh %261 : vector<8x128xf32>
    %263 = arith.mulf %256, %262 : vector<8x128xf32>
    %264 = vector.extract_strided_slice %263 {offsets = [0, 0], sizes = [8, 64], strides = [1, 1]} : vector<8x128xf32> to vector<8x64xf32>
    %c64_95 = arith.constant 64 : index
    %c0_96 = arith.constant 0 : index
    %265 = vector.load %arg21[%c64_95, %c0_96] : memref<128x64xf32, #tpu.memory_space<vmem>>, vector<8x64xf32>
    tpu.vector_store %arg21[%c64_95, %c0_96], %264 {strides = array<i32>} : memref<128x64xf32, #tpu.memory_space<vmem>>, vector<8x64xf32>,
    %266 = vector.extract_strided_slice %263 {offsets = [0, 64], sizes = [8, 64], strides = [1, 1]} : vector<8x128xf32> to vector<8x64xf32>
    %c56_97 = arith.constant 56 : index
    %c0_98 = arith.constant 0 : index
    %267 = vector.load %arg22[%c56_97, %c0_98] : memref<128x64xf32, #tpu.memory_space<vmem>>, vector<8x64xf32>
    tpu.vector_store %arg22[%c56_97, %c0_98], %266 {strides = array<i32>} : memref<128x64xf32, #tpu.memory_space<vmem>>, vector<8x64xf32>,
    %c72_99 = arith.constant 72 : index
    %c0_100 = arith.constant 0 : index
    %268 = vector.load %arg19[%c72_99, %c0_100] : memref<128x512xf32, #tpu.memory_space<vmem>>, vector<8x512xf32>
    %c0_101 = arith.constant 0 : index
    %c0_102 = arith.constant 0 : index
    %269 = vector.load %arg7[%c0_101, %c0_102] : memref<128x512xf32, #tpu.memory_space<vmem>>, vector<128x512xf32>
    %cst_103 = arith.constant dense<0.000000e+00> : vector<8x512xf32>
    %270 = tpu.matmul %263, %269, %cst_103 {dimension_numbers = #tpu.dot_dimension_numbers<[1], [0], [0], [1], [0, 0, 1, 1], [], []>} : vector<8x128xf32>, vector<128x512xf32>, vector<8x512xf32> -> vector<8x512xf32>
    %271 = arith.addf %268, %270 : vector<8x512xf32>
    %272 = vector.extract_strided_slice %271 {offsets = [0, 0], sizes = [8, 384], strides = [1, 1]} : vector<8x512xf32> to vector<8x384xf32>
    %273 = arith.negf %272 : vector<8x384xf32>
    %274 = math.exp %273 : vector<8x384xf32>
    %cst_104 = arith.constant 1.000000e+00 : f32
    %275 = vector.broadcast %cst_104 : f32 to vector<8x384xf32>
    %276 = arith.addf %275, %274 : vector<8x384xf32>
    %277 = arith.divf %275, %276 : vector<8x384xf32>
    %278 = vector.extract_strided_slice %277 {offsets = [0, 0], sizes = [8, 128], strides = [1, 1]} : vector<8x384xf32> to vector<8x128xf32>
    %279 = vector.extract_strided_slice %277 {offsets = [0, 128], sizes = [8, 128], strides = [1, 1]} : vector<8x384xf32> to vector<8x128xf32>
    %280 = vector.extract_strided_slice %277 {offsets = [0, 256], sizes = [8, 128], strides = [1, 1]} : vector<8x384xf32> to vector<8x128xf32>
    %281 = vector.extract_strided_slice %271 {offsets = [0, 384], sizes = [8, 128], strides = [1, 1]} : vector<8x512xf32> to vector<8x128xf32>
    %282 = math.tanh %281 : vector<8x128xf32>
    %283 = arith.mulf %279, %261 : vector<8x128xf32>
    %284 = arith.mulf %278, %282 : vector<8x128xf32>
    %285 = arith.addf %283, %284 : vector<8x128xf32>
    %286 = math.tanh %285 : vector<8x128xf32>
    %287 = arith.mulf %280, %286 : vector<8x128xf32>
    %288 = vector.extract_strided_slice %287 {offsets = [0, 0], sizes = [8, 64], strides = [1, 1]} : vector<8x128xf32> to vector<8x64xf32>
    %c72_105 = arith.constant 72 : index
    %c0_106 = arith.constant 0 : index
    %289 = vector.load %arg21[%c72_105, %c0_106] : memref<128x64xf32, #tpu.memory_space<vmem>>, vector<8x64xf32>
    tpu.vector_store %arg21[%c72_105, %c0_106], %288 {strides = array<i32>} : memref<128x64xf32, #tpu.memory_space<vmem>>, vector<8x64xf32>,
    %290 = vector.extract_strided_slice %287 {offsets = [0, 64], sizes = [8, 64], strides = [1, 1]} : vector<8x128xf32> to vector<8x64xf32>
    %c48_107 = arith.constant 48 : index
    %c0_108 = arith.constant 0 : index
    %291 = vector.load %arg22[%c48_107, %c0_108] : memref<128x64xf32, #tpu.memory_space<vmem>>, vector<8x64xf32>
    tpu.vector_store %arg22[%c48_107, %c0_108], %290 {strides = array<i32>} : memref<128x64xf32, #tpu.memory_space<vmem>>, vector<8x64xf32>,
    %c80_109 = arith.constant 80 : index
    %c0_110 = arith.constant 0 : index
    %292 = vector.load %arg19[%c80_109, %c0_110] : memref<128x512xf32, #tpu.memory_space<vmem>>, vector<8x512xf32>
    %c0_111 = arith.constant 0 : index
    %c0_112 = arith.constant 0 : index
    %293 = vector.load %arg7[%c0_111, %c0_112] : memref<128x512xf32, #tpu.memory_space<vmem>>, vector<128x512xf32>
    %cst_113 = arith.constant dense<0.000000e+00> : vector<8x512xf32>
    %294 = tpu.matmul %287, %293, %cst_113 {dimension_numbers = #tpu.dot_dimension_numbers<[1], [0], [0], [1], [0, 0, 1, 1], [], []>} : vector<8x128xf32>, vector<128x512xf32>, vector<8x512xf32> -> vector<8x512xf32>
    %295 = arith.addf %292, %294 : vector<8x512xf32>
    %296 = vector.extract_strided_slice %295 {offsets = [0, 0], sizes = [8, 384], strides = [1, 1]} : vector<8x512xf32> to vector<8x384xf32>
    %297 = arith.negf %296 : vector<8x384xf32>
    %298 = math.exp %297 : vector<8x384xf32>
    %cst_114 = arith.constant 1.000000e+00 : f32
    %299 = vector.broadcast %cst_114 : f32 to vector<8x384xf32>
    %300 = arith.addf %299, %298 : vector<8x384xf32>
    %301 = arith.divf %299, %300 : vector<8x384xf32>
    %302 = vector.extract_strided_slice %301 {offsets = [0, 0], sizes = [8, 128], strides = [1, 1]} : vector<8x384xf32> to vector<8x128xf32>
    %303 = vector.extract_strided_slice %301 {offsets = [0, 128], sizes = [8, 128], strides = [1, 1]} : vector<8x384xf32> to vector<8x128xf32>
    %304 = vector.extract_strided_slice %301 {offsets = [0, 256], sizes = [8, 128], strides = [1, 1]} : vector<8x384xf32> to vector<8x128xf32>
    %305 = vector.extract_strided_slice %295 {offsets = [0, 384], sizes = [8, 128], strides = [1, 1]} : vector<8x512xf32> to vector<8x128xf32>
    %306 = math.tanh %305 : vector<8x128xf32>
    %307 = arith.mulf %303, %285 : vector<8x128xf32>
    %308 = arith.mulf %302, %306 : vector<8x128xf32>
    %309 = arith.addf %307, %308 : vector<8x128xf32>
    %310 = math.tanh %309 : vector<8x128xf32>
    %311 = arith.mulf %304, %310 : vector<8x128xf32>
    %312 = vector.extract_strided_slice %311 {offsets = [0, 0], sizes = [8, 64], strides = [1, 1]} : vector<8x128xf32> to vector<8x64xf32>
    %c80_115 = arith.constant 80 : index
    %c0_116 = arith.constant 0 : index
    %313 = vector.load %arg21[%c80_115, %c0_116] : memref<128x64xf32, #tpu.memory_space<vmem>>, vector<8x64xf32>
    tpu.vector_store %arg21[%c80_115, %c0_116], %312 {strides = array<i32>} : memref<128x64xf32, #tpu.memory_space<vmem>>, vector<8x64xf32>,
    %314 = vector.extract_strided_slice %311 {offsets = [0, 64], sizes = [8, 64], strides = [1, 1]} : vector<8x128xf32> to vector<8x64xf32>
    %c40_117 = arith.constant 40 : index
    %c0_118 = arith.constant 0 : index
    %315 = vector.load %arg22[%c40_117, %c0_118] : memref<128x64xf32, #tpu.memory_space<vmem>>, vector<8x64xf32>
    tpu.vector_store %arg22[%c40_117, %c0_118], %314 {strides = array<i32>} : memref<128x64xf32, #tpu.memory_space<vmem>>, vector<8x64xf32>,
    %c88_119 = arith.constant 88 : index
    %c0_120 = arith.constant 0 : index
    %316 = vector.load %arg19[%c88_119, %c0_120] : memref<128x512xf32, #tpu.memory_space<vmem>>, vector<8x512xf32>
    %c0_121 = arith.constant 0 : index
    %c0_122 = arith.constant 0 : index
    %317 = vector.load %arg7[%c0_121, %c0_122] : memref<128x512xf32, #tpu.memory_space<vmem>>, vector<128x512xf32>
    %cst_123 = arith.constant dense<0.000000e+00> : vector<8x512xf32>
    %318 = tpu.matmul %311, %317, %cst_123 {dimension_numbers = #tpu.dot_dimension_numbers<[1], [0], [0], [1], [0, 0, 1, 1], [], []>} : vector<8x128xf32>, vector<128x512xf32>, vector<8x512xf32> -> vector<8x512xf32>
    %319 = arith.addf %316, %318 : vector<8x512xf32>
    %320 = vector.extract_strided_slice %319 {offsets = [0, 0], sizes = [8, 384], strides = [1, 1]} : vector<8x512xf32> to vector<8x384xf32>
    %321 = arith.negf %320 : vector<8x384xf32>
    %322 = math.exp %321 : vector<8x384xf32>
    %cst_124 = arith.constant 1.000000e+00 : f32
    %323 = vector.broadcast %cst_124 : f32 to vector<8x384xf32>
    %324 = arith.addf %323, %322 : vector<8x384xf32>
    %325 = arith.divf %323, %324 : vector<8x384xf32>
    %326 = vector.extract_strided_slice %325 {offsets = [0, 0], sizes = [8, 128], strides = [1, 1]} : vector<8x384xf32> to vector<8x128xf32>
    %327 = vector.extract_strided_slice %325 {offsets = [0, 128], sizes = [8, 128], strides = [1, 1]} : vector<8x384xf32> to vector<8x128xf32>
    %328 = vector.extract_strided_slice %325 {offsets = [0, 256], sizes = [8, 128], strides = [1, 1]} : vector<8x384xf32> to vector<8x128xf32>
    %329 = vector.extract_strided_slice %319 {offsets = [0, 384], sizes = [8, 128], strides = [1, 1]} : vector<8x512xf32> to vector<8x128xf32>
    %330 = math.tanh %329 : vector<8x128xf32>
    %331 = arith.mulf %327, %309 : vector<8x128xf32>
    %332 = arith.mulf %326, %330 : vector<8x128xf32>
    %333 = arith.addf %331, %332 : vector<8x128xf32>
    %334 = math.tanh %333 : vector<8x128xf32>
    %335 = arith.mulf %328, %334 : vector<8x128xf32>
    %336 = vector.extract_strided_slice %335 {offsets = [0, 0], sizes = [8, 64], strides = [1, 1]} : vector<8x128xf32> to vector<8x64xf32>
    %c88_125 = arith.constant 88 : index
    %c0_126 = arith.constant 0 : index
    %337 = vector.load %arg21[%c88_125, %c0_126] : memref<128x64xf32, #tpu.memory_space<vmem>>, vector<8x64xf32>
    tpu.vector_store %arg21[%c88_125, %c0_126], %336 {strides = array<i32>} : memref<128x64xf32, #tpu.memory_space<vmem>>, vector<8x64xf32>,
    %338 = vector.extract_strided_slice %335 {offsets = [0, 64], sizes = [8, 64], strides = [1, 1]} : vector<8x128xf32> to vector<8x64xf32>
    %c32_127 = arith.constant 32 : index
    %c0_128 = arith.constant 0 : index
    %339 = vector.load %arg22[%c32_127, %c0_128] : memref<128x64xf32, #tpu.memory_space<vmem>>, vector<8x64xf32>
    tpu.vector_store %arg22[%c32_127, %c0_128], %338 {strides = array<i32>} : memref<128x64xf32, #tpu.memory_space<vmem>>, vector<8x64xf32>,
    %c96_129 = arith.constant 96 : index
    %c0_130 = arith.constant 0 : index
    %340 = vector.load %arg19[%c96_129, %c0_130] : memref<128x512xf32, #tpu.memory_space<vmem>>, vector<8x512xf32>
    %c0_131 = arith.constant 0 : index
    %c0_132 = arith.constant 0 : index
    %341 = vector.load %arg7[%c0_131, %c0_132] : memref<128x512xf32, #tpu.memory_space<vmem>>, vector<128x512xf32>
    %cst_133 = arith.constant dense<0.000000e+00> : vector<8x512xf32>
    %342 = tpu.matmul %335, %341, %cst_133 {dimension_numbers = #tpu.dot_dimension_numbers<[1], [0], [0], [1], [0, 0, 1, 1], [], []>} : vector<8x128xf32>, vector<128x512xf32>, vector<8x512xf32> -> vector<8x512xf32>
    %343 = arith.addf %340, %342 : vector<8x512xf32>
    %344 = vector.extract_strided_slice %343 {offsets = [0, 0], sizes = [8, 384], strides = [1, 1]} : vector<8x512xf32> to vector<8x384xf32>
    %345 = arith.negf %344 : vector<8x384xf32>
    %346 = math.exp %345 : vector<8x384xf32>
    %cst_134 = arith.constant 1.000000e+00 : f32
    %347 = vector.broadcast %cst_134 : f32 to vector<8x384xf32>
    %348 = arith.addf %347, %346 : vector<8x384xf32>
    %349 = arith.divf %347, %348 : vector<8x384xf32>
    %350 = vector.extract_strided_slice %349 {offsets = [0, 0], sizes = [8, 128], strides = [1, 1]} : vector<8x384xf32> to vector<8x128xf32>
    %351 = vector.extract_strided_slice %349 {offsets = [0, 128], sizes = [8, 128], strides = [1, 1]} : vector<8x384xf32> to vector<8x128xf32>
    %352 = vector.extract_strided_slice %349 {offsets = [0, 256], sizes = [8, 128], strides = [1, 1]} : vector<8x384xf32> to vector<8x128xf32>
    %353 = vector.extract_strided_slice %343 {offsets = [0, 384], sizes = [8, 128], strides = [1, 1]} : vector<8x512xf32> to vector<8x128xf32>
    %354 = math.tanh %353 : vector<8x128xf32>
    %355 = arith.mulf %351, %333 : vector<8x128xf32>
    %356 = arith.mulf %350, %354 : vector<8x128xf32>
    %357 = arith.addf %355, %356 : vector<8x128xf32>
    %358 = math.tanh %357 : vector<8x128xf32>
    %359 = arith.mulf %352, %358 : vector<8x128xf32>
    %360 = vector.extract_strided_slice %359 {offsets = [0, 0], sizes = [8, 64], strides = [1, 1]} : vector<8x128xf32> to vector<8x64xf32>
    %c96_135 = arith.constant 96 : index
    %c0_136 = arith.constant 0 : index
    %361 = vector.load %arg21[%c96_135, %c0_136] : memref<128x64xf32, #tpu.memory_space<vmem>>, vector<8x64xf32>
    tpu.vector_store %arg21[%c96_135, %c0_136], %360 {strides = array<i32>} : memref<128x64xf32, #tpu.memory_space<vmem>>, vector<8x64xf32>,
    %362 = vector.extract_strided_slice %359 {offsets = [0, 64], sizes = [8, 64], strides = [1, 1]} : vector<8x128xf32> to vector<8x64xf32>
    %c24_137 = arith.constant 24 : index
    %c0_138 = arith.constant 0 : index
    %363 = vector.load %arg22[%c24_137, %c0_138] : memref<128x64xf32, #tpu.memory_space<vmem>>, vector<8x64xf32>
    tpu.vector_store %arg22[%c24_137, %c0_138], %362 {strides = array<i32>} : memref<128x64xf32, #tpu.memory_space<vmem>>, vector<8x64xf32>,
    %c104_139 = arith.constant 104 : index
    %c0_140 = arith.constant 0 : index
    %364 = vector.load %arg19[%c104_139, %c0_140] : memref<128x512xf32, #tpu.memory_space<vmem>>, vector<8x512xf32>
    %c0_141 = arith.constant 0 : index
    %c0_142 = arith.constant 0 : index
    %365 = vector.load %arg7[%c0_141, %c0_142] : memref<128x512xf32, #tpu.memory_space<vmem>>, vector<128x512xf32>
    %cst_143 = arith.constant dense<0.000000e+00> : vector<8x512xf32>
    %366 = tpu.matmul %359, %365, %cst_143 {dimension_numbers = #tpu.dot_dimension_numbers<[1], [0], [0], [1], [0, 0, 1, 1], [], []>} : vector<8x128xf32>, vector<128x512xf32>, vector<8x512xf32> -> vector<8x512xf32>
    %367 = arith.addf %364, %366 : vector<8x512xf32>
    %368 = vector.extract_strided_slice %367 {offsets = [0, 0], sizes = [8, 384], strides = [1, 1]} : vector<8x512xf32> to vector<8x384xf32>
    %369 = arith.negf %368 : vector<8x384xf32>
    %370 = math.exp %369 : vector<8x384xf32>
    %cst_144 = arith.constant 1.000000e+00 : f32
    %371 = vector.broadcast %cst_144 : f32 to vector<8x384xf32>
    %372 = arith.addf %371, %370 : vector<8x384xf32>
    %373 = arith.divf %371, %372 : vector<8x384xf32>
    %374 = vector.extract_strided_slice %373 {offsets = [0, 0], sizes = [8, 128], strides = [1, 1]} : vector<8x384xf32> to vector<8x128xf32>
    %375 = vector.extract_strided_slice %373 {offsets = [0, 128], sizes = [8, 128], strides = [1, 1]} : vector<8x384xf32> to vector<8x128xf32>
    %376 = vector.extract_strided_slice %373 {offsets = [0, 256], sizes = [8, 128], strides = [1, 1]} : vector<8x384xf32> to vector<8x128xf32>
    %377 = vector.extract_strided_slice %367 {offsets = [0, 384], sizes = [8, 128], strides = [1, 1]} : vector<8x512xf32> to vector<8x128xf32>
    %378 = math.tanh %377 : vector<8x128xf32>
    %379 = arith.mulf %375, %357 : vector<8x128xf32>
    %380 = arith.mulf %374, %378 : vector<8x128xf32>
    %381 = arith.addf %379, %380 : vector<8x128xf32>
    %382 = math.tanh %381 : vector<8x128xf32>
    %383 = arith.mulf %376, %382 : vector<8x128xf32>
    %384 = vector.extract_strided_slice %383 {offsets = [0, 0], sizes = [8, 64], strides = [1, 1]} : vector<8x128xf32> to vector<8x64xf32>
    %c104_145 = arith.constant 104 : index
    %c0_146 = arith.constant 0 : index
    %385 = vector.load %arg21[%c104_145, %c0_146] : memref<128x64xf32, #tpu.memory_space<vmem>>, vector<8x64xf32>
    tpu.vector_store %arg21[%c104_145, %c0_146], %384 {strides = array<i32>} : memref<128x64xf32, #tpu.memory_space<vmem>>, vector<8x64xf32>,
    %386 = vector.extract_strided_slice %383 {offsets = [0, 64], sizes = [8, 64], strides = [1, 1]} : vector<8x128xf32> to vector<8x64xf32>
    %c16_147 = arith.constant 16 : index
    %c0_148 = arith.constant 0 : index
    %387 = vector.load %arg22[%c16_147, %c0_148] : memref<128x64xf32, #tpu.memory_space<vmem>>, vector<8x64xf32>
    tpu.vector_store %arg22[%c16_147, %c0_148], %386 {strides = array<i32>} : memref<128x64xf32, #tpu.memory_space<vmem>>, vector<8x64xf32>,
    %c112_149 = arith.constant 112 : index
    %c0_150 = arith.constant 0 : index
    %388 = vector.load %arg19[%c112_149, %c0_150] : memref<128x512xf32, #tpu.memory_space<vmem>>, vector<8x512xf32>
    %c0_151 = arith.constant 0 : index
    %c0_152 = arith.constant 0 : index
    %389 = vector.load %arg7[%c0_151, %c0_152] : memref<128x512xf32, #tpu.memory_space<vmem>>, vector<128x512xf32>
    %cst_153 = arith.constant dense<0.000000e+00> : vector<8x512xf32>
    %390 = tpu.matmul %383, %389, %cst_153 {dimension_numbers = #tpu.dot_dimension_numbers<[1], [0], [0], [1], [0, 0, 1, 1], [], []>} : vector<8x128xf32>, vector<128x512xf32>, vector<8x512xf32> -> vector<8x512xf32>
    %391 = arith.addf %388, %390 : vector<8x512xf32>
    %392 = vector.extract_strided_slice %391 {offsets = [0, 0], sizes = [8, 384], strides = [1, 1]} : vector<8x512xf32> to vector<8x384xf32>
    %393 = arith.negf %392 : vector<8x384xf32>
    %394 = math.exp %393 : vector<8x384xf32>
    %cst_154 = arith.constant 1.000000e+00 : f32
    %395 = vector.broadcast %cst_154 : f32 to vector<8x384xf32>
    %396 = arith.addf %395, %394 : vector<8x384xf32>
    %397 = arith.divf %395, %396 : vector<8x384xf32>
    %398 = vector.extract_strided_slice %397 {offsets = [0, 0], sizes = [8, 128], strides = [1, 1]} : vector<8x384xf32> to vector<8x128xf32>
    %399 = vector.extract_strided_slice %397 {offsets = [0, 128], sizes = [8, 128], strides = [1, 1]} : vector<8x384xf32> to vector<8x128xf32>
    %400 = vector.extract_strided_slice %397 {offsets = [0, 256], sizes = [8, 128], strides = [1, 1]} : vector<8x384xf32> to vector<8x128xf32>
    %401 = vector.extract_strided_slice %391 {offsets = [0, 384], sizes = [8, 128], strides = [1, 1]} : vector<8x512xf32> to vector<8x128xf32>
    %402 = math.tanh %401 : vector<8x128xf32>
    %403 = arith.mulf %399, %381 : vector<8x128xf32>
    %404 = arith.mulf %398, %402 : vector<8x128xf32>
    %405 = arith.addf %403, %404 : vector<8x128xf32>
    %406 = math.tanh %405 : vector<8x128xf32>
    %407 = arith.mulf %400, %406 : vector<8x128xf32>
    %408 = vector.extract_strided_slice %407 {offsets = [0, 0], sizes = [8, 64], strides = [1, 1]} : vector<8x128xf32> to vector<8x64xf32>
    %c112_155 = arith.constant 112 : index
    %c0_156 = arith.constant 0 : index
    %409 = vector.load %arg21[%c112_155, %c0_156] : memref<128x64xf32, #tpu.memory_space<vmem>>, vector<8x64xf32>
    tpu.vector_store %arg21[%c112_155, %c0_156], %408 {strides = array<i32>} : memref<128x64xf32, #tpu.memory_space<vmem>>, vector<8x64xf32>,
    %410 = vector.extract_strided_slice %407 {offsets = [0, 64], sizes = [8, 64], strides = [1, 1]} : vector<8x128xf32> to vector<8x64xf32>
    %c8_157 = arith.constant 8 : index
    %c0_158 = arith.constant 0 : index
    %411 = vector.load %arg22[%c8_157, %c0_158] : memref<128x64xf32, #tpu.memory_space<vmem>>, vector<8x64xf32>
    tpu.vector_store %arg22[%c8_157, %c0_158], %410 {strides = array<i32>} : memref<128x64xf32, #tpu.memory_space<vmem>>, vector<8x64xf32>,
    %c120_159 = arith.constant 120 : index
    %c0_160 = arith.constant 0 : index
    %412 = vector.load %arg19[%c120_159, %c0_160] : memref<128x512xf32, #tpu.memory_space<vmem>>, vector<8x512xf32>
    %c0_161 = arith.constant 0 : index
    %c0_162 = arith.constant 0 : index
    %413 = vector.load %arg7[%c0_161, %c0_162] : memref<128x512xf32, #tpu.memory_space<vmem>>, vector<128x512xf32>
    %cst_163 = arith.constant dense<0.000000e+00> : vector<8x512xf32>
    %414 = tpu.matmul %407, %413, %cst_163 {dimension_numbers = #tpu.dot_dimension_numbers<[1], [0], [0], [1], [0, 0, 1, 1], [], []>} : vector<8x128xf32>, vector<128x512xf32>, vector<8x512xf32> -> vector<8x512xf32>
    %415 = arith.addf %412, %414 : vector<8x512xf32>
    %416 = vector.extract_strided_slice %415 {offsets = [0, 0], sizes = [8, 384], strides = [1, 1]} : vector<8x512xf32> to vector<8x384xf32>
    %417 = arith.negf %416 : vector<8x384xf32>
    %418 = math.exp %417 : vector<8x384xf32>
    %cst_164 = arith.constant 1.000000e+00 : f32
    %419 = vector.broadcast %cst_164 : f32 to vector<8x384xf32>
    %420 = arith.addf %419, %418 : vector<8x384xf32>
    %421 = arith.divf %419, %420 : vector<8x384xf32>
    %422 = vector.extract_strided_slice %421 {offsets = [0, 0], sizes = [8, 128], strides = [1, 1]} : vector<8x384xf32> to vector<8x128xf32>
    %423 = vector.extract_strided_slice %421 {offsets = [0, 128], sizes = [8, 128], strides = [1, 1]} : vector<8x384xf32> to vector<8x128xf32>
    %424 = vector.extract_strided_slice %421 {offsets = [0, 256], sizes = [8, 128], strides = [1, 1]} : vector<8x384xf32> to vector<8x128xf32>
    %425 = vector.extract_strided_slice %415 {offsets = [0, 384], sizes = [8, 128], strides = [1, 1]} : vector<8x512xf32> to vector<8x128xf32>
    %426 = math.tanh %425 : vector<8x128xf32>
    %427 = arith.mulf %423, %405 : vector<8x128xf32>
    %428 = arith.mulf %422, %426 : vector<8x128xf32>
    %429 = arith.addf %427, %428 : vector<8x128xf32>
    %430 = math.tanh %429 : vector<8x128xf32>
    %431 = arith.mulf %424, %430 : vector<8x128xf32>
    %432 = vector.extract_strided_slice %431 {offsets = [0, 0], sizes = [8, 64], strides = [1, 1]} : vector<8x128xf32> to vector<8x64xf32>
    %c120_165 = arith.constant 120 : index
    %c0_166 = arith.constant 0 : index
    %433 = vector.load %arg21[%c120_165, %c0_166] : memref<128x64xf32, #tpu.memory_space<vmem>>, vector<8x64xf32>
    tpu.vector_store %arg21[%c120_165, %c0_166], %432 {strides = array<i32>} : memref<128x64xf32, #tpu.memory_space<vmem>>, vector<8x64xf32>,
    %434 = vector.extract_strided_slice %431 {offsets = [0, 64], sizes = [8, 64], strides = [1, 1]} : vector<8x128xf32> to vector<8x64xf32>
    %c0_167 = arith.constant 0 : index
    %c0_168 = arith.constant 0 : index
    %435 = vector.load %arg22[%c0_167, %c0_168] : memref<128x64xf32, #tpu.memory_space<vmem>>, vector<8x64xf32>
    tpu.vector_store %arg22[%c0_167, %c0_168], %434 {strides = array<i32>} : memref<128x64xf32, #tpu.memory_space<vmem>>, vector<8x64xf32>,
    %436 = vector.extract_strided_slice %431 {offsets = [0, 0], sizes = [8, 64], strides = [1, 1]} : vector<8x128xf32> to vector<8x64xf32>
    %c0_169 = arith.constant 0 : index
    %c0_170 = arith.constant 0 : index
    %437 = vector.load %arg21[%c0_169, %c0_170] : memref<128x64xf32, #tpu.memory_space<vmem>>, vector<128x64xf32>
    %438 = arith.truncf %437 : vector<128x64xf32> to vector<128x64xbf16>
    %c0_171 = arith.constant 0 : index
    %c0_172 = arith.constant 0 : index
    %439 = vector.load %arg22[%c0_171, %c0_172] : memref<128x64xf32, #tpu.memory_space<vmem>>, vector<128x64xf32>
    %440 = arith.truncf %439 : vector<128x64xf32> to vector<128x64xbf16>
    %c0_173 = arith.constant 0 : index
    %c0_174 = arith.constant 0 : index
    %441 = vector.load %arg9[%c0_173, %c0_174] : memref<128x256xbf16, #tpu.memory_space<vmem>>, vector<64x256xbf16>
    %cst_175 = arith.constant dense<0.000000e+00> : vector<128x256xf32>
    %442 = tpu.matmul %438, %441, %cst_175 {dimension_numbers = #tpu.dot_dimension_numbers<[1], [0], [0], [1], [0, 0, 1, 1], [], []>} : vector<128x64xbf16>, vector<64x256xbf16>, vector<128x256xf32> -> vector<128x256xf32>
    %c64_176 = arith.constant 64 : index
    %c0_177 = arith.constant 0 : index
    %443 = vector.load %arg9[%c64_176, %c0_177] : memref<128x256xbf16, #tpu.memory_space<vmem>>, vector<64x256xbf16>
    %cst_178 = arith.constant dense<0.000000e+00> : vector<128x256xf32>
    %444 = tpu.matmul %440, %443, %cst_178 {dimension_numbers = #tpu.dot_dimension_numbers<[1], [0], [0], [1], [0, 0, 1, 1], [], []>} : vector<128x64xbf16>, vector<64x256xbf16>, vector<128x256xf32> -> vector<128x256xf32>
    %445 = arith.addf %442, %444 : vector<128x256xf32>
    %c0_179 = arith.constant 0 : index
    %c0_180 = arith.constant 0 : index
    %446 = vector.load %arg11[%c0_179, %c0_180] : memref<1x256xf32, #tpu.memory_space<vmem>>, vector<1x256xf32>
    %447 = vector.broadcast %446 : vector<1x256xf32> to vector<128x256xf32>
    %448 = arith.addf %445, %447 : vector<128x256xf32>
    %c0_181 = arith.constant 0 : index
    %c0_182 = arith.constant 0 : index
    %449 = vector.load %arg20[%c0_181, %c0_182] : memref<128x256xf32, #tpu.memory_space<vmem>>, vector<128x256xf32>
    tpu.vector_store %arg20[%c0_181, %c0_182], %448 {strides = array<i32>} : memref<128x256xf32, #tpu.memory_space<vmem>>, vector<128x256xf32>,
    %450 = arith.truncf %436 : vector<8x64xf32> to vector<8x64xbf16>
    %c0_183 = arith.constant 0 : index
    %c0_184 = arith.constant 0 : index
    %451 = vector.load %arg12[%c0_183, %c0_184] : memref<128x256xbf16, #tpu.memory_space<vmem>>, vector<64x256xbf16>
    %cst_185 = arith.constant dense<0.000000e+00> : vector<8x256xf32>
    %452 = tpu.matmul %450, %451, %cst_185 {dimension_numbers = #tpu.dot_dimension_numbers<[1], [0], [0], [1], [0, 0, 1, 1], [], []>} : vector<8x64xbf16>, vector<64x256xbf16>, vector<8x256xf32> -> vector<8x256xf32>
    %453 = arith.truncf %75 : vector<8x64xf32> to vector<8x64xbf16>
    %c64_186 = arith.constant 64 : index
    %c0_187 = arith.constant 0 : index
    %454 = vector.load %arg12[%c64_186, %c0_187] : memref<128x256xbf16, #tpu.memory_space<vmem>>, vector<64x256xbf16>
    %cst_188 = arith.constant dense<0.000000e+00> : vector<8x256xf32>
    %455 = tpu.matmul %453, %454, %cst_188 {dimension_numbers = #tpu.dot_dimension_numbers<[1], [0], [0], [1], [0, 0, 1, 1], [], []>} : vector<8x64xbf16>, vector<64x256xbf16>, vector<8x256xf32> -> vector<8x256xf32>
    %456 = arith.addf %452, %455 : vector<8x256xf32>
    %c0_189 = arith.constant 0 : index
    %c0_190 = arith.constant 0 : index
    %457 = vector.load %arg13[%c0_189, %c0_190] : memref<1x256xf32, #tpu.memory_space<vmem>>, vector<1x256xf32>
    %458 = vector.broadcast %457 : vector<1x256xf32> to vector<8x256xf32>
    %459 = arith.addf %456, %458 : vector<8x256xf32>
    %460 = vector.extract_strided_slice %459 {offsets = [0, 0], sizes = [8, 64], strides = [1, 1]} : vector<8x256xf32> to vector<8x64xf32>
    %461 = arith.negf %460 : vector<8x64xf32>
    %462 = math.exp %461 : vector<8x64xf32>
    %cst_191 = arith.constant 1.000000e+00 : f32
    %463 = vector.broadcast %cst_191 : f32 to vector<8x64xf32>
    %464 = arith.addf %463, %462 : vector<8x64xf32>
    %465 = arith.divf %463, %464 : vector<8x64xf32>
    %466 = vector.extract_strided_slice %459 {offsets = [0, 128], sizes = [8, 64], strides = [1, 1]} : vector<8x256xf32> to vector<8x64xf32>
    %467 = arith.negf %466 : vector<8x64xf32>
    %468 = math.exp %467 : vector<8x64xf32>
    %cst_192 = arith.constant 1.000000e+00 : f32
    %469 = vector.broadcast %cst_192 : f32 to vector<8x64xf32>
    %470 = arith.addf %469, %468 : vector<8x64xf32>
    %471 = arith.divf %469, %470 : vector<8x64xf32>
    %472 = vector.extract_strided_slice %459 {offsets = [0, 192], sizes = [8, 64], strides = [1, 1]} : vector<8x256xf32> to vector<8x64xf32>
    %473 = math.tanh %472 : vector<8x64xf32>
    %474 = arith.mulf %465, %473 : vector<8x64xf32>
    %475 = math.tanh %474 : vector<8x64xf32>
    %476 = arith.mulf %471, %475 : vector<8x64xf32>
    %cst_193 = arith.constant 0.000000e+00 : f32
    %477 = vector.broadcast %cst_193 : f32 to vector<8x64xf32>
    %cst_194 = arith.constant 0.000000e+00 : f32
    %478 = vector.broadcast %cst_194 : f32 to vector<8x64xf32>
    %c0_195 = arith.constant 0 : index
    %c0_196 = arith.constant 0 : index
    %479 = vector.load %arg20[%c0_195, %c0_196] : memref<128x256xf32, #tpu.memory_space<vmem>>, vector<8x256xf32>
    %c0_197 = arith.constant 0 : index
    %c0_198 = arith.constant 0 : index
    %480 = vector.load %arg10[%c0_197, %c0_198] : memref<64x256xf32, #tpu.memory_space<vmem>>, vector<64x256xf32>
    %cst_199 = arith.constant dense<0.000000e+00> : vector<8x256xf32>
    %481 = tpu.matmul %477, %480, %cst_199 {dimension_numbers = #tpu.dot_dimension_numbers<[1], [0], [0], [1], [0, 0, 1, 1], [], []>} : vector<8x64xf32>, vector<64x256xf32>, vector<8x256xf32> -> vector<8x256xf32>
    %482 = arith.addf %479, %481 : vector<8x256xf32>
    %483 = vector.extract_strided_slice %482 {offsets = [0, 0], sizes = [8, 192], strides = [1, 1]} : vector<8x256xf32> to vector<8x192xf32>
    %484 = arith.negf %483 : vector<8x192xf32>
    %485 = math.exp %484 : vector<8x192xf32>
    %cst_200 = arith.constant 1.000000e+00 : f32
    %486 = vector.broadcast %cst_200 : f32 to vector<8x192xf32>
    %487 = arith.addf %486, %485 : vector<8x192xf32>
    %488 = arith.divf %486, %487 : vector<8x192xf32>
    %489 = vector.extract_strided_slice %488 {offsets = [0, 0], sizes = [8, 64], strides = [1, 1]} : vector<8x192xf32> to vector<8x64xf32>
    %490 = vector.extract_strided_slice %488 {offsets = [0, 64], sizes = [8, 64], strides = [1, 1]} : vector<8x192xf32> to vector<8x64xf32>
    %491 = vector.extract_strided_slice %488 {offsets = [0, 128], sizes = [8, 64], strides = [1, 1]} : vector<8x192xf32> to vector<8x64xf32>
    %492 = vector.extract_strided_slice %482 {offsets = [0, 192], sizes = [8, 64], strides = [1, 1]} : vector<8x256xf32> to vector<8x64xf32>
    %493 = math.tanh %492 : vector<8x64xf32>
    %494 = arith.mulf %490, %478 : vector<8x64xf32>
    %495 = arith.mulf %489, %493 : vector<8x64xf32>
    %496 = arith.addf %494, %495 : vector<8x64xf32>
    %497 = math.tanh %496 : vector<8x64xf32>
    %498 = arith.mulf %491, %497 : vector<8x64xf32>
    %c8_201 = arith.constant 8 : index
    %c0_202 = arith.constant 0 : index
    %499 = vector.load %arg20[%c8_201, %c0_202] : memref<128x256xf32, #tpu.memory_space<vmem>>, vector<8x256xf32>
    %c0_203 = arith.constant 0 : index
    %c0_204 = arith.constant 0 : index
    %500 = vector.load %arg10[%c0_203, %c0_204] : memref<64x256xf32, #tpu.memory_space<vmem>>, vector<64x256xf32>
    %cst_205 = arith.constant dense<0.000000e+00> : vector<8x256xf32>
    %501 = tpu.matmul %498, %500, %cst_205 {dimension_numbers = #tpu.dot_dimension_numbers<[1], [0], [0], [1], [0, 0, 1, 1], [], []>} : vector<8x64xf32>, vector<64x256xf32>, vector<8x256xf32> -> vector<8x256xf32>
    %502 = arith.addf %499, %501 : vector<8x256xf32>
    %503 = vector.extract_strided_slice %502 {offsets = [0, 0], sizes = [8, 192], strides = [1, 1]} : vector<8x256xf32> to vector<8x192xf32>
    %504 = arith.negf %503 : vector<8x192xf32>
    %505 = math.exp %504 : vector<8x192xf32>
    %cst_206 = arith.constant 1.000000e+00 : f32
    %506 = vector.broadcast %cst_206 : f32 to vector<8x192xf32>
    %507 = arith.addf %506, %505 : vector<8x192xf32>
    %508 = arith.divf %506, %507 : vector<8x192xf32>
    %509 = vector.extract_strided_slice %508 {offsets = [0, 0], sizes = [8, 64], strides = [1, 1]} : vector<8x192xf32> to vector<8x64xf32>
    %510 = vector.extract_strided_slice %508 {offsets = [0, 64], sizes = [8, 64], strides = [1, 1]} : vector<8x192xf32> to vector<8x64xf32>
    %511 = vector.extract_strided_slice %508 {offsets = [0, 128], sizes = [8, 64], strides = [1, 1]} : vector<8x192xf32> to vector<8x64xf32>
    %512 = vector.extract_strided_slice %502 {offsets = [0, 192], sizes = [8, 64], strides = [1, 1]} : vector<8x256xf32> to vector<8x64xf32>
    %513 = math.tanh %512 : vector<8x64xf32>
    %514 = arith.mulf %510, %496 : vector<8x64xf32>
    %515 = arith.mulf %509, %513 : vector<8x64xf32>
    %516 = arith.addf %514, %515 : vector<8x64xf32>
    %517 = math.tanh %516 : vector<8x64xf32>
    %518 = arith.mulf %511, %517 : vector<8x64xf32>
    %c16_207 = arith.constant 16 : index
    %c0_208 = arith.constant 0 : index
    %519 = vector.load %arg20[%c16_207, %c0_208] : memref<128x256xf32, #tpu.memory_space<vmem>>, vector<8x256xf32>
    %c0_209 = arith.constant 0 : index
    %c0_210 = arith.constant 0 : index
    %520 = vector.load %arg10[%c0_209, %c0_210] : memref<64x256xf32, #tpu.memory_space<vmem>>, vector<64x256xf32>
    %cst_211 = arith.constant dense<0.000000e+00> : vector<8x256xf32>
    %521 = tpu.matmul %518, %520, %cst_211 {dimension_numbers = #tpu.dot_dimension_numbers<[1], [0], [0], [1], [0, 0, 1, 1], [], []>} : vector<8x64xf32>, vector<64x256xf32>, vector<8x256xf32> -> vector<8x256xf32>
    %522 = arith.addf %519, %521 : vector<8x256xf32>
    %523 = vector.extract_strided_slice %522 {offsets = [0, 0], sizes = [8, 192], strides = [1, 1]} : vector<8x256xf32> to vector<8x192xf32>
    %524 = arith.negf %523 : vector<8x192xf32>
    %525 = math.exp %524 : vector<8x192xf32>
    %cst_212 = arith.constant 1.000000e+00 : f32
    %526 = vector.broadcast %cst_212 : f32 to vector<8x192xf32>
    %527 = arith.addf %526, %525 : vector<8x192xf32>
    %528 = arith.divf %526, %527 : vector<8x192xf32>
    %529 = vector.extract_strided_slice %528 {offsets = [0, 0], sizes = [8, 64], strides = [1, 1]} : vector<8x192xf32> to vector<8x64xf32>
    %530 = vector.extract_strided_slice %528 {offsets = [0, 64], sizes = [8, 64], strides = [1, 1]} : vector<8x192xf32> to vector<8x64xf32>
    %531 = vector.extract_strided_slice %528 {offsets = [0, 128], sizes = [8, 64], strides = [1, 1]} : vector<8x192xf32> to vector<8x64xf32>
    %532 = vector.extract_strided_slice %522 {offsets = [0, 192], sizes = [8, 64], strides = [1, 1]} : vector<8x256xf32> to vector<8x64xf32>
    %533 = math.tanh %532 : vector<8x64xf32>
    %534 = arith.mulf %530, %516 : vector<8x64xf32>
    %535 = arith.mulf %529, %533 : vector<8x64xf32>
    %536 = arith.addf %534, %535 : vector<8x64xf32>
    %537 = math.tanh %536 : vector<8x64xf32>
    %538 = arith.mulf %531, %537 : vector<8x64xf32>
    %c24_213 = arith.constant 24 : index
    %c0_214 = arith.constant 0 : index
    %539 = vector.load %arg20[%c24_213, %c0_214] : memref<128x256xf32, #tpu.memory_space<vmem>>, vector<8x256xf32>
    %c0_215 = arith.constant 0 : index
    %c0_216 = arith.constant 0 : index
    %540 = vector.load %arg10[%c0_215, %c0_216] : memref<64x256xf32, #tpu.memory_space<vmem>>, vector<64x256xf32>
    %cst_217 = arith.constant dense<0.000000e+00> : vector<8x256xf32>
    %541 = tpu.matmul %538, %540, %cst_217 {dimension_numbers = #tpu.dot_dimension_numbers<[1], [0], [0], [1], [0, 0, 1, 1], [], []>} : vector<8x64xf32>, vector<64x256xf32>, vector<8x256xf32> -> vector<8x256xf32>
    %542 = arith.addf %539, %541 : vector<8x256xf32>
    %543 = vector.extract_strided_slice %542 {offsets = [0, 0], sizes = [8, 192], strides = [1, 1]} : vector<8x256xf32> to vector<8x192xf32>
    %544 = arith.negf %543 : vector<8x192xf32>
    %545 = math.exp %544 : vector<8x192xf32>
    %cst_218 = arith.constant 1.000000e+00 : f32
    %546 = vector.broadcast %cst_218 : f32 to vector<8x192xf32>
    %547 = arith.addf %546, %545 : vector<8x192xf32>
    %548 = arith.divf %546, %547 : vector<8x192xf32>
    %549 = vector.extract_strided_slice %548 {offsets = [0, 0], sizes = [8, 64], strides = [1, 1]} : vector<8x192xf32> to vector<8x64xf32>
    %550 = vector.extract_strided_slice %548 {offsets = [0, 64], sizes = [8, 64], strides = [1, 1]} : vector<8x192xf32> to vector<8x64xf32>
    %551 = vector.extract_strided_slice %548 {offsets = [0, 128], sizes = [8, 64], strides = [1, 1]} : vector<8x192xf32> to vector<8x64xf32>
    %552 = vector.extract_strided_slice %542 {offsets = [0, 192], sizes = [8, 64], strides = [1, 1]} : vector<8x256xf32> to vector<8x64xf32>
    %553 = math.tanh %552 : vector<8x64xf32>
    %554 = arith.mulf %550, %536 : vector<8x64xf32>
    %555 = arith.mulf %549, %553 : vector<8x64xf32>
    %556 = arith.addf %554, %555 : vector<8x64xf32>
    %557 = math.tanh %556 : vector<8x64xf32>
    %558 = arith.mulf %551, %557 : vector<8x64xf32>
    %c32_219 = arith.constant 32 : index
    %c0_220 = arith.constant 0 : index
    %559 = vector.load %arg20[%c32_219, %c0_220] : memref<128x256xf32, #tpu.memory_space<vmem>>, vector<8x256xf32>
    %c0_221 = arith.constant 0 : index
    %c0_222 = arith.constant 0 : index
    %560 = vector.load %arg10[%c0_221, %c0_222] : memref<64x256xf32, #tpu.memory_space<vmem>>, vector<64x256xf32>
    %cst_223 = arith.constant dense<0.000000e+00> : vector<8x256xf32>
    %561 = tpu.matmul %558, %560, %cst_223 {dimension_numbers = #tpu.dot_dimension_numbers<[1], [0], [0], [1], [0, 0, 1, 1], [], []>} : vector<8x64xf32>, vector<64x256xf32>, vector<8x256xf32> -> vector<8x256xf32>
    %562 = arith.addf %559, %561 : vector<8x256xf32>
    %563 = vector.extract_strided_slice %562 {offsets = [0, 0], sizes = [8, 192], strides = [1, 1]} : vector<8x256xf32> to vector<8x192xf32>
    %564 = arith.negf %563 : vector<8x192xf32>
    %565 = math.exp %564 : vector<8x192xf32>
    %cst_224 = arith.constant 1.000000e+00 : f32
    %566 = vector.broadcast %cst_224 : f32 to vector<8x192xf32>
    %567 = arith.addf %566, %565 : vector<8x192xf32>
    %568 = arith.divf %566, %567 : vector<8x192xf32>
    %569 = vector.extract_strided_slice %568 {offsets = [0, 0], sizes = [8, 64], strides = [1, 1]} : vector<8x192xf32> to vector<8x64xf32>
    %570 = vector.extract_strided_slice %568 {offsets = [0, 64], sizes = [8, 64], strides = [1, 1]} : vector<8x192xf32> to vector<8x64xf32>
    %571 = vector.extract_strided_slice %568 {offsets = [0, 128], sizes = [8, 64], strides = [1, 1]} : vector<8x192xf32> to vector<8x64xf32>
    %572 = vector.extract_strided_slice %562 {offsets = [0, 192], sizes = [8, 64], strides = [1, 1]} : vector<8x256xf32> to vector<8x64xf32>
    %573 = math.tanh %572 : vector<8x64xf32>
    %574 = arith.mulf %570, %556 : vector<8x64xf32>
    %575 = arith.mulf %569, %573 : vector<8x64xf32>
    %576 = arith.addf %574, %575 : vector<8x64xf32>
    %577 = math.tanh %576 : vector<8x64xf32>
    %578 = arith.mulf %571, %577 : vector<8x64xf32>
    %c40_225 = arith.constant 40 : index
    %c0_226 = arith.constant 0 : index
    %579 = vector.load %arg20[%c40_225, %c0_226] : memref<128x256xf32, #tpu.memory_space<vmem>>, vector<8x256xf32>
    %c0_227 = arith.constant 0 : index
    %c0_228 = arith.constant 0 : index
    %580 = vector.load %arg10[%c0_227, %c0_228] : memref<64x256xf32, #tpu.memory_space<vmem>>, vector<64x256xf32>
    %cst_229 = arith.constant dense<0.000000e+00> : vector<8x256xf32>
    %581 = tpu.matmul %578, %580, %cst_229 {dimension_numbers = #tpu.dot_dimension_numbers<[1], [0], [0], [1], [0, 0, 1, 1], [], []>} : vector<8x64xf32>, vector<64x256xf32>, vector<8x256xf32> -> vector<8x256xf32>
    %582 = arith.addf %579, %581 : vector<8x256xf32>
    %583 = vector.extract_strided_slice %582 {offsets = [0, 0], sizes = [8, 192], strides = [1, 1]} : vector<8x256xf32> to vector<8x192xf32>
    %584 = arith.negf %583 : vector<8x192xf32>
    %585 = math.exp %584 : vector<8x192xf32>
    %cst_230 = arith.constant 1.000000e+00 : f32
    %586 = vector.broadcast %cst_230 : f32 to vector<8x192xf32>
    %587 = arith.addf %586, %585 : vector<8x192xf32>
    %588 = arith.divf %586, %587 : vector<8x192xf32>
    %589 = vector.extract_strided_slice %588 {offsets = [0, 0], sizes = [8, 64], strides = [1, 1]} : vector<8x192xf32> to vector<8x64xf32>
    %590 = vector.extract_strided_slice %588 {offsets = [0, 64], sizes = [8, 64], strides = [1, 1]} : vector<8x192xf32> to vector<8x64xf32>
    %591 = vector.extract_strided_slice %588 {offsets = [0, 128], sizes = [8, 64], strides = [1, 1]} : vector<8x192xf32> to vector<8x64xf32>
    %592 = vector.extract_strided_slice %582 {offsets = [0, 192], sizes = [8, 64], strides = [1, 1]} : vector<8x256xf32> to vector<8x64xf32>
    %593 = math.tanh %592 : vector<8x64xf32>
    %594 = arith.mulf %590, %576 : vector<8x64xf32>
    %595 = arith.mulf %589, %593 : vector<8x64xf32>
    %596 = arith.addf %594, %595 : vector<8x64xf32>
    %597 = math.tanh %596 : vector<8x64xf32>
    %598 = arith.mulf %591, %597 : vector<8x64xf32>
    %c48_231 = arith.constant 48 : index
    %c0_232 = arith.constant 0 : index
    %599 = vector.load %arg20[%c48_231, %c0_232] : memref<128x256xf32, #tpu.memory_space<vmem>>, vector<8x256xf32>
    %c0_233 = arith.constant 0 : index
    %c0_234 = arith.constant 0 : index
    %600 = vector.load %arg10[%c0_233, %c0_234] : memref<64x256xf32, #tpu.memory_space<vmem>>, vector<64x256xf32>
    %cst_235 = arith.constant dense<0.000000e+00> : vector<8x256xf32>
    %601 = tpu.matmul %598, %600, %cst_235 {dimension_numbers = #tpu.dot_dimension_numbers<[1], [0], [0], [1], [0, 0, 1, 1], [], []>} : vector<8x64xf32>, vector<64x256xf32>, vector<8x256xf32> -> vector<8x256xf32>
    %602 = arith.addf %599, %601 : vector<8x256xf32>
    %603 = vector.extract_strided_slice %602 {offsets = [0, 0], sizes = [8, 192], strides = [1, 1]} : vector<8x256xf32> to vector<8x192xf32>
    %604 = arith.negf %603 : vector<8x192xf32>
    %605 = math.exp %604 : vector<8x192xf32>
    %cst_236 = arith.constant 1.000000e+00 : f32
    %606 = vector.broadcast %cst_236 : f32 to vector<8x192xf32>
    %607 = arith.addf %606, %605 : vector<8x192xf32>
    %608 = arith.divf %606, %607 : vector<8x192xf32>
    %609 = vector.extract_strided_slice %608 {offsets = [0, 0], sizes = [8, 64], strides = [1, 1]} : vector<8x192xf32> to vector<8x64xf32>
    %610 = vector.extract_strided_slice %608 {offsets = [0, 64], sizes = [8, 64], strides = [1, 1]} : vector<8x192xf32> to vector<8x64xf32>
    %611 = vector.extract_strided_slice %608 {offsets = [0, 128], sizes = [8, 64], strides = [1, 1]} : vector<8x192xf32> to vector<8x64xf32>
    %612 = vector.extract_strided_slice %602 {offsets = [0, 192], sizes = [8, 64], strides = [1, 1]} : vector<8x256xf32> to vector<8x64xf32>
    %613 = math.tanh %612 : vector<8x64xf32>
    %614 = arith.mulf %610, %596 : vector<8x64xf32>
    %615 = arith.mulf %609, %613 : vector<8x64xf32>
    %616 = arith.addf %614, %615 : vector<8x64xf32>
    %617 = math.tanh %616 : vector<8x64xf32>
    %618 = arith.mulf %611, %617 : vector<8x64xf32>
    %c56_237 = arith.constant 56 : index
    %c0_238 = arith.constant 0 : index
    %619 = vector.load %arg20[%c56_237, %c0_238] : memref<128x256xf32, #tpu.memory_space<vmem>>, vector<8x256xf32>
    %c0_239 = arith.constant 0 : index
    %c0_240 = arith.constant 0 : index
    %620 = vector.load %arg10[%c0_239, %c0_240] : memref<64x256xf32, #tpu.memory_space<vmem>>, vector<64x256xf32>
    %cst_241 = arith.constant dense<0.000000e+00> : vector<8x256xf32>
    %621 = tpu.matmul %618, %620, %cst_241 {dimension_numbers = #tpu.dot_dimension_numbers<[1], [0], [0], [1], [0, 0, 1, 1], [], []>} : vector<8x64xf32>, vector<64x256xf32>, vector<8x256xf32> -> vector<8x256xf32>
    %622 = arith.addf %619, %621 : vector<8x256xf32>
    %623 = vector.extract_strided_slice %622 {offsets = [0, 0], sizes = [8, 192], strides = [1, 1]} : vector<8x256xf32> to vector<8x192xf32>
    %624 = arith.negf %623 : vector<8x192xf32>
    %625 = math.exp %624 : vector<8x192xf32>
    %cst_242 = arith.constant 1.000000e+00 : f32
    %626 = vector.broadcast %cst_242 : f32 to vector<8x192xf32>
    %627 = arith.addf %626, %625 : vector<8x192xf32>
    %628 = arith.divf %626, %627 : vector<8x192xf32>
    %629 = vector.extract_strided_slice %628 {offsets = [0, 0], sizes = [8, 64], strides = [1, 1]} : vector<8x192xf32> to vector<8x64xf32>
    %630 = vector.extract_strided_slice %628 {offsets = [0, 64], sizes = [8, 64], strides = [1, 1]} : vector<8x192xf32> to vector<8x64xf32>
    %631 = vector.extract_strided_slice %628 {offsets = [0, 128], sizes = [8, 64], strides = [1, 1]} : vector<8x192xf32> to vector<8x64xf32>
    %632 = vector.extract_strided_slice %622 {offsets = [0, 192], sizes = [8, 64], strides = [1, 1]} : vector<8x256xf32> to vector<8x64xf32>
    %633 = math.tanh %632 : vector<8x64xf32>
    %634 = arith.mulf %630, %616 : vector<8x64xf32>
    %635 = arith.mulf %629, %633 : vector<8x64xf32>
    %636 = arith.addf %634, %635 : vector<8x64xf32>
    %637 = math.tanh %636 : vector<8x64xf32>
    %638 = arith.mulf %631, %637 : vector<8x64xf32>
    %c64_243 = arith.constant 64 : index
    %c0_244 = arith.constant 0 : index
    %639 = vector.load %arg20[%c64_243, %c0_244] : memref<128x256xf32, #tpu.memory_space<vmem>>, vector<8x256xf32>
    %c0_245 = arith.constant 0 : index
    %c0_246 = arith.constant 0 : index
    %640 = vector.load %arg10[%c0_245, %c0_246] : memref<64x256xf32, #tpu.memory_space<vmem>>, vector<64x256xf32>
    %cst_247 = arith.constant dense<0.000000e+00> : vector<8x256xf32>
    %641 = tpu.matmul %638, %640, %cst_247 {dimension_numbers = #tpu.dot_dimension_numbers<[1], [0], [0], [1], [0, 0, 1, 1], [], []>} : vector<8x64xf32>, vector<64x256xf32>, vector<8x256xf32> -> vector<8x256xf32>
    %642 = arith.addf %639, %641 : vector<8x256xf32>
    %643 = vector.extract_strided_slice %642 {offsets = [0, 0], sizes = [8, 192], strides = [1, 1]} : vector<8x256xf32> to vector<8x192xf32>
    %644 = arith.negf %643 : vector<8x192xf32>
    %645 = math.exp %644 : vector<8x192xf32>
    %cst_248 = arith.constant 1.000000e+00 : f32
    %646 = vector.broadcast %cst_248 : f32 to vector<8x192xf32>
    %647 = arith.addf %646, %645 : vector<8x192xf32>
    %648 = arith.divf %646, %647 : vector<8x192xf32>
    %649 = vector.extract_strided_slice %648 {offsets = [0, 0], sizes = [8, 64], strides = [1, 1]} : vector<8x192xf32> to vector<8x64xf32>
    %650 = vector.extract_strided_slice %648 {offsets = [0, 64], sizes = [8, 64], strides = [1, 1]} : vector<8x192xf32> to vector<8x64xf32>
    %651 = vector.extract_strided_slice %648 {offsets = [0, 128], sizes = [8, 64], strides = [1, 1]} : vector<8x192xf32> to vector<8x64xf32>
    %652 = vector.extract_strided_slice %642 {offsets = [0, 192], sizes = [8, 64], strides = [1, 1]} : vector<8x256xf32> to vector<8x64xf32>
    %653 = math.tanh %652 : vector<8x64xf32>
    %654 = arith.mulf %650, %636 : vector<8x64xf32>
    %655 = arith.mulf %649, %653 : vector<8x64xf32>
    %656 = arith.addf %654, %655 : vector<8x64xf32>
    %657 = math.tanh %656 : vector<8x64xf32>
    %658 = arith.mulf %651, %657 : vector<8x64xf32>
    %c72_249 = arith.constant 72 : index
    %c0_250 = arith.constant 0 : index
    %659 = vector.load %arg20[%c72_249, %c0_250] : memref<128x256xf32, #tpu.memory_space<vmem>>, vector<8x256xf32>
    %c0_251 = arith.constant 0 : index
    %c0_252 = arith.constant 0 : index
    %660 = vector.load %arg10[%c0_251, %c0_252] : memref<64x256xf32, #tpu.memory_space<vmem>>, vector<64x256xf32>
    %cst_253 = arith.constant dense<0.000000e+00> : vector<8x256xf32>
    %661 = tpu.matmul %658, %660, %cst_253 {dimension_numbers = #tpu.dot_dimension_numbers<[1], [0], [0], [1], [0, 0, 1, 1], [], []>} : vector<8x64xf32>, vector<64x256xf32>, vector<8x256xf32> -> vector<8x256xf32>
    %662 = arith.addf %659, %661 : vector<8x256xf32>
    %663 = vector.extract_strided_slice %662 {offsets = [0, 0], sizes = [8, 192], strides = [1, 1]} : vector<8x256xf32> to vector<8x192xf32>
    %664 = arith.negf %663 : vector<8x192xf32>
    %665 = math.exp %664 : vector<8x192xf32>
    %cst_254 = arith.constant 1.000000e+00 : f32
    %666 = vector.broadcast %cst_254 : f32 to vector<8x192xf32>
    %667 = arith.addf %666, %665 : vector<8x192xf32>
    %668 = arith.divf %666, %667 : vector<8x192xf32>
    %669 = vector.extract_strided_slice %668 {offsets = [0, 0], sizes = [8, 64], strides = [1, 1]} : vector<8x192xf32> to vector<8x64xf32>
    %670 = vector.extract_strided_slice %668 {offsets = [0, 64], sizes = [8, 64], strides = [1, 1]} : vector<8x192xf32> to vector<8x64xf32>
    %671 = vector.extract_strided_slice %668 {offsets = [0, 128], sizes = [8, 64], strides = [1, 1]} : vector<8x192xf32> to vector<8x64xf32>
    %672 = vector.extract_strided_slice %662 {offsets = [0, 192], sizes = [8, 64], strides = [1, 1]} : vector<8x256xf32> to vector<8x64xf32>
    %673 = math.tanh %672 : vector<8x64xf32>
    %674 = arith.mulf %670, %656 : vector<8x64xf32>
    %675 = arith.mulf %669, %673 : vector<8x64xf32>
    %676 = arith.addf %674, %675 : vector<8x64xf32>
    %677 = math.tanh %676 : vector<8x64xf32>
    %678 = arith.mulf %671, %677 : vector<8x64xf32>
    %c80_255 = arith.constant 80 : index
    %c0_256 = arith.constant 0 : index
    %679 = vector.load %arg20[%c80_255, %c0_256] : memref<128x256xf32, #tpu.memory_space<vmem>>, vector<8x256xf32>
    %c0_257 = arith.constant 0 : index
    %c0_258 = arith.constant 0 : index
    %680 = vector.load %arg10[%c0_257, %c0_258] : memref<64x256xf32, #tpu.memory_space<vmem>>, vector<64x256xf32>
    %cst_259 = arith.constant dense<0.000000e+00> : vector<8x256xf32>
    %681 = tpu.matmul %678, %680, %cst_259 {dimension_numbers = #tpu.dot_dimension_numbers<[1], [0], [0], [1], [0, 0, 1, 1], [], []>} : vector<8x64xf32>, vector<64x256xf32>, vector<8x256xf32> -> vector<8x256xf32>
    %682 = arith.addf %679, %681 : vector<8x256xf32>
    %683 = vector.extract_strided_slice %682 {offsets = [0, 0], sizes = [8, 192], strides = [1, 1]} : vector<8x256xf32> to vector<8x192xf32>
    %684 = arith.negf %683 : vector<8x192xf32>
    %685 = math.exp %684 : vector<8x192xf32>
    %cst_260 = arith.constant 1.000000e+00 : f32
    %686 = vector.broadcast %cst_260 : f32 to vector<8x192xf32>
    %687 = arith.addf %686, %685 : vector<8x192xf32>
    %688 = arith.divf %686, %687 : vector<8x192xf32>
    %689 = vector.extract_strided_slice %688 {offsets = [0, 0], sizes = [8, 64], strides = [1, 1]} : vector<8x192xf32> to vector<8x64xf32>
    %690 = vector.extract_strided_slice %688 {offsets = [0, 64], sizes = [8, 64], strides = [1, 1]} : vector<8x192xf32> to vector<8x64xf32>
    %691 = vector.extract_strided_slice %688 {offsets = [0, 128], sizes = [8, 64], strides = [1, 1]} : vector<8x192xf32> to vector<8x64xf32>
    %692 = vector.extract_strided_slice %682 {offsets = [0, 192], sizes = [8, 64], strides = [1, 1]} : vector<8x256xf32> to vector<8x64xf32>
    %693 = math.tanh %692 : vector<8x64xf32>
    %694 = arith.mulf %690, %676 : vector<8x64xf32>
    %695 = arith.mulf %689, %693 : vector<8x64xf32>
    %696 = arith.addf %694, %695 : vector<8x64xf32>
    %697 = math.tanh %696 : vector<8x64xf32>
    %698 = arith.mulf %691, %697 : vector<8x64xf32>
    %c88_261 = arith.constant 88 : index
    %c0_262 = arith.constant 0 : index
    %699 = vector.load %arg20[%c88_261, %c0_262] : memref<128x256xf32, #tpu.memory_space<vmem>>, vector<8x256xf32>
    %c0_263 = arith.constant 0 : index
    %c0_264 = arith.constant 0 : index
    %700 = vector.load %arg10[%c0_263, %c0_264] : memref<64x256xf32, #tpu.memory_space<vmem>>, vector<64x256xf32>
    %cst_265 = arith.constant dense<0.000000e+00> : vector<8x256xf32>
    %701 = tpu.matmul %698, %700, %cst_265 {dimension_numbers = #tpu.dot_dimension_numbers<[1], [0], [0], [1], [0, 0, 1, 1], [], []>} : vector<8x64xf32>, vector<64x256xf32>, vector<8x256xf32> -> vector<8x256xf32>
    %702 = arith.addf %699, %701 : vector<8x256xf32>
    %703 = vector.extract_strided_slice %702 {offsets = [0, 0], sizes = [8, 192], strides = [1, 1]} : vector<8x256xf32> to vector<8x192xf32>
    %704 = arith.negf %703 : vector<8x192xf32>
    %705 = math.exp %704 : vector<8x192xf32>
    %cst_266 = arith.constant 1.000000e+00 : f32
    %706 = vector.broadcast %cst_266 : f32 to vector<8x192xf32>
    %707 = arith.addf %706, %705 : vector<8x192xf32>
    %708 = arith.divf %706, %707 : vector<8x192xf32>
    %709 = vector.extract_strided_slice %708 {offsets = [0, 0], sizes = [8, 64], strides = [1, 1]} : vector<8x192xf32> to vector<8x64xf32>
    %710 = vector.extract_strided_slice %708 {offsets = [0, 64], sizes = [8, 64], strides = [1, 1]} : vector<8x192xf32> to vector<8x64xf32>
    %711 = vector.extract_strided_slice %708 {offsets = [0, 128], sizes = [8, 64], strides = [1, 1]} : vector<8x192xf32> to vector<8x64xf32>
    %712 = vector.extract_strided_slice %702 {offsets = [0, 192], sizes = [8, 64], strides = [1, 1]} : vector<8x256xf32> to vector<8x64xf32>
    %713 = math.tanh %712 : vector<8x64xf32>
    %714 = arith.mulf %710, %696 : vector<8x64xf32>
    %715 = arith.mulf %709, %713 : vector<8x64xf32>
    %716 = arith.addf %714, %715 : vector<8x64xf32>
    %717 = math.tanh %716 : vector<8x64xf32>
    %718 = arith.mulf %711, %717 : vector<8x64xf32>
    %c96_267 = arith.constant 96 : index
    %c0_268 = arith.constant 0 : index
    %719 = vector.load %arg20[%c96_267, %c0_268] : memref<128x256xf32, #tpu.memory_space<vmem>>, vector<8x256xf32>
    %c0_269 = arith.constant 0 : index
    %c0_270 = arith.constant 0 : index
    %720 = vector.load %arg10[%c0_269, %c0_270] : memref<64x256xf32, #tpu.memory_space<vmem>>, vector<64x256xf32>
    %cst_271 = arith.constant dense<0.000000e+00> : vector<8x256xf32>
    %721 = tpu.matmul %718, %720, %cst_271 {dimension_numbers = #tpu.dot_dimension_numbers<[1], [0], [0], [1], [0, 0, 1, 1], [], []>} : vector<8x64xf32>, vector<64x256xf32>, vector<8x256xf32> -> vector<8x256xf32>
    %722 = arith.addf %719, %721 : vector<8x256xf32>
    %723 = vector.extract_strided_slice %722 {offsets = [0, 0], sizes = [8, 192], strides = [1, 1]} : vector<8x256xf32> to vector<8x192xf32>
    %724 = arith.negf %723 : vector<8x192xf32>
    %725 = math.exp %724 : vector<8x192xf32>
    %cst_272 = arith.constant 1.000000e+00 : f32
    %726 = vector.broadcast %cst_272 : f32 to vector<8x192xf32>
    %727 = arith.addf %726, %725 : vector<8x192xf32>
    %728 = arith.divf %726, %727 : vector<8x192xf32>
    %729 = vector.extract_strided_slice %728 {offsets = [0, 0], sizes = [8, 64], strides = [1, 1]} : vector<8x192xf32> to vector<8x64xf32>
    %730 = vector.extract_strided_slice %728 {offsets = [0, 64], sizes = [8, 64], strides = [1, 1]} : vector<8x192xf32> to vector<8x64xf32>
    %731 = vector.extract_strided_slice %728 {offsets = [0, 128], sizes = [8, 64], strides = [1, 1]} : vector<8x192xf32> to vector<8x64xf32>
    %732 = vector.extract_strided_slice %722 {offsets = [0, 192], sizes = [8, 64], strides = [1, 1]} : vector<8x256xf32> to vector<8x64xf32>
    %733 = math.tanh %732 : vector<8x64xf32>
    %734 = arith.mulf %730, %716 : vector<8x64xf32>
    %735 = arith.mulf %729, %733 : vector<8x64xf32>
    %736 = arith.addf %734, %735 : vector<8x64xf32>
    %737 = math.tanh %736 : vector<8x64xf32>
    %738 = arith.mulf %731, %737 : vector<8x64xf32>
    %c104_273 = arith.constant 104 : index
    %c0_274 = arith.constant 0 : index
    %739 = vector.load %arg20[%c104_273, %c0_274] : memref<128x256xf32, #tpu.memory_space<vmem>>, vector<8x256xf32>
    %c0_275 = arith.constant 0 : index
    %c0_276 = arith.constant 0 : index
    %740 = vector.load %arg10[%c0_275, %c0_276] : memref<64x256xf32, #tpu.memory_space<vmem>>, vector<64x256xf32>
    %cst_277 = arith.constant dense<0.000000e+00> : vector<8x256xf32>
    %741 = tpu.matmul %738, %740, %cst_277 {dimension_numbers = #tpu.dot_dimension_numbers<[1], [0], [0], [1], [0, 0, 1, 1], [], []>} : vector<8x64xf32>, vector<64x256xf32>, vector<8x256xf32> -> vector<8x256xf32>
    %742 = arith.addf %739, %741 : vector<8x256xf32>
    %743 = vector.extract_strided_slice %742 {offsets = [0, 0], sizes = [8, 192], strides = [1, 1]} : vector<8x256xf32> to vector<8x192xf32>
    %744 = arith.negf %743 : vector<8x192xf32>
    %745 = math.exp %744 : vector<8x192xf32>
    %cst_278 = arith.constant 1.000000e+00 : f32
    %746 = vector.broadcast %cst_278 : f32 to vector<8x192xf32>
    %747 = arith.addf %746, %745 : vector<8x192xf32>
    %748 = arith.divf %746, %747 : vector<8x192xf32>
    %749 = vector.extract_strided_slice %748 {offsets = [0, 0], sizes = [8, 64], strides = [1, 1]} : vector<8x192xf32> to vector<8x64xf32>
    %750 = vector.extract_strided_slice %748 {offsets = [0, 64], sizes = [8, 64], strides = [1, 1]} : vector<8x192xf32> to vector<8x64xf32>
    %751 = vector.extract_strided_slice %748 {offsets = [0, 128], sizes = [8, 64], strides = [1, 1]} : vector<8x192xf32> to vector<8x64xf32>
    %752 = vector.extract_strided_slice %742 {offsets = [0, 192], sizes = [8, 64], strides = [1, 1]} : vector<8x256xf32> to vector<8x64xf32>
    %753 = math.tanh %752 : vector<8x64xf32>
    %754 = arith.mulf %750, %736 : vector<8x64xf32>
    %755 = arith.mulf %749, %753 : vector<8x64xf32>
    %756 = arith.addf %754, %755 : vector<8x64xf32>
    %757 = math.tanh %756 : vector<8x64xf32>
    %758 = arith.mulf %751, %757 : vector<8x64xf32>
    %c112_279 = arith.constant 112 : index
    %c0_280 = arith.constant 0 : index
    %759 = vector.load %arg20[%c112_279, %c0_280] : memref<128x256xf32, #tpu.memory_space<vmem>>, vector<8x256xf32>
    %c0_281 = arith.constant 0 : index
    %c0_282 = arith.constant 0 : index
    %760 = vector.load %arg10[%c0_281, %c0_282] : memref<64x256xf32, #tpu.memory_space<vmem>>, vector<64x256xf32>
    %cst_283 = arith.constant dense<0.000000e+00> : vector<8x256xf32>
    %761 = tpu.matmul %758, %760, %cst_283 {dimension_numbers = #tpu.dot_dimension_numbers<[1], [0], [0], [1], [0, 0, 1, 1], [], []>} : vector<8x64xf32>, vector<64x256xf32>, vector<8x256xf32> -> vector<8x256xf32>
    %762 = arith.addf %759, %761 : vector<8x256xf32>
    %763 = vector.extract_strided_slice %762 {offsets = [0, 0], sizes = [8, 192], strides = [1, 1]} : vector<8x256xf32> to vector<8x192xf32>
    %764 = arith.negf %763 : vector<8x192xf32>
    %765 = math.exp %764 : vector<8x192xf32>
    %cst_284 = arith.constant 1.000000e+00 : f32
    %766 = vector.broadcast %cst_284 : f32 to vector<8x192xf32>
    %767 = arith.addf %766, %765 : vector<8x192xf32>
    %768 = arith.divf %766, %767 : vector<8x192xf32>
    %769 = vector.extract_strided_slice %768 {offsets = [0, 0], sizes = [8, 64], strides = [1, 1]} : vector<8x192xf32> to vector<8x64xf32>
    %770 = vector.extract_strided_slice %768 {offsets = [0, 64], sizes = [8, 64], strides = [1, 1]} : vector<8x192xf32> to vector<8x64xf32>
    %771 = vector.extract_strided_slice %768 {offsets = [0, 128], sizes = [8, 64], strides = [1, 1]} : vector<8x192xf32> to vector<8x64xf32>
    %772 = vector.extract_strided_slice %762 {offsets = [0, 192], sizes = [8, 64], strides = [1, 1]} : vector<8x256xf32> to vector<8x64xf32>
    %773 = math.tanh %772 : vector<8x64xf32>
    %774 = arith.mulf %770, %756 : vector<8x64xf32>
    %775 = arith.mulf %769, %773 : vector<8x64xf32>
    %776 = arith.addf %774, %775 : vector<8x64xf32>
    %777 = math.tanh %776 : vector<8x64xf32>
    %778 = arith.mulf %771, %777 : vector<8x64xf32>
    %c120_285 = arith.constant 120 : index
    %c0_286 = arith.constant 0 : index
    %779 = vector.load %arg20[%c120_285, %c0_286] : memref<128x256xf32, #tpu.memory_space<vmem>>, vector<8x256xf32>
    %c0_287 = arith.constant 0 : index
    %c0_288 = arith.constant 0 : index
    %780 = vector.load %arg10[%c0_287, %c0_288] : memref<64x256xf32, #tpu.memory_space<vmem>>, vector<64x256xf32>
    %cst_289 = arith.constant dense<0.000000e+00> : vector<8x256xf32>
    %781 = tpu.matmul %778, %780, %cst_289 {dimension_numbers = #tpu.dot_dimension_numbers<[1], [0], [0], [1], [0, 0, 1, 1], [], []>} : vector<8x64xf32>, vector<64x256xf32>, vector<8x256xf32> -> vector<8x256xf32>
    %782 = arith.addf %779, %781 : vector<8x256xf32>
    %783 = vector.extract_strided_slice %782 {offsets = [0, 0], sizes = [8, 192], strides = [1, 1]} : vector<8x256xf32> to vector<8x192xf32>
    %784 = arith.negf %783 : vector<8x192xf32>
    %785 = math.exp %784 : vector<8x192xf32>
    %cst_290 = arith.constant 1.000000e+00 : f32
    %786 = vector.broadcast %cst_290 : f32 to vector<8x192xf32>
    %787 = arith.addf %786, %785 : vector<8x192xf32>
    %788 = arith.divf %786, %787 : vector<8x192xf32>
    %789 = vector.extract_strided_slice %788 {offsets = [0, 0], sizes = [8, 64], strides = [1, 1]} : vector<8x192xf32> to vector<8x64xf32>
    %790 = vector.extract_strided_slice %788 {offsets = [0, 64], sizes = [8, 64], strides = [1, 1]} : vector<8x192xf32> to vector<8x64xf32>
    %791 = vector.extract_strided_slice %788 {offsets = [0, 128], sizes = [8, 64], strides = [1, 1]} : vector<8x192xf32> to vector<8x64xf32>
    %792 = vector.extract_strided_slice %782 {offsets = [0, 192], sizes = [8, 64], strides = [1, 1]} : vector<8x256xf32> to vector<8x64xf32>
    %793 = math.tanh %792 : vector<8x64xf32>
    %794 = arith.mulf %790, %776 : vector<8x64xf32>
    %795 = arith.mulf %789, %793 : vector<8x64xf32>
    %796 = arith.addf %794, %795 : vector<8x64xf32>
    %797 = math.tanh %796 : vector<8x64xf32>
    %798 = arith.mulf %791, %797 : vector<8x64xf32>
    %c0_291 = arith.constant 0 : index
    %c0_292 = arith.constant 0 : index
    %799 = vector.load %arg14[%c0_291, %c0_292] : memref<192x64xf32, #tpu.memory_space<vmem>>, vector<64x64xf32>
    %cst_293 = arith.constant dense<0.000000e+00> : vector<8x64xf32>
    %800 = tpu.matmul %48, %799, %cst_293 {dimension_numbers = #tpu.dot_dimension_numbers<[1], [0], [0], [1], [0, 0, 1, 1], [], []>} : vector<8x64xf32>, vector<64x64xf32>, vector<8x64xf32> -> vector<8x64xf32>
    %c64_294 = arith.constant 64 : index
    %c0_295 = arith.constant 0 : index
    %801 = vector.load %arg14[%c64_294, %c0_295] : memref<192x64xf32, #tpu.memory_space<vmem>>, vector<64x64xf32>
    %cst_296 = arith.constant dense<0.000000e+00> : vector<8x64xf32>
    %802 = tpu.matmul %798, %801, %cst_296 {dimension_numbers = #tpu.dot_dimension_numbers<[1], [0], [0], [1], [0, 0, 1, 1], [], []>} : vector<8x64xf32>, vector<64x64xf32>, vector<8x64xf32> -> vector<8x64xf32>
    %803 = arith.addf %800, %802 : vector<8x64xf32>
    %c128 = arith.constant 128 : index
    %c0_297 = arith.constant 0 : index
    %804 = vector.load %arg14[%c128, %c0_297] : memref<192x64xf32, #tpu.memory_space<vmem>>, vector<64x64xf32>
    %cst_298 = arith.constant dense<0.000000e+00> : vector<8x64xf32>
    %805 = tpu.matmul %476, %804, %cst_298 {dimension_numbers = #tpu.dot_dimension_numbers<[1], [0], [0], [1], [0, 0, 1, 1], [], []>} : vector<8x64xf32>, vector<64x64xf32>, vector<8x64xf32> -> vector<8x64xf32>
    %806 = arith.addf %803, %805 : vector<8x64xf32>
    %c0_299 = arith.constant 0 : index
    %c0_300 = arith.constant 0 : index
    %807 = vector.load %arg15[%c0_299, %c0_300] : memref<1x64xf32, #tpu.memory_space<vmem>>, vector<1x64xf32>
    %808 = vector.broadcast %807 : vector<1x64xf32> to vector<8x64xf32>
    %809 = arith.addf %806, %808 : vector<8x64xf32>
    %cst_301 = arith.constant 0.000000e+00 : f32
    %810 = vector.broadcast %cst_301 : f32 to vector<8x64xf32>
    %811 = arith.maximumf %809, %810 : vector<8x64xf32>
    %c0_302 = arith.constant 0 : index
    %c0_303 = arith.constant 0 : index
    %812 = vector.load %arg16[%c0_302, %c0_303] : memref<64x5xf32, #tpu.memory_space<vmem>>, vector<64x5xf32>
    %cst_304 = arith.constant dense<0.000000e+00> : vector<8x5xf32>
    %813 = tpu.matmul %811, %812, %cst_304 {dimension_numbers = #tpu.dot_dimension_numbers<[1], [0], [0], [1], [0, 0, 1, 1], [], []>} : vector<8x64xf32>, vector<64x5xf32>, vector<8x5xf32> -> vector<8x5xf32>
    %c0_305 = arith.constant 0 : index
    %c0_306 = arith.constant 0 : index
    %814 = vector.load %arg17[%c0_305, %c0_306] : memref<1x5xf32, #tpu.memory_space<vmem>>, vector<1x5xf32>
    %815 = vector.broadcast %814 : vector<1x5xf32> to vector<8x5xf32>
    %816 = arith.addf %813, %815 : vector<8x5xf32>
    %817 = arith.negf %816 : vector<8x5xf32>
    %818 = math.exp %817 : vector<8x5xf32>
    %cst_307 = arith.constant 1.000000e+00 : f32
    %819 = vector.broadcast %cst_307 : f32 to vector<8x5xf32>
    %820 = arith.addf %819, %818 : vector<8x5xf32>
    %821 = arith.divf %819, %820 : vector<8x5xf32>
    %cst_308 = arith.constant 9.000000e+01 : f32
    %822 = vector.broadcast %cst_308 : f32 to vector<8x5xf32>
    %823 = arith.mulf %821, %822 : vector<8x5xf32>
    %c0_309 = arith.constant 0 : index
    %c0_310 = arith.constant 0 : index
    %824 = vector.load %arg18[%c0_309, %c0_310] : memref<8x5xf32, #tpu.memory_space<vmem>>, vector<8x5xf32>
    tpu.vector_store %arg18[%c0_309, %c0_310], %823 {strides = array<i32>} : memref<8x5xf32, #tpu.memory_space<vmem>>, vector<8x5xf32>,
    return
  }
}

</mosaic_0001>

<bundles_post_ra>
// kernel: transfer_learning_forward.1
= control target key start
LH: loop header
LB: loop body
LE: loop exit
PB: predicated region body
PF: predicated region fallthrough
CT: control target
= control target key end

     0   :  { %v13289_v1 = vmov 0   ;;  %vm162_vm0 = vcmask 130048   ;;  %vm585_vm1 = vcmask 1043456   ;;  %vm560_vm2 = vcmask 326656   ;;  %s9996_s25 = smov 32   ;;  %s9997_s30 = smov 64   ;;  %s13267_s6 = inlined_call_operand.vmem [shape: bf16[16,512], index: 6, kind: input, shape index: {}]   ;;  %s13268_s1 = inlined_call_operand.vmem [shape: bf16[128,16], index: 1, kind: input, shape index: {}]   ;;  %s13269_s2 = inlined_call_operand.vmem [shape: bf16[40,32], index: 2, kind: input, shape index: {}]   ;;  %s13270_s0 = inlined_call_operand.vmem [shape: bf16[128,40], index: 0, kind: input, shape index: {}]   ;;  %s13271_s7 = inlined_call_operand.vmem [shape: f32[128,512], index: 7, kind: input, shape index: {}]   ;;  %s13272_s8 = inlined_call_operand.vmem [shape: f32[1,512], index: 8, kind: input, shape index: {}]   ;;  %s13273_s4 = inlined_call_operand.vmem [shape: bf16[96,64], index: 4, kind: input, shape index: {}]   ;;  %s13274_s3 = inlined_call_operand.vmem [shape: f32[1,32], index: 3, kind: input, shape index: {}]   ;;  %s13275_s5 = inlined_call_operand.vmem [shape: f32[1,64], index: 5, kind: input, shape index: {}]   ;;  %s13276_s12 = inlined_call_operand.vmem [shape: bf16[128,256], index: 12, kind: input, shape index: {}]   ;;  %s13277_s9 = inlined_call_operand.vmem [shape: bf16[128,256], index: 9, kind: input, shape index: {}]   ;;  %s13278_s10 = inlined_call_operand.vmem [shape: f32[64,256], index: 10, kind: input, shape index: {}]   ;;  %s13279_s13 = inlined_call_operand.vmem [shape: f32[1,256], index: 13, kind: input, shape index: {}]   ;;  %s13280_s11 = inlined_call_operand.vmem [shape: f32[1,256], index: 11, kind: input, shape index: {}]   ;;  %s13281_s14 = inlined_call_operand.vmem [shape: f32[192,64], index: 14, kind: input, shape index: {}]   ;;  %s13282_s16 = inlined_call_operand.vmem [shape: f32[64,5], index: 16, kind: input, shape index: {}]   ;;  %s13283_s15 = inlined_call_operand.vmem [shape: f32[1,64], index: 15, kind: input, shape index: {}]   ;;  %s13284_s17 = inlined_call_operand.vmem [shape: f32[1,5], index: 17, kind: input, shape index: {}]   ;;  %s13285_s18 = inlined_call_operand.vmem [shape: f32[8,5], index: 18, kind: output, shape index: {}]  }
   0x1   :  { %13297 = sst [smem:[#allocation66_spill]] %s13267_s6  ;;  %219 = vmatprep.mubr.bf16.mxu0 %v13289_v1  ;;  %332 = vmatprep.mubr.bf16.mxu1 %v13289_v1  ;;  %v942_v9 = vld [vmem:[%s13271_s7 + $0x8] sm:$0xff]  ;;  %v9464_v18 = vld [vmem:[%s13270_s0] sm:$0xff]   ;;  %v9466_v25 = vld [vmem:[%s13270_s0 + $0x10] sm:$0xff]   ;;  %vm767_vm3 = vcmask 261120   ;;  %vm776_vm4 = vcmask 523264  }
   0x2   :  { %13298 = sst [smem:[#allocation67_spill]] %s13268_s1  ;;  %s13300_s29 = sld [smem:[#allocation66_spill]]  ;;  %v946_v10 = vld [vmem:[%s13271_s7 + $0x28] sm:$0xff]  ;;  %v941_v19 = vld [vmem:[%s13271_s7] sm:$0xff]  ;;  %v9467_v37 = vld [vmem:[%s13270_s0 + $0x18] sm:$0xff]   ;;  %vm844_vm5 = vcmask 785408  }
   0x3   :  { %13299 = sst [smem:[#allocation68_spill]] %s13269_s2  ;;  %s13301_s20 = sld [smem:[#allocation67_spill]]  ;;  %v8043_v11 = vpack.c.bf16 %v946_v10, %v942_v9  ;;  %v945_v20 = vld [vmem:[%s13271_s7 + $0x20] sm:$0xff]  ;;  %v950_v21 = vld [vmem:[%s13271_s7 + $0x48] sm:$0xff]  ;;  %v9470_v53 = vld [vmem:[%s13270_s0 + $0x30] sm:$0xff]   ;;  %v13291_v10 = vmov 0.0  }
   0x4   :  { %s13302_s2 = sld [smem:[#allocation68_spill]]  ;;  %v954_v22 = vld [vmem:[%s13271_s7 + $0x68] sm:$0xff]  ;;  %v8045_v24 = vpack.c.bf16 %v945_v20, %v941_v19  ;;  %v949_v27 = vld [vmem:[%s13271_s7 + $0x40] sm:$0xff]  ;;  %vm9999_vm6 = vmmov 0   ;;  %vm7649_vm7 = vcmask 39936  }
   0x5   :  { %v9465_v23 = vld [vmem:[%s13270_s0 + $0x8] sm:$0xff]   ;;  %v8047_v26 = vpack.c.bf16 %v954_v22, %v950_v21  ;;  %v953_v28 = vld [vmem:[%s13271_s7 + $0x60] sm:$0xff] }
   0x6   :  { %v958_v29 = vld [vmem:[%s13271_s7 + $0x88] sm:$0xff]  ;;  %v8049_v31 = vpack.c.bf16 %v953_v28, %v949_v27  ;;  %v957_v33 = vld [vmem:[%s13271_s7 + $0x80] sm:$0xff] }
   0x7   :  { %v962_v30 = vld [vmem:[%s13271_s7 + $0xa8] sm:$0xff]  ;;  %v961_v34 = vld [vmem:[%s13271_s7 + $0xa0] sm:$0xff] }
   0x8   :  { %v9450_v0 = vld [vmem:[%s13300_s29 + $0x4] ss:$16 sps:$4 sm:$0xff]   ;;  %v9452_v2 = vld [vmem:[%s13300_s29] ss:$16 sps:$4 sm:$0xff]   ;;  %v8051_v32 = vpack.c.bf16 %v962_v30, %v958_v29  ;;  %v966_v35 = vld [vmem:[%s13271_s7 + $0xc8] sm:$0xff]  ;;  %v8053_v38 = vpack.c.bf16 %v961_v34, %v957_v33 }
   0x9   :  { %187 = vmatprep.subr.bf16.mxu0 %v9450_v0  ;;  %v10106_v3 = vld [vmem:[%s13301_s20] sm:$0xff]   ;;  %v10123_v7 = vld [vmem:[%s13301_s20 + $0x8] sm:$0xff]   ;;  %v10137_v12 = vld [vmem:[%s13301_s20 + $0x10] sm:$0xff]  }
   0xa   :  { %188 = vmatpush1.bf16.msra.mxu0 %v9452_v2  ;;  %v9454_v4 = vld [vmem:[%s13302_s2] sm:$0xff]   ;;  %v9457_v5 = vld [vmem:[%s13302_s2 + $0x8] sm:$0xff]   ;;  %v9461_v6 = vld [vmem:[%s13302_s2 + $0x10] ss:$0 sps:$4 sm:$0xff]  }
   0xb   :  { %7925 = vmatprep.subr.bf16.mxu0 %v9454_v4  ;;  %v587_v8 = vsel %vm585_vm1, %v9461_v6, 0  ;;  %v10145_v13 = vld [vmem:[%s13301_s20 + $0x18] sm:$0xff]   ;;  %v10153_v14 = vld [vmem:[%s13301_s20 + $0x20] sm:$0xff]   ;;  %v10161_v15 = vld [vmem:[%s13301_s20 + $0x28] sm:$0xff]  }
   0xc   :  { %v10169_v16 = vld [vmem:[%s13301_s20 + $0x30] sm:$0xff]   ;;  %v10177_v17 = vld [vmem:[%s13301_s20 + $0x38] sm:$0xff]   ;;  %v970_v36 = vld [vmem:[%s13271_s7 + $0xe8] sm:$0xff] }
   0xd   :  { %7667 = vmatmul.mubr.msk.bf16.vlgmr.msra.gmra.mrb[0].mxu0 %vm162_vm0, %v10106_v3  ;;  %v9468_v39 = vld [vmem:[%s13270_s0 + $0x20] sm:$0xff]   ;;  %v8055_v40 = vpack.c.bf16 %v970_v36, %v966_v35  ;;  %v974_v43 = vld [vmem:[%s13271_s7 + $0x108] sm:$0xff]  ;;  %v9471_v2 = vld [vmem:[%s13270_s0 + $0x38] sm:$0xff]  }
   0xe   :  { %7926 = vmatpush3.bf16.msra.mxu0 %v9454_v4  ;;  %229 = vmatprep.mubr.bf16.mxu0 %v13289_v1  ;;  %v965_v41 = vld [vmem:[%s13271_s7 + $0xc0] sm:$0xff]  ;;  %v978_v44 = vld [vmem:[%s13271_s7 + $0x128] sm:$0xff]  ;;  %v9477_v34 = vld [vmem:[%s13273_s4 + $0x10] sm:$0xff]  }
   0xf   :  { %7927 = vmatprep.subr.bf16.mxu0 %v9457_v5  ;;  %v969_v42 = vld [vmem:[%s13271_s7 + $0xe0] sm:$0xff]  ;;  %v8059_v46 = vpack.c.bf16 %v978_v44, %v974_v43  ;;  %v982_v49 = vld [vmem:[%s13271_s7 + $0x148] sm:$0xff] }
  0x10   :  { %v8057_v45 = vpack.c.bf16 %v969_v42, %v965_v41  ;;  %v973_v47 = vld [vmem:[%s13271_s7 + $0x100] sm:$0xff]  ;;  %v986_v50 = vld [vmem:[%s13271_s7 + $0x168] sm:$0xff] }
  0x11   :  { %v977_v48 = vld [vmem:[%s13271_s7 + $0x120] sm:$0xff]  ;;  %v9469_v51 = vld [vmem:[%s13270_s0 + $0x28] sm:$0xff]   ;;  %v8063_v54 = vpack.c.bf16 %v986_v50, %v982_v49 }
  0x12   :  { %7928 = vmatpush3.bf16.msra.mxu0 %v9457_v5  ;;  %v8061_v52 = vpack.c.bf16 %v977_v48, %v973_v47  ;;  %v981_v55 = vld [vmem:[%s13271_s7 + $0x140] sm:$0xff]  ;;  %v990_v57 = vld [vmem:[%s13271_s7 + $0x188] sm:$0xff] }
  0x13   :  { %9403 = vmatprep.subr.msk.bf16.mxu0 %vm585_vm1, %v9461_v6  ;;  %v985_v56 = vld [vmem:[%s13271_s7 + $0x160] sm:$0xff]  ;;  %v994_v58 = vld [vmem:[%s13271_s7 + $0x1a8] sm:$0xff] }
  0x14   :  { %v8065_v59 = vpack.c.bf16 %v985_v56, %v981_v55  ;;  %v8067_v60 = vpack.c.bf16 %v994_v58, %v990_v57  ;;  %v989_v61 = vld [vmem:[%s13271_s7 + $0x180] sm:$0xff]  ;;  %v998_v63 = vld [vmem:[%s13271_s7 + $0x1c8] sm:$0xff] }
  0x15   :  { %7668 = vmatmul.mubr.msk.bf16.gmra.mrb[4].mxu0 %vm162_vm0, %v10123_v7  ;;  %v993_v62 = vld [vmem:[%s13271_s7 + $0x1a0] sm:$0xff]  ;;  %v1002_v0 = vld [vmem:[%s13271_s7 + $0x1e8] sm:$0xff] }
  0x16   :  { %239 = vmatprep.mubr.bf16.mxu0 %v13289_v1  ;;  %7930 = vmatpush3.bf16.msra.mxu0 %v587_v8  ;;  %v8069_v4 = vpack.c.bf16 %v993_v62, %v989_v61  ;;  %v8071_v5 = vpack.c.bf16 %v1002_v0, %v998_v63  ;;  %v997_v6 = vld [vmem:[%s13271_s7 + $0x1c0] sm:$0xff]  ;;  %v9472_v22 = vld [vmem:[%s13300_s29 + $0xc] ss:$16 sps:$4 sm:$0xff]  }
  0x17   :  { %8044 = vmatprep.subr.bf16.mxu0 %v8043_v11  ;;  %v1001_v8 = vld [vmem:[%s13271_s7 + $0x1e0] sm:$0xff]  ;;  %v82_v11 = vlaneseq  ;;  %300 = vmatprep.subr.bf16.mxu1 %v9472_v22  ;;  %v9476_v30 = vld [vmem:[%s13273_s4 + $0x8] sm:$0xff]  }
  0x18   :  { %v8073_v9 = vpack.c.bf16 %v1001_v8, %v997_v6  ;;  %v10311_v19 = vld [vmem:[%s13272_s8] sm:$0xf] }
  0x1d   :  { %7669 = vmatmul.mubr.msk.bf16.gmra.mrb[8].mxu0 %vm162_vm0, %v10137_v12 }
  0x1e   :  { %249 = vmatprep.mubr.bf16.mxu0 %v13289_v1 }
  0x25   :  { %7670 = vmatmul.mubr.msk.bf16.gmra.mrb[12].mxu0 %vm162_vm0, %v10145_v13 }
  0x26   :  { %259 = vmatprep.mubr.bf16.mxu0 %v13289_v1 }
  0x2d   :  { %7671 = vmatmul.mubr.msk.bf16.gmra.mrb[16].mxu0 %vm162_vm0, %v10153_v14 }
  0x2e   :  { %269 = vmatprep.mubr.bf16.mxu0 %v13289_v1 }
  0x35   :  { %7672 = vmatmul.mubr.msk.bf16.gmra.mrb[20].mxu0 %vm162_vm0, %v10161_v15 }
  0x36   :  { %279 = vmatprep.mubr.bf16.mxu0 %v13289_v1 }
  0x3d   :  { %7673 = vmatmul.mubr.msk.bf16.gmra.mrb[24].mxu0 %vm162_vm0, %v10169_v16 }
  0x3e   :  { %289 = vmatprep.mubr.bf16.mxu0 %v13289_v1 }
  0x45   :  { %7674 = vmatmul.mubr.msk.bf16.gmra.mrb[28].mxu0 %vm162_vm0, %v10177_v17 }
  0x46   :  { %7931 = vmatprep.mubr.msk.bf16.mxu0 %vm560_vm2, %v9464_v18  ;;  %v10306_v18 = vshrl.u32 %v82_v11, 7 }
  0x48   :  { %v10314_v20 = vsub.s32 0, %v10306_v18  ;;  %v10317_v21 = vsub.s32 1, %v10306_v18 }
  0x4a   :  { %13303 = vst [vmem:[#allocation6_spill] sm:$0xff] %v10314_v20  ;;  %13304 = vst [vmem:[#allocation7_spill] sm:$0xff] %v10317_v21  ;;  %v10338_v28 = vrot.slane %v10311_v19, %v10317_v21 }
  0x4d   :  { %7932 = vmatmul.mubr.msk.bf16.vlgmr.msra.gmra.mrb[32].mxu0 %vm560_vm2, %v9465_v23  ;;  %v9474_v23 = vld [vmem:[%s13300_s29 + $0x8] ss:$16 sps:$4 sm:$0xff]  }
  0x4e   :  { %8046 = vmatpush1.bf16.msra.mxu0 %v8045_v24  ;;  %7935 = vmatprep.mubr.msk.bf16.mxu0 %vm560_vm2, %v9466_v25  ;;  %v9475_v24 = vld [vmem:[%s13273_s4] sm:$0xff]  }
  0x4f   :  { %8048 = vmatprep.subr.bf16.mxu0 %v8047_v26  ;;  %v10332_v26 = vrot.slane %v10311_v19, %v10314_v20  ;;  %301 = vmatpush1.bf16.msra.mxu1 %v9474_v23 }
  0x50   :  { %7947 = vmatprep.subr.bf16.mxu1 %v9475_v24 }
  0x52   :  { %8050 = vmatpush1.bf16.msra.mxu0 %v8049_v31  ;;  %7675 = vmatmul.mubr.msk.bf16.vlgmr.msra.gmra.mrb[0].mxu1 %vm162_vm0, %v10106_v3  ;;  %v9478_v3 = vld [vmem:[%s13273_s4 + $0x18] sm:$0xff]  }
  0x53   :  { %8052 = vmatprep.subr.bf16.mxu0 %v8051_v32  ;;  %7948 = vmatpush3.bf16.msra.mxu1 %v9475_v24 }
  0x54   :  { %342 = vmatprep.mubr.bf16.mxu1 %v13289_v1  ;;  %7949 = vmatprep.subr.bf16.mxu1 %v9476_v30 }
  0x55   :  { %7936 = vmatmul.mubr.msk.bf16.gmra.mrb[36].mxu0 %vm560_vm2, %v9467_v37 }
  0x56   :  { %8054 = vmatpush1.bf16.msra.mxu0 %v8053_v38  ;;  %7939 = vmatprep.mubr.msk.bf16.mxu0 %vm560_vm2, %v9468_v39 }
  0x57   :  { %8056 = vmatprep.subr.bf16.mxu0 %v8055_v40  ;;  %7950 = vmatpush3.bf16.msra.mxu1 %v9476_v30 }
  0x58   :  { %7951 = vmatprep.subr.bf16.mxu1 %v9477_v34 }
  0x5a   :  { %8058 = vmatpush1.bf16.msra.mxu0 %v8057_v45  ;;  %7676 = vmatmul.mubr.msk.bf16.gmra.mrb[4].mxu1 %vm162_vm0, %v10123_v7 }
  0x5b   :  { %8060 = vmatprep.subr.bf16.mxu0 %v8059_v46  ;;  %352 = vmatprep.mubr.bf16.mxu1 %v13289_v1 }
  0x5c   :  { %7952 = vmatpush3.bf16.msra.mxu1 %v9477_v34 }
  0x5d   :  { %7940 = vmatmul.mubr.msk.bf16.gmra.mrb[40].mxu0 %vm560_vm2, %v9469_v51  ;;  %7953 = vmatprep.subr.bf16.mxu1 %v9478_v3 }
  0x5e   :  { %8062 = vmatpush1.bf16.msra.mxu0 %v8061_v52  ;;  %7943 = vmatprep.mubr.msk.bf16.mxu0 %vm560_vm2, %v9470_v53 }
  0x5f   :  { %8064 = vmatprep.subr.bf16.mxu0 %v8063_v54 }
  0x60   :  { %7954 = vmatpush3.bf16.msra.mxu1 %v9478_v3 }
  0x62   :  { %8066 = vmatpush1.bf16.msra.mxu0 %v8065_v59  ;;  %7677 = vmatmul.mubr.msk.bf16.gmra.mrb[8].mxu1 %vm162_vm0, %v10137_v12 }
  0x63   :  { %8068 = vmatprep.subr.bf16.mxu0 %v8067_v60  ;;  %362 = vmatprep.mubr.bf16.mxu1 %v13289_v1 }
  0x65   :  { %7944 = vmatmul.mubr.msk.bf16.gmra.mrb[44].mxu0 %vm560_vm2, %v9471_v2 }
  0x66   :  { %8070 = vmatpush1.bf16.msra.mxu0 %v8069_v4  ;;  %1069 = vmatprep.mubr.f32.mxu0 %v13291_v10 }
  0x67   :  { %8072 = vmatprep.subr.bf16.mxu0 %v8071_v5 }
  0x6a   :  { %8074 = vmatpush1.bf16.msra.mxu0 %v8073_v9  ;;  %7678 = vmatmul.mubr.msk.bf16.gmra.mrb[12].mxu1 %vm162_vm0, %v10145_v13 }
  0x6b   :  { %372 = vmatprep.mubr.bf16.mxu1 %v13289_v1 }
  0x6d   :  { %1070 = vmatmul.mubr.f32.vlgmr.msra.gmra.mrb[48].mxu0 %v13291_v10 }
  0x6e   :  { %1313 = vmatprep.mubr.f32.mxu0 %v13291_v10 }
  0x72   :  { %7679 = vmatmul.mubr.msk.bf16.gmra.mrb[16].mxu1 %vm162_vm0, %v10153_v14 }
  0x73   :  { %382 = vmatprep.mubr.bf16.mxu1 %v13289_v1 }
  0x7a   :  { %7680 = vmatmul.mubr.msk.bf16.gmra.mrb[20].mxu1 %vm162_vm0, %v10161_v15 }
  0x7b   :  { %392 = vmatprep.mubr.bf16.mxu1 %v13289_v1 }
  0x82   :  { %7681 = vmatmul.mubr.msk.bf16.gmra.mrb[24].mxu1 %vm162_vm0, %v10169_v16  ;;  %v10465_v16 = vld [vmem:[%s13274_s3] ss:$0 sm:$0xff] }
  0x83   :  { %402 = vmatprep.mubr.bf16.mxu1 %v13289_v1 }
  0x8a   :  { %7682 = vmatmul.mubr.msk.bf16.gmra.mrb[28].mxu1 %vm162_vm0, %v10177_v17 }
  0xe0   :  { %v10328_v25 = vpop.f32.mrb[0].mxu0 }
  0xe1   :  { %v10334_v27 = vpop.f32.mrb[1].mxu0 }
  0xe2   :  { %v225_v29 = vpop.f32.mrb[2].mxu0 }
  0xe3   :  { %v10344_v31 = vadd.f32 %v225_v29, %v10332_v26  ;;  %v227_v32 = vpop.f32.mrb[3].mxu0 }
  0xe4   :  { %v10347_v33 = vadd.f32 %v227_v32, %v10338_v28 }
  0xe8   :  { %v231_v35 = vpop.f32.mrb[4].mxu0 }
  0xe9   :  { %v10356_v36 = vadd.f32 %v231_v35, %v10332_v26  ;;  %v233_v37 = vpop.f32.mrb[5].mxu0 }
  0xea   :  { %v10359_v38 = vadd.f32 %v233_v37, %v10338_v28  ;;  %v235_v39 = vpop.f32.mrb[6].mxu0 }
  0xeb   :  { %13305 = vst [vmem:[#allocation8_spill] sm:$0xff] %v10356_v36  ;;  %v10365_v40 = vadd.f32 %v235_v39, %v10332_v26  ;;  %v237_v41 = vpop.f32.mrb[7].mxu0 }
  0xec   :  { %13306 = vst [vmem:[#allocation9_spill] sm:$0xff] %v10359_v38  ;;  %v10368_v42 = vadd.f32 %v237_v41, %v10338_v28 }
  0xed   :  { %13307 = vst [vmem:[#allocation10_spill] sm:$0xff] %v10365_v40 }
  0xee   :  { %13308 = vst [vmem:[#allocation11_spill] sm:$0xff] %v10368_v42 }
  0xf0   :  { %v241_v43 = vpop.f32.mrb[8].mxu0 }
  0xf1   :  { %v10374_v44 = vadd.f32 %v241_v43, %v10332_v26  ;;  %v243_v45 = vpop.f32.mrb[9].mxu0 }
  0xf2   :  { %v10377_v46 = vadd.f32 %v243_v45, %v10338_v28  ;;  %v245_v47 = vpop.f32.mrb[10].mxu0 }
  0xf3   :  { %13309 = vst [vmem:[#allocation12_spill] sm:$0xff] %v10374_v44  ;;  %v10380_v48 = vadd.f32 %v245_v47, %v10332_v26  ;;  %v247_v49 = vpop.f32.mrb[11].mxu0 }
  0xf4   :  { %13310 = vst [vmem:[#allocation13_spill] sm:$0xff] %v10377_v46  ;;  %v10383_v7 = vadd.f32 %v247_v49, %v10338_v28 }
  0xf5   :  { %13311 = vst [vmem:[#allocation14_spill] sm:$0xff] %v10380_v48 }
  0xf6   :  { %13312 = vst [vmem:[#allocation15_spill] sm:$0xff] %v10383_v7 }
  0xf8   :  { %v251_v50 = vpop.f32.mrb[12].mxu0 }
  0xf9   :  { %v10389_v51 = vadd.f32 %v251_v50, %v10332_v26  ;;  %v253_v52 = vpop.f32.mrb[13].mxu0 }
  0xfa   :  { %v10392_v53 = vadd.f32 %v253_v52, %v10338_v28  ;;  %v255_v54 = vpop.f32.mrb[14].mxu0  ;;  %v9479_v52 = vld [vmem:[%s13273_s4 + $0x20] sm:$0xff]  }
  0xfb   :  { %13313 = vst [vmem:[#allocation16_spill] sm:$0xff] %v10389_v51  ;;  %v10395_v55 = vadd.f32 %v255_v54, %v10332_v26  ;;  %v257_v56 = vpop.f32.mrb[15].mxu0  ;;  %7955 = vmatprep.subr.bf16.mxu1 %v9479_v52 }
  0xfc   :  { %13314 = vst [vmem:[#allocation17_spill] sm:$0xff] %v10392_v53  ;;  %v10398_v57 = vadd.f32 %v257_v56, %v10338_v28  ;;  %7956 = vmatpush3.bf16.msra.mxu1 %v9479_v52 }
  0xfd   :  { %13315 = vst [vmem:[#allocation18_spill] sm:$0xff] %v10395_v55  ;;  %v1238_v55 = vld [vmem:[%s13271_s7 + $0x1a8] sm:$0xff] }
  0xfe   :  { %13316 = vst [vmem:[#allocation19_spill] sm:$0xff] %v10398_v57  ;;  %v1225_v57 = vld [vmem:[%s13271_s7 + $0x140] sm:$0xff] }
 0x100   :  { %v261_v12 = vpop.f32.mrb[16].mxu0 }
 0x101   :  { %v10404_v58 = vadd.f32 %v261_v12, %v10332_v26  ;;  %v263_v59 = vpop.f32.mrb[17].mxu0 }
 0x102   :  { %v10407_v60 = vadd.f32 %v263_v59, %v10338_v28  ;;  %v265_v61 = vpop.f32.mrb[18].mxu0 }
 0x103   :  { %13317 = vst [vmem:[#allocation20_spill] sm:$0xff] %v10404_v58  ;;  %v10410_v62 = vadd.f32 %v265_v61, %v10332_v26  ;;  %v267_v63 = vpop.f32.mrb[19].mxu0  ;;  %v1217_v58 = vld [vmem:[%s13271_s7 + $0x100] sm:$0xff] }
 0x104   :  { %13318 = vst [vmem:[#allocation21_spill] sm:$0xff] %v10407_v60  ;;  %v10413_v0 = vadd.f32 %v267_v63, %v10338_v28  ;;  %v1209_v60 = vld [vmem:[%s13271_s7 + $0xc0] sm:$0xff] }
 0x105   :  { %13319 = vst [vmem:[#allocation22_spill] sm:$0xff] %v10410_v62  ;;  %v1201_v62 = vld [vmem:[%s13271_s7 + $0x80] sm:$0xff] }
 0x106   :  { %13320 = vst [vmem:[#allocation23_spill] sm:$0xff] %v10413_v0 }
 0x108   :  { %v271_v13 = vpop.f32.mrb[20].mxu0 }
 0x109   :  { %v10419_v2 = vadd.f32 %v271_v13, %v10332_v26  ;;  %v273_v4 = vpop.f32.mrb[21].mxu0 }
 0x10a   :  { %v10422_v5 = vadd.f32 %v273_v4, %v10338_v28  ;;  %v275_v6 = vpop.f32.mrb[22].mxu0 }
 0x10b   :  { %13321 = vst [vmem:[#allocation24_spill] sm:$0xff] %v10419_v2  ;;  %v10425_v8 = vadd.f32 %v275_v6, %v10332_v26  ;;  %v277_v9 = vpop.f32.mrb[23].mxu0 }
 0x10c   :  { %13322 = vst [vmem:[#allocation25_spill] sm:$0xff] %v10422_v5  ;;  %v10428_v11 = vadd.f32 %v277_v9, %v10338_v28 }
 0x10d   :  { %13323 = vst [vmem:[#allocation26_spill] sm:$0xff] %v10425_v8 }
 0x10e   :  { %13324 = vst [vmem:[#allocation27_spill] sm:$0xff] %v10428_v11 }
 0x110   :  { %v281_v14 = vpop.f32.mrb[24].mxu0 }
 0x111   :  { %v10434_v22 = vadd.f32 %v281_v14, %v10332_v26  ;;  %v283_v23 = vpop.f32.mrb[25].mxu0 }
 0x112   :  { %v10437_v24 = vadd.f32 %v283_v23, %v10338_v28  ;;  %v285_v29 = vpop.f32.mrb[26].mxu0 }
 0x113   :  { %13325 = vst [vmem:[#allocation28_spill] sm:$0xff] %v10434_v22  ;;  %v10440_v30 = vadd.f32 %v285_v29, %v10332_v26  ;;  %v287_v32 = vpop.f32.mrb[27].mxu0 }
 0x114   :  { %13326 = vst [vmem:[#allocation29_spill] sm:$0xff] %v10437_v24  ;;  %v10443_v34 = vadd.f32 %v287_v32, %v10338_v28 }
 0x115   :  { %13327 = vst [vmem:[#allocation30_spill] sm:$0xff] %v10440_v30 }
 0x116   :  { %13328 = vst [vmem:[#allocation31_spill] sm:$0xff] %v10443_v34 }
 0x118   :  { %v291_v15 = vpop.f32.mrb[28].mxu0 }
 0x119   :  { %v10449_v35 = vadd.f32 %v291_v15, %v10332_v26  ;;  %v293_v37 = vpop.f32.mrb[29].mxu0 }
 0x11a   :  { %v10452_v39 = vadd.f32 %v293_v37, %v10338_v28  ;;  %v295_v3 = vpop.f32.mrb[30].mxu0 }
 0x11b   :  { %13329 = vst [vmem:[#allocation32_spill] sm:$0xff] %v10449_v35  ;;  %v10455_v41 = vadd.f32 %v295_v3, %v10332_v26  ;;  %v297_v43 = vpop.f32.mrb[31].mxu0  ;;  %v9480_v3 = vld [vmem:[%s13273_s4 + $0x28] sm:$0xff]   ;;  %v999_v35 = vld [vmem:[%s13271_s7 + $0x1d0] sm:$0xff] }
 0x11c   :  { %13330 = vst [vmem:[#allocation33_spill] sm:$0xff] %v10452_v39  ;;  %v10458_v45 = vadd.f32 %v297_v43, %v10338_v28  ;;  %7957 = vmatprep.subr.bf16.mxu1 %v9480_v3 }
 0x11d   :  { %13331 = vst [vmem:[#allocation34_spill] sm:$0xff] %v10455_v41  ;;  %7958 = vmatpush3.bf16.msra.mxu1 %v9480_v3 }
 0x11e   :  { %13332 = vst [vmem:[#allocation35_spill] sm:$0xff] %v10458_v45 }
 0x120   :  { %v7933_v47 = vpop.f32.mrb[32].mxu0 }
 0x121   :  { %v632_v49 = vadd.f32 %v7933_v47, %v10465_v16  ;;  %v623_v50 = vpop.f32.mrb[33].mxu0 }
 0x122   :  { %v624_v54 = vadd.f32 %v10465_v16, %v623_v50  ;;  %v7934_v56 = vpop.f32.mrb[34].mxu0 }
 0x123   :  { %v635_v12 = vadd.f32 %v7934_v56, %v10465_v16  ;;  %v626_v59 = vpop.f32.mrb[35].mxu0  ;;  %v688_v61 = vmax.f32 %v632_v49, 0.0 }
 0x124   :  { %v627_v17 = vadd.f32 %v10465_v16, %v626_v59  ;;  %v686_v13 = vmax.f32 %v624_v54, 0.0 }
 0x125   :  { %v689_v63 = vmax.f32 %v635_v12, 0.0 }
 0x126   :  { %v687_v4 = vmax.f32 %v627_v17, 0.0 }
 0x127   :  { %v10474_v6 = vmax.f32 %v688_v61, %v689_v63  ;;  %v944_v61 = vld [vmem:[%s13271_s7 + $0x18] sm:$0xff] }
 0x128   :  { %v10476_v9 = vmax.f32 %v686_v13, %v687_v4  ;;  %v7937_v14 = vpop.f32.mrb[36].mxu0  ;;  %v948_v63 = vld [vmem:[%s13271_s7 + $0x38] sm:$0xff] }
 0x129   :  { %v648_v23 = vadd.f32 %v7937_v14, %v10465_v16  ;;  %v639_v29 = vpop.f32.mrb[37].mxu0  ;;  %v10499_v14 = vpack.c.bf16 %v948_v63, %v944_v61 }
 0x12a   :  { %v640_v32 = vadd.f32 %v10465_v16, %v639_v29  ;;  %v7938_v15 = vpop.f32.mrb[38].mxu0  ;;  %v9410_v37 = vpack.i.bf16 %v10474_v6, %v10476_v9 }
 0x12b   :  { %v651_v43 = vadd.f32 %v7938_v15, %v10465_v16  ;;  %v642_v47 = vpop.f32.mrb[39].mxu0  ;;  %v692_v50 = vmax.f32 %v648_v23, 0.0  ;;  %8076 = vmatprep.subr.bf16.mxu1 %v10499_v14 }
 0x12c   :  { %v643_v49 = vadd.f32 %v10465_v16, %v642_v47  ;;  %9411 = vrot.lane.b32.xlu0 %v9410_v37, %s9996_s25  ;;  %v690_v54 = vmax.f32 %v640_v32, 0.0 }
 0x12d   :  { %v693_v52 = vmax.f32 %v651_v43, 0.0 }
 0x12e   :  { %v691_v56 = vmax.f32 %v643_v49, 0.0 }
 0x12f   :  { %v10488_v12 = vmax.f32 %v692_v50, %v693_v52 }
 0x130   :  { %v10490_v59 = vmax.f32 %v690_v54, %v691_v56  ;;  %v7941_v17 = vpop.f32.mrb[40].mxu0 }
 0x131   :  { %v664_v13 = vadd.f32 %v7941_v17, %v10465_v16  ;;  %v655_v4 = vpop.f32.mrb[41].mxu0 }
 0x132   :  { %v656_v23 = vadd.f32 %v10465_v16, %v655_v4  ;;  %v7942_v29 = vpop.f32.mrb[42].mxu0  ;;  %v9420_v32 = vpack.i.bf16 %v10490_v59, %v10474_v6  ;;  %v9415_v15 = vpack.i.bf16 %v10488_v12, %v10490_v59 }
 0x133   :  { %v667_v37 = vadd.f32 %v7942_v29, %v10465_v16  ;;  %v658_v3 = vpop.f32.mrb[43].mxu0  ;;  %v696_v47 = vmax.f32 %v664_v13, 0.0 }
 0x134   :  { %v659_v43 = vadd.f32 %v10465_v16, %v658_v3  ;;  %9421 = vrot.lane.b32.xlu1 %v9420_v32, %s9997_s30  ;;  %9416 = vrot.lane.b32.xlu0 %v9415_v15, %s9996_s25  ;;  %v694_v50 = vmax.f32 %v656_v23, 0.0 }
 0x135   :  { %v697_v49 = vmax.f32 %v667_v37, 0.0 }
 0x136   :  { %v695_v52 = vmax.f32 %v659_v43, 0.0 }
 0x137   :  { %v10511_v54 = vmax.f32 %v696_v47, %v697_v49 }
 0x138   :  { %v10513_v56 = vmax.f32 %v694_v50, %v695_v52  ;;  %v7945_v17 = vpop.f32.mrb[44].mxu0  ;;  %v222_v50 = vadd.f32 %v10328_v25, %v10332_v26 }
 0x139   :  { %v680_v61 = vadd.f32 %v7945_v17, %v10465_v16  ;;  %v671_v63 = vpop.f32.mrb[45].mxu0  ;;  %v224_v17 = vadd.f32 %v10334_v27, %v10338_v28 }
 0x13a   :  { %v672_v4 = vadd.f32 %v10465_v16, %v671_v63  ;;  %v7946_v29 = vpop.f32.mrb[46].mxu0  ;;  %v9425_v32 = vpack.i.bf16 %v10513_v56, %v10488_v12  ;;  %v9430_v13 = vpack.i.bf16 %v10511_v54, %v10513_v56 }
 0x13b   :  { %v700_v15 = vmax.f32 %v680_v61, 0.0  ;;  %v683_v23 = vadd.f32 %v7946_v29, %v10465_v16  ;;  %v674_v37 = vpop.f32.mrb[47].mxu0 }
 0x13c   :  { %v698_v3 = vmax.f32 %v672_v4, 0.0  ;;  %v675_v43 = vadd.f32 %v10465_v16, %v674_v37  ;;  %9426 = vrot.lane.b32.xlu1 %v9425_v32, %s9997_s30  ;;  %9431 = vrot.lane.b32.xlu0 %v9430_v13, %s9996_s25 }
 0x13d   :  { %v701_v47 = vmax.f32 %v683_v23, 0.0 }
 0x13e   :  { %v699_v49 = vmax.f32 %v675_v43, 0.0 }
 0x13f   :  { %v709_v52 = vmax.f32 %v700_v15, %v701_v47 }
 0x140   :  { %v10529_v61 = vmax.f32 %v698_v3, %v699_v49  ;;  %v1071_v63 = vpop.f32.mrb[48].mxu0 }
 0x141   :  { %v10531_v29 = vadd.f32 %v1071_v63, %v222_v50  ;;  %v1073_v4 = vpop.f32.mrb[49].mxu0  ;;  %v9445_v25 = vpack.i.bf16 %v13291_v10, %v709_v52 }
 0x142   :  { %v10533_v16 = vadd.f32 %v1073_v4, %v224_v17  ;;  %v9435_v32 = vpack.i.bf16 %v709_v52, %v10529_v61  ;;  %v9440_v13 = vpack.i.bf16 %v10529_v61, %v10511_v54 }
 0x143   :  { %v7714_v38 = vmul.f32 -1.442695, %v10531_v29 }
 0x144   :  { %9436 = vrot.lane.b32.xlu1 %v9435_v32, %s9996_s25  ;;  %9441 = vrot.lane.b32.xlu0 %v9440_v13, %s9997_s30  ;;  %v943_v32 = vld [vmem:[%s13271_s7 + $0x10] sm:$0xff]  ;;  %v7715_v40 = vmul.f32 -1.442695, %v10533_v16 }
 0x146   :  { %9529 = vpow2.f32 %v7715_v40 }
 0x147   :  { %9531 = vpow2.f32 %v7714_v38 }
 0x148   :  { %9446 = vrot.lane.b32.xlu1 %v9445_v25, %s9997_s30 }
 0x150   :  { %v9530_v16 = vpop.eup %9529 }
 0x151   :  { %v1161_v29 = vadd.f32 1.0, %v9530_v16 }
 0x153   :  { %9533 = vrcp.f32 %v1161_v29 }
 0x19e   :  { %v9412_v26 = vpop.permute.xlu0 %9411 }
 0x19f   :  { %v9414_v27 = vunpack.i.h.bf16 %v9412_v26  ;;  %v9413_v28 = vunpack.i.l.bf16 %v9412_v26  ;;  %v952_v26 = vld [vmem:[%s13271_s7 + $0x58] sm:$0xff] }
 0x1a1   :  { %v769_v3 = vsel %vm767_vm3, %v10476_v9, %v9414_v27  ;;  %v768_v43 = vsel %vm767_vm3, 0.0, %v9413_v28  ;;  %v947_v9 = vld [vmem:[%s13271_s7 + $0x30] sm:$0xff]  ;;  %v956_v27 = vld [vmem:[%s13271_s7 + $0x78] sm:$0xff] }
 0x1a6   :  { %v9422_v15 = vpop.permute.xlu1 %9421  ;;  %v9417_v50 = vpop.permute.xlu0 %9416 }
 0x1a7   :  { %v9424_v23 = vunpack.i.h.bf16 %v9422_v15  ;;  %v9423_v37 = vunpack.i.l.bf16 %v9422_v15  ;;  %v9419_v17 = vunpack.i.h.bf16 %v9417_v50  ;;  %v9418_v63 = vunpack.i.l.bf16 %v9417_v50  ;;  %v951_v50 = vld [vmem:[%s13271_s7 + $0x50] sm:$0xff] }
 0x1a9   :  { %v777_v47 = vsel %vm776_vm4, %v768_v43, %v9423_v37  ;;  %v778_v49 = vsel %vm776_vm4, %v769_v3, %v9424_v23  ;;  %v771_v28 = vsel %vm767_vm3, %v10490_v59, %v9419_v17  ;;  %v770_v15 = vsel %vm767_vm3, %v10474_v6, %v9418_v63  ;;  %v955_v59 = vld [vmem:[%s13271_s7 + $0x70] sm:$0xff]  ;;  %v964_v17 = vld [vmem:[%s13271_s7 + $0xb8] sm:$0xff] }
 0x1aa   :  { %v785_v52 = vpack.c.bf16 %v778_v49, %v777_v47  ;;  %v10566_v43 = vpack.c.bf16 %v947_v9, %v943_v32  ;;  %v10568_v49 = vpack.c.bf16 %v956_v27, %v952_v26  ;;  %v92_v6 = vsub.s32 2, %v10306_v18  ;;  %v959_v27 = vld [vmem:[%s13271_s7 + $0x90] sm:$0xff] }
 0x1ab   :  { %v96_v63 = vsub.s32 3, %v10306_v18  ;;  %v10586_v9 = vpack.c.bf16 %v955_v59, %v951_v50  ;;  %v963_v18 = vld [vmem:[%s13271_s7 + $0xb0] sm:$0xff] }
 0x1ac   :  { %7959 = vmatprep.mubr.msk.bf16.mxu1 %vm844_vm5, %v785_v52  ;;  %v960_v52 = vld [vmem:[%s13271_s7 + $0x98] sm:$0xff]  ;;  %v10620_v21 = vpack.c.bf16 %v963_v18, %v959_v27 }
 0x1ad   :  { %v10589_v26 = vpack.c.bf16 %v964_v17, %v960_v52  ;;  %v10609_v50 = vrot.slane %v10311_v19, %v96_v63 }
 0x1ae   :  { %v9427_v4 = vpop.permute.xlu1 %9426  ;;  %v9432_v3 = vpop.permute.xlu0 %9431 }
 0x1af   :  { %v9429_v13 = vunpack.i.h.bf16 %v9427_v4  ;;  %v9428_v25 = vunpack.i.l.bf16 %v9427_v4  ;;  %v9434_v4 = vunpack.i.h.bf16 %v9432_v3  ;;  %v9433_v32 = vunpack.i.l.bf16 %v9432_v3  ;;  %v972_v3 = vld [vmem:[%s13271_s7 + $0xf8] sm:$0xff] }
 0x1b1   :  { %v779_v23 = vsel %vm776_vm4, %v770_v15, %v9428_v25  ;;  %v780_v37 = vsel %vm776_vm4, %v771_v28, %v9429_v13  ;;  %v10598_v28 = vrot.slane %v10311_v19, %v92_v6  ;;  %v773_v59 = vsel %vm767_vm3, %v10513_v56, %v9434_v4  ;;  %v971_v4 = vld [vmem:[%s13271_s7 + $0xf0] sm:$0xff] }
 0x1b2   :  { %v786_v47 = vpack.c.bf16 %v780_v37, %v779_v23  ;;  %v968_v37 = vld [vmem:[%s13271_s7 + $0xd8] sm:$0xff]  ;;  %v772_v6 = vsel %vm767_vm3, %v10488_v12, %v9433_v32  ;;  %v967_v12 = vld [vmem:[%s13271_s7 + $0xd0] sm:$0xff] }
 0x1b3   :  { %v10623_v56 = vpack.c.bf16 %v972_v3, %v968_v37 }
 0x1b4   :  { %7960 = vmatmul.mubr.msk.bf16.vlgmr.msra.gmra.mrb[32].mxu1 %vm844_vm5, %v786_v47  ;;  %v10606_v47 = vpop.f32.mrb[0].mxu1 }
 0x1b5   :  { %8078 = vmatpush1.bf16.msra.mxu1 %v10566_v43 }
 0x1b6   :  { %v9437_v13 = vpop.permute.xlu1 %9436  ;;  %v9442_v25 = vpop.permute.xlu0 %9441  ;;  %8080 = vmatprep.subr.bf16.mxu1 %v10568_v49 }
 0x1b7   :  { %v9444_v15 = vunpack.i.h.bf16 %v9442_v25  ;;  %v9443_v23 = vunpack.i.l.bf16 %v9442_v25  ;;  %v9439_v52 = vunpack.i.h.bf16 %v9437_v13  ;;  %v9438_v17 = vunpack.i.l.bf16 %v9437_v13  ;;  %v10615_v25 = vpop.f32.mrb[1].mxu1 }
 0x1b8   :  { %v338_v19 = vpop.f32.mrb[2].mxu1 }
 0x1b9   :  { %v781_v1 = vsel %vm776_vm4, %v772_v6, %v9443_v23  ;;  %v782_v10 = vsel %vm776_vm4, %v773_v59, %v9444_v15  ;;  %8082 = vmatpush1.bf16.msra.mxu1 %v10586_v9  ;;  %v10632_v32 = vadd.f32 %v338_v19, %v10598_v28  ;;  %v340_v13 = vpop.f32.mrb[3].mxu1  ;;  %v775_v23 = vsel %vm767_vm3, %v10529_v61, %v9439_v52  ;;  %v975_v61 = vld [vmem:[%s13271_s7 + $0x110] sm:$0xff]  ;;  %v984_v52 = vld [vmem:[%s13271_s7 + $0x158] sm:$0xff] }
 0x1ba   :  { %v787_v63 = vpack.c.bf16 %v782_v10, %v781_v1  ;;  %v9447_v20 = vpop.permute.xlu1 %9446  ;;  %8084 = vmatprep.subr.bf16.mxu1 %v10589_v26  ;;  %v976_v1 = vld [vmem:[%s13271_s7 + $0x118] sm:$0xff]  ;;  %v10641_v15 = vadd.f32 %v340_v13, %v10609_v50  ;;  %v774_v37 = vsel %vm767_vm3, %v10511_v54, %v9438_v17  ;;  %v10651_v59 = vpack.c.bf16 %v971_v4, %v967_v12  ;;  %v979_v54 = vld [vmem:[%s13271_s7 + $0x130] sm:$0xff] }
 0x1bb   :  { %v9449_v27 = vunpack.i.h.bf16 %v9447_v20  ;;  %v9448_v18 = vunpack.i.l.bf16 %v9447_v20  ;;  %v980_v10 = vld [vmem:[%s13271_s7 + $0x138] sm:$0xff]  ;;  %v10673_v13 = vpack.c.bf16 %v979_v54, %v975_v61 }
 0x1bc   :  { %13333 = vst [vmem:[#allocation36_spill] sm:$0xff] %v10641_v15  ;;  %7963 = vmatprep.mubr.msk.bf16.mxu1 %vm844_vm5, %v787_v63  ;;  %v10654_v19 = vpack.c.bf16 %v980_v10, %v976_v1  ;;  %v988_v17 = vld [vmem:[%s13271_s7 + $0x178] sm:$0xff]  ;;  %v344_v63 = vpop.f32.mrb[4].mxu1 }
 0x1bd   :  { %v783_v20 = vsel %vm776_vm4, %v774_v37, %v9448_v18  ;;  %v784_v3 = vsel %vm776_vm4, %v775_v23, %v9449_v27  ;;  %8086 = vmatpush1.bf16.msra.mxu1 %v10620_v21  ;;  %v10670_v12 = vadd.f32 %v344_v63, %v10598_v28  ;;  %v346_v4 = vpop.f32.mrb[5].mxu1  ;;  %v13335_v27 = vmov 0.0   ;;  %v983_v23 = vld [vmem:[%s13271_s7 + $0x150] sm:$0xff]  ;;  %v996_v61 = vld [vmem:[%s13271_s7 + $0x1b8] sm:$0xff] }
 0x1be   :  { %v788_v6 = vpack.c.bf16 %v784_v3, %v783_v20  ;;  %8088 = vmatprep.subr.bf16.mxu1 %v10623_v56  ;;  %v10677_v18 = vadd.f32 %v346_v4, %v10609_v50  ;;  %v348_v1 = vpop.f32.mrb[6].mxu1  ;;  %v10680_v10 = vpack.c.bf16 %v988_v17, %v984_v52  ;;  %v987_v37 = vld [vmem:[%s13271_s7 + $0x170] sm:$0xff] }
 0x1bf   :  { %13334 = vst [vmem:[#allocation37_spill] sm:$0xff] %v10670_v12  ;;  %v10689_v20 = vadd.f32 %v348_v1, %v10598_v28  ;;  %v350_v3 = vpop.f32.mrb[7].mxu1  ;;  %v10701_v52 = vpack.c.bf16 %v987_v37, %v983_v23  ;;  %v991_v63 = vld [vmem:[%s13271_s7 + $0x190] sm:$0xff]  ;;  %v1000_v1 = vld [vmem:[%s13271_s7 + $0x1d8] sm:$0xff] }
 0x1c0   :  { %7964 = vmatmul.mubr.msk.bf16.gmra.mrb[36].mxu1 %vm844_vm5, %v788_v6  ;;  %13336 = vst [vmem:[#allocation38_spill] sm:$0xff] %v10677_v18  ;;  %v992_v6 = vld [vmem:[%s13271_s7 + $0x198] sm:$0xff]  ;;  %v10698_v54 = vadd.f32 %v350_v3, %v10609_v50  ;;  %v995_v4 = vld [vmem:[%s13271_s7 + $0x1b0] sm:$0xff]  ;;  %v354_v37 = vpop.f32.mrb[8].mxu1 }
 0x1c1   :  { %8090 = vmatpush1.bf16.msra.mxu1 %v10651_v59  ;;  %1140 = vmatprep.mubr.f32.mxu1 %v13335_v27  ;;  %13337 = vst [vmem:[#allocation39_spill] sm:$0xff] %v10689_v20  ;;  %v10704_v17 = vpack.c.bf16 %v996_v61, %v992_v6  ;;  %v1004_v23 = vld [vmem:[%s13271_s7 + $0x1f8] sm:$0xff]  ;;  %v10719_v3 = vadd.f32 %v354_v37, %v10598_v28  ;;  %v356_v6 = vpop.f32.mrb[9].mxu1  ;;  %v1003_v37 = vld [vmem:[%s13271_s7 + $0x1f0] sm:$0xff] }
 0x1c2   :  { %8092 = vmatprep.subr.bf16.mxu1 %v10654_v19  ;;  %13338 = vst [vmem:[#allocation40_spill] sm:$0xff] %v10698_v54  ;;  %v10722_v61 = vpack.c.bf16 %v995_v4, %v991_v63  ;;  %v10725_v45 = vadd.f32 %v356_v6, %v10609_v50  ;;  %v358_v41 = vpop.f32.mrb[10].mxu1  ;;  %v10728_v39 = vpack.c.bf16 %v1004_v23, %v1000_v1 }
 0x1c3   :  { %13339 = vst [vmem:[#allocation41_spill] sm:$0xff] %v10719_v3  ;;  %v10737_v34 = vadd.f32 %v358_v41, %v10598_v28  ;;  %v360_v63 = vpop.f32.mrb[11].mxu1  ;;  %v10743_v6 = vpack.c.bf16 %v1003_v37, %v999_v35 }
 0x1c4   :  { %13340 = vst [vmem:[#allocation42_spill] sm:$0xff] %v10725_v45  ;;  %v10740_v4 = vadd.f32 %v360_v63, %v10609_v50  ;;  %v364_v1 = vpop.f32.mrb[12].mxu1 }
 0x1c5   :  { %8094 = vmatpush1.bf16.msra.mxu1 %v10673_v13  ;;  %13341 = vst [vmem:[#allocation43_spill] sm:$0xff] %v10737_v34  ;;  %v10747_v23 = vadd.f32 %v364_v1, %v10598_v28  ;;  %v366_v30 = vpop.f32.mrb[13].mxu1 }
 0x1c6   :  { %8096 = vmatprep.subr.bf16.mxu1 %v10680_v10  ;;  %13342 = vst [vmem:[#allocation44_spill] sm:$0xff] %v10740_v4  ;;  %v10751_v41 = vadd.f32 %v366_v30, %v10609_v50  ;;  %v368_v24 = vpop.f32.mrb[14].mxu1 }
 0x1c7   :  { %13343 = vst [vmem:[#allocation45_spill] sm:$0xff] %v10747_v23  ;;  %v10754_v63 = vadd.f32 %v368_v24, %v10598_v28  ;;  %v370_v22 = vpop.f32.mrb[15].mxu1  ;;  %v1245_v23 = vld [vmem:[%s13271_s7 + $0x1e0] sm:$0xff] }
 0x1c8   :  { %13344 = vst [vmem:[#allocation46_spill] sm:$0xff] %v10751_v41  ;;  %v10758_v35 = vadd.f32 %v370_v22, %v10609_v50  ;;  %v374_v30 = vpop.f32.mrb[16].mxu1  ;;  %v1246_v41 = vld [vmem:[%s13271_s7 + $0x1e8] sm:$0xff] }
 0x1c9   :  { %8098 = vmatpush1.bf16.msra.mxu1 %v10701_v52  ;;  %13345 = vst [vmem:[#allocation47_spill] sm:$0xff] %v10754_v63  ;;  %v10765_v37 = vadd.f32 %v374_v30, %v10598_v28  ;;  %v376_v24 = vpop.f32.mrb[17].mxu1  ;;  %v1234_v63 = vld [vmem:[%s13271_s7 + $0x188] sm:$0xff] }
 0x1ca   :  { %8100 = vmatprep.subr.bf16.mxu1 %v10704_v17  ;;  %13346 = vst [vmem:[#allocation48_spill] sm:$0xff] %v10758_v35  ;;  %v10768_v1 = vadd.f32 %v376_v24, %v10609_v50  ;;  %v378_v11 = vpop.f32.mrb[18].mxu1  ;;  %v1226_v35 = vld [vmem:[%s13271_s7 + $0x148] sm:$0xff] }
 0x1cb   :  { %13347 = vst [vmem:[#allocation49_spill] sm:$0xff] %v10765_v37  ;;  %v10772_v22 = vadd.f32 %v378_v11, %v10598_v28  ;;  %v380_v8 = vpop.f32.mrb[19].mxu1  ;;  %v1218_v37 = vld [vmem:[%s13271_s7 + $0x108] sm:$0xff] }
 0x1cc   :  { %13348 = vst [vmem:[#allocation50_spill] sm:$0xff] %v10768_v1  ;;  %v10776_v5 = vadd.f32 %v380_v8, %v10609_v50  ;;  %v384_v30 = vpop.f32.mrb[20].mxu1  ;;  %v1210_v1 = vld [vmem:[%s13271_s7 + $0xc8] sm:$0xff] }
 0x1cd   :  { %8102 = vmatpush1.bf16.msra.mxu1 %v10722_v61  ;;  %13349 = vst [vmem:[#allocation51_spill] sm:$0xff] %v10772_v22  ;;  %v10781_v24 = vadd.f32 %v384_v30, %v10598_v28  ;;  %v386_v2 = vpop.f32.mrb[21].mxu1 }
 0x1ce   :  { %8104 = vmatprep.subr.bf16.mxu1 %v10728_v39  ;;  %13350 = vst [vmem:[#allocation52_spill] sm:$0xff] %v10776_v5  ;;  %v10784_v0 = vadd.f32 %v386_v2, %v10609_v50  ;;  %v388_v11 = vpop.f32.mrb[22].mxu1 }
 0x1cf   :  { %13351 = vst [vmem:[#allocation53_spill] sm:$0xff] %v10781_v24  ;;  %v10788_v22 = vadd.f32 %v388_v11, %v10598_v28  ;;  %v390_v8 = vpop.f32.mrb[23].mxu1 }
 0x1d0   :  { %13352 = vst [vmem:[#allocation54_spill] sm:$0xff] %v10784_v0  ;;  %v10792_v5 = vadd.f32 %v390_v8, %v10609_v50  ;;  %v394_v30 = vpop.f32.mrb[24].mxu1 }
 0x1d1   :  { %8106 = vmatpush1.bf16.msra.mxu1 %v10743_v6  ;;  %13353 = vst [vmem:[#allocation55_spill] sm:$0xff] %v10788_v22  ;;  %v10797_v2 = vadd.f32 %v394_v30, %v10598_v28  ;;  %v396_v0 = vpop.f32.mrb[25].mxu1 }
 0x1d2   :  { %8140 = vmatprep.subr.bf16.mxu1 %v10499_v14  ;;  %13354 = vst [vmem:[#allocation56_spill] sm:$0xff] %v10792_v5  ;;  %v10800_v24 = vadd.f32 %v396_v0, %v10609_v50  ;;  %v398_v11 = vpop.f32.mrb[26].mxu1 }
 0x1d3   :  { %13355 = vst [vmem:[#allocation57_spill] sm:$0xff] %v10797_v2  ;;  %v10804_v22 = vadd.f32 %v398_v11, %v10598_v28  ;;  %v400_v8 = vpop.f32.mrb[27].mxu1 }
 0x1d4   :  { %1141 = vmatmul.mubr.f32.vlgmr.msra.gmra.mrb[40].mxu1 %v13335_v27  ;;  %13356 = vst [vmem:[#allocation58_spill] sm:$0xff] %v10800_v24  ;;  %v10808_v5 = vadd.f32 %v400_v8, %v10609_v50  ;;  %v404_v30 = vpop.f32.mrb[28].mxu1 }
 0x1d5   :  { %8142 = vmatpush1.bf16.msra.mxu1 %v10566_v43  ;;  %1384 = vmatprep.mubr.f32.mxu1 %v13335_v27  ;;  %13357 = vst [vmem:[#allocation59_spill] sm:$0xff] %v10804_v22  ;;  %v10813_v0 = vadd.f32 %v404_v30, %v10598_v28  ;;  %v406_v24 = vpop.f32.mrb[29].mxu1  ;;  %v1186_v30 = vld [vmem:[%s13271_s7 + $0x8] sm:$0xff] }
 0x1d6   :  { %8144 = vmatprep.subr.bf16.mxu1 %v10568_v49  ;;  %13358 = vst [vmem:[#allocation60_spill] sm:$0xff] %v10808_v5  ;;  %v10816_v2 = vadd.f32 %v406_v24, %v10609_v50  ;;  %v408_v11 = vpop.f32.mrb[30].mxu1  ;;  %v1190_v24 = vld [vmem:[%s13271_s7 + $0x28] sm:$0xff] }
 0x1d7   :  { %13359 = vst [vmem:[#allocation61_spill] sm:$0xff] %v10813_v0  ;;  %v10820_v22 = vadd.f32 %v408_v11, %v10598_v28  ;;  %v410_v8 = vpop.f32.mrb[31].mxu1  ;;  %v1185_v11 = vld [vmem:[%s13271_s7] sm:$0xff]  ;;  %v1202_v0 = vld [vmem:[%s13271_s7 + $0x88] sm:$0xff] }
 0x1d8   :  { %13360 = vst [vmem:[#allocation62_spill] sm:$0xff] %v10816_v2  ;;  %v10824_v5 = vadd.f32 %v410_v8, %v10609_v50  ;;  %v10832_v2 = vpack.c.bf16 %v1190_v24, %v1186_v30  ;;  %v1198_v30 = vld [vmem:[%s13271_s7 + $0x68] sm:$0xff] }
 0x1d9   :  { %8146 = vmatpush1.bf16.msra.mxu1 %v10586_v9  ;;  %13361 = vst [vmem:[#allocation63_spill] sm:$0xff] %v10820_v22  ;;  %v1193_v22 = vld [vmem:[%s13271_s7 + $0x40] sm:$0xff] }
 0x1da   :  { %8148 = vmatprep.subr.bf16.mxu1 %v10589_v26  ;;  %13362 = vst [vmem:[#allocation64_spill] sm:$0xff] %v10824_v5  ;;  %8108 = vmatprep.subr.bf16.mxu0 %v10832_v2  ;;  %v1194_v5 = vld [vmem:[%s13271_s7 + $0x48] sm:$0xff] }
 0x1db   :  { %v10850_v24 = vpack.c.bf16 %v1198_v30, %v1194_v5  ;;  %v1206_v5 = vld [vmem:[%s13271_s7 + $0xa8] sm:$0xff] }
 0x1dc   :  { %v10868_v30 = vpack.c.bf16 %v1206_v5, %v1202_v0  ;;  %v1214_v0 = vld [vmem:[%s13271_s7 + $0xe8] sm:$0xff] }
 0x1dd   :  { %8150 = vmatpush1.bf16.msra.mxu1 %v10620_v21  ;;  %v10886_v5 = vpack.c.bf16 %v1214_v0, %v1210_v1  ;;  %v1222_v1 = vld [vmem:[%s13271_s7 + $0x128] sm:$0xff] }
 0x1de   :  { %8152 = vmatprep.subr.bf16.mxu1 %v10623_v56  ;;  %v10904_v0 = vpack.c.bf16 %v1222_v1, %v1218_v37  ;;  %v1230_v37 = vld [vmem:[%s13271_s7 + $0x168] sm:$0xff] }
 0x1df   :  { %v10922_v1 = vpack.c.bf16 %v1230_v37, %v1226_v35  ;;  %v1233_v35 = vld [vmem:[%s13271_s7 + $0x180] sm:$0xff]  ;;  %v10942_v37 = vpack.c.bf16 %v1238_v55, %v1234_v63 }
 0x1e0   :  { %v1241_v63 = vld [vmem:[%s13271_s7 + $0x1c0] sm:$0xff] }
 0x1e1   :  { %8154 = vmatpush1.bf16.msra.mxu1 %v10651_v59  ;;  %v10966_v51 = vpack.c.bf16 %v1245_v23, %v1241_v63 }
 0x1e2   :  { %8156 = vmatprep.subr.bf16.mxu1 %v10654_v19 }
 0x1e5   :  { %8158 = vmatpush1.bf16.msra.mxu1 %v10673_v13 }
 0x1e6   :  { %8160 = vmatprep.subr.bf16.mxu1 %v10680_v10 }
 0x1e9   :  { %8162 = vmatpush1.bf16.msra.mxu1 %v10701_v52 }
 0x1ea   :  { %8164 = vmatprep.subr.bf16.mxu1 %v10704_v17 }
 0x1ed   :  { %8166 = vmatpush1.bf16.msra.mxu1 %v10722_v61 }
 0x1ee   :  { %8168 = vmatprep.subr.bf16.mxu1 %v10728_v39 }
 0x1f1   :  { %8170 = vmatpush1.bf16.msra.mxu1 %v10743_v6 }
 0x1f2   :  { %8204 = vmatprep.subr.bf16.mxu1 %v10499_v14  ;;  %v1189_v14 = vld [vmem:[%s13271_s7 + $0x20] sm:$0xff] }
 0x1f3   :  { %v10840_v8 = vpack.c.bf16 %v1189_v14, %v1185_v11  ;;  %v1197_v11 = vld [vmem:[%s13271_s7 + $0x60] sm:$0xff] }
 0x1f4   :  { %v10858_v14 = vpack.c.bf16 %v1197_v11, %v1193_v22  ;;  %v1205_v22 = vld [vmem:[%s13271_s7 + $0xa0] sm:$0xff] }
 0x1f5   :  { %8110 = vmatpush1.bf16.msra.mxu0 %v10840_v8  ;;  %v10876_v11 = vpack.c.bf16 %v1205_v22, %v1201_v62  ;;  %v1213_v62 = vld [vmem:[%s13271_s7 + $0xe0] sm:$0xff] }
 0x1f6   :  { %8112 = vmatprep.subr.bf16.mxu0 %v10850_v24  ;;  %v10894_v22 = vpack.c.bf16 %v1213_v62, %v1209_v60  ;;  %v1221_v60 = vld [vmem:[%s13271_s7 + $0x120] sm:$0xff] }
 0x1f7   :  { %v10912_v62 = vpack.c.bf16 %v1221_v60, %v1217_v58  ;;  %v1229_v58 = vld [vmem:[%s13271_s7 + $0x160] sm:$0xff] }
 0x1f8   :  { %v10930_v60 = vpack.c.bf16 %v1229_v58, %v1225_v57  ;;  %v1237_v57 = vld [vmem:[%s13271_s7 + $0x1a0] sm:$0xff]  ;;  %v1242_v58 = vld [vmem:[%s13271_s7 + $0x1c8] sm:$0xff] }
 0x1f9   :  { %8114 = vmatpush1.bf16.msra.mxu0 %v10858_v14  ;;  %v10954_v53 = vpack.c.bf16 %v1237_v57, %v1233_v35  ;;  %v10957_v55 = vpack.c.bf16 %v1246_v41, %v1242_v58  ;;  %v7703_v41 = vld [vmem:[%s13275_s5] ss:$0 sm:$0xff] }
 0x1fa   :  { %8116 = vmatprep.subr.bf16.mxu0 %v10868_v30 }
 0x1fd   :  { %8118 = vmatpush1.bf16.msra.mxu0 %v10876_v11 }
 0x1fe   :  { %8120 = vmatprep.subr.bf16.mxu0 %v10886_v5 }
 0x201   :  { %8122 = vmatpush1.bf16.msra.mxu0 %v10894_v22 }
 0x202   :  { %8124 = vmatprep.subr.bf16.mxu0 %v10904_v0 }
 0x205   :  { %8126 = vmatpush1.bf16.msra.mxu0 %v10912_v62 }
 0x206   :  { %8128 = vmatprep.subr.bf16.mxu0 %v10922_v1 }
 0x209   :  { %8130 = vmatpush1.bf16.msra.mxu0 %v10930_v60 }
 0x20a   :  { %8132 = vmatprep.subr.bf16.mxu0 %v10942_v37 }
 0x20d   :  { %8134 = vmatpush1.bf16.msra.mxu0 %v10954_v53 }
 0x20e   :  { %8136 = vmatprep.subr.bf16.mxu0 %v10957_v55 }
 0x211   :  { %8138 = vmatpush1.bf16.msra.mxu0 %v10966_v51 }
 0x212   :  { %8172 = vmatprep.subr.bf16.mxu0 %v10832_v2 }
 0x287   :  { %v7961_v35 = vpop.f32.mrb[32].mxu1 }
 0x288   :  { %v891_v57 = vpop.f32.mrb[33].mxu1  ;;  %v900_v34 = vadd.f32 %v7961_v35, %v7703_v41 }
 0x289   :  { %v892_v58 = vadd.f32 %v7703_v41, %v891_v57  ;;  %v7962_v4 = vpop.f32.mrb[34].mxu1 }
 0x28a   :  { %v894_v7 = vpop.f32.mrb[35].mxu1  ;;  %v903_v23 = vadd.f32 %v7962_v4, %v7703_v41  ;;  %v924_v46 = vmax.f32 %v900_v34, 0.0 }
 0x28b   :  { %v895_v48 = vadd.f32 %v7703_v41, %v894_v7  ;;  %v922_v45 = vmax.f32 %v892_v58, 0.0  ;;  %v9532_v58 = vpop.eup %9531 }
 0x28c   :  { %v925_v44 = vmax.f32 %v903_v23, 0.0 }
 0x28d   :  { %v923_v63 = vmax.f32 %v895_v48, 0.0 }
 0x28f   :  { %v930_v3 = vmax.f32 %v922_v45, %v923_v63 }
 0x291   :  { %v931_v54 = vmax.f32 %v930_v3, %v924_v46 }
 0x293   :  { %v7965_v42 = vpop.f32.mrb[36].mxu1  ;;  %v932_v20 = vmax.f32 %v931_v54, %v925_v44 }
 0x294   :  { %v907_v18 = vpop.f32.mrb[37].mxu1  ;;  %v916_v15 = vadd.f32 %v7965_v42, %v7703_v41  ;;  %v335_v42 = vadd.f32 %v10606_v47, %v10598_v28 }
 0x295   :  { %v908_v12 = vadd.f32 %v7703_v41, %v907_v18  ;;  %v7966_v57 = vpop.f32.mrb[38].mxu1  ;;  %v1160_v18 = vadd.f32 1.0, %v9532_v58 }
 0x296   :  { %v910_v36 = vpop.f32.mrb[39].mxu1  ;;  %v919_v34 = vadd.f32 %v7966_v57, %v7703_v41  ;;  %v928_v4 = vmax.f32 %v916_v15, 0.0 }
 0x297   :  { %v926_v35 = vmax.f32 %v908_v12, 0.0  ;;  %v911_v7 = vadd.f32 %v7703_v41, %v910_v36  ;;  %v337_v36 = vadd.f32 %v10615_v25, %v10609_v50  ;;  %9535 = vrcp.f32 %v1160_v18  ;;  %v9534_v41 = vpop.eup %9533  ;;  %v1676_v18 = vld [vmem:[%s13271_s7 + $0x18] sm:$0xff] }
 0x298   :  { %v929_v3 = vmax.f32 %v919_v34, 0.0 }
 0x299   :  { %v933_v48 = vmax.f32 %v932_v20, %v926_v35  ;;  %v927_v45 = vmax.f32 %v911_v7, 0.0  ;;  %v1170_v35 = vmul.f32 0.0, %v9534_v41  ;;  %v1683_v41 = vld [vmem:[%s13271_s7 + $0x50] sm:$0xff] }
 0x29b   :  { %v934_v46 = vmax.f32 %v933_v48, %v927_v45 }
 0x29d   :  { %v935_v44 = vmax.f32 %v934_v46, %v928_v4 }
 0x29f   :  { %v10976_v54 = vmax.f32 %v935_v44, %v929_v3 }
 0x2a1   :  { %13363 = vst [vmem:[#allocation65_spill] sm:$0xff] %v10976_v54  ;;  %v9536_v23 = vpop.eup %9535 }
 0x2a7   :  { %v1142_v38 = vpop.f32.mrb[40].mxu1 }
 0x2a8   :  { %v1149_v40 = vadd.f32 %v1142_v38, %v335_v42  ;;  %v1144_v12 = vpop.f32.mrb[41].mxu1  ;;  %v1680_v42 = vld [vmem:[%s13271_s7 + $0x38] sm:$0xff]  ;;  %v1675_v38 = vld [vmem:[%s13271_s7 + $0x10] sm:$0xff] }
 0x2a9   :  { %v1150_v15 = vadd.f32 %v1144_v12, %v337_v36  ;;  %v11062_v36 = vpack.c.bf16 %v1680_v42, %v1676_v18  ;;  %v1731_v42 = vld [vmem:[%s13271_s7 + $0x1d0] sm:$0xff] }
 0x2aa   :  { %v7716_v20 = vmul.f32 -1.442695, %v1149_v40  ;;  %v1679_v40 = vld [vmem:[%s13271_s7 + $0x30] sm:$0xff] }
 0x2ab   :  { %9537 = vtanh.f32 %v1150_v15  ;;  %v11070_v12 = vpack.c.bf16 %v1679_v40, %v1675_v38  ;;  %v1688_v15 = vld [vmem:[%s13271_s7 + $0x78] sm:$0xff]  ;;  %v1735_v38 = vld [vmem:[%s13271_s7 + $0x1f0] sm:$0xff] }
 0x2ac   :  { %9539 = vpow2.f32 %v7716_v20  ;;  %v11196_v40 = vpack.c.bf16 %v1735_v38, %v1731_v42 }
 0x2b5   :  { %v9538_v63 = vpop.eup %9537 }
 0x2b6   :  { %v9540_v57 = vpop.eup %9539  ;;  %v1171_v7 = vmul.f32 %v9538_v63, %v9536_v23  ;;  %v1687_v23 = vld [vmem:[%s13271_s7 + $0x70] sm:$0xff] }
 0x2b7   :  { %v1162_v48 = vadd.f32 1.0, %v9540_v57  ;;  %v11088_v63 = vpack.c.bf16 %v1687_v23, %v1683_v41  ;;  %v1692_v57 = vld [vmem:[%s13271_s7 + $0x98] sm:$0xff]  ;;  %v13365_v41 = vld [vmem:[#allocation8_spill] sm:$0xff] }
 0x2b8   :  { %v10982_v28 = vadd.f32 %v1171_v7, %v1170_v35  ;;  %v1696_v35 = vld [vmem:[%s13271_s7 + $0xb8] sm:$0xff] }
 0x2b9   :  { %9541 = vrcp.f32 %v1162_v48  ;;  %v11098_v7 = vpack.c.bf16 %v1696_v35, %v1692_v57  ;;  %v1691_v48 = vld [vmem:[%s13271_s7 + $0x90] sm:$0xff]  ;;  %v13366_v57 = vld [vmem:[#allocation37_spill] sm:$0xff] }
 0x2ba   :  { %9543 = vtanh.f32 %v10982_v28 }
 0x2c3   :  { %v9542_v47 = vpop.eup %9541 }
 0x2c4   :  { %v9544_v50 = vpop.eup %9543 }
 0x2c5   :  { %v10985_v25 = vmul.f32 %v9544_v50, %v9542_v47  ;;  %v1700_v50 = vld [vmem:[%s13271_s7 + $0xd8] sm:$0xff] }
 0x2c7   :  { %1175 = vst.msk [vmem:[#allocation4] sm:$0xff] %vm776_vm4, %v10985_v25  ;;  %1314 = vmatmul.mubr.f32.vlgmr.msra.gmra.mrb[50].mxu0 %v10985_v25  ;;  %1385 = vmatmul.mubr.f32.vlgmr.msra.gmra.mrb[42].mxu1 %v10985_v25 }
 0x2c8   :  { %8174 = vmatpush1.bf16.msra.mxu0 %v10840_v8  ;;  %8206 = vmatpush1.bf16.msra.mxu1 %v10566_v43 }
 0x2c9   :  { %8176 = vmatprep.subr.bf16.mxu0 %v10850_v24  ;;  %8208 = vmatprep.subr.bf16.mxu1 %v10568_v49 }
 0x2ca   :  { %1557 = vmatprep.mubr.f32.mxu0 %v13335_v27  ;;  %1628 = vmatprep.mubr.f32.mxu1 %v13335_v27 }
 0x2cc   :  { %8178 = vmatpush1.bf16.msra.mxu0 %v10858_v14  ;;  %8210 = vmatpush1.bf16.msra.mxu1 %v10586_v9 }
 0x2cd   :  { %8180 = vmatprep.subr.bf16.mxu0 %v10868_v30  ;;  %8212 = vmatprep.subr.bf16.mxu1 %v10589_v26 }
 0x2d0   :  { %8182 = vmatpush1.bf16.msra.mxu0 %v10876_v11  ;;  %8214 = vmatpush1.bf16.msra.mxu1 %v10620_v21 }
 0x2d1   :  { %8184 = vmatprep.subr.bf16.mxu0 %v10886_v5  ;;  %8216 = vmatprep.subr.bf16.mxu1 %v10623_v56 }
 0x2d4   :  { %8186 = vmatpush1.bf16.msra.mxu0 %v10894_v22  ;;  %8218 = vmatpush1.bf16.msra.mxu1 %v10651_v59 }
 0x2d5   :  { %8188 = vmatprep.subr.bf16.mxu0 %v10904_v0  ;;  %8220 = vmatprep.subr.bf16.mxu1 %v10654_v19  ;;  %v13364_v19 = vld [vmem:[#allocation36_spill] sm:$0xff] }
 0x2d8   :  { %8190 = vmatpush1.bf16.msra.mxu0 %v10912_v62  ;;  %8222 = vmatpush1.bf16.msra.mxu1 %v10673_v13 }
 0x2d9   :  { %8192 = vmatprep.subr.bf16.mxu0 %v10922_v1  ;;  %8224 = vmatprep.subr.bf16.mxu1 %v10680_v10 }
 0x2dc   :  { %8194 = vmatpush1.bf16.msra.mxu0 %v10930_v60  ;;  %8226 = vmatpush1.bf16.msra.mxu1 %v10701_v52 }
 0x2dd   :  { %8196 = vmatprep.subr.bf16.mxu0 %v10942_v37  ;;  %8228 = vmatprep.subr.bf16.mxu1 %v10704_v17 }
 0x2e0   :  { %8198 = vmatpush1.bf16.msra.mxu0 %v10954_v53  ;;  %8230 = vmatpush1.bf16.msra.mxu1 %v10722_v61 }
 0x2e1   :  { %8200 = vmatprep.subr.bf16.mxu0 %v10957_v55  ;;  %8232 = vmatprep.subr.bf16.mxu1 %v10728_v39 }
 0x2e4   :  { %8202 = vmatpush1.bf16.msra.mxu0 %v10966_v51  ;;  %8234 = vmatpush1.bf16.msra.mxu1 %v10743_v6 }
 0x2e5   :  { %8236 = vmatprep.subr.bf16.mxu0 %v10832_v2  ;;  %8268 = vmatprep.subr.bf16.mxu1 %v11062_v36 }
 0x39a   :  { %v1315_v21 = vpop.f32.mrb[50].mxu0  ;;  %v1386_v43 = vpop.f32.mrb[42].mxu1 }
 0x39b   :  { %v1391_v49 = vadd.f32 %v1315_v21, %v10344_v31  ;;  %v1393_v9 = vadd.f32 %v1386_v43, %v10632_v32  ;;  %v1317_v26 = vpop.f32.mrb[51].mxu0  ;;  %v1388_v56 = vpop.f32.mrb[43].mxu1  ;;  %v1704_v21 = vld [vmem:[%s13271_s7 + $0xf8] sm:$0xff] }
 0x39c   :  { %v1392_v59 = vadd.f32 %v1317_v26, %v10347_v33  ;;  %v1394_v13 = vadd.f32 %v1388_v56, %v13364_v19  ;;  %v11116_v43 = vpack.c.bf16 %v1704_v21, %v1700_v50  ;;  %v1708_v56 = vld [vmem:[%s13271_s7 + $0x118] sm:$0xff] }
 0x39d   :  { %v7717_v10 = vmul.f32 -1.442695, %v1391_v49  ;;  %v7719_v52 = vmul.f32 -1.442695, %v1393_v9  ;;  %v1699_v49 = vld [vmem:[%s13271_s7 + $0xd0] sm:$0xff]  ;;  %v13367_v50 = vld [vmem:[#allocation9_spill] sm:$0xff] }
 0x39e   :  { %v7718_v39 = vmul.f32 -1.442695, %v1392_v59  ;;  %v1703_v9 = vld [vmem:[%s13271_s7 + $0xf0] sm:$0xff]  ;;  %v1712_v59 = vld [vmem:[%s13271_s7 + $0x138] sm:$0xff] }
 0x39f   :  { %9545 = vpow2.f32 %v7717_v10  ;;  %v11124_v26 = vpack.c.bf16 %v1703_v9, %v1699_v49  ;;  %v11134_v19 = vpack.c.bf16 %v1712_v59, %v1708_v56  ;;  %v1711_v10 = vld [vmem:[%s13271_s7 + $0x130] sm:$0xff]  ;;  %v13368_v49 = vld [vmem:[#allocation38_spill] sm:$0xff] }
 0x3a0   :  { %9547 = vpow2.f32 %v7718_v39 }
 0x3a1   :  { %9549 = vtanh.f32 %v1394_v13  ;;  %v1707_v13 = vld [vmem:[%s13271_s7 + $0x110] sm:$0xff] }
 0x3a2   :  { %9551 = vpow2.f32 %v7719_v52  ;;  %v11142_v39 = vpack.c.bf16 %v1711_v10, %v1707_v13  ;;  %v1716_v52 = vld [vmem:[%s13271_s7 + $0x158] sm:$0xff] }
 0x3a9   :  { %v9546_v17 = vpop.eup %9545 }
 0x3aa   :  { %v1404_v61 = vadd.f32 1.0, %v9546_v17  ;;  %v9548_v6 = vpop.eup %9547  ;;  %v1720_v17 = vld [vmem:[%s13271_s7 + $0x178] sm:$0xff] }
 0x3ab   :  { %v1405_v31 = vadd.f32 1.0, %v9548_v6  ;;  %v9550_v32 = vpop.eup %9549  ;;  %v1715_v6 = vld [vmem:[%s13271_s7 + $0x150] sm:$0xff] }
 0x3ac   :  { %9553 = vrcp.f32 %v1404_v61  ;;  %v9552_v34 = vpop.eup %9551  ;;  %v11152_v61 = vpack.c.bf16 %v1720_v17, %v1716_v52 }
 0x3ad   :  { %9555 = vrcp.f32 %v1405_v31  ;;  %v1406_v46 = vadd.f32 1.0, %v9552_v34  ;;  %v1719_v31 = vld [vmem:[%s13271_s7 + $0x170] sm:$0xff]  ;;  %v1724_v34 = vld [vmem:[%s13271_s7 + $0x198] sm:$0xff] }
 0x3af   :  { %9557 = vrcp.f32 %v1406_v46  ;;  %v1727_v46 = vld [vmem:[%s13271_s7 + $0x1b0] sm:$0xff] }
 0x3b6   :  { %v9554_v45 = vpop.eup %9553 }
 0x3b7   :  { %v1415_v4 = vmul.f32 %v9554_v45, %v9550_v32  ;;  %v9556_v33 = vpop.eup %9555  ;;  %v11160_v32 = vpack.c.bf16 %v1719_v31, %v1715_v6  ;;  %v1728_v45 = vld [vmem:[%s13271_s7 + $0x1b8] sm:$0xff] }
 0x3b8   :  { %v1414_v3 = vmul.f32 %v9556_v33, %v10982_v28  ;;  %v1695_v28 = vld [vmem:[%s13271_s7 + $0xb0] sm:$0xff]  ;;  %v11172_v33 = vpack.c.bf16 %v1728_v45, %v1724_v34 }
 0x3b9   :  { %v9558_v16 = vpop.eup %9557  ;;  %v11106_v47 = vpack.c.bf16 %v1695_v28, %v1691_v48 }
 0x3ba   :  { %v11029_v44 = vadd.f32 %v1415_v4, %v1414_v3  ;;  %v1723_v4 = vld [vmem:[%s13271_s7 + $0x190] sm:$0xff]  ;;  %v1732_v3 = vld [vmem:[%s13271_s7 + $0x1d8] sm:$0xff] }
 0x3bc   :  { %9559 = vtanh.f32 %v11029_v44 }
 0x3c6   :  { %v9560_v58 = vpop.eup %9559 }
 0x3c7   :  { %v11032_v29 = vmul.f32 %v9560_v58, %v9558_v16  ;;  %v1736_v16 = vld [vmem:[%s13271_s7 + $0x1f8] sm:$0xff]  ;;  %v11184_v58 = vpack.c.bf16 %v1727_v46, %v1723_v4 }
 0x3c8   :  { %v11187_v18 = vpack.c.bf16 %v1736_v16, %v1732_v3 }
 0x3c9   :  { %1419 = vst.msk [vmem:[#allocation4 + $0x8] sm:$0xff] %vm776_vm4, %v11032_v29  ;;  %1558 = vmatmul.mubr.f32.vlgmr.msra.gmra.mrb[52].mxu0 %v11032_v29  ;;  %1629 = vmatmul.mubr.f32.vlgmr.msra.gmra.mrb[44].mxu1 %v11032_v29 }
 0x3ca   :  { %8238 = vmatpush1.bf16.msra.mxu0 %v10840_v8  ;;  %1801 = vmatprep.mubr.f32.mxu0 %v13335_v27 }
 0x3cb   :  { %8240 = vmatprep.subr.bf16.mxu0 %v10850_v24  ;;  %1872 = vmatprep.mubr.f32.mxu1 %v13335_v27 }
 0x3cc   :  { %8270 = vmatpush1.bf16.msra.mxu1 %v11070_v12 }
 0x3ce   :  { %8242 = vmatpush1.bf16.msra.mxu0 %v10858_v14 }
 0x3cf   :  { %8244 = vmatprep.subr.bf16.mxu0 %v10868_v30 }
 0x3d2   :  { %8246 = vmatpush1.bf16.msra.mxu0 %v10876_v11 }
 0x3d3   :  { %8248 = vmatprep.subr.bf16.mxu0 %v10886_v5 }
 0x3d6   :  { %8250 = vmatpush1.bf16.msra.mxu0 %v10894_v22 }
 0x3d7   :  { %8252 = vmatprep.subr.bf16.mxu0 %v10904_v0 }
 0x3da   :  { %8254 = vmatpush1.bf16.msra.mxu0 %v10912_v62 }
 0x3db   :  { %8256 = vmatprep.subr.bf16.mxu0 %v10922_v1 }
 0x3de   :  { %8258 = vmatpush1.bf16.msra.mxu0 %v10930_v60 }
 0x3df   :  { %8260 = vmatprep.subr.bf16.mxu0 %v10942_v37 }
 0x3e2   :  { %8262 = vmatpush1.bf16.msra.mxu0 %v10954_v53 }
 0x3e3   :  { %8264 = vmatprep.subr.bf16.mxu0 %v10957_v55 }
 0x3e6   :  { %8266 = vmatpush1.bf16.msra.mxu0 %v10966_v51 }
 0x3e7   :  { %8300 = vmatprep.subr.bf16.mxu0 %v10832_v2  ;;  %v1684_v2 = vld [vmem:[%s13271_s7 + $0x58] sm:$0xff] }
 0x3e8   :  { %v11080_v20 = vpack.c.bf16 %v1688_v15, %v1684_v2 }
 0x3ea   :  { %8272 = vmatprep.subr.bf16.mxu1 %v11080_v20 }
 0x3eb   :  { %8274 = vmatpush1.bf16.msra.mxu1 %v11088_v63 }
 0x3ec   :  { %8276 = vmatprep.subr.bf16.mxu1 %v11098_v7 }
 0x3ef   :  { %8278 = vmatpush1.bf16.msra.mxu1 %v11106_v47 }
 0x3f0   :  { %8280 = vmatprep.subr.bf16.mxu1 %v11116_v43 }
 0x3f3   :  { %8282 = vmatpush1.bf16.msra.mxu1 %v11124_v26 }
 0x3f4   :  { %8284 = vmatprep.subr.bf16.mxu1 %v11134_v19 }
 0x3f7   :  { %8286 = vmatpush1.bf16.msra.mxu1 %v11142_v39 }
 0x3f8   :  { %8288 = vmatprep.subr.bf16.mxu1 %v11152_v61 }
 0x3fb   :  { %8290 = vmatpush1.bf16.msra.mxu1 %v11160_v32 }
 0x3fc   :  { %8292 = vmatprep.subr.bf16.mxu1 %v11172_v33 }
 0x3ff   :  { %8294 = vmatpush1.bf16.msra.mxu1 %v11184_v58 }
 0x400   :  { %8296 = vmatprep.subr.bf16.mxu1 %v11187_v18 }
 0x403   :  { %8298 = vmatpush1.bf16.msra.mxu1 %v11196_v40 }
 0x404   :  { %8332 = vmatprep.subr.bf16.mxu1 %v11062_v36 }
 0x49c   :  { %v1559_v2 = vpop.f32.mrb[52].mxu0  ;;  %v1630_v15 = vpop.f32.mrb[44].mxu1 }
 0x49d   :  { %v1635_v23 = vadd.f32 %v1559_v2, %v13365_v41  ;;  %v1637_v35 = vadd.f32 %v1630_v15, %v13366_v57  ;;  %v1561_v48 = vpop.f32.mrb[53].mxu0  ;;  %v1632_v28 = vpop.f32.mrb[45].mxu1 }
 0x49e   :  { %v1636_v21 = vadd.f32 %v1561_v48, %v13367_v50  ;;  %v1638_v9 = vadd.f32 %v1632_v28, %v13368_v49 }
 0x49f   :  { %v7720_v56 = vmul.f32 -1.442695, %v1635_v23  ;;  %v7722_v13 = vmul.f32 -1.442695, %v1637_v35 }
 0x4a0   :  { %v7721_v59 = vmul.f32 -1.442695, %v1636_v21 }
 0x4a1   :  { %9561 = vpow2.f32 %v7720_v56 }
 0x4a2   :  { %9563 = vpow2.f32 %v7721_v59 }
 0x4a3   :  { %9565 = vtanh.f32 %v1638_v9 }
 0x4a4   :  { %9567 = vpow2.f32 %v7722_v13 }
 0x4ab   :  { %v9562_v10 = vpop.eup %9561 }
 0x4ac   :  { %v1648_v52 = vadd.f32 1.0, %v9562_v10  ;;  %v9564_v17 = vpop.eup %9563 }
 0x4ad   :  { %v1649_v6 = vadd.f32 1.0, %v9564_v17  ;;  %v9566_v31 = vpop.eup %9565  ;;  %v2166_v17 = vld [vmem:[%s13271_s7 + $0x28] sm:$0xff] }
 0x4ae   :  { %9569 = vrcp.f32 %v1648_v52  ;;  %v9568_v34 = vpop.eup %9567  ;;  %v2162_v52 = vld [vmem:[%s13271_s7 + $0x8] sm:$0xff] }
 0x4af   :  { %9571 = vrcp.f32 %v1649_v6  ;;  %v1650_v3 = vadd.f32 1.0, %v9568_v34  ;;  %v11286_v6 = vpack.c.bf16 %v2166_v17, %v2162_v52  ;;  %v2165_v34 = vld [vmem:[%s13271_s7 + $0x20] sm:$0xff]  ;;  %v2222_v52 = vld [vmem:[%s13271_s7 + $0x1e8] sm:$0xff] }
 0x4b1   :  { %9573 = vrcp.f32 %v1650_v3  ;;  %v2169_v3 = vld [vmem:[%s13271_s7 + $0x40] sm:$0xff] }
 0x4b8   :  { %v9570_v45 = vpop.eup %9569 }
 0x4b9   :  { %v1659_v4 = vmul.f32 %v9570_v45, %v9566_v31  ;;  %v9572_v46 = vpop.eup %9571  ;;  %v2161_v31 = vld [vmem:[%s13271_s7] sm:$0xff] }
 0x4ba   :  { %v1658_v16 = vmul.f32 %v9572_v46, %v11029_v44  ;;  %v11294_v45 = vpack.c.bf16 %v2165_v34, %v2161_v31  ;;  %v2217_v34 = vld [vmem:[%s13271_s7 + $0x1c0] sm:$0xff] }
 0x4bb   :  { %v9574_v38 = vpop.eup %9573 }
 0x4bc   :  { %v11206_v42 = vadd.f32 %v1659_v4, %v1658_v16  ;;  %v2174_v4 = vld [vmem:[%s13271_s7 + $0x68] sm:$0xff]  ;;  %v2173_v16 = vld [vmem:[%s13271_s7 + $0x60] sm:$0xff] }
 0x4be   :  { %9575 = vtanh.f32 %v11206_v42 }
 0x4c8   :  { %v9576_v2 = vpop.eup %9575 }
 0x4c9   :  { %v11209_v15 = vmul.f32 %v9576_v2, %v9574_v38  ;;  %v2178_v38 = vld [vmem:[%s13271_s7 + $0x88] sm:$0xff] }
 0x4ca   :  { %v2182_v2 = vld [vmem:[%s13271_s7 + $0xa8] sm:$0xff] }
 0x4cb   :  { %1663 = vst.msk [vmem:[#allocation4 + $0x10] sm:$0xff] %vm776_vm4, %v11209_v15  ;;  %1802 = vmatmul.mubr.f32.vlgmr.msra.gmra.mrb[54].mxu0 %v11209_v15  ;;  %1873 = vmatmul.mubr.f32.vlgmr.msra.gmra.mrb[46].mxu1 %v11209_v15 }
 0x4cc   :  { %8302 = vmatpush1.bf16.msra.mxu0 %v10840_v8  ;;  %8334 = vmatpush1.bf16.msra.mxu1 %v11070_v12 }
 0x4cd   :  { %8304 = vmatprep.subr.bf16.mxu0 %v10850_v24  ;;  %8336 = vmatprep.subr.bf16.mxu1 %v11080_v20 }
 0x4ce   :  { %2045 = vmatprep.mubr.f32.mxu0 %v13335_v27  ;;  %2116 = vmatprep.mubr.f32.mxu1 %v13335_v27 }
 0x4d0   :  { %8306 = vmatpush1.bf16.msra.mxu0 %v10858_v14  ;;  %8338 = vmatpush1.bf16.msra.mxu1 %v11088_v63  ;;  %v13369_v14 = vld [vmem:[#allocation10_spill] sm:$0xff] }
 0x4d1   :  { %8308 = vmatprep.subr.bf16.mxu0 %v10868_v30  ;;  %8340 = vmatprep.subr.bf16.mxu1 %v11098_v7 }
 0x4d4   :  { %8310 = vmatpush1.bf16.msra.mxu0 %v10876_v11  ;;  %8342 = vmatpush1.bf16.msra.mxu1 %v11106_v47  ;;  %v13370_v11 = vld [vmem:[#allocation39_spill] sm:$0xff] }
 0x4d5   :  { %8312 = vmatprep.subr.bf16.mxu0 %v10886_v5  ;;  %8344 = vmatprep.subr.bf16.mxu1 %v11116_v43 }
 0x4d8   :  { %8314 = vmatpush1.bf16.msra.mxu0 %v10894_v22  ;;  %8346 = vmatpush1.bf16.msra.mxu1 %v11124_v26 }
 0x4d9   :  { %8316 = vmatprep.subr.bf16.mxu0 %v10904_v0  ;;  %8348 = vmatprep.subr.bf16.mxu1 %v11134_v19  ;;  %v13371_v0 = vld [vmem:[#allocation11_spill] sm:$0xff] }
 0x4dc   :  { %8318 = vmatpush1.bf16.msra.mxu0 %v10912_v62  ;;  %8350 = vmatpush1.bf16.msra.mxu1 %v11142_v39 }
 0x4dd   :  { %8320 = vmatprep.subr.bf16.mxu0 %v10922_v1  ;;  %8352 = vmatprep.subr.bf16.mxu1 %v11152_v61  ;;  %v13372_v1 = vld [vmem:[#allocation40_spill] sm:$0xff] }
 0x4e0   :  { %8322 = vmatpush1.bf16.msra.mxu0 %v10930_v60  ;;  %8354 = vmatpush1.bf16.msra.mxu1 %v11160_v32 }
 0x4e1   :  { %8324 = vmatprep.subr.bf16.mxu0 %v10942_v37  ;;  %8356 = vmatprep.subr.bf16.mxu1 %v11172_v33 }
 0x4e4   :  { %8326 = vmatpush1.bf16.msra.mxu0 %v10954_v53  ;;  %8358 = vmatpush1.bf16.msra.mxu1 %v11184_v58 }
 0x4e5   :  { %8328 = vmatprep.subr.bf16.mxu0 %v10957_v55  ;;  %8360 = vmatprep.subr.bf16.mxu1 %v11187_v18 }
 0x4e8   :  { %8330 = vmatpush1.bf16.msra.mxu0 %v10966_v51  ;;  %8362 = vmatpush1.bf16.msra.mxu1 %v11196_v40 }
 0x4e9   :  { %8396 = vmatprep.subr.bf16.mxu1 %v11062_v36  ;;  %8364 = vmatprep.subr.bf16.mxu0 %v11286_v6 }
 0x59e   :  { %v1803_v8 = vpop.f32.mrb[54].mxu0  ;;  %v1874_v24 = vpop.f32.mrb[46].mxu1 }
 0x59f   :  { %v1879_v30 = vadd.f32 %v1803_v8, %v13369_v14  ;;  %v1881_v5 = vadd.f32 %v1874_v24, %v13370_v11  ;;  %v1805_v22 = vpop.f32.mrb[55].mxu0  ;;  %v1876_v53 = vpop.f32.mrb[47].mxu1  ;;  %v11322_v8 = vpack.c.bf16 %v2182_v2, %v2178_v38  ;;  %v2177_v24 = vld [vmem:[%s13271_s7 + $0x80] sm:$0xff]  ;;  %v2186_v11 = vld [vmem:[%s13271_s7 + $0xc8] sm:$0xff]  ;;  %v13373_v38 = vld [vmem:[#allocation12_spill] sm:$0xff] }
 0x5a0   :  { %v1880_v62 = vadd.f32 %v1805_v22, %v13371_v0  ;;  %v1882_v60 = vadd.f32 %v1876_v53, %v13372_v1  ;;  %v2181_v14 = vld [vmem:[%s13271_s7 + $0xa0] sm:$0xff]  ;;  %v2194_v1 = vld [vmem:[%s13271_s7 + $0x108] sm:$0xff] }
 0x5a1   :  { %v7723_v37 = vmul.f32 -1.442695, %v1879_v30  ;;  %v7725_v51 = vmul.f32 -1.442695, %v1881_v5  ;;  %v11330_v30 = vpack.c.bf16 %v2181_v14, %v2177_v24  ;;  %v2190_v5 = vld [vmem:[%s13271_s7 + $0xe8] sm:$0xff]  ;;  %v2185_v53 = vld [vmem:[%s13271_s7 + $0xc0] sm:$0xff] }
 0x5a2   :  { %v7724_v55 = vmul.f32 -1.442695, %v1880_v62  ;;  %v11340_v22 = vpack.c.bf16 %v2190_v5, %v2186_v11  ;;  %v2189_v0 = vld [vmem:[%s13271_s7 + $0xe0] sm:$0xff]  ;;  %v13374_v24 = vld [vmem:[#allocation41_spill] sm:$0xff] }
 0x5a3   :  { %9577 = vpow2.f32 %v7723_v37  ;;  %v11348_v62 = vpack.c.bf16 %v2189_v0, %v2185_v53  ;;  %v13375_v53 = vld [vmem:[#allocation13_spill] sm:$0xff] }
 0x5a4   :  { %9579 = vpow2.f32 %v7724_v55  ;;  %v2193_v55 = vld [vmem:[%s13271_s7 + $0x100] sm:$0xff] }
 0x5a5   :  { %9581 = vtanh.f32 %v1882_v60  ;;  %v2198_v60 = vld [vmem:[%s13271_s7 + $0x128] sm:$0xff] }
 0x5a6   :  { %9583 = vpow2.f32 %v7725_v51  ;;  %v11358_v37 = vpack.c.bf16 %v2198_v60, %v2194_v1  ;;  %v2197_v51 = vld [vmem:[%s13271_s7 + $0x120] sm:$0xff] }
 0x5a7   :  { %v13376_v1 = vld [vmem:[#allocation42_spill] sm:$0xff] }
 0x5ad   :  { %v9578_v44 = vpop.eup %9577 }
 0x5ae   :  { %v1892_v41 = vadd.f32 1.0, %v9578_v44  ;;  %v9580_v23 = vpop.eup %9579  ;;  %v11366_v44 = vpack.c.bf16 %v2197_v51, %v2193_v55 }
 0x5af   :  { %v1893_v57 = vadd.f32 1.0, %v9580_v23  ;;  %v9582_v35 = vpop.eup %9581  ;;  %v2206_v23 = vld [vmem:[%s13271_s7 + $0x168] sm:$0xff] }
 0x5b0   :  { %9585 = vrcp.f32 %v1892_v41  ;;  %v9584_v48 = vpop.eup %9583  ;;  %v2202_v41 = vld [vmem:[%s13271_s7 + $0x148] sm:$0xff] }
 0x5b1   :  { %9587 = vrcp.f32 %v1893_v57  ;;  %v1894_v49 = vadd.f32 1.0, %v9584_v48  ;;  %v11376_v57 = vpack.c.bf16 %v2206_v23, %v2202_v41  ;;  %v2205_v48 = vld [vmem:[%s13271_s7 + $0x160] sm:$0xff] }
 0x5b3   :  { %9589 = vrcp.f32 %v1894_v49  ;;  %v2209_v49 = vld [vmem:[%s13271_s7 + $0x180] sm:$0xff] }
 0x5ba   :  { %v9586_v28 = vpop.eup %9585 }
 0x5bb   :  { %v1903_v50 = vmul.f32 %v9586_v28, %v9582_v35  ;;  %v9588_v21 = vpop.eup %9587  ;;  %v2201_v35 = vld [vmem:[%s13271_s7 + $0x140] sm:$0xff] }
 0x5bc   :  { %v1902_v9 = vmul.f32 %v9588_v21, %v11206_v42  ;;  %v11312_v42 = vpack.c.bf16 %v2173_v16, %v2169_v3  ;;  %v11384_v28 = vpack.c.bf16 %v2205_v48, %v2201_v35  ;;  %v2214_v21 = vld [vmem:[%s13271_s7 + $0x1a8] sm:$0xff] }
 0x5bd   :  { %v9590_v59 = vpop.eup %9589 }
 0x5be   :  { %v11253_v56 = vadd.f32 %v1903_v50, %v1902_v9  ;;  %v2210_v50 = vld [vmem:[%s13271_s7 + $0x188] sm:$0xff] }
 0x5bf   :  { %v11396_v9 = vpack.c.bf16 %v2214_v21, %v2210_v50 }
 0x5c0   :  { %9591 = vtanh.f32 %v11253_v56 }
 0x5ca   :  { %v9592_v13 = vpop.eup %9591 }
 0x5cb   :  { %v11256_v10 = vmul.f32 %v9592_v13, %v9590_v59  ;;  %v2213_v59 = vld [vmem:[%s13271_s7 + $0x1a0] sm:$0xff]  ;;  %v2218_v13 = vld [vmem:[%s13271_s7 + $0x1c8] sm:$0xff] }
 0x5cc   :  { %v11408_v17 = vpack.c.bf16 %v2213_v59, %v2209_v49  ;;  %v11411_v31 = vpack.c.bf16 %v2222_v52, %v2218_v13 }
 0x5cd   :  { %1907 = vst.msk [vmem:[#allocation4 + $0x18] sm:$0xff] %vm776_vm4, %v11256_v10  ;;  %2046 = vmatmul.mubr.f32.vlgmr.msra.gmra.mrb[56].mxu0 %v11256_v10  ;;  %2117 = vmatmul.mubr.f32.vlgmr.msra.gmra.mrb[48].mxu1 %v11256_v10 }
 0x5ce   :  { %8398 = vmatpush1.bf16.msra.mxu1 %v11070_v12  ;;  %2289 = vmatprep.mubr.f32.mxu0 %v13335_v27 }
 0x5cf   :  { %8400 = vmatprep.subr.bf16.mxu1 %v11080_v20  ;;  %2360 = vmatprep.mubr.f32.mxu1 %v13335_v27 }
 0x5d0   :  { %8366 = vmatpush1.bf16.msra.mxu0 %v11294_v45 }
 0x5d2   :  { %8402 = vmatpush1.bf16.msra.mxu1 %v11088_v63 }
 0x5d3   :  { %8404 = vmatprep.subr.bf16.mxu1 %v11098_v7 }
 0x5d6   :  { %8406 = vmatpush1.bf16.msra.mxu1 %v11106_v47 }
 0x5d7   :  { %8408 = vmatprep.subr.bf16.mxu1 %v11116_v43 }
 0x5da   :  { %8410 = vmatpush1.bf16.msra.mxu1 %v11124_v26 }
 0x5db   :  { %8412 = vmatprep.subr.bf16.mxu1 %v11134_v19 }
 0x5de   :  { %8414 = vmatpush1.bf16.msra.mxu1 %v11142_v39 }
 0x5df   :  { %8416 = vmatprep.subr.bf16.mxu1 %v11152_v61 }
 0x5e2   :  { %8418 = vmatpush1.bf16.msra.mxu1 %v11160_v32 }
 0x5e3   :  { %8420 = vmatprep.subr.bf16.mxu1 %v11172_v33 }
 0x5e6   :  { %8422 = vmatpush1.bf16.msra.mxu1 %v11184_v58 }
 0x5e7   :  { %8424 = vmatprep.subr.bf16.mxu1 %v11187_v18 }
 0x5ea   :  { %8426 = vmatpush1.bf16.msra.mxu1 %v11196_v40 }
 0x5eb   :  { %8460 = vmatprep.subr.bf16.mxu1 %v11062_v36  ;;  %v2170_v36 = vld [vmem:[%s13271_s7 + $0x48] sm:$0xff] }
 0x5ec   :  { %v11304_v46 = vpack.c.bf16 %v2174_v4, %v2170_v36  ;;  %v2221_v36 = vld [vmem:[%s13271_s7 + $0x1e0] sm:$0xff] }
 0x5ed   :  { %v11420_v4 = vpack.c.bf16 %v2221_v36, %v2217_v34 }
 0x5ee   :  { %8368 = vmatprep.subr.bf16.mxu0 %v11304_v46 }
 0x5ef   :  { %8370 = vmatpush1.bf16.msra.mxu0 %v11312_v42 }
 0x5f0   :  { %8372 = vmatprep.subr.bf16.mxu0 %v11322_v8 }
 0x5f3   :  { %8374 = vmatpush1.bf16.msra.mxu0 %v11330_v30 }
 0x5f4   :  { %8376 = vmatprep.subr.bf16.mxu0 %v11340_v22 }
 0x5f7   :  { %8378 = vmatpush1.bf16.msra.mxu0 %v11348_v62 }
 0x5f8   :  { %8380 = vmatprep.subr.bf16.mxu0 %v11358_v37 }
 0x5fb   :  { %8382 = vmatpush1.bf16.msra.mxu0 %v11366_v44 }
 0x5fc   :  { %8384 = vmatprep.subr.bf16.mxu0 %v11376_v57 }
 0x5ff   :  { %8386 = vmatpush1.bf16.msra.mxu0 %v11384_v28 }
 0x600   :  { %8388 = vmatprep.subr.bf16.mxu0 %v11396_v9 }
 0x603   :  { %8390 = vmatpush1.bf16.msra.mxu0 %v11408_v17 }
 0x604   :  { %8392 = vmatprep.subr.bf16.mxu0 %v11411_v31 }
 0x607   :  { %8394 = vmatpush1.bf16.msra.mxu0 %v11420_v4 }
 0x608   :  { %8428 = vmatprep.subr.bf16.mxu0 %v11286_v6 }
 0x6a0   :  { %v2047_v3 = vpop.f32.mrb[56].mxu0  ;;  %v2118_v16 = vpop.f32.mrb[48].mxu1 }
 0x6a1   :  { %v2123_v2 = vadd.f32 %v2047_v3, %v13373_v38  ;;  %v2125_v14 = vadd.f32 %v2118_v16, %v13374_v24  ;;  %v2049_v11 = vpop.f32.mrb[57].mxu0  ;;  %v2120_v5 = vpop.f32.mrb[49].mxu1 }
 0x6a2   :  { %v2124_v0 = vadd.f32 %v2049_v11, %v13375_v53  ;;  %v2126_v60 = vadd.f32 %v2120_v5, %v13376_v1 }
 0x6a3   :  { %v7726_v55 = vmul.f32 -1.442695, %v2123_v2  ;;  %v7728_v41 = vmul.f32 -1.442695, %v2125_v14 }
 0x6a4   :  { %v7727_v51 = vmul.f32 -1.442695, %v2124_v0 }
 0x6a5   :  { %9593 = vpow2.f32 %v7726_v55 }
 0x6a6   :  { %9595 = vpow2.f32 %v7727_v51 }
 0x6a7   :  { %9597 = vtanh.f32 %v2126_v60 }
 0x6a8   :  { %9599 = vpow2.f32 %v7728_v41 }
 0x6af   :  { %v9594_v23 = vpop.eup %9593 }
 0x6b0   :  { %v2136_v35 = vadd.f32 1.0, %v9594_v23  ;;  %v9596_v48 = vpop.eup %9595 }
 0x6b1   :  { %v2137_v50 = vadd.f32 1.0, %v9596_v48  ;;  %v9598_v21 = vpop.eup %9597 }
 0x6b2   :  { %9601 = vrcp.f32 %v2136_v35  ;;  %v9600_v49 = vpop.eup %9599 }
 0x6b3   :  { %9603 = vrcp.f32 %v2137_v50  ;;  %v2138_v34 = vadd.f32 1.0, %v9600_v49  ;;  %v2652_v50 = vld [vmem:[%s13271_s7 + $0x18] sm:$0xff] }
 0x6b5   :  { %9605 = vrcp.f32 %v2138_v34  ;;  %v2664_v34 = vld [vmem:[%s13271_s7 + $0x78] sm:$0xff] }
 0x6bc   :  { %v9602_v59 = vpop.eup %9601 }
 0x6bd   :  { %v2147_v13 = vmul.f32 %v9602_v59, %v9598_v21  ;;  %v9604_v52 = vpop.eup %9603  ;;  %v2656_v21 = vld [vmem:[%s13271_s7 + $0x38] sm:$0xff]  ;;  %v2651_v59 = vld [vmem:[%s13271_s7 + $0x10] sm:$0xff] }
 0x6be   :  { %v2146_v36 = vmul.f32 %v9604_v52, %v11253_v56  ;;  %v11510_v49 = vpack.c.bf16 %v2656_v21, %v2652_v50  ;;  %v2703_v50 = vld [vmem:[%s13271_s7 + $0x1b0] sm:$0xff]  ;;  %v2708_v21 = vld [vmem:[%s13271_s7 + $0x1d8] sm:$0xff] }
 0x6bf   :  { %v9606_v16 = vpop.eup %9605 }
 0x6c0   :  { %v11430_v3 = vadd.f32 %v2147_v13, %v2146_v36  ;;  %v2655_v13 = vld [vmem:[%s13271_s7 + $0x30] sm:$0xff] }
 0x6c1   :  { %v11518_v52 = vpack.c.bf16 %v2655_v13, %v2651_v59  ;;  %v2712_v59 = vld [vmem:[%s13271_s7 + $0x1f8] sm:$0xff] }
 0x6c2   :  { %9607 = vtanh.f32 %v11430_v3 }
 0x6cc   :  { %v9608_v38 = vpop.eup %9607 }
 0x6cd   :  { %v11433_v2 = vmul.f32 %v9608_v38, %v9606_v16  ;;  %v2663_v16 = vld [vmem:[%s13271_s7 + $0x70] sm:$0xff] }
 0x6cf   :  { %2151 = vst.msk [vmem:[#allocation4 + $0x20] sm:$0xff] %vm776_vm4, %v11433_v2  ;;  %2290 = vmatmul.mubr.f32.vlgmr.msra.gmra.mrb[58].mxu0 %v11433_v2  ;;  %2361 = vmatmul.mubr.f32.vlgmr.msra.gmra.mrb[50].mxu1 %v11433_v2 }
 0x6d0   :  { %8430 = vmatpush1.bf16.msra.mxu0 %v11294_v45  ;;  %8462 = vmatpush1.bf16.msra.mxu1 %v11070_v12 }
 0x6d1   :  { %8432 = vmatprep.subr.bf16.mxu0 %v11304_v46  ;;  %8464 = vmatprep.subr.bf16.mxu1 %v11080_v20 }
 0x6d2   :  { %2533 = vmatprep.mubr.f32.mxu0 %v13335_v27  ;;  %2604 = vmatprep.mubr.f32.mxu1 %v13335_v27 }
 0x6d4   :  { %8434 = vmatpush1.bf16.msra.mxu0 %v11312_v42  ;;  %8466 = vmatpush1.bf16.msra.mxu1 %v11088_v63  ;;  %v13377_v63 = vld [vmem:[#allocation14_spill] sm:$0xff] }
 0x6d5   :  { %8436 = vmatprep.subr.bf16.mxu0 %v11322_v8  ;;  %8468 = vmatprep.subr.bf16.mxu1 %v11098_v7 }
 0x6d8   :  { %8438 = vmatpush1.bf16.msra.mxu0 %v11330_v30  ;;  %8470 = vmatpush1.bf16.msra.mxu1 %v11106_v47  ;;  %v13378_v47 = vld [vmem:[#allocation43_spill] sm:$0xff] }
 0x6d9   :  { %8440 = vmatprep.subr.bf16.mxu0 %v11340_v22  ;;  %8472 = vmatprep.subr.bf16.mxu1 %v11116_v43 }
 0x6dc   :  { %8442 = vmatpush1.bf16.msra.mxu0 %v11348_v62  ;;  %8474 = vmatpush1.bf16.msra.mxu1 %v11124_v26 }
 0x6dd   :  { %8444 = vmatprep.subr.bf16.mxu0 %v11358_v37  ;;  %8476 = vmatprep.subr.bf16.mxu1 %v11134_v19 }
 0x6e0   :  { %8446 = vmatpush1.bf16.msra.mxu0 %v11366_v44  ;;  %8478 = vmatpush1.bf16.msra.mxu1 %v11142_v39  ;;  %v13379_v39 = vld [vmem:[#allocation15_spill] sm:$0xff] }
 0x6e1   :  { %8448 = vmatprep.subr.bf16.mxu0 %v11376_v57  ;;  %8480 = vmatprep.subr.bf16.mxu1 %v11152_v61 }
 0x6e4   :  { %8450 = vmatpush1.bf16.msra.mxu0 %v11384_v28  ;;  %8482 = vmatpush1.bf16.msra.mxu1 %v11160_v32  ;;  %v13380_v32 = vld [vmem:[#allocation44_spill] sm:$0xff] }
 0x6e5   :  { %8452 = vmatprep.subr.bf16.mxu0 %v11396_v9  ;;  %8484 = vmatprep.subr.bf16.mxu1 %v11172_v33 }
 0x6e8   :  { %8454 = vmatpush1.bf16.msra.mxu0 %v11408_v17  ;;  %8486 = vmatpush1.bf16.msra.mxu1 %v11184_v58 }
 0x6e9   :  { %8456 = vmatprep.subr.bf16.mxu0 %v11411_v31  ;;  %8488 = vmatprep.subr.bf16.mxu1 %v11187_v18 }
 0x6ec   :  { %8458 = vmatpush1.bf16.msra.mxu0 %v11420_v4  ;;  %8490 = vmatpush1.bf16.msra.mxu1 %v11196_v40 }
 0x6ed   :  { %8492 = vmatprep.subr.bf16.mxu0 %v11286_v6  ;;  %8524 = vmatprep.subr.bf16.mxu1 %v11510_v49 }
 0x7a2   :  { %v2291_v12 = vpop.f32.mrb[58].mxu0  ;;  %v2362_v20 = vpop.f32.mrb[50].mxu1 }
 0x7a3   :  { %v2367_v7 = vadd.f32 %v2291_v12, %v13377_v63  ;;  %v2369_v43 = vadd.f32 %v2362_v20, %v13378_v47  ;;  %v2293_v26 = vpop.f32.mrb[59].mxu0  ;;  %v2364_v19 = vpop.f32.mrb[51].mxu1  ;;  %v2668_v12 = vld [vmem:[%s13271_s7 + $0x98] sm:$0xff]  ;;  %v2671_v47 = vld [vmem:[%s13271_s7 + $0xb0] sm:$0xff] }
 0x7a4   :  { %v2368_v61 = vadd.f32 %v2293_v26, %v13379_v39  ;;  %v2370_v33 = vadd.f32 %v2364_v19, %v13380_v32  ;;  %v2672_v20 = vld [vmem:[%s13271_s7 + $0xb8] sm:$0xff]  ;;  %v2679_v32 = vld [vmem:[%s13271_s7 + $0xf0] sm:$0xff] }
 0x7a5   :  { %v7729_v58 = vmul.f32 -1.442695, %v2367_v7  ;;  %v7731_v56 = vmul.f32 -1.442695, %v2369_v43  ;;  %v11546_v63 = vpack.c.bf16 %v2672_v20, %v2668_v12  ;;  %v2667_v7 = vld [vmem:[%s13271_s7 + $0x90] sm:$0xff]  ;;  %v2676_v26 = vld [vmem:[%s13271_s7 + $0xd8] sm:$0xff] }
 0x7a6   :  { %v7730_v18 = vmul.f32 -1.442695, %v2368_v61  ;;  %v11554_v43 = vpack.c.bf16 %v2671_v47, %v2667_v7  ;;  %v2680_v19 = vld [vmem:[%s13271_s7 + $0xf8] sm:$0xff]  ;;  %v2675_v61 = vld [vmem:[%s13271_s7 + $0xd0] sm:$0xff] }
 0x7a7   :  { %9609 = vpow2.f32 %v7729_v58  ;;  %v11564_v39 = vpack.c.bf16 %v2680_v19, %v2676_v26  ;;  %v2684_v58 = vld [vmem:[%s13271_s7 + $0x118] sm:$0xff]  ;;  %v13381_v7 = vld [vmem:[#allocation16_spill] sm:$0xff] }
 0x7a8   :  { %9611 = vpow2.f32 %v7730_v18  ;;  %v2688_v18 = vld [vmem:[%s13271_s7 + $0x138] sm:$0xff] }
 0x7a9   :  { %9613 = vtanh.f32 %v2370_v33  ;;  %v11572_v33 = vpack.c.bf16 %v2679_v32, %v2675_v61  ;;  %v13382_v26 = vld [vmem:[#allocation45_spill] sm:$0xff] }
 0x7aa   :  { %9615 = vpow2.f32 %v7731_v56  ;;  %v11582_v56 = vpack.c.bf16 %v2688_v18, %v2684_v58  ;;  %v13383_v58 = vld [vmem:[#allocation17_spill] sm:$0xff] }
 0x7b1   :  { %v9610_v40 = vpop.eup %9609 }
 0x7b2   :  { %v2380_v24 = vadd.f32 1.0, %v9610_v40  ;;  %v9612_v14 = vpop.eup %9611  ;;  %v2683_v40 = vld [vmem:[%s13271_s7 + $0x110] sm:$0xff] }
 0x7b3   :  { %v2381_v11 = vadd.f32 1.0, %v9612_v14  ;;  %v9614_v5 = vpop.eup %9613 }
 0x7b4   :  { %9617 = vrcp.f32 %v2380_v24  ;;  %v9616_v53 = vpop.eup %9615  ;;  %v2687_v24 = vld [vmem:[%s13271_s7 + $0x130] sm:$0xff] }
 0x7b5   :  { %9619 = vrcp.f32 %v2381_v11  ;;  %v2382_v55 = vadd.f32 1.0, %v9616_v53  ;;  %v11590_v14 = vpack.c.bf16 %v2687_v24, %v2683_v40  ;;  %v2692_v11 = vld [vmem:[%s13271_s7 + $0x158] sm:$0xff]  ;;  %v13384_v40 = vld [vmem:[#allocation46_spill] sm:$0xff] }
 0x7b7   :  { %9621 = vrcp.f32 %v2382_v55  ;;  %v2700_v55 = vld [vmem:[%s13271_s7 + $0x198] sm:$0xff] }
 0x7be   :  { %v9618_v0 = vpop.eup %9617 }
 0x7bf   :  { %v2391_v1 = vmul.f32 %v9618_v0, %v9614_v5  ;;  %v9620_v60 = vpop.eup %9619  ;;  %v2696_v5 = vld [vmem:[%s13271_s7 + $0x178] sm:$0xff]  ;;  %v2691_v0 = vld [vmem:[%s13271_s7 + $0x150] sm:$0xff] }
 0x7c0   :  { %v2390_v51 = vmul.f32 %v9620_v60, %v11430_v3  ;;  %v2659_v3 = vld [vmem:[%s13271_s7 + $0x50] sm:$0xff]  ;;  %v11600_v53 = vpack.c.bf16 %v2696_v5, %v2692_v11 }
 0x7c1   :  { %v9622_v23 = vpop.eup %9621  ;;  %v11536_v38 = vpack.c.bf16 %v2663_v16, %v2659_v3  ;;  %v2711_v3 = vld [vmem:[%s13271_s7 + $0x1f0] sm:$0xff] }
 0x7c2   :  { %v11477_v41 = vadd.f32 %v2391_v1, %v2390_v51  ;;  %v2695_v1 = vld [vmem:[%s13271_s7 + $0x170] sm:$0xff]  ;;  %v2704_v51 = vld [vmem:[%s13271_s7 + $0x1b8] sm:$0xff] }
 0x7c3   :  { %v11608_v60 = vpack.c.bf16 %v2695_v1, %v2691_v0 }
 0x7c4   :  { %9623 = vtanh.f32 %v11477_v41 }
 0x7ce   :  { %v9624_v35 = vpop.eup %9623 }
 0x7cf   :  { %v11480_v48 = vmul.f32 %v9624_v35, %v9622_v23  ;;  %v2699_v23 = vld [vmem:[%s13271_s7 + $0x190] sm:$0xff]  ;;  %v11620_v35 = vpack.c.bf16 %v2704_v51, %v2700_v55 }
 0x7d0   :  { %v11632_v13 = vpack.c.bf16 %v2703_v50, %v2699_v23 }
 0x7d1   :  { %2395 = vst.msk [vmem:[#allocation4 + $0x28] sm:$0xff] %vm776_vm4, %v11480_v48  ;;  %2534 = vmatmul.mubr.f32.vlgmr.msra.gmra.mrb[60].mxu0 %v11480_v48  ;;  %2605 = vmatmul.mubr.f32.vlgmr.msra.gmra.mrb[52].mxu1 %v11480_v48 }
 0x7d2   :  { %8494 = vmatpush1.bf16.msra.mxu0 %v11294_v45  ;;  %2777 = vmatprep.mubr.f32.mxu0 %v13335_v27 }
 0x7d3   :  { %8496 = vmatprep.subr.bf16.mxu0 %v11304_v46  ;;  %2848 = vmatprep.mubr.f32.mxu1 %v13335_v27 }
 0x7d4   :  { %8526 = vmatpush1.bf16.msra.mxu1 %v11518_v52 }
 0x7d6   :  { %8498 = vmatpush1.bf16.msra.mxu0 %v11312_v42 }
 0x7d7   :  { %8500 = vmatprep.subr.bf16.mxu0 %v11322_v8 }
 0x7da   :  { %8502 = vmatpush1.bf16.msra.mxu0 %v11330_v30 }
 0x7db   :  { %8504 = vmatprep.subr.bf16.mxu0 %v11340_v22 }
 0x7de   :  { %8506 = vmatpush1.bf16.msra.mxu0 %v11348_v62 }
 0x7df   :  { %8508 = vmatprep.subr.bf16.mxu0 %v11358_v37 }
 0x7e2   :  { %8510 = vmatpush1.bf16.msra.mxu0 %v11366_v44 }
 0x7e3   :  { %8512 = vmatprep.subr.bf16.mxu0 %v11376_v57 }
 0x7e6   :  { %8514 = vmatpush1.bf16.msra.mxu0 %v11384_v28 }
 0x7e7   :  { %8516 = vmatprep.subr.bf16.mxu0 %v11396_v9 }
 0x7ea   :  { %8518 = vmatpush1.bf16.msra.mxu0 %v11408_v17 }
 0x7eb   :  { %8520 = vmatprep.subr.bf16.mxu0 %v11411_v31 }
 0x7ee   :  { %8522 = vmatpush1.bf16.msra.mxu0 %v11420_v4 }
 0x7ef   :  { %8556 = vmatprep.subr.bf16.mxu0 %v11286_v6  ;;  %v2660_v6 = vld [vmem:[%s13271_s7 + $0x58] sm:$0xff] }
 0x7f0   :  { %v11528_v36 = vpack.c.bf16 %v2664_v34, %v2660_v6  ;;  %v11635_v6 = vpack.c.bf16 %v2712_v59, %v2708_v21  ;;  %v2707_v34 = vld [vmem:[%s13271_s7 + $0x1d0] sm:$0xff] }
 0x7f1   :  { %v11644_v16 = vpack.c.bf16 %v2711_v3, %v2707_v34 }
 0x7f2   :  { %8528 = vmatprep.subr.bf16.mxu1 %v11528_v36 }
 0x7f3   :  { %8530 = vmatpush1.bf16.msra.mxu1 %v11536_v38 }
 0x7f4   :  { %8532 = vmatprep.subr.bf16.mxu1 %v11546_v63 }
 0x7f7   :  { %8534 = vmatpush1.bf16.msra.mxu1 %v11554_v43 }
 0x7f8   :  { %8536 = vmatprep.subr.bf16.mxu1 %v11564_v39 }
 0x7fb   :  { %8538 = vmatpush1.bf16.msra.mxu1 %v11572_v33 }
 0x7fc   :  { %8540 = vmatprep.subr.bf16.mxu1 %v11582_v56 }
 0x7ff   :  { %8542 = vmatpush1.bf16.msra.mxu1 %v11590_v14 }
 0x800   :  { %8544 = vmatprep.subr.bf16.mxu1 %v11600_v53 }
 0x803   :  { %8546 = vmatpush1.bf16.msra.mxu1 %v11608_v60 }
 0x804   :  { %8548 = vmatprep.subr.bf16.mxu1 %v11620_v35 }
 0x807   :  { %8550 = vmatpush1.bf16.msra.mxu1 %v11632_v13 }
 0x808   :  { %8552 = vmatprep.subr.bf16.mxu1 %v11635_v6 }
 0x80b   :  { %8554 = vmatpush1.bf16.msra.mxu1 %v11644_v16 }
 0x80c   :  { %8588 = vmatprep.subr.bf16.mxu1 %v11510_v49 }
 0x8a4   :  { %v2535_v12 = vpop.f32.mrb[60].mxu0  ;;  %v2606_v20 = vpop.f32.mrb[52].mxu1 }
 0x8a5   :  { %v2611_v47 = vadd.f32 %v2535_v12, %v13381_v7  ;;  %v2613_v19 = vadd.f32 %v2606_v20, %v13382_v26  ;;  %v2537_v61 = vpop.f32.mrb[61].mxu0  ;;  %v2608_v32 = vpop.f32.mrb[53].mxu1 }
 0x8a6   :  { %v2612_v18 = vadd.f32 %v2537_v61, %v13383_v58  ;;  %v2614_v24 = vadd.f32 %v2608_v32, %v13384_v40 }
 0x8a7   :  { %v7732_v11 = vmul.f32 -1.442695, %v2611_v47  ;;  %v7734_v0 = vmul.f32 -1.442695, %v2613_v19 }
 0x8a8   :  { %v7733_v5 = vmul.f32 -1.442695, %v2612_v18 }
 0x8a9   :  { %9625 = vpow2.f32 %v7732_v11 }
 0x8aa   :  { %9627 = vpow2.f32 %v7733_v5 }
 0x8ab   :  { %9629 = vtanh.f32 %v2614_v24 }
 0x8ac   :  { %9631 = vpow2.f32 %v7734_v0 }
 0x8b3   :  { %v9626_v1 = vpop.eup %9625 }
 0x8b4   :  { %v2624_v55 = vadd.f32 1.0, %v9626_v1  ;;  %v9628_v51 = vpop.eup %9627 }
 0x8b5   :  { %v2625_v23 = vadd.f32 1.0, %v9628_v51  ;;  %v9630_v50 = vpop.eup %9629 }
 0x8b6   :  { %9633 = vrcp.f32 %v2624_v55  ;;  %v9632_v21 = vpop.eup %9631 }
 0x8b7   :  { %9635 = vrcp.f32 %v2625_v23  ;;  %v2626_v12 = vadd.f32 1.0, %v9632_v21  ;;  %v3138_v21 = vld [vmem:[%s13271_s7 + $0x8] sm:$0xff] }
 0x8b9   :  { %9637 = vrcp.f32 %v2626_v12  ;;  %v3141_v12 = vld [vmem:[%s13271_s7 + $0x20] sm:$0xff] }
 0x8c0   :  { %v9634_v59 = vpop.eup %9633 }
 0x8c1   :  { %v2635_v34 = vmul.f32 %v9634_v59, %v9630_v50  ;;  %v9636_v3 = vpop.eup %9635  ;;  %v3142_v59 = vld [vmem:[%s13271_s7 + $0x28] sm:$0xff] }
 0x8c2   :  { %v2634_v20 = vmul.f32 %v9636_v3, %v11477_v41  ;;  %v3137_v3 = vld [vmem:[%s13271_s7] sm:$0xff] }
 0x8c3   :  { %v9638_v47 = vpop.eup %9637 }
 0x8c4   :  { %v11654_v7 = vadd.f32 %v2635_v34, %v2634_v20  ;;  %v11734_v34 = vpack.c.bf16 %v3142_v59, %v3138_v21  ;;  %v11742_v20 = vpack.c.bf16 %v3141_v12, %v3137_v3  ;;  %v3185_v21 = vld [vmem:[%s13271_s7 + $0x180] sm:$0xff]  ;;  %v3194_v12 = vld [vmem:[%s13271_s7 + $0x1c8] sm:$0xff] }
 0x8c5   :  { %v3189_v3 = vld [vmem:[%s13271_s7 + $0x1a0] sm:$0xff] }
 0x8c6   :  { %9639 = vtanh.f32 %v11654_v7 }
 0x8d0   :  { %v9640_v26 = vpop.eup %9639 }
 0x8d1   :  { %v11657_v19 = vmul.f32 %v9640_v26, %v9638_v47  ;;  %v3145_v26 = vld [vmem:[%s13271_s7 + $0x40] sm:$0xff] }
 0x8d3   :  { %2639 = vst.msk [vmem:[#allocation4 + $0x30] sm:$0xff] %vm776_vm4, %v11657_v19  ;;  %2778 = vmatmul.mubr.f32.vlgmr.msra.gmra.mrb[62].mxu0 %v11657_v19  ;;  %2849 = vmatmul.mubr.f32.vlgmr.msra.gmra.mrb[54].mxu1 %v11657_v19 }
 0x8d4   :  { %8558 = vmatpush1.bf16.msra.mxu0 %v11294_v45  ;;  %8590 = vmatpush1.bf16.msra.mxu1 %v11518_v52 }
 0x8d5   :  { %8560 = vmatprep.subr.bf16.mxu0 %v11304_v46  ;;  %8592 = vmatprep.subr.bf16.mxu1 %v11528_v36 }
 0x8d6   :  { %3021 = vmatprep.mubr.f32.mxu0 %v13335_v27  ;;  %3092 = vmatprep.mubr.f32.mxu1 %v13335_v27 }
 0x8d8   :  { %8562 = vmatpush1.bf16.msra.mxu0 %v11312_v42  ;;  %8594 = vmatpush1.bf16.msra.mxu1 %v11536_v38  ;;  %v13385_v42 = vld [vmem:[#allocation18_spill] sm:$0xff] }
 0x8d9   :  { %8564 = vmatprep.subr.bf16.mxu0 %v11322_v8  ;;  %8596 = vmatprep.subr.bf16.mxu1 %v11546_v63 }
 0x8dc   :  { %8566 = vmatpush1.bf16.msra.mxu0 %v11330_v30  ;;  %8598 = vmatpush1.bf16.msra.mxu1 %v11554_v43  ;;  %v13386_v30 = vld [vmem:[#allocation47_spill] sm:$0xff] }
 0x8dd   :  { %8568 = vmatprep.subr.bf16.mxu0 %v11340_v22  ;;  %8600 = vmatprep.subr.bf16.mxu1 %v11564_v39 }
 0x8e0   :  { %8570 = vmatpush1.bf16.msra.mxu0 %v11348_v62  ;;  %8602 = vmatpush1.bf16.msra.mxu1 %v11572_v33 }
 0x8e1   :  { %8572 = vmatprep.subr.bf16.mxu0 %v11358_v37  ;;  %8604 = vmatprep.subr.bf16.mxu1 %v11582_v56 }
 0x8e4   :  { %8574 = vmatpush1.bf16.msra.mxu0 %v11366_v44  ;;  %8606 = vmatpush1.bf16.msra.mxu1 %v11590_v14  ;;  %v13387_v44 = vld [vmem:[#allocation19_spill] sm:$0xff] }
 0x8e5   :  { %8576 = vmatprep.subr.bf16.mxu0 %v11376_v57  ;;  %8608 = vmatprep.subr.bf16.mxu1 %v11600_v53 }
 0x8e8   :  { %8578 = vmatpush1.bf16.msra.mxu0 %v11384_v28  ;;  %8610 = vmatpush1.bf16.msra.mxu1 %v11608_v60  ;;  %v13388_v28 = vld [vmem:[#allocation48_spill] sm:$0xff] }
 0x8e9   :  { %8580 = vmatprep.subr.bf16.mxu0 %v11396_v9  ;;  %8612 = vmatprep.subr.bf16.mxu1 %v11620_v35 }
 0x8ec   :  { %8582 = vmatpush1.bf16.msra.mxu0 %v11408_v17  ;;  %8614 = vmatpush1.bf16.msra.mxu1 %v11632_v13 }
 0x8ed   :  { %8584 = vmatprep.subr.bf16.mxu0 %v11411_v31  ;;  %8616 = vmatprep.subr.bf16.mxu1 %v11635_v6 }
 0x8f0   :  { %8586 = vmatpush1.bf16.msra.mxu0 %v11420_v4  ;;  %8618 = vmatpush1.bf16.msra.mxu1 %v11644_v16 }
 0x8f1   :  { %8652 = vmatprep.subr.bf16.mxu1 %v11510_v49  ;;  %8620 = vmatprep.subr.bf16.mxu0 %v11734_v34 }
 0x9a6   :  { %v2779_v45 = vpop.f32.mrb[62].mxu0  ;;  %v2850_v46 = vpop.f32.mrb[54].mxu1 }
 0x9a7   :  { %v2855_v8 = vadd.f32 %v2779_v45, %v13385_v42  ;;  %v2857_v22 = vadd.f32 %v2850_v46, %v13386_v30  ;;  %v2781_v62 = vpop.f32.mrb[63].mxu0  ;;  %v2852_v37 = vpop.f32.mrb[55].mxu1  ;;  %v3149_v45 = vld [vmem:[%s13271_s7 + $0x60] sm:$0xff]  ;;  %v3154_v42 = vld [vmem:[%s13271_s7 + $0x88] sm:$0xff] }
 0x9a8   :  { %v2856_v57 = vadd.f32 %v2781_v62, %v13387_v44  ;;  %v2858_v9 = vadd.f32 %v2852_v37, %v13388_v28  ;;  %v11760_v46 = vpack.c.bf16 %v3149_v45, %v3145_v26  ;;  %v3157_v62 = vld [vmem:[%s13271_s7 + $0xa0] sm:$0xff]  ;;  %v3162_v44 = vld [vmem:[%s13271_s7 + $0xc8] sm:$0xff] }
 0x9a9   :  { %v7735_v17 = vmul.f32 -1.442695, %v2855_v8  ;;  %v7737_v4 = vmul.f32 -1.442695, %v2857_v22  ;;  %v3158_v8 = vld [vmem:[%s13271_s7 + $0xa8] sm:$0xff]  ;;  %v3153_v22 = vld [vmem:[%s13271_s7 + $0x80] sm:$0xff] }
 0x9aa   :  { %v7736_v31 = vmul.f32 -1.442695, %v2856_v57  ;;  %v11770_v30 = vpack.c.bf16 %v3158_v8, %v3154_v42  ;;  %v11778_v37 = vpack.c.bf16 %v3157_v62, %v3153_v22  ;;  %v3166_v57 = vld [vmem:[%s13271_s7 + $0xe8] sm:$0xff]  ;;  %v3193_v45 = vld [vmem:[%s13271_s7 + $0x1c0] sm:$0xff] }
 0x9ab   :  { %9641 = vpow2.f32 %v7735_v17  ;;  %v11788_v28 = vpack.c.bf16 %v3166_v57, %v3162_v44  ;;  %v3165_v17 = vld [vmem:[%s13271_s7 + $0xe0] sm:$0xff]  ;;  %v13389_v44 = vld [vmem:[#allocation20_spill] sm:$0xff] }
 0x9ac   :  { %9643 = vpow2.f32 %v7736_v31  ;;  %v3197_v42 = vld [vmem:[%s13271_s7 + $0x1e0] sm:$0xff] }
 0x9ad   :  { %9645 = vtanh.f32 %v2858_v9  ;;  %v3161_v9 = vld [vmem:[%s13271_s7 + $0xc0] sm:$0xff]  ;;  %v11868_v8 = vpack.c.bf16 %v3197_v42, %v3193_v45 }
 0x9ae   :  { %9647 = vpow2.f32 %v7737_v4  ;;  %v11796_v31 = vpack.c.bf16 %v3165_v17, %v3161_v9  ;;  %v3170_v4 = vld [vmem:[%s13271_s7 + $0x108] sm:$0xff]  ;;  %v13390_v9 = vld [vmem:[#allocation49_spill] sm:$0xff] }
 0x9b5   :  { %v9642_v41 = vpop.eup %9641 }
 0x9b6   :  { %v2868_v61 = vadd.f32 1.0, %v9642_v41  ;;  %v9644_v32 = vpop.eup %9643  ;;  %v3174_v41 = vld [vmem:[%s13271_s7 + $0x128] sm:$0xff] }
 0x9b7   :  { %v2869_v58 = vadd.f32 1.0, %v9644_v32  ;;  %v9646_v18 = vpop.eup %9645  ;;  %v3169_v32 = vld [vmem:[%s13271_s7 + $0x100] sm:$0xff] }
 0x9b8   :  { %9649 = vrcp.f32 %v2868_v61  ;;  %v9648_v40 = vpop.eup %9647  ;;  %v11806_v61 = vpack.c.bf16 %v3174_v41, %v3170_v4 }
 0x9b9   :  { %9651 = vrcp.f32 %v2869_v58  ;;  %v2870_v0 = vadd.f32 1.0, %v9648_v40  ;;  %v3173_v58 = vld [vmem:[%s13271_s7 + $0x120] sm:$0xff]  ;;  %v3178_v40 = vld [vmem:[%s13271_s7 + $0x148] sm:$0xff] }
 0x9bb   :  { %9653 = vrcp.f32 %v2870_v0  ;;  %v3181_v0 = vld [vmem:[%s13271_s7 + $0x160] sm:$0xff] }
 0x9c2   :  { %v9650_v24 = vpop.eup %9649 }
 0x9c3   :  { %v2879_v11 = vmul.f32 %v9650_v24, %v9646_v18  ;;  %v9652_v5 = vpop.eup %9651  ;;  %v11814_v18 = vpack.c.bf16 %v3173_v58, %v3169_v32  ;;  %v3182_v24 = vld [vmem:[%s13271_s7 + $0x168] sm:$0xff]  ;;  %v13391_v32 = vld [vmem:[#allocation21_spill] sm:$0xff] }
 0x9c4   :  { %v2878_v1 = vmul.f32 %v9652_v5, %v11654_v7  ;;  %v3150_v7 = vld [vmem:[%s13271_s7 + $0x68] sm:$0xff]  ;;  %v3177_v5 = vld [vmem:[%s13271_s7 + $0x140] sm:$0xff] }
 0x9c5   :  { %v9654_v51 = vpop.eup %9653 }
 0x9c6   :  { %v11701_v55 = vadd.f32 %v2879_v11, %v2878_v1  ;;  %v11824_v11 = vpack.c.bf16 %v3182_v24, %v3178_v40  ;;  %v11832_v1 = vpack.c.bf16 %v3181_v0, %v3177_v5  ;;  %v13392_v40 = vld [vmem:[#allocation50_spill] sm:$0xff] }
 0x9c8   :  { %9655 = vtanh.f32 %v11701_v55 }
 0x9d2   :  { %v9656_v23 = vpop.eup %9655 }
 0x9d3   :  { %v11704_v50 = vmul.f32 %v9656_v23, %v9654_v51  ;;  %v3186_v51 = vld [vmem:[%s13271_s7 + $0x188] sm:$0xff] }
 0x9d4   :  { %v3190_v23 = vld [vmem:[%s13271_s7 + $0x1a8] sm:$0xff] }
 0x9d5   :  { %2883 = vst.msk [vmem:[#allocation4 + $0x38] sm:$0xff] %vm776_vm4, %v11704_v50  ;;  %3022 = vmatmul.mubr.f32.vlgmr.msra.gmra.mrb[64].mxu0 %v11704_v50  ;;  %3093 = vmatmul.mubr.f32.vlgmr.msra.gmra.mrb[56].mxu1 %v11704_v50  ;;  %v11844_v59 = vpack.c.bf16 %v3190_v23, %v3186_v51 }
 0x9d6   :  { %8654 = vmatpush1.bf16.msra.mxu1 %v11518_v52  ;;  %3265 = vmatprep.mubr.f32.mxu0 %v13335_v27 }
 0x9d7   :  { %8656 = vmatprep.subr.bf16.mxu1 %v11528_v36  ;;  %3336 = vmatprep.mubr.f32.mxu1 %v13335_v27 }
 0x9d8   :  { %8622 = vmatpush1.bf16.msra.mxu0 %v11742_v20 }
 0x9da   :  { %8658 = vmatpush1.bf16.msra.mxu1 %v11536_v38 }
 0x9db   :  { %8660 = vmatprep.subr.bf16.mxu1 %v11546_v63 }
 0x9de   :  { %8662 = vmatpush1.bf16.msra.mxu1 %v11554_v43 }
 0x9df   :  { %8664 = vmatprep.subr.bf16.mxu1 %v11564_v39 }
 0x9e2   :  { %8666 = vmatpush1.bf16.msra.mxu1 %v11572_v33 }
 0x9e3   :  { %8668 = vmatprep.subr.bf16.mxu1 %v11582_v56 }
 0x9e6   :  { %8670 = vmatpush1.bf16.msra.mxu1 %v11590_v14 }
 0x9e7   :  { %8672 = vmatprep.subr.bf16.mxu1 %v11600_v53 }
 0x9ea   :  { %8674 = vmatpush1.bf16.msra.mxu1 %v11608_v60 }
 0x9eb   :  { %8676 = vmatprep.subr.bf16.mxu1 %v11620_v35 }
 0x9ee   :  { %8678 = vmatpush1.bf16.msra.mxu1 %v11632_v13 }
 0x9ef   :  { %8680 = vmatprep.subr.bf16.mxu1 %v11635_v6 }
 0x9f2   :  { %8682 = vmatpush1.bf16.msra.mxu1 %v11644_v16 }
 0x9f3   :  { %8716 = vmatprep.subr.bf16.mxu1 %v11510_v49  ;;  %v3146_v49 = vld [vmem:[%s13271_s7 + $0x48] sm:$0xff] }
 0x9f4   :  { %v11752_v47 = vpack.c.bf16 %v3150_v7, %v3146_v49  ;;  %v3198_v49 = vld [vmem:[%s13271_s7 + $0x1e8] sm:$0xff]  ;;  %v11856_v7 = vpack.c.bf16 %v3189_v3, %v3185_v21 }
 0x9f5   :  { %v11859_v26 = vpack.c.bf16 %v3198_v49, %v3194_v12 }
 0x9f6   :  { %8624 = vmatprep.subr.bf16.mxu0 %v11752_v47 }
 0x9f7   :  { %8626 = vmatpush1.bf16.msra.mxu0 %v11760_v46 }
 0x9f8   :  { %8628 = vmatprep.subr.bf16.mxu0 %v11770_v30 }
 0x9fb   :  { %8630 = vmatpush1.bf16.msra.mxu0 %v11778_v37 }
 0x9fc   :  { %8632 = vmatprep.subr.bf16.mxu0 %v11788_v28 }
 0x9ff   :  { %8634 = vmatpush1.bf16.msra.mxu0 %v11796_v31 }
 0xa00   :  { %8636 = vmatprep.subr.bf16.mxu0 %v11806_v61 }
 0xa03   :  { %8638 = vmatpush1.bf16.msra.mxu0 %v11814_v18 }
 0xa04   :  { %8640 = vmatprep.subr.bf16.mxu0 %v11824_v11 }
 0xa07   :  { %8642 = vmatpush1.bf16.msra.mxu0 %v11832_v1 }
 0xa08   :  { %8644 = vmatprep.subr.bf16.mxu0 %v11844_v59 }
 0xa0b   :  { %8646 = vmatpush1.bf16.msra.mxu0 %v11856_v7 }
 0xa0c   :  { %8648 = vmatprep.subr.bf16.mxu0 %v11859_v26 }
 0xa0f   :  { %8650 = vmatpush1.bf16.msra.mxu0 %v11868_v8 }
 0xa10   :  { %8684 = vmatprep.subr.bf16.mxu0 %v11734_v34 }
 0xaa8   :  { %v3023_v22 = vpop.f32.mrb[64].mxu0  ;;  %v3094_v62 = vpop.f32.mrb[56].mxu1 }
 0xaa9   :  { %v3099_v57 = vadd.f32 %v3023_v22, %v13389_v44  ;;  %v3101_v17 = vadd.f32 %v3094_v62, %v13390_v9  ;;  %v3025_v4 = vpop.f32.mrb[65].mxu0  ;;  %v3096_v41 = vpop.f32.mrb[57].mxu1 }
 0xaaa   :  { %v3100_v58 = vadd.f32 %v3025_v4, %v13391_v32  ;;  %v3102_v24 = vadd.f32 %v3096_v41, %v13392_v40 }
 0xaab   :  { %v7738_v5 = vmul.f32 -1.442695, %v3099_v57  ;;  %v7740_v51 = vmul.f32 -1.442695, %v3101_v17 }
 0xaac   :  { %v7739_v0 = vmul.f32 -1.442695, %v3100_v58 }
 0xaad   :  { %9657 = vpow2.f32 %v7738_v5 }
 0xaae   :  { %9659 = vpow2.f32 %v7739_v0 }
 0xaaf   :  { %9661 = vtanh.f32 %v3102_v24 }
 0xab0   :  { %9663 = vpow2.f32 %v7740_v51 }
 0xab7   :  { %v9658_v23 = vpop.eup %9657 }
 0xab8   :  { %v3112_v21 = vadd.f32 1.0, %v9658_v23  ;;  %v9660_v3 = vpop.eup %9659 }
 0xab9   :  { %v3113_v12 = vadd.f32 1.0, %v9660_v3  ;;  %v9662_v49 = vpop.eup %9661 }
 0xaba   :  { %9665 = vrcp.f32 %v3112_v21  ;;  %v9664_v45 = vpop.eup %9663 }
 0xabb   :  { %9667 = vrcp.f32 %v3113_v12  ;;  %v3114_v44 = vadd.f32 1.0, %v9664_v45 }
 0xabd   :  { %9669 = vrcp.f32 %v3114_v44 }
 0xac4   :  { %v9666_v42 = vpop.eup %9665 }
 0xac5   :  { %v3123_v22 = vmul.f32 %v9666_v42, %v9662_v49  ;;  %v9668_v62 = vpop.eup %9667 }
 0xac6   :  { %v3122_v57 = vmul.f32 %v9668_v62, %v11701_v55  ;;  %v3632_v62 = vld [vmem:[%s13271_s7 + $0x38] sm:$0xff] }
 0xac7   :  { %v9670_v17 = vpop.eup %9669 }
 0xac8   :  { %v11878_v9 = vadd.f32 %v3123_v22, %v3122_v57  ;;  %v3628_v22 = vld [vmem:[%s13271_s7 + $0x18] sm:$0xff]  ;;  %v3627_v57 = vld [vmem:[%s13271_s7 + $0x10] sm:$0xff] }
 0xac9   :  { %v11958_v44 = vpack.c.bf16 %v3632_v62, %v3628_v22  ;;  %v3676_v22 = vld [vmem:[%s13271_s7 + $0x198] sm:$0xff] }
 0xaca   :  { %9671 = vtanh.f32 %v11878_v9  ;;  %v3680_v62 = vld [vmem:[%s13271_s7 + $0x1b8] sm:$0xff] }
 0xad4   :  { %v9672_v4 = vpop.eup %9671 }
 0xad5   :  { %v11881_v41 = vmul.f32 %v9672_v4, %v9670_v17  ;;  %v3640_v4 = vld [vmem:[%s13271_s7 + $0x78] sm:$0xff] }
 0xad7   :  { %3127 = vst.msk [vmem:[#allocation4 + $0x40] sm:$0xff] %vm776_vm4, %v11881_v41  ;;  %3266 = vmatmul.mubr.f32.vlgmr.msra.gmra.mrb[66].mxu0 %v11881_v41  ;;  %3337 = vmatmul.mubr.f32.vlgmr.msra.gmra.mrb[58].mxu1 %v11881_v41 }
 0xad8   :  { %8686 = vmatpush1.bf16.msra.mxu0 %v11742_v20  ;;  %8718 = vmatpush1.bf16.msra.mxu1 %v11518_v52 }
 0xad9   :  { %8688 = vmatprep.subr.bf16.mxu0 %v11752_v47  ;;  %8720 = vmatprep.subr.bf16.mxu1 %v11528_v36 }
 0xada   :  { %3509 = vmatprep.mubr.f32.mxu0 %v13335_v27  ;;  %3580 = vmatprep.mubr.f32.mxu1 %v13335_v27 }
 0xadc   :  { %8690 = vmatpush1.bf16.msra.mxu0 %v11760_v46  ;;  %8722 = vmatpush1.bf16.msra.mxu1 %v11536_v38  ;;  %v13393_v38 = vld [vmem:[#allocation22_spill] sm:$0xff] }
 0xadd   :  { %8692 = vmatprep.subr.bf16.mxu0 %v11770_v30  ;;  %8724 = vmatprep.subr.bf16.mxu1 %v11546_v63 }
 0xae0   :  { %8694 = vmatpush1.bf16.msra.mxu0 %v11778_v37  ;;  %8726 = vmatpush1.bf16.msra.mxu1 %v11554_v43  ;;  %v13394_v43 = vld [vmem:[#allocation51_spill] sm:$0xff] }
 0xae1   :  { %8696 = vmatprep.subr.bf16.mxu0 %v11788_v28  ;;  %8728 = vmatprep.subr.bf16.mxu1 %v11564_v39 }
 0xae4   :  { %8698 = vmatpush1.bf16.msra.mxu0 %v11796_v31  ;;  %8730 = vmatpush1.bf16.msra.mxu1 %v11572_v33 }
 0xae5   :  { %8700 = vmatprep.subr.bf16.mxu0 %v11806_v61  ;;  %8732 = vmatprep.subr.bf16.mxu1 %v11582_v56 }
 0xae8   :  { %8702 = vmatpush1.bf16.msra.mxu0 %v11814_v18  ;;  %8734 = vmatpush1.bf16.msra.mxu1 %v11590_v14  ;;  %v13395_v14 = vld [vmem:[#allocation23_spill] sm:$0xff] }
 0xae9   :  { %8704 = vmatprep.subr.bf16.mxu0 %v11824_v11  ;;  %8736 = vmatprep.subr.bf16.mxu1 %v11600_v53 }
 0xaec   :  { %8706 = vmatpush1.bf16.msra.mxu0 %v11832_v1  ;;  %8738 = vmatpush1.bf16.msra.mxu1 %v11608_v60  ;;  %v13396_v60 = vld [vmem:[#allocation52_spill] sm:$0xff] }
 0xaed   :  { %8708 = vmatprep.subr.bf16.mxu0 %v11844_v59  ;;  %8740 = vmatprep.subr.bf16.mxu1 %v11620_v35 }
 0xaf0   :  { %8710 = vmatpush1.bf16.msra.mxu0 %v11856_v7  ;;  %8742 = vmatpush1.bf16.msra.mxu1 %v11632_v13 }
 0xaf1   :  { %8712 = vmatprep.subr.bf16.mxu0 %v11859_v26  ;;  %8744 = vmatprep.subr.bf16.mxu1 %v11635_v6 }
 0xaf4   :  { %8714 = vmatpush1.bf16.msra.mxu0 %v11868_v8  ;;  %8746 = vmatpush1.bf16.msra.mxu1 %v11644_v16 }
 0xaf5   :  { %8748 = vmatprep.subr.bf16.mxu0 %v11734_v34  ;;  %8780 = vmatprep.subr.bf16.mxu1 %v11958_v44 }
 0xbaa   :  { %v3267_v52 = vpop.f32.mrb[66].mxu0  ;;  %v3338_v36 = vpop.f32.mrb[58].mxu1 }
 0xbab   :  { %v3343_v63 = vadd.f32 %v3267_v52, %v13393_v38  ;;  %v3345_v39 = vadd.f32 %v3338_v36, %v13394_v43  ;;  %v3269_v33 = vpop.f32.mrb[67].mxu0  ;;  %v3340_v56 = vpop.f32.mrb[59].mxu1  ;;  %v3635_v36 = vld [vmem:[%s13271_s7 + $0x50] sm:$0xff]  ;;  %v3644_v43 = vld [vmem:[%s13271_s7 + $0x98] sm:$0xff] }
 0xbac   :  { %v3344_v53 = vadd.f32 %v3269_v33, %v13395_v14  ;;  %v3346_v35 = vadd.f32 %v3340_v56, %v13396_v60  ;;  %v3639_v38 = vld [vmem:[%s13271_s7 + $0x70] sm:$0xff]  ;;  %v3652_v60 = vld [vmem:[%s13271_s7 + $0xd8] sm:$0xff] }
 0xbad   :  { %v7741_v13 = vmul.f32 -1.442695, %v3343_v63  ;;  %v7743_v55 = vmul.f32 -1.442695, %v3345_v39  ;;  %v11984_v63 = vpack.c.bf16 %v3639_v38, %v3635_v36  ;;  %v3648_v39 = vld [vmem:[%s13271_s7 + $0xb8] sm:$0xff]  ;;  %v3643_v56 = vld [vmem:[%s13271_s7 + $0x90] sm:$0xff] }
 0xbae   :  { %v7742_v6 = vmul.f32 -1.442695, %v3344_v53  ;;  %v11994_v33 = vpack.c.bf16 %v3648_v39, %v3644_v43  ;;  %v3647_v14 = vld [vmem:[%s13271_s7 + $0xb0] sm:$0xff]  ;;  %v3688_v36 = vld [vmem:[%s13271_s7 + $0x1f8] sm:$0xff] }
 0xbaf   :  { %9673 = vpow2.f32 %v7741_v13  ;;  %v12002_v53 = vpack.c.bf16 %v3647_v14, %v3643_v56  ;;  %v3683_v39 = vld [vmem:[%s13271_s7 + $0x1d0] sm:$0xff] }
 0xbb0   :  { %9675 = vpow2.f32 %v7742_v6  ;;  %v3651_v6 = vld [vmem:[%s13271_s7 + $0xd0] sm:$0xff] }
 0xbb1   :  { %9677 = vtanh.f32 %v3346_v35  ;;  %v3656_v35 = vld [vmem:[%s13271_s7 + $0xf8] sm:$0xff]  ;;  %v3687_v56 = vld [vmem:[%s13271_s7 + $0x1f0] sm:$0xff] }
 0xbb2   :  { %9679 = vpow2.f32 %v7743_v55  ;;  %v12012_v13 = vpack.c.bf16 %v3656_v35, %v3652_v60  ;;  %v3655_v55 = vld [vmem:[%s13271_s7 + $0xf0] sm:$0xff]  ;;  %v12092_v14 = vpack.c.bf16 %v3687_v56, %v3683_v39 }
 0xbb9   :  { %v9674_v16 = vpop.eup %9673 }
 0xbba   :  { %v3356_v32 = vadd.f32 1.0, %v9674_v16  ;;  %v9676_v58 = vpop.eup %9675  ;;  %v12020_v16 = vpack.c.bf16 %v3655_v55, %v3651_v6  ;;  %v13397_v6 = vld [vmem:[#allocation24_spill] sm:$0xff] }
 0xbbb   :  { %v3357_v40 = vadd.f32 1.0, %v9676_v58  ;;  %v9678_v24 = vpop.eup %9677  ;;  %v3664_v58 = vld [vmem:[%s13271_s7 + $0x138] sm:$0xff] }
 0xbbc   :  { %9681 = vrcp.f32 %v3356_v32  ;;  %v9680_v5 = vpop.eup %9679  ;;  %v3660_v32 = vld [vmem:[%s13271_s7 + $0x118] sm:$0xff] }
 0xbbd   :  { %9683 = vrcp.f32 %v3357_v40  ;;  %v3358_v21 = vadd.f32 1.0, %v9680_v5  ;;  %v12030_v40 = vpack.c.bf16 %v3664_v58, %v3660_v32  ;;  %v3663_v5 = vld [vmem:[%s13271_s7 + $0x130] sm:$0xff]  ;;  %v13398_v32 = vld [vmem:[#allocation53_spill] sm:$0xff] }
 0xbbf   :  { %9685 = vrcp.f32 %v3358_v21 }
 0xbc6   :  { %v9682_v0 = vpop.eup %9681 }
 0xbc7   :  { %v3367_v51 = vmul.f32 %v9682_v0, %v9678_v24  ;;  %v9684_v23 = vpop.eup %9683  ;;  %v3659_v24 = vld [vmem:[%s13271_s7 + $0x110] sm:$0xff] }
 0xbc8   :  { %v3366_v3 = vmul.f32 %v9684_v23, %v11878_v9  ;;  %v3631_v9 = vld [vmem:[%s13271_s7 + $0x30] sm:$0xff]  ;;  %v12038_v0 = vpack.c.bf16 %v3663_v5, %v3659_v24  ;;  %v3672_v23 = vld [vmem:[%s13271_s7 + $0x178] sm:$0xff] }
 0xbc9   :  { %v9686_v49 = vpop.eup %9685  ;;  %v11966_v17 = vpack.c.bf16 %v3631_v9, %v3627_v57  ;;  %v3675_v57 = vld [vmem:[%s13271_s7 + $0x190] sm:$0xff]  ;;  %v12068_v9 = vpack.c.bf16 %v3680_v62, %v3676_v22 }
 0xbca   :  { %v11925_v12 = vadd.f32 %v3367_v51, %v3366_v3  ;;  %v3668_v51 = vld [vmem:[%s13271_s7 + $0x158] sm:$0xff]  ;;  %v3667_v3 = vld [vmem:[%s13271_s7 + $0x150] sm:$0xff] }
 0xbcb   :  { %v12048_v21 = vpack.c.bf16 %v3672_v23, %v3668_v51  ;;  %v13399_v51 = vld [vmem:[#allocation25_spill] sm:$0xff] }
 0xbcc   :  { %9687 = vtanh.f32 %v11925_v12 }
 0xbd6   :  { %v9688_v45 = vpop.eup %9687 }
 0xbd7   :  { %v11928_v42 = vmul.f32 %v9688_v45, %v9686_v49  ;;  %v3671_v49 = vld [vmem:[%s13271_s7 + $0x170] sm:$0xff] }
 0xbd8   :  { %v12056_v45 = vpack.c.bf16 %v3671_v49, %v3667_v3  ;;  %v13400_v3 = vld [vmem:[#allocation54_spill] sm:$0xff] }
 0xbd9   :  { %3371 = vst.msk [vmem:[#allocation4 + $0x48] sm:$0xff] %vm776_vm4, %v11928_v42  ;;  %3510 = vmatmul.mubr.f32.vlgmr.msra.gmra.mrb[68].mxu0 %v11928_v42  ;;  %3581 = vmatmul.mubr.f32.vlgmr.msra.gmra.mrb[60].mxu1 %v11928_v42 }
 0xbda   :  { %8750 = vmatpush1.bf16.msra.mxu0 %v11742_v20  ;;  %3753 = vmatprep.mubr.f32.mxu0 %v13335_v27 }
 0xbdb   :  { %8752 = vmatprep.subr.bf16.mxu0 %v11752_v47  ;;  %3824 = vmatprep.mubr.f32.mxu1 %v13335_v27 }
 0xbdc   :  { %8782 = vmatpush1.bf16.msra.mxu1 %v11966_v17 }
 0xbde   :  { %8754 = vmatpush1.bf16.msra.mxu0 %v11760_v46 }
 0xbdf   :  { %8756 = vmatprep.subr.bf16.mxu0 %v11770_v30 }
 0xbe2   :  { %8758 = vmatpush1.bf16.msra.mxu0 %v11778_v37 }
 0xbe3   :  { %8760 = vmatprep.subr.bf16.mxu0 %v11788_v28 }
 0xbe6   :  { %8762 = vmatpush1.bf16.msra.mxu0 %v11796_v31 }
 0xbe7   :  { %8764 = vmatprep.subr.bf16.mxu0 %v11806_v61 }
 0xbea   :  { %8766 = vmatpush1.bf16.msra.mxu0 %v11814_v18 }
 0xbeb   :  { %8768 = vmatprep.subr.bf16.mxu0 %v11824_v11 }
 0xbee   :  { %8770 = vmatpush1.bf16.msra.mxu0 %v11832_v1 }
 0xbef   :  { %8772 = vmatprep.subr.bf16.mxu0 %v11844_v59 }
 0xbf2   :  { %8774 = vmatpush1.bf16.msra.mxu0 %v11856_v7 }
 0xbf3   :  { %8776 = vmatprep.subr.bf16.mxu0 %v11859_v26 }
 0xbf6   :  { %8778 = vmatpush1.bf16.msra.mxu0 %v11868_v8 }
 0xbf7   :  { %8812 = vmatprep.subr.bf16.mxu0 %v11734_v34  ;;  %v3636_v34 = vld [vmem:[%s13271_s7 + $0x58] sm:$0xff] }
 0xbf8   :  { %v11976_v52 = vpack.c.bf16 %v3640_v4, %v3636_v34  ;;  %v3679_v34 = vld [vmem:[%s13271_s7 + $0x1b0] sm:$0xff]  ;;  %v3684_v4 = vld [vmem:[%s13271_s7 + $0x1d8] sm:$0xff] }
 0xbf9   :  { %v12080_v38 = vpack.c.bf16 %v3679_v34, %v3675_v57  ;;  %v12083_v43 = vpack.c.bf16 %v3688_v36, %v3684_v4 }
 0xbfa   :  { %8784 = vmatprep.subr.bf16.mxu1 %v11976_v52 }
 0xbfb   :  { %8786 = vmatpush1.bf16.msra.mxu1 %v11984_v63 }
 0xbfc   :  { %8788 = vmatprep.subr.bf16.mxu1 %v11994_v33 }
 0xbff   :  { %8790 = vmatpush1.bf16.msra.mxu1 %v12002_v53 }
 0xc00   :  { %8792 = vmatprep.subr.bf16.mxu1 %v12012_v13 }
 0xc03   :  { %8794 = vmatpush1.bf16.msra.mxu1 %v12020_v16 }
 0xc04   :  { %8796 = vmatprep.subr.bf16.mxu1 %v12030_v40 }
 0xc07   :  { %8798 = vmatpush1.bf16.msra.mxu1 %v12038_v0 }
 0xc08   :  { %8800 = vmatprep.subr.bf16.mxu1 %v12048_v21 }
 0xc0b   :  { %8802 = vmatpush1.bf16.msra.mxu1 %v12056_v45 }
 0xc0c   :  { %8804 = vmatprep.subr.bf16.mxu1 %v12068_v9 }
 0xc0f   :  { %8806 = vmatpush1.bf16.msra.mxu1 %v12080_v38 }
 0xc10   :  { %8808 = vmatprep.subr.bf16.mxu1 %v12083_v43 }
 0xc13   :  { %8810 = vmatpush1.bf16.msra.mxu1 %v12092_v14 }
 0xc14   :  { %8844 = vmatprep.subr.bf16.mxu1 %v11958_v44 }
 0xcac   :  { %v3511_v60 = vpop.f32.mrb[68].mxu0  ;;  %v3582_v35 = vpop.f32.mrb[60].mxu1 }
 0xcad   :  { %v3587_v55 = vadd.f32 %v3511_v60, %v13397_v6  ;;  %v3589_v58 = vadd.f32 %v3582_v35, %v13398_v32  ;;  %v3513_v24 = vpop.f32.mrb[69].mxu0  ;;  %v3584_v5 = vpop.f32.mrb[61].mxu1 }
 0xcae   :  { %v3588_v23 = vadd.f32 %v3513_v24, %v13399_v51  ;;  %v3590_v49 = vadd.f32 %v3584_v5, %v13400_v3 }
 0xcaf   :  { %v7744_v22 = vmul.f32 -1.442695, %v3587_v55  ;;  %v7746_v57 = vmul.f32 -1.442695, %v3589_v58 }
 0xcb0   :  { %v7745_v62 = vmul.f32 -1.442695, %v3588_v23 }
 0xcb1   :  { %9689 = vpow2.f32 %v7744_v22 }
 0xcb2   :  { %9691 = vpow2.f32 %v7745_v62 }
 0xcb3   :  { %9693 = vtanh.f32 %v3590_v49 }
 0xcb4   :  { %9695 = vpow2.f32 %v7746_v57 }
 0xcbb   :  { %v9690_v34 = vpop.eup %9689 }
 0xcbc   :  { %v3600_v4 = vadd.f32 1.0, %v9690_v34  ;;  %v9692_v36 = vpop.eup %9691 }
 0xcbd   :  { %v3601_v39 = vadd.f32 1.0, %v9692_v36  ;;  %v9694_v56 = vpop.eup %9693 }
 0xcbe   :  { %9697 = vrcp.f32 %v3600_v4  ;;  %v9696_v60 = vpop.eup %9695 }
 0xcbf   :  { %9699 = vrcp.f32 %v3601_v39  ;;  %v3602_v24 = vadd.f32 1.0, %v9696_v60 }
 0xcc1   :  { %9701 = vrcp.f32 %v3602_v24  ;;  %v4114_v24 = vld [vmem:[%s13271_s7 + $0x8] sm:$0xff] }
 0xcc8   :  { %v9698_v35 = vpop.eup %9697 }
 0xcc9   :  { %v3611_v6 = vmul.f32 %v9698_v35, %v9694_v56  ;;  %v9700_v32 = vpop.eup %9699 }
 0xcca   :  { %v3610_v55 = vmul.f32 %v9700_v32, %v11925_v12 }
 0xccb   :  { %v9702_v58 = vpop.eup %9701 }
 0xccc   :  { %v12102_v5 = vadd.f32 %v3611_v6, %v3610_v55  ;;  %v4118_v55 = vld [vmem:[%s13271_s7 + $0x28] sm:$0xff] }
 0xcce   :  { %9703 = vtanh.f32 %v12102_v5 }
 0xcd8   :  { %v9704_v51 = vpop.eup %9703 }
 0xcd9   :  { %v12105_v23 = vmul.f32 %v9704_v51, %v9702_v58  ;;  %v4113_v58 = vld [vmem:[%s13271_s7] sm:$0xff] }
 0xcda   :  { %v4117_v51 = vld [vmem:[%s13271_s7 + $0x20] sm:$0xff] }
 0xcdb   :  { %3615 = vst.msk [vmem:[#allocation4 + $0x50] sm:$0xff] %vm776_vm4, %v12105_v23  ;;  %3754 = vmatmul.mubr.f32.vlgmr.msra.gmra.mrb[70].mxu0 %v12105_v23  ;;  %3825 = vmatmul.mubr.f32.vlgmr.msra.gmra.mrb[62].mxu1 %v12105_v23 }
 0xcdc   :  { %8814 = vmatpush1.bf16.msra.mxu0 %v11742_v20  ;;  %8846 = vmatpush1.bf16.msra.mxu1 %v11966_v17 }
 0xcdd   :  { %8816 = vmatprep.subr.bf16.mxu0 %v11752_v47  ;;  %8848 = vmatprep.subr.bf16.mxu1 %v11976_v52 }
 0xcde   :  { %3997 = vmatprep.mubr.f32.mxu0 %v13335_v27  ;;  %4068 = vmatprep.mubr.f32.mxu1 %v13335_v27 }
 0xce0   :  { %8818 = vmatpush1.bf16.msra.mxu0 %v11760_v46  ;;  %8850 = vmatpush1.bf16.msra.mxu1 %v11984_v63  ;;  %v13401_v46 = vld [vmem:[#allocation26_spill] sm:$0xff] }
 0xce1   :  { %8820 = vmatprep.subr.bf16.mxu0 %v11770_v30  ;;  %8852 = vmatprep.subr.bf16.mxu1 %v11994_v33 }
 0xce4   :  { %8822 = vmatpush1.bf16.msra.mxu0 %v11778_v37  ;;  %8854 = vmatpush1.bf16.msra.mxu1 %v12002_v53  ;;  %v13402_v37 = vld [vmem:[#allocation55_spill] sm:$0xff] }
 0xce5   :  { %8824 = vmatprep.subr.bf16.mxu0 %v11788_v28  ;;  %8856 = vmatprep.subr.bf16.mxu1 %v12012_v13 }
 0xce8   :  { %8826 = vmatpush1.bf16.msra.mxu0 %v11796_v31  ;;  %8858 = vmatpush1.bf16.msra.mxu1 %v12020_v16 }
 0xce9   :  { %8828 = vmatprep.subr.bf16.mxu0 %v11806_v61  ;;  %8860 = vmatprep.subr.bf16.mxu1 %v12030_v40 }
 0xcec   :  { %8830 = vmatpush1.bf16.msra.mxu0 %v11814_v18  ;;  %8862 = vmatpush1.bf16.msra.mxu1 %v12038_v0  ;;  %v13403_v18 = vld [vmem:[#allocation27_spill] sm:$0xff] }
 0xced   :  { %8832 = vmatprep.subr.bf16.mxu0 %v11824_v11  ;;  %8864 = vmatprep.subr.bf16.mxu1 %v12048_v21 }
 0xcf0   :  { %8834 = vmatpush1.bf16.msra.mxu0 %v11832_v1  ;;  %8866 = vmatpush1.bf16.msra.mxu1 %v12056_v45  ;;  %v13404_v1 = vld [vmem:[#allocation56_spill] sm:$0xff] }
 0xcf1   :  { %8836 = vmatprep.subr.bf16.mxu0 %v11844_v59  ;;  %8868 = vmatprep.subr.bf16.mxu1 %v12068_v9 }
 0xcf4   :  { %8838 = vmatpush1.bf16.msra.mxu0 %v11856_v7  ;;  %8870 = vmatpush1.bf16.msra.mxu1 %v12080_v38 }
 0xcf5   :  { %8840 = vmatprep.subr.bf16.mxu0 %v11859_v26  ;;  %8872 = vmatprep.subr.bf16.mxu1 %v12083_v43 }
 0xcf8   :  { %8842 = vmatpush1.bf16.msra.mxu0 %v11868_v8  ;;  %8874 = vmatpush1.bf16.msra.mxu1 %v12092_v14 }
 0xcf9   :  { %8908 = vmatprep.subr.bf16.mxu1 %v11958_v44 }
 0xdae   :  { %v3755_v20 = vpop.f32.mrb[70].mxu0  ;;  %v3826_v47 = vpop.f32.mrb[62].mxu1 }
 0xdaf   :  { %v3831_v30 = vadd.f32 %v3755_v20, %v13401_v46  ;;  %v3833_v28 = vadd.f32 %v3826_v47, %v13402_v37  ;;  %v3757_v31 = vpop.f32.mrb[71].mxu0  ;;  %v3828_v61 = vpop.f32.mrb[63].mxu1  ;;  %v12190_v20 = vpack.c.bf16 %v4117_v51, %v4113_v58  ;;  %v4126_v47 = vld [vmem:[%s13271_s7 + $0x68] sm:$0xff]  ;;  %v4125_v37 = vld [vmem:[%s13271_s7 + $0x60] sm:$0xff] }
 0xdb0   :  { %v3832_v11 = vadd.f32 %v3757_v31, %v13403_v18  ;;  %v3834_v59 = vadd.f32 %v3828_v61, %v13404_v1  ;;  %v4130_v31 = vld [vmem:[%s13271_s7 + $0x88] sm:$0xff]  ;;  %v4133_v1 = vld [vmem:[%s13271_s7 + $0xa0] sm:$0xff] }
 0xdb1   :  { %v7747_v7 = vmul.f32 -1.442695, %v3831_v30  ;;  %v7749_v8 = vmul.f32 -1.442695, %v3833_v28  ;;  %v4121_v30 = vld [vmem:[%s13271_s7 + $0x40] sm:$0xff]  ;;  %v4134_v61 = vld [vmem:[%s13271_s7 + $0xa8] sm:$0xff] }
 0xdb2   :  { %v7748_v26 = vmul.f32 -1.442695, %v3832_v11  ;;  %v12208_v28 = vpack.c.bf16 %v4125_v37, %v4121_v30  ;;  %v12218_v18 = vpack.c.bf16 %v4134_v61, %v4130_v31  ;;  %v4129_v11 = vld [vmem:[%s13271_s7 + $0x80] sm:$0xff]  ;;  %v4162_v58 = vld [vmem:[%s13271_s7 + $0x188] sm:$0xff] }
 0xdb3   :  { %9705 = vpow2.f32 %v7747_v7  ;;  %v4138_v7 = vld [vmem:[%s13271_s7 + $0xc8] sm:$0xff]  ;;  %v4165_v30 = vld [vmem:[%s13271_s7 + $0x1a0] sm:$0xff] }
 0xdb4   :  { %9707 = vpow2.f32 %v7748_v26  ;;  %v4142_v26 = vld [vmem:[%s13271_s7 + $0xe8] sm:$0xff] }
 0xdb5   :  { %9709 = vtanh.f32 %v3834_v59  ;;  %v12226_v59 = vpack.c.bf16 %v4133_v1, %v4129_v11  ;;  %v4166_v51 = vld [vmem:[%s13271_s7 + $0x1a8] sm:$0xff]  ;;  %v4169_v1 = vld [vmem:[%s13271_s7 + $0x1c0] sm:$0xff] }
 0xdb6   :  { %9711 = vpow2.f32 %v7749_v8  ;;  %v12236_v8 = vpack.c.bf16 %v4142_v26, %v4138_v7  ;;  %v4170_v37 = vld [vmem:[%s13271_s7 + $0x1c8] sm:$0xff]  ;;  %v4173_v7 = vld [vmem:[%s13271_s7 + $0x1e0] sm:$0xff] }
 0xdb7   :  { %v4174_v31 = vld [vmem:[%s13271_s7 + $0x1e8] sm:$0xff]  ;;  %v12316_v26 = vpack.c.bf16 %v4173_v7, %v4169_v1 }
 0xdb8   :  { %v12307_v11 = vpack.c.bf16 %v4174_v31, %v4170_v37 }
 0xdbd   :  { %v9706_v12 = vpop.eup %9705 }
 0xdbe   :  { %v3844_v3 = vadd.f32 1.0, %v9706_v12  ;;  %v9708_v49 = vpop.eup %9707  ;;  %v4137_v12 = vld [vmem:[%s13271_s7 + $0xc0] sm:$0xff] }
 0xdbf   :  { %v3845_v22 = vadd.f32 1.0, %v9708_v49  ;;  %v9710_v62 = vpop.eup %9709 }
 0xdc0   :  { %9713 = vrcp.f32 %v3844_v3  ;;  %v9712_v57 = vpop.eup %9711  ;;  %v4141_v3 = vld [vmem:[%s13271_s7 + $0xe0] sm:$0xff] }
 0xdc1   :  { %9715 = vrcp.f32 %v3845_v22  ;;  %v3846_v39 = vadd.f32 1.0, %v9712_v57  ;;  %v12244_v49 = vpack.c.bf16 %v4141_v3, %v4137_v12  ;;  %v4146_v22 = vld [vmem:[%s13271_s7 + $0x108] sm:$0xff] }
 0xdc3   :  { %9717 = vrcp.f32 %v3846_v39  ;;  %v4154_v39 = vld [vmem:[%s13271_s7 + $0x148] sm:$0xff] }
 0xdca   :  { %v9714_v34 = vpop.eup %9713 }
 0xdcb   :  { %v3855_v4 = vmul.f32 %v9714_v34, %v9710_v62  ;;  %v9716_v36 = vpop.eup %9715  ;;  %v4150_v62 = vld [vmem:[%s13271_s7 + $0x128] sm:$0xff]  ;;  %v4145_v34 = vld [vmem:[%s13271_s7 + $0x100] sm:$0xff] }
 0xdcc   :  { %v3854_v56 = vmul.f32 %v9716_v36, %v12102_v5  ;;  %v12182_v5 = vpack.c.bf16 %v4118_v55, %v4114_v24  ;;  %v12254_v57 = vpack.c.bf16 %v4150_v62, %v4146_v22  ;;  %v4157_v24 = vld [vmem:[%s13271_s7 + $0x160] sm:$0xff]  ;;  %v13405_v22 = vld [vmem:[#allocation28_spill] sm:$0xff] }
 0xdcd   :  { %v9718_v35 = vpop.eup %9717 }
 0xdce   :  { %v12149_v60 = vadd.f32 %v3855_v4, %v3854_v56  ;;  %8876 = vmatprep.subr.bf16.mxu0 %v12182_v5  ;;  %v4149_v4 = vld [vmem:[%s13271_s7 + $0x120] sm:$0xff]  ;;  %v4158_v56 = vld [vmem:[%s13271_s7 + $0x168] sm:$0xff] }
 0xdcf   :  { %v12262_v36 = vpack.c.bf16 %v4149_v4, %v4145_v34  ;;  %v13406_v34 = vld [vmem:[#allocation57_spill] sm:$0xff] }
 0xdd0   :  { %9719 = vtanh.f32 %v12149_v60 }
 0xdda   :  { %v9720_v6 = vpop.eup %9719 }
 0xddb   :  { %v12152_v32 = vmul.f32 %v9720_v6, %v9718_v35  ;;  %v12272_v35 = vpack.c.bf16 %v4158_v56, %v4154_v39  ;;  %v4153_v6 = vld [vmem:[%s13271_s7 + $0x140] sm:$0xff] }
 0xddc   :  { %v12280_v55 = vpack.c.bf16 %v4157_v24, %v4153_v6  ;;  %v13407_v6 = vld [vmem:[#allocation29_spill] sm:$0xff] }
 0xddd   :  { %3859 = vst.msk [vmem:[#allocation4 + $0x58] sm:$0xff] %vm776_vm4, %v12152_v32  ;;  %3998 = vmatmul.mubr.f32.vlgmr.msra.gmra.mrb[72].mxu0 %v12152_v32  ;;  %4069 = vmatmul.mubr.f32.vlgmr.msra.gmra.mrb[64].mxu1 %v12152_v32 }
 0xdde   :  { %8910 = vmatpush1.bf16.msra.mxu1 %v11966_v17  ;;  %4241 = vmatprep.mubr.f32.mxu0 %v13335_v27 }
 0xddf   :  { %8912 = vmatprep.subr.bf16.mxu1 %v11976_v52  ;;  %4312 = vmatprep.mubr.f32.mxu1 %v13335_v27 }
 0xde0   :  { %8878 = vmatpush1.bf16.msra.mxu0 %v12190_v20 }
 0xde2   :  { %8914 = vmatpush1.bf16.msra.mxu1 %v11984_v63 }
 0xde3   :  { %8916 = vmatprep.subr.bf16.mxu1 %v11994_v33 }
 0xde6   :  { %8918 = vmatpush1.bf16.msra.mxu1 %v12002_v53 }
 0xde7   :  { %8920 = vmatprep.subr.bf16.mxu1 %v12012_v13 }
 0xdea   :  { %8922 = vmatpush1.bf16.msra.mxu1 %v12020_v16 }
 0xdeb   :  { %8924 = vmatprep.subr.bf16.mxu1 %v12030_v40 }
 0xdee   :  { %8926 = vmatpush1.bf16.msra.mxu1 %v12038_v0 }
 0xdef   :  { %8928 = vmatprep.subr.bf16.mxu1 %v12048_v21 }
 0xdf2   :  { %8930 = vmatpush1.bf16.msra.mxu1 %v12056_v45 }
 0xdf3   :  { %8932 = vmatprep.subr.bf16.mxu1 %v12068_v9 }
 0xdf6   :  { %8934 = vmatpush1.bf16.msra.mxu1 %v12080_v38 }
 0xdf7   :  { %8936 = vmatprep.subr.bf16.mxu1 %v12083_v43 }
 0xdfa   :  { %8938 = vmatpush1.bf16.msra.mxu1 %v12092_v14 }
 0xdfb   :  { %8972 = vmatprep.subr.bf16.mxu1 %v11958_v44  ;;  %v4122_v44 = vld [vmem:[%s13271_s7 + $0x48] sm:$0xff] }
 0xdfc   :  { %v12200_v46 = vpack.c.bf16 %v4126_v47, %v4122_v44  ;;  %v4161_v44 = vld [vmem:[%s13271_s7 + $0x180] sm:$0xff]  ;;  %v12292_v47 = vpack.c.bf16 %v4166_v51, %v4162_v58 }
 0xdfd   :  { %v12304_v61 = vpack.c.bf16 %v4165_v30, %v4161_v44  ;;  %v13408_v58 = vld [vmem:[#allocation58_spill] sm:$0xff] }
 0xdfe   :  { %8880 = vmatprep.subr.bf16.mxu0 %v12200_v46 }
 0xdff   :  { %8882 = vmatpush1.bf16.msra.mxu0 %v12208_v28 }
 0xe00   :  { %8884 = vmatprep.subr.bf16.mxu0 %v12218_v18 }
 0xe03   :  { %8886 = vmatpush1.bf16.msra.mxu0 %v12226_v59 }
 0xe04   :  { %8888 = vmatprep.subr.bf16.mxu0 %v12236_v8 }
 0xe07   :  { %8890 = vmatpush1.bf16.msra.mxu0 %v12244_v49 }
 0xe08   :  { %8892 = vmatprep.subr.bf16.mxu0 %v12254_v57 }
 0xe0b   :  { %8894 = vmatpush1.bf16.msra.mxu0 %v12262_v36 }
 0xe0c   :  { %8896 = vmatprep.subr.bf16.mxu0 %v12272_v35 }
 0xe0f   :  { %8898 = vmatpush1.bf16.msra.mxu0 %v12280_v55 }
 0xe10   :  { %8900 = vmatprep.subr.bf16.mxu0 %v12292_v47 }
 0xe13   :  { %8902 = vmatpush1.bf16.msra.mxu0 %v12304_v61 }
 0xe14   :  { %8904 = vmatprep.subr.bf16.mxu0 %v12307_v11 }
 0xe17   :  { %8906 = vmatpush1.bf16.msra.mxu0 %v12316_v26 }
 0xe18   :  { %8940 = vmatprep.subr.bf16.mxu0 %v12182_v5 }
 0xeb0   :  { %v3999_v12 = vpop.f32.mrb[72].mxu0  ;;  %v4070_v3 = vpop.f32.mrb[64].mxu1 }
 0xeb1   :  { %v4075_v62 = vadd.f32 %v3999_v12, %v13405_v22  ;;  %v4077_v4 = vadd.f32 %v4070_v3, %v13406_v34  ;;  %v4001_v39 = vpop.f32.mrb[73].mxu0  ;;  %v4072_v56 = vpop.f32.mrb[65].mxu1 }
 0xeb2   :  { %v4076_v24 = vadd.f32 %v4001_v39, %v13407_v6  ;;  %v4078_v51 = vadd.f32 %v4072_v56, %v13408_v58 }
 0xeb3   :  { %v7750_v44 = vmul.f32 -1.442695, %v4075_v62  ;;  %v7752_v37 = vmul.f32 -1.442695, %v4077_v4 }
 0xeb4   :  { %v7751_v30 = vmul.f32 -1.442695, %v4076_v24 }
 0xeb5   :  { %9721 = vpow2.f32 %v7750_v44 }
 0xeb6   :  { %9723 = vpow2.f32 %v7751_v30 }
 0xeb7   :  { %9725 = vtanh.f32 %v4078_v51 }
 0xeb8   :  { %9727 = vpow2.f32 %v7752_v37 }
 0xebf   :  { %v9722_v31 = vpop.eup %9721 }
 0xec0   :  { %v4088_v1 = vadd.f32 1.0, %v9722_v31  ;;  %v9724_v7 = vpop.eup %9723 }
 0xec1   :  { %v4089_v12 = vadd.f32 1.0, %v9724_v7  ;;  %v9726_v3 = vpop.eup %9725 }
 0xec2   :  { %9729 = vrcp.f32 %v4088_v1  ;;  %v9728_v22 = vpop.eup %9727 }
 0xec3   :  { %9731 = vrcp.f32 %v4089_v12  ;;  %v4090_v6 = vadd.f32 1.0, %v9728_v22 }
 0xec5   :  { %9733 = vrcp.f32 %v4090_v6  ;;  %v4619_v6 = vld [vmem:[%s13271_s7 + $0x90] sm:$0xff] }
 0xecc   :  { %v9730_v34 = vpop.eup %9729 }
 0xecd   :  { %v4099_v54 = vmul.f32 %v9730_v34, %v9726_v3  ;;  %v9732_v39 = vpop.eup %9731 }
 0xece   :  { %v4098_v62 = vmul.f32 %v9732_v39, %v12149_v60 }
 0xecf   :  { %v9734_v4 = vpop.eup %9733 }
 0xed0   :  { %v12326_v56 = vadd.f32 %v4099_v54, %v4098_v62  ;;  %v4623_v62 = vld [vmem:[%s13271_s7 + $0xb0] sm:$0xff] }
 0xed2   :  { %9735 = vtanh.f32 %v12326_v56 }
 0xedc   :  { %v9736_v24 = vpop.eup %9735 }
 0xedd   :  { %v12329_v58 = vmul.f32 %v9736_v24, %v9734_v4  ;;  %v4628_v4 = vld [vmem:[%s13271_s7 + $0xd8] sm:$0xff] }
 0xede   :  { %v4632_v24 = vld [vmem:[%s13271_s7 + $0xf8] sm:$0xff] }
 0xedf   :  { %4103 = vst.msk [vmem:[#allocation4 + $0x60] sm:$0xff] %vm776_vm4, %v12329_v58  ;;  %4242 = vmatmul.mubr.f32.vlgmr.msra.gmra.mrb[74].mxu0 %v12329_v58  ;;  %4313 = vmatmul.mubr.f32.vlgmr.msra.gmra.mrb[66].mxu1 %v12329_v58 }
 0xee0   :  { %8942 = vmatpush1.bf16.msra.mxu0 %v12190_v20  ;;  %8974 = vmatpush1.bf16.msra.mxu1 %v11966_v17 }
 0xee1   :  { %8944 = vmatprep.subr.bf16.mxu0 %v12200_v46  ;;  %8976 = vmatprep.subr.bf16.mxu1 %v11976_v52  ;;  %v13409_v52 = vld [vmem:[#allocation30_spill] sm:$0xff] }
 0xee2   :  { %4485 = vmatprep.mubr.f32.mxu0 %v13335_v27  ;;  %4556 = vmatprep.mubr.f32.mxu1 %v13335_v27 }
 0xee4   :  { %8946 = vmatpush1.bf16.msra.mxu0 %v12208_v28  ;;  %8978 = vmatpush1.bf16.msra.mxu1 %v11984_v63 }
 0xee5   :  { %8948 = vmatprep.subr.bf16.mxu0 %v12218_v18  ;;  %8980 = vmatprep.subr.bf16.mxu1 %v11994_v33  ;;  %v13410_v33 = vld [vmem:[#allocation59_spill] sm:$0xff] }
 0xee8   :  { %8950 = vmatpush1.bf16.msra.mxu0 %v12226_v59  ;;  %8982 = vmatpush1.bf16.msra.mxu1 %v12002_v53 }
 0xee9   :  { %8952 = vmatprep.subr.bf16.mxu0 %v12236_v8  ;;  %8984 = vmatprep.subr.bf16.mxu1 %v12012_v13 }
 0xeec   :  { %8954 = vmatpush1.bf16.msra.mxu0 %v12244_v49  ;;  %8986 = vmatpush1.bf16.msra.mxu1 %v12020_v16 }
 0xeed   :  { %8956 = vmatprep.subr.bf16.mxu0 %v12254_v57  ;;  %8988 = vmatprep.subr.bf16.mxu1 %v12030_v40  ;;  %v13411_v40 = vld [vmem:[#allocation31_spill] sm:$0xff] }
 0xef0   :  { %8958 = vmatpush1.bf16.msra.mxu0 %v12262_v36  ;;  %8990 = vmatpush1.bf16.msra.mxu1 %v12038_v0 }
 0xef1   :  { %8960 = vmatprep.subr.bf16.mxu0 %v12272_v35  ;;  %8992 = vmatprep.subr.bf16.mxu1 %v12048_v21  ;;  %v13412_v21 = vld [vmem:[#allocation60_spill] sm:$0xff] }
 0xef4   :  { %8962 = vmatpush1.bf16.msra.mxu0 %v12280_v55  ;;  %8994 = vmatpush1.bf16.msra.mxu1 %v12056_v45 }
 0xef5   :  { %8964 = vmatprep.subr.bf16.mxu0 %v12292_v47  ;;  %8996 = vmatprep.subr.bf16.mxu1 %v12068_v9 }
 0xef8   :  { %8966 = vmatpush1.bf16.msra.mxu0 %v12304_v61  ;;  %8998 = vmatpush1.bf16.msra.mxu1 %v12080_v38 }
 0xef9   :  { %8968 = vmatprep.subr.bf16.mxu0 %v12307_v11  ;;  %9000 = vmatprep.subr.bf16.mxu1 %v12083_v43 }
 0xefc   :  { %8970 = vmatpush1.bf16.msra.mxu0 %v12316_v26  ;;  %9002 = vmatpush1.bf16.msra.mxu1 %v12092_v14 }
 0xefd   :  { %9004 = vmatprep.subr.bf16.mxu0 %v12182_v5 }
 0xfb2   :  { %v4243_v54 = vpop.f32.mrb[74].mxu0  ;;  %v4314_v17 = vpop.f32.mrb[66].mxu1 }
 0xfb3   :  { %v4319_v63 = vadd.f32 %v4243_v54, %v13409_v52  ;;  %v4321_v53 = vadd.f32 %v4314_v17, %v13410_v33  ;;  %v4245_v13 = vpop.f32.mrb[75].mxu0  ;;  %v4316_v16 = vpop.f32.mrb[67].mxu1  ;;  %v9047_v54 = vpack.c.bf16 %v4632_v24, %v4628_v4  ;;  %v4627_v17 = vld [vmem:[%s13271_s7 + $0xd0] sm:$0xff]  ;;  %v4636_v33 = vld [vmem:[%s13271_s7 + $0x118] sm:$0xff] }
 0xfb4   :  { %v4320_v0 = vadd.f32 %v4245_v13, %v13411_v40  ;;  %v4322_v45 = vadd.f32 %v4316_v16, %v13412_v21  ;;  %v4631_v52 = vld [vmem:[%s13271_s7 + $0xf0] sm:$0xff]  ;;  %v4644_v21 = vld [vmem:[%s13271_s7 + $0x158] sm:$0xff] }
 0xfb5   :  { %v7753_v9 = vmul.f32 -1.442695, %v4319_v63  ;;  %v7755_v43 = vmul.f32 -1.442695, %v4321_v53  ;;  %v9049_v63 = vpack.c.bf16 %v4631_v52, %v4627_v17  ;;  %v4640_v53 = vld [vmem:[%s13271_s7 + $0x138] sm:$0xff]  ;;  %v4635_v16 = vld [vmem:[%s13271_s7 + $0x110] sm:$0xff] }
 0xfb6   :  { %v7754_v38 = vmul.f32 -1.442695, %v4320_v0  ;;  %v9051_v13 = vpack.c.bf16 %v4640_v53, %v4636_v33  ;;  %v4639_v40 = vld [vmem:[%s13271_s7 + $0x130] sm:$0xff] }
 0xfb7   :  { %9737 = vpow2.f32 %v7753_v9  ;;  %v9053_v0 = vpack.c.bf16 %v4639_v40, %v4635_v16  ;;  %v9483_v16 = vld [vmem:[%s13276_s12 + $0x44] ss:$8 sps:$4 sm:$0xff]  }
 0xfb8   :  { %9739 = vpow2.f32 %v7754_v38  ;;  %v4643_v38 = vld [vmem:[%s13271_s7 + $0x150] sm:$0xff] }
 0xfb9   :  { %9741 = vtanh.f32 %v4322_v45  ;;  %v4648_v45 = vld [vmem:[%s13271_s7 + $0x178] sm:$0xff] }
 0xfba   :  { %9743 = vpow2.f32 %v7755_v43  ;;  %v9055_v9 = vpack.c.bf16 %v4648_v45, %v4644_v21  ;;  %v4647_v43 = vld [vmem:[%s13271_s7 + $0x170] sm:$0xff]  ;;  %v9481_v45 = vld [vmem:[%s13276_s12 + $0x40] ss:$8 sps:$4 sm:$0xff]  }
 0xfc1   :  { %v9738_v14 = vpop.eup %9737 }
 0xfc2   :  { %v4332_v60 = vadd.f32 1.0, %v9738_v14  ;;  %v9740_v5 = vpop.eup %9739  ;;  %v9057_v14 = vpack.c.bf16 %v4647_v43, %v4643_v38  ;;  %v9484_v38 = vld [vmem:[%s13276_s12 + $0x50] ss:$8 sps:$4 sm:$0xff]   ;;  %v9489_v43 = vld [vmem:[%s13276_s12 + $0x64] ss:$8 sps:$4 sm:$0xff]  }
 0xfc3   :  { %v4333_v51 = vadd.f32 1.0, %v9740_v5  ;;  %v9742_v44 = vpop.eup %9741  ;;  %v4656_v5 = vld [vmem:[%s13271_s7 + $0x1b8] sm:$0xff] }
 0xfc4   :  { %9745 = vrcp.f32 %v4332_v60  ;;  %v9744_v30 = vpop.eup %9743  ;;  %v4652_v60 = vld [vmem:[%s13271_s7 + $0x198] sm:$0xff] }
 0xfc5   :  { %9747 = vrcp.f32 %v4333_v51  ;;  %v4334_v7 = vadd.f32 1.0, %v9744_v30  ;;  %v4651_v51 = vld [vmem:[%s13271_s7 + $0x190] sm:$0xff] }
 0xfc6   :  { %v4655_v30 = vld [vmem:[%s13271_s7 + $0x1b0] sm:$0xff] }
 0xfc7   :  { %9749 = vrcp.f32 %v4334_v7 }
 0xfce   :  { %v9746_v37 = vpop.eup %9745 }
 0xfcf   :  { %v4343_v31 = vmul.f32 %v9746_v37, %v9742_v44  ;;  %v9748_v1 = vpop.eup %9747  ;;  %v9059_v44 = vpack.c.bf16 %v4656_v5, %v4652_v60  ;;  %v4660_v37 = vld [vmem:[%s13271_s7 + $0x1d8] sm:$0xff] }
 0xfd0   :  { %v4342_v12 = vmul.f32 %v9748_v1, %v12326_v56  ;;  %v9045_v56 = vpack.c.bf16 %v4623_v62, %v4619_v6  ;;  %v9061_v1 = vpack.c.bf16 %v4655_v30, %v4651_v51  ;;  %v9492_v60 = vld [vmem:[%s13276_s12 + $0x74] ss:$8 sps:$4 sm:$0xff]   ;;  %v9490_v5 = vld [vmem:[%s13276_s12 + $0x70] ss:$8 sps:$4 sm:$0xff]  }
 0xfd1   :  { %v9750_v22 = vpop.eup %9749  ;;  %v9498_v30 = vld [vmem:[%s13276_s12 + $0x14] ss:$8 sps:$4 sm:$0xff]  }
 0xfd2   :  { %v12373_v3 = vadd.f32 %v4343_v31, %v4342_v12  ;;  %v4664_v31 = vld [vmem:[%s13271_s7 + $0x1f8] sm:$0xff]  ;;  %v4659_v12 = vld [vmem:[%s13271_s7 + $0x1d0] sm:$0xff] }
 0xfd3   :  { %v9063_v7 = vpack.c.bf16 %v4664_v31, %v4660_v37  ;;  %v9496_v31 = vld [vmem:[%s13276_s12 + $0x10] ss:$8 sps:$4 sm:$0xff]  }
 0xfd4   :  { %9751 = vtanh.f32 %v12373_v3 }
 0xfde   :  { %v9752_v34 = vpop.eup %9751 }
 0xfdf   :  { %v12376_v39 = vmul.f32 %v9752_v34, %v9750_v22  ;;  %v4663_v22 = vld [vmem:[%s13271_s7 + $0x1f0] sm:$0xff] }
 0xfe0   :  { %v9065_v34 = vpack.c.bf16 %v4663_v22, %v4659_v12  ;;  %v9499_v12 = vld [vmem:[%s13276_s12 + $0x20] ss:$8 sps:$4 sm:$0xff]   ;;  %v9504_v22 = vld [vmem:[%s13276_s12 + $0x34] ss:$8 sps:$4 sm:$0xff]  }
 0xfe1   :  { %4347 = vst.msk [vmem:[#allocation4 + $0x68] sm:$0xff] %vm776_vm4, %v12376_v39  ;;  %4486 = vmatmul.mubr.f32.vlgmr.msra.gmra.mrb[76].mxu0 %v12376_v39  ;;  %4557 = vmatmul.mubr.f32.vlgmr.msra.gmra.mrb[68].mxu1 %v12376_v39 }
 0xfe2   :  { %9006 = vmatpush1.bf16.msra.mxu0 %v12190_v20  ;;  %4729 = vmatprep.mubr.f32.mxu0 %v13335_v27  ;;  %v4604_v20 = vld [vmem:[%s13271_s7 + $0x18] sm:$0xff] }
 0xfe3   :  { %9008 = vmatprep.subr.bf16.mxu0 %v12200_v46  ;;  %4800 = vmatprep.mubr.f32.mxu1 %v13335_v27  ;;  %v4608_v46 = vld [vmem:[%s13271_s7 + $0x38] sm:$0xff] }
 0xfe6   :  { %9010 = vmatpush1.bf16.msra.mxu0 %v12208_v28  ;;  %v9035_v28 = vpack.c.bf16 %v4608_v46, %v4604_v20 }
 0xfe7   :  { %9012 = vmatprep.subr.bf16.mxu0 %v12218_v18  ;;  %v4603_v18 = vld [vmem:[%s13271_s7 + $0x10] sm:$0xff] }
 0xfe8   :  { %9036 = vmatprep.subr.bf16.mxu1 %v9035_v28  ;;  %v13413_v28 = vld [vmem:[#allocation32_spill] sm:$0xff] }
 0xfea   :  { %9014 = vmatpush1.bf16.msra.mxu0 %v12226_v59  ;;  %v4607_v59 = vld [vmem:[%s13271_s7 + $0x30] sm:$0xff] }
 0xfeb   :  { %9016 = vmatprep.subr.bf16.mxu0 %v12236_v8  ;;  %v9037_v8 = vpack.c.bf16 %v4607_v59, %v4603_v18  ;;  %v13414_v59 = vld [vmem:[#allocation61_spill] sm:$0xff] }
 0xfed   :  { %9038 = vmatpush1.bf16.msra.mxu1 %v9037_v8 }
 0xfee   :  { %9018 = vmatpush1.bf16.msra.mxu0 %v12244_v49  ;;  %v4612_v49 = vld [vmem:[%s13271_s7 + $0x58] sm:$0xff] }
 0xfef   :  { %9020 = vmatprep.subr.bf16.mxu0 %v12254_v57  ;;  %v4616_v57 = vld [vmem:[%s13271_s7 + $0x78] sm:$0xff] }
 0xff2   :  { %9022 = vmatpush1.bf16.msra.mxu0 %v12262_v36  ;;  %v9039_v36 = vpack.c.bf16 %v4616_v57, %v4612_v49 }
 0xff3   :  { %9024 = vmatprep.subr.bf16.mxu0 %v12272_v35  ;;  %v4611_v35 = vld [vmem:[%s13271_s7 + $0x50] sm:$0xff] }
 0xff4   :  { %9040 = vmatprep.subr.bf16.mxu1 %v9039_v36  ;;  %v13415_v36 = vld [vmem:[#allocation33_spill] sm:$0xff] }
 0xff6   :  { %9026 = vmatpush1.bf16.msra.mxu0 %v12280_v55  ;;  %v4615_v55 = vld [vmem:[%s13271_s7 + $0x70] sm:$0xff] }
 0xff7   :  { %9028 = vmatprep.subr.bf16.mxu0 %v12292_v47  ;;  %v9041_v47 = vpack.c.bf16 %v4615_v55, %v4611_v35  ;;  %v13416_v55 = vld [vmem:[#allocation62_spill] sm:$0xff] }
 0xff9   :  { %9042 = vmatpush1.bf16.msra.mxu1 %v9041_v47 }
 0xffa   :  { %9030 = vmatpush1.bf16.msra.mxu0 %v12304_v61  ;;  %v4620_v61 = vld [vmem:[%s13271_s7 + $0x98] sm:$0xff] }
 0xffb   :  { %9032 = vmatprep.subr.bf16.mxu0 %v12307_v11  ;;  %v4624_v11 = vld [vmem:[%s13271_s7 + $0xb8] sm:$0xff] }
 0xffe   :  { %9034 = vmatpush1.bf16.msra.mxu0 %v12316_v26  ;;  %v9043_v26 = vpack.c.bf16 %v4624_v11, %v4620_v61 }
0x1000   :  { %9044 = vmatprep.subr.bf16.mxu1 %v9043_v26 }
0x1001   :  { %9046 = vmatpush1.bf16.msra.mxu1 %v9045_v56 }
0x1002   :  { %9048 = vmatprep.subr.bf16.mxu1 %v9047_v54 }
0x1005   :  { %9050 = vmatpush1.bf16.msra.mxu1 %v9049_v63 }
0x1006   :  { %9052 = vmatprep.subr.bf16.mxu1 %v9051_v13 }
0x1009   :  { %9054 = vmatpush1.bf16.msra.mxu1 %v9053_v0 }
0x100a   :  { %9056 = vmatprep.subr.bf16.mxu1 %v9055_v9  ;;  %v13417_v9 = vmov 0  }
0x100d   :  { %9058 = vmatpush1.bf16.msra.mxu1 %v9057_v14  ;;  %v9487_v14 = vld [vmem:[%s13276_s12 + $0x60] ss:$8 sps:$4 sm:$0xff]  }
0x100e   :  { %9060 = vmatprep.subr.bf16.mxu1 %v9059_v44  ;;  %v9493_v44 = vld [vmem:[%s13276_s12] ss:$8 sps:$4 sm:$0xff]  }
0x1011   :  { %9062 = vmatpush1.bf16.msra.mxu1 %v9061_v1  ;;  %v9501_v1 = vld [vmem:[%s13276_s12 + $0x24] ss:$8 sps:$4 sm:$0xff]  }
0x1012   :  { %9064 = vmatprep.subr.bf16.mxu1 %v9063_v7 }
0x1015   :  { %9066 = vmatpush1.bf16.msra.mxu1 %v9065_v34 }
0x1016   :  { %5399 = vmatprep.subr.bf16.mxu1 %v9483_v16 }
0x10b4   :  { %v4487_v20 = vpop.f32.mrb[76].mxu0  ;;  %v4558_v46 = vpop.f32.mrb[68].mxu1 }
0x10b5   :  { %v4563_v18 = vadd.f32 %v4487_v20, %v13413_v28  ;;  %v4565_v8 = vadd.f32 %v4558_v46, %v13414_v59  ;;  %v4489_v49 = vpop.f32.mrb[77].mxu0  ;;  %v4560_v57 = vpop.f32.mrb[69].mxu1  ;;  %v9502_v20 = vld [vmem:[%s13276_s12 + $0x30] ss:$8 sps:$4 sm:$0xff]   ;;  %v13418_v28 = vld [vmem:[#allocation34_spill] sm:$0xff] }
0x10b6   :  { %v4564_v35 = vadd.f32 %v4489_v49, %v13415_v36  ;;  %v4566_v47 = vadd.f32 %v4560_v57, %v13416_v55  ;;  %v13419_v49 = vld [vmem:[#allocation63_spill] sm:$0xff] }
0x10b7   :  { %v7756_v61 = vmul.f32 -1.442695, %v4563_v18  ;;  %v7758_v26 = vmul.f32 -1.442695, %v4565_v8  ;;  %v13420_v36 = vld [vmem:[#allocation35_spill] sm:$0xff] }
0x10b8   :  { %v7757_v11 = vmul.f32 -1.442695, %v4564_v35 }
0x10b9   :  { %9753 = vpow2.f32 %v7756_v61  ;;  %v13421_v61 = vld [vmem:[#allocation64_spill] sm:$0xff] }
0x10ba   :  { %9755 = vpow2.f32 %v7757_v11 }
0x10bb   :  { %9757 = vtanh.f32 %v4566_v47 }
0x10bc   :  { %9759 = vpow2.f32 %v7758_v26 }
0x10c3   :  { %v9754_v6 = vpop.eup %9753 }
0x10c4   :  { %v4576_v62 = vadd.f32 1.0, %v9754_v6  ;;  %v9756_v56 = vpop.eup %9755 }
0x10c5   :  { %v4577_v4 = vadd.f32 1.0, %v9756_v56  ;;  %v9758_v24 = vpop.eup %9757  ;;  %v9505_v56 = vld [vmem:[%s13277_s9 + $0x40] ss:$8 sps:$4 sm:$0xff]  }
0x10c6   :  { %9761 = vrcp.f32 %v4576_v62  ;;  %v9760_v54 = vpop.eup %9759 }
0x10c7   :  { %9763 = vrcp.f32 %v4577_v4  ;;  %v4578_v33 = vadd.f32 1.0, %v9760_v54 }
0x10c9   :  { %9765 = vrcp.f32 %v4578_v33 }
0x10d0   :  { %v9762_v17 = vpop.eup %9761 }
0x10d1   :  { %v4587_v52 = vmul.f32 %v9762_v17, %v9758_v24  ;;  %v9764_v63 = vpop.eup %9763  ;;  %v9507_v24 = vld [vmem:[%s13277_s9 + $0x44] ss:$8 sps:$4 sm:$0xff]   ;;  %v9508_v17 = vld [vmem:[%s13277_s9 + $0x50] ss:$8 sps:$4 sm:$0xff]  }
0x10d2   :  { %v4586_v53 = vmul.f32 %v9764_v63, %v12373_v3  ;;  %v9486_v3 = vld [vmem:[%s13276_s12 + $0x54] ss:$8 sps:$4 sm:$0xff]   ;;  %4969 = vmatprep.subr.bf16.mxu0 %v9507_v24 }
0x10d3   :  { %v9766_v40 = vpop.eup %9765 }
0x10d4   :  { %v12500_v13 = vadd.f32 %v4587_v52, %v4586_v53  ;;  %v9510_v52 = vld [vmem:[%s13277_s9 + $0x54] ss:$8 sps:$4 sm:$0xff]  }
0x10d6   :  { %9767 = vtanh.f32 %v12500_v13 }
0x10e0   :  { %v9768_v0 = vpop.eup %9767 }
0x10e1   :  { %v4590_v21 = vmul.f32 %v9768_v0, %v9766_v40 }
0x10e3   :  { %4593 = vrot.lane.b32.xlu0 %v4590_v21, %s9997_s30  ;;  %4591 = vst.msk [vmem:[#allocation4 + $0x70] sm:$0xff] %vm776_vm4, %v4590_v21  ;;  %4730 = vmatmul.mubr.f32.vlgmr.msra.gmra.mrb[78].mxu0 %v4590_v21 }
0x10e4   :  { %4801 = vmatmul.mubr.f32.vlgmr.msra.gmra.mrb[70].mxu1 %v4590_v21  ;;  %5001 = vmatprep.mubr.bf16.mxu0 %v13417_v9 }
0x10e5   :  { %5400 = vmatpush1.bf16.msra.mxu1 %v9481_v45  ;;  %5431 = vmatprep.mubr.bf16.mxu1 %v13417_v9 }
0x10e6   :  { %5401 = vmatprep.subr.bf16.mxu1 %v9486_v3  ;;  %4970 = vmatpush1.bf16.msra.mxu0 %v9505_v56  ;;  %v9525_v56 = vld [vmem:[%s13277_s9 + $0x24] ss:$8 sps:$4 sm:$0xff]  }
0x10e7   :  { %4105 = vrot.lane.b32.xlu0 %v12329_v58, %s9997_s30  ;;  %v5344_v58 = vpack.c.bf16 %v10985_v25, %v10985_v25  ;;  %4971 = vmatprep.subr.bf16.mxu0 %v9510_v52 }
0x10e9   :  { %5402 = vmatpush1.bf16.msra.mxu1 %v9484_v38  ;;  %v9511_v38 = vld [vmem:[%s13277_s9 + $0x60] ss:$8 sps:$4 sm:$0xff]  }
0x10ea   :  { %5403 = vmatprep.subr.bf16.mxu1 %v9489_v43  ;;  %4972 = vmatpush1.bf16.msra.mxu0 %v9508_v17  ;;  %v9513_v43 = vld [vmem:[%s13277_s9 + $0x64] ss:$8 sps:$4 sm:$0xff]   ;;  %v9523_v17 = vld [vmem:[%s13277_s9 + $0x20] ss:$8 sps:$4 sm:$0xff]  }
0x10eb   :  { %3617 = vrot.lane.b32.xlu0 %v12105_v23, %s9997_s30  ;;  %4973 = vmatprep.subr.bf16.mxu0 %v9513_v43 }
0x10ed   :  { %5404 = vmatpush1.bf16.msra.mxu1 %v9487_v14  ;;  %v9514_v14 = vld [vmem:[%s13277_s9 + $0x70] ss:$8 sps:$4 sm:$0xff]  }
0x10ee   :  { %5405 = vmatprep.subr.bf16.mxu1 %v9492_v60  ;;  %4974 = vmatpush1.bf16.msra.mxu0 %v9511_v38 }
0x10ef   :  { %3129 = vrot.lane.b32.xlu0 %v11881_v41, %s9997_s30 }
0x10f1   :  { %5406 = vmatpush1.bf16.msra.mxu1 %v9490_v5 }
0x10f3   :  { %2641 = vrot.lane.b32.xlu0 %v11657_v19, %s9997_s30  ;;  %v9495_v19 = vld [vmem:[%s13276_s12 + $0x4] ss:$8 sps:$4 sm:$0xff]  }
0x10f4   :  { %5483 = vmatprep.subr.bf16.mxu1 %v9495_v19 }
0x10f7   :  { %2153 = vrot.lane.b32.xlu0 %v11433_v2, %s9997_s30 }
0x10fb   :  { %5354 = vrot.lane.b32.xlu0 %v5344_v58, %s9997_s30  ;;  %v9519_v58 = vld [vmem:[%s13277_s9 + $0x4] ss:$8 sps:$4 sm:$0xff]  }
0x10ff   :  { %1909 = vrot.lane.b32.xlu0 %v11256_v10, %s9997_s30 }
0x1103   :  { %1421 = vrot.lane.b32.xlu0 %v11032_v29, %s9997_s30 }
0x1155   :  { %v4594_v23 = vpop.permute.xlu0 %4593 }
0x1156   :  { %4596 = vst.msk [vmem:[#allocation5 + $0x8] sm:$0xff] %vm776_vm4, %v4594_v23 }
0x1159   :  { %v4106_v41 = vpop.permute.xlu0 %4105 }
0x115a   :  { %4108 = vst.msk [vmem:[#allocation5 + $0x18] sm:$0xff] %vm776_vm4, %v4106_v41 }
0x115d   :  { %v3618_v2 = vpop.permute.xlu0 %3617 }
0x115e   :  { %3620 = vst.msk [vmem:[#allocation5 + $0x28] sm:$0xff] %vm776_vm4, %v3618_v2 }
0x1161   :  { %v3130_v51 = vpop.permute.xlu0 %3129 }
0x1162   :  { %3132 = vst.msk [vmem:[#allocation5 + $0x38] sm:$0xff] %vm776_vm4, %v3130_v51  ;;  %v5564_v51 = vld [vmem:[%s13278_s10 + $0x20] sm:$0xff] }
0x1165   :  { %v2642_v10 = vpop.permute.xlu0 %2641 }
0x1166   :  { %2644 = vst.msk [vmem:[#allocation5 + $0x48] sm:$0xff] %vm776_vm4, %v2642_v10  ;;  %v5566_v10 = vld [vmem:[%s13278_s10 + $0x30] sm:$0xff] }
0x1169   :  { %v2154_v29 = vpop.permute.xlu0 %2153  ;;  %v4872_v38 = vld [vmem:[#allocation5 + $0x38] sm:$0xff] }
0x116a   :  { %2156 = vst.msk [vmem:[#allocation5 + $0x58] sm:$0xff] %vm776_vm4, %v2154_v29  ;;  %v12664_v29 = vpack.c.bf16 %v5566_v10, %v5564_v51  ;;  %v4841_v51 = vld [vmem:[#allocation4] sm:$0xff] }
0x116d   :  { %v5355_v37 = vpop.permute.xlu0 %5354 }
0x116e   :  { %7802 = vmatmul.mubr.msk.bf16.vlgmr.msra.gmra.mrb[72].mxu1 %vm776_vm4, %v5355_v37  ;;  %v5568_v37 = vld [vmem:[%s13278_s10 + $0x40] sm:$0xff] }
0x116f   :  { %5484 = vmatpush1.bf16.msra.mxu1 %v9493_v44  ;;  %5515 = vmatprep.mubr.bf16.mxu1 %v13417_v9  ;;  %v5569_v44 = vld [vmem:[%s13278_s10 + $0x48] sm:$0xff] }
0x1170   :  { %5485 = vmatprep.subr.bf16.mxu1 %v9498_v30  ;;  %v5571_v30 = vld [vmem:[%s13278_s10 + $0x58] sm:$0xff] }
0x1171   :  { %v1910_v7 = vpop.permute.xlu0 %1909 }
0x1172   :  { %1912 = vst.msk [vmem:[#allocation5 + $0x60] sm:$0xff] %vm776_vm4, %v1910_v7  ;;  %v5573_v7 = vld [vmem:[%s13278_s10 + $0x68] sm:$0xff] }
0x1173   :  { %5486 = vmatpush1.bf16.msra.mxu1 %v9496_v31  ;;  %v12677_v31 = vpack.c.bf16 %v5571_v30, %v5569_v44  ;;  %v4844_v44 = vld [vmem:[#allocation4 + $0x18] sm:$0xff]  ;;  %v4843_v30 = vld [vmem:[#allocation4 + $0x10] sm:$0xff] }
0x1174   :  { %5487 = vmatprep.subr.bf16.mxu1 %v9501_v1  ;;  %v5570_v1 = vld [vmem:[%s13278_s10 + $0x50] sm:$0xff] }
0x1175   :  { %v1422_v34 = vpop.permute.xlu0 %1421 }
0x1176   :  { %1424 = vst.msk [vmem:[#allocation5 + $0x70] sm:$0xff] %vm776_vm4, %v1422_v34 }
0x1177   :  { %5488 = vmatpush1.bf16.msra.mxu1 %v9499_v12  ;;  %v5575_v12 = vld [vmem:[%s13278_s10 + $0x78] sm:$0xff] }
0x1178   :  { %5489 = vmatprep.subr.bf16.mxu1 %v9504_v22  ;;  %v12688_v22 = vpack.c.bf16 %v5570_v1, %v5568_v37  ;;  %v12690_v34 = vpack.c.bf16 %v5575_v12, %v5573_v7  ;;  %v4858_v37 = vpack.c.bf16 %v4844_v44, %v4843_v30  ;;  %v4846_v1 = vld [vmem:[#allocation4 + $0x28] sm:$0xff]  ;;  %v4845_v7 = vld [vmem:[#allocation4 + $0x20] sm:$0xff] }
0x1179   :  { %v4859_v12 = vpack.c.bf16 %v4846_v1, %v4845_v7 }
0x117b   :  { %5490 = vmatpush1.bf16.msra.mxu1 %v9502_v20  ;;  %v5572_v20 = vld [vmem:[%s13278_s10 + $0x60] sm:$0xff] }
0x11b6   :  { %v4731_v46 = vpop.f32.mrb[78].mxu0 }
0x11b7   :  { %v4807_v18 = vadd.f32 %v4731_v46, %v13418_v28  ;;  %v4802_v59 = vpop.f32.mrb[70].mxu1  ;;  %v4733_v8 = vpop.f32.mrb[79].mxu0  ;;  %v5574_v46 = vld [vmem:[%s13278_s10 + $0x70] sm:$0xff] }
0x11b8   :  { %v4809_v57 = vadd.f32 %v4802_v59, %v13419_v49  ;;  %v4808_v35 = vadd.f32 %v4733_v8, %v13420_v36  ;;  %v4804_v55 = vpop.f32.mrb[71].mxu1  ;;  %v12700_v28 = vpack.c.bf16 %v5574_v46, %v5572_v20  ;;  %v4848_v20 = vld [vmem:[#allocation4 + $0x38] sm:$0xff]  ;;  %v5524_v46 = vld [vmem:[%s13279_s13] sm:$0x3] }
0x11b9   :  { %v7759_v47 = vmul.f32 -1.442695, %v4807_v18  ;;  %v4810_v11 = vadd.f32 %v4804_v55, %v13421_v61  ;;  %v9517_v61 = vld [vmem:[%s13277_s9] ss:$8 sps:$4 sm:$0xff]  }
0x11ba   :  { %v7760_v26 = vmul.f32 -1.442695, %v4808_v35  ;;  %v7761_v6 = vmul.f32 -1.442695, %v4809_v57 }
0x11bb   :  { %9769 = vpow2.f32 %v7759_v47  ;;  %v4866_v47 = vld [vmem:[#allocation5 + $0x8] sm:$0xff] }
0x11bc   :  { %9771 = vpow2.f32 %v7760_v26  ;;  %v9522_v26 = vld [vmem:[%s13277_s9 + $0x14] ss:$8 sps:$4 sm:$0xff]  }
0x11bd   :  { %9773 = vpow2.f32 %v7761_v6 }
0x11be   :  { %9775 = vtanh.f32 %v4810_v11 }
0x11c5   :  { %v9770_v62 = vpop.eup %9769 }
0x11c6   :  { %v4820_v4 = vadd.f32 1.0, %v9770_v62  ;;  %v9772_v54 = vpop.eup %9771  ;;  %v9520_v62 = vld [vmem:[%s13277_s9 + $0x10] ss:$8 sps:$4 sm:$0xff]  }
0x11c7   :  { %v4821_v63 = vadd.f32 1.0, %v9772_v54  ;;  %v9774_v33 = vpop.eup %9773  ;;  %v4868_v54 = vld [vmem:[#allocation5 + $0x18] sm:$0xff] }
0x11c8   :  { %9777 = vrcp.f32 %v4820_v4  ;;  %v9776_v53 = vpop.eup %9775  ;;  %v4822_v21 = vadd.f32 1.0, %v9774_v33 }
0x11c9   :  { %9779 = vrcp.f32 %v4821_v63  ;;  %v9528_v63 = vld [vmem:[%s13277_s9 + $0x34] ss:$8 sps:$4 sm:$0xff]  }
0x11ca   :  { %9781 = vrcp.f32 %v4822_v21 }
0x11d2   :  { %v9778_v16 = vpop.eup %9777 }
0x11d3   :  { %v4831_v40 = vmul.f32 %v9778_v16, %v9776_v53  ;;  %v9780_v0 = vpop.eup %9779  ;;  %v9526_v53 = vld [vmem:[%s13277_s9 + $0x30] ss:$8 sps:$4 sm:$0xff]  }
0x11d4   :  { %v4830_v45 = vmul.f32 %v9780_v0, %v12500_v13  ;;  %v9516_v13 = vld [vmem:[%s13277_s9 + $0x74] ss:$8 sps:$4 sm:$0xff]   ;;  %v9782_v60 = vpop.eup %9781  ;;  %v4870_v0 = vld [vmem:[#allocation5 + $0x28] sm:$0xff] }
0x11d5   :  { %4975 = vmatprep.subr.bf16.mxu0 %v9516_v13  ;;  %v4874_v13 = vld [vmem:[#allocation5 + $0x48] sm:$0xff] }
0x11d6   :  { %v4832_v3 = vadd.f32 %v4831_v40, %v4830_v45  ;;  %4976 = vmatpush1.bf16.msra.mxu0 %v9514_v14 }
0x11d7   :  { %5146 = vmatprep.subr.bf16.mxu0 %v9519_v58  ;;  %v4876_v58 = vld [vmem:[#allocation5 + $0x58] sm:$0xff] }
0x11d8   :  { %9783 = vtanh.f32 %v4832_v3 }
0x11e2   :  { %v9784_v5 = vpop.eup %9783 }
0x11e3   :  { %v4834_v23 = vmul.f32 %v9784_v5, %v9782_v60 }
0x11e5   :  { %4837 = vrot.lane.b32.xlu1 %v4834_v23, %s9997_s30  ;;  %4835 = vst.msk [vmem:[#allocation4 + $0x78] sm:$0xff] %vm776_vm4, %v4834_v23  ;;  %v5335_v41 = vpack.c.bf16 %v4834_v23, %v4834_v23 }
0x11e7   :  { %7811 = vmatmul.mubr.msk.bf16.vlgmr.msra.gmra.mrb[76].mxu1 %vm776_vm4, %v5335_v41 }
0x11e8   :  { %5642 = vmatprep.mubr.f32.mxu1 %v13335_v27 }
0x11e9   :  { %4349 = vrot.lane.b32.xlu1 %v12376_v39, %s9997_s30  ;;  %v5561_v39 = vld [vmem:[%s13278_s10 + $0x8] sm:$0xff] }
0x11ed   :  { %3861 = vrot.lane.b32.xlu1 %v12152_v32, %s9997_s30 }
0x11f1   :  { %3373 = vrot.lane.b32.xlu1 %v11928_v42, %s9997_s30  ;;  %v5563_v42 = vld [vmem:[%s13278_s10 + $0x18] sm:$0xff] }
0x11f2   :  { %v12641_v32 = vpack.c.bf16 %v5563_v42, %v5561_v39  ;;  %v4877_v39 = vld [vmem:[#allocation5 + $0x60] sm:$0xff] }
0x11f4   :  { %9068 = vmatprep.subr.bf16.mxu1 %v12641_v32 }
0x11f5   :  { %2885 = vrot.lane.b32.xlu1 %v11704_v50, %s9997_s30  ;;  %v5560_v50 = vld [vmem:[%s13278_s10] sm:$0xff] }
0x11f9   :  { %2397 = vrot.lane.b32.xlu1 %v11480_v48, %s9997_s30  ;;  %v5567_v48 = vld [vmem:[%s13278_s10 + $0x38] sm:$0xff] }
0x11fd   :  { %1665 = vrot.lane.b32.xlu1 %v11209_v15, %s9997_s30  ;;  %v5562_v15 = vld [vmem:[%s13278_s10 + $0x10] sm:$0xff] }
0x11fe   :  { %v12652_v19 = vpack.c.bf16 %v5562_v15, %v5560_v50  ;;  %v4879_v15 = vld [vmem:[#allocation5 + $0x70] sm:$0xff] }
0x1200   :  { %9070 = vmatpush1.bf16.msra.mxu1 %v12652_v19 }
0x1201   :  { %1177 = vrot.lane.b32.xlu1 %v10985_v25, %s9997_s30  ;;  %v5565_v25 = vld [vmem:[%s13278_s10 + $0x28] sm:$0xff] }
0x1202   :  { %v12654_v2 = vpack.c.bf16 %v5567_v48, %v5565_v25  ;;  %v4842_v48 = vld [vmem:[#allocation4 + $0x8] sm:$0xff] }
0x1203   :  { %v4857_v10 = vpack.c.bf16 %v4842_v48, %v4841_v51 }
0x1204   :  { %9072 = vmatprep.subr.bf16.mxu1 %v12654_v2 }
0x1205   :  { %9074 = vmatpush1.bf16.msra.mxu1 %v12664_v29 }
0x1206   :  { %9076 = vmatprep.subr.bf16.mxu1 %v12677_v31 }
0x1209   :  { %9078 = vmatpush1.bf16.msra.mxu1 %v12688_v22 }
0x120a   :  { %9080 = vmatprep.subr.bf16.mxu1 %v12690_v34 }
0x120d   :  { %9082 = vmatpush1.bf16.msra.mxu1 %v12700_v28 }
0x120e   :  { %9084 = vmatprep.subr.bf16.mxu1 %v12641_v32 }
0x1210   :  { %5643 = vmatmul.mubr.f32.vlgmr.msra.gmra.mrb[80].mxu1 %v13335_v27 }
0x1211   :  { %9086 = vmatpush1.bf16.msra.mxu1 %v12652_v19  ;;  %5750 = vmatprep.mubr.f32.mxu1 %v13335_v27 }
0x1212   :  { %9088 = vmatprep.subr.bf16.mxu1 %v12654_v2 }
0x1215   :  { %9090 = vmatpush1.bf16.msra.mxu1 %v12664_v29 }
0x1216   :  { %9092 = vmatprep.subr.bf16.mxu1 %v12677_v31 }
0x1219   :  { %9094 = vmatpush1.bf16.msra.mxu1 %v12688_v22 }
0x121a   :  { %9096 = vmatprep.subr.bf16.mxu1 %v12690_v34 }
0x121d   :  { %9098 = vmatpush1.bf16.msra.mxu1 %v12700_v28 }
0x121e   :  { %9100 = vmatprep.subr.bf16.mxu1 %v12641_v32 }
0x1241   :  { %v12715_v18 = vpop.f32.mrb[72].mxu1 }
0x1242   :  { %v12717_v59 = vpop.f32.mrb[73].mxu1 }
0x1243   :  { %v5437_v8 = vpop.f32.mrb[74].mxu1 }
0x1244   :  { %v5438_v49 = vpop.f32.mrb[75].mxu1  ;;  %v4847_v8 = vld [vmem:[#allocation4 + $0x30] sm:$0xff] }
0x1245   :  { %v4860_v49 = vpack.c.bf16 %v4848_v20, %v4847_v8 }
0x1257   :  { %v4838_v57 = vpop.permute.xlu1 %4837 }
0x1258   :  { %4840 = vst.msk [vmem:[#allocation5] sm:$0xff] %vm776_vm4, %v4838_v57  ;;  %v13422_v57 = vld [vmem:[#allocation6_spill] sm:$0xff] }
0x125b   :  { %v4350_v36 = vpop.permute.xlu1 %4349 }
0x125c   :  { %4352 = vst.msk [vmem:[#allocation5 + $0x10] sm:$0xff] %vm776_vm4, %v4350_v36  ;;  %v5529_v36 = vrot.slane %v5524_v46, %v13422_v57 }
0x125f   :  { %v3862_v35 = vpop.permute.xlu1 %3861  ;;  %v4865_v55 = vld [vmem:[#allocation5] sm:$0xff] }
0x1260   :  { %3864 = vst.msk [vmem:[#allocation5 + $0x20] sm:$0xff] %vm776_vm4, %v3862_v35  ;;  %v4881_v11 = vpack.c.bf16 %v4866_v47, %v4865_v55 }
0x1262   :  { %7770 = vmatmul.mubr.msk.bf16.vlgmr.msra.gmra.mrb[80].mxu0 %vm776_vm4, %v4881_v11 }
0x1263   :  { %5147 = vmatpush1.bf16.msra.mxu0 %v9517_v61  ;;  %v3374_v6 = vpop.permute.xlu1 %3373  ;;  %5011 = vmatprep.mubr.bf16.mxu0 %v13417_v9  ;;  %v4867_v4 = vld [vmem:[#allocation5 + $0x10] sm:$0xff] }
0x1264   :  { %3376 = vst.msk [vmem:[#allocation5 + $0x30] sm:$0xff] %vm776_vm4, %v3374_v6  ;;  %5148 = vmatprep.subr.bf16.mxu0 %v9522_v26  ;;  %v4882_v52 = vpack.c.bf16 %v4868_v54, %v4867_v4  ;;  %v4851_v54 = vld [vmem:[#allocation4 + $0x50] sm:$0xff] }
0x1267   :  { %v2886_v24 = vpop.permute.xlu1 %2885  ;;  %5149 = vmatpush1.bf16.msra.mxu0 %v9520_v62  ;;  %v4869_v16 = vld [vmem:[#allocation5 + $0x20] sm:$0xff]  ;;  %v4850_v62 = vld [vmem:[#allocation4 + $0x48] sm:$0xff] }
0x1268   :  { %2888 = vst.msk [vmem:[#allocation5 + $0x40] sm:$0xff] %vm776_vm4, %v2886_v24  ;;  %5150 = vmatprep.subr.bf16.mxu0 %v9525_v56  ;;  %v4883_v21 = vpack.c.bf16 %v4870_v0, %v4869_v16  ;;  %v4849_v56 = vld [vmem:[#allocation4 + $0x40] sm:$0xff]  ;;  %v4852_v24 = vld [vmem:[#allocation4 + $0x58] sm:$0xff] }
0x1269   :  { %v4861_v4 = vpack.c.bf16 %v4850_v62, %v4849_v56  ;;  %v5259_v0 = vld [vmem:[%s13280_s11] sm:$0x3] }
0x126a   :  { %7771 = vmatmul.mubr.msk.bf16.gmra.mrb[84].mxu0 %vm776_vm4, %v4882_v52 }
0x126b   :  { %v2398_v33 = vpop.permute.xlu1 %2397  ;;  %5021 = vmatprep.mubr.bf16.mxu0 %v13417_v9  ;;  %5151 = vmatpush1.bf16.msra.mxu0 %v9523_v17  ;;  %v4871_v3 = vld [vmem:[#allocation5 + $0x30] sm:$0xff]  ;;  %v4853_v17 = vld [vmem:[#allocation4 + $0x60] sm:$0xff] }
0x126c   :  { %2400 = vst.msk [vmem:[#allocation5 + $0x50] sm:$0xff] %vm776_vm4, %v2398_v33  ;;  %5152 = vmatprep.subr.bf16.mxu0 %v9528_v63  ;;  %v4884_v43 = vpack.c.bf16 %v4872_v38, %v4871_v3  ;;  %v4856_v63 = vld [vmem:[#allocation4 + $0x78] sm:$0xff]  ;;  %v4855_v33 = vld [vmem:[#allocation4 + $0x70] sm:$0xff] }
0x126f   :  { %v1666_v40 = vpop.permute.xlu1 %1665  ;;  %5153 = vmatpush1.bf16.msra.mxu0 %v9526_v53  ;;  %v4873_v14 = vld [vmem:[#allocation5 + $0x40] sm:$0xff]  ;;  %v4864_v53 = vpack.c.bf16 %v4856_v63, %v4855_v33 }
0x1270   :  { %1668 = vst.msk [vmem:[#allocation5 + $0x68] sm:$0xff] %vm776_vm4, %v1666_v40  ;;  %9164 = vmatprep.subr.bf16.mxu0 %v12641_v32  ;;  %v4885_v60 = vpack.c.bf16 %v4874_v13, %v4873_v14 }
0x1272   :  { %7772 = vmatmul.mubr.msk.bf16.gmra.mrb[88].mxu0 %vm776_vm4, %v4883_v21  ;;  %v12803_v21 = vrot.slane %v5259_v0, %v13422_v57 }
0x1273   :  { %v1178_v45 = vpop.permute.xlu1 %1177  ;;  %5031 = vmatprep.mubr.bf16.mxu0 %v13417_v9  ;;  %v4875_v5 = vld [vmem:[#allocation5 + $0x50] sm:$0xff] }
0x1274   :  { %1180 = vst.msk [vmem:[#allocation5 + $0x78] sm:$0xff] %vm776_vm4, %v1178_v45  ;;  %v4886_v23 = vpack.c.bf16 %v4876_v58, %v4875_v5  ;;  %v13423_v45 = vld [vmem:[#allocation7_spill] sm:$0xff] }
0x1275   :  { %v12806_v3 = vrot.slane %v5259_v0, %v13423_v45 }
0x1277   :  { %v4878_v41 = vld [vmem:[#allocation5 + $0x68] sm:$0xff] }
0x1278   :  { %v4887_v42 = vpack.c.bf16 %v4878_v41, %v4877_v39 }
0x127a   :  { %7773 = vmatmul.mubr.msk.bf16.gmra.mrb[92].mxu0 %vm776_vm4, %v4884_v43 }
0x127b   :  { %5041 = vmatprep.mubr.bf16.mxu0 %v13417_v9  ;;  %v4880_v50 = vld [vmem:[#allocation5 + $0x78] sm:$0xff] }
0x127c   :  { %v4888_v25 = vpack.c.bf16 %v4880_v50, %v4879_v15 }
0x1282   :  { %7774 = vmatmul.mubr.msk.bf16.gmra.mrb[96].mxu0 %vm776_vm4, %v4885_v60 }
0x1283   :  { %5051 = vmatprep.mubr.bf16.mxu0 %v13417_v9 }
0x128a   :  { %7775 = vmatmul.mubr.msk.bf16.gmra.mrb[100].mxu0 %vm776_vm4, %v4886_v23 }
0x128b   :  { %5061 = vmatprep.mubr.bf16.mxu0 %v13417_v9 }
0x1292   :  { %7776 = vmatmul.mubr.msk.bf16.gmra.mrb[104].mxu0 %vm776_vm4, %v4887_v42 }
0x1293   :  { %5071 = vmatprep.mubr.bf16.mxu0 %v13417_v9 }
0x129a   :  { %7777 = vmatmul.mubr.msk.bf16.gmra.mrb[108].mxu0 %vm776_vm4, %v4888_v25 }
0x129b   :  { %5178 = vmatprep.mubr.bf16.mxu0 %v13417_v9 }
0x12a2   :  { %7786 = vmatmul.mubr.msk.bf16.vlgmr.msra.gmra.mrb[80].mxu0 %vm776_vm4, %v4857_v10 }
0x12a3   :  { %5188 = vmatprep.mubr.bf16.mxu0 %v13417_v9  ;;  %9166 = vmatpush1.bf16.msra.mxu0 %v12652_v19 }
0x12a4   :  { %9168 = vmatprep.subr.bf16.mxu0 %v12654_v2 }
0x12a7   :  { %9170 = vmatpush1.bf16.msra.mxu0 %v12664_v29 }
0x12a8   :  { %9172 = vmatprep.subr.bf16.mxu0 %v12677_v31 }
0x12aa   :  { %7787 = vmatmul.mubr.msk.bf16.gmra.mrb[84].mxu0 %vm776_vm4, %v4858_v37 }
0x12ab   :  { %5198 = vmatprep.mubr.bf16.mxu0 %v13417_v9  ;;  %9174 = vmatpush1.bf16.msra.mxu0 %v12688_v22 }
0x12ac   :  { %9176 = vmatprep.subr.bf16.mxu0 %v12690_v34 }
0x12af   :  { %9178 = vmatpush1.bf16.msra.mxu0 %v12700_v28 }
0x12b0   :  { %9196 = vmatprep.subr.bf16.mxu0 %v12641_v32 }
0x12b2   :  { %7788 = vmatmul.mubr.msk.bf16.gmra.mrb[88].mxu0 %vm776_vm4, %v4859_v12 }
0x12b3   :  { %5208 = vmatprep.mubr.bf16.mxu0 %v13417_v9 }
0x12ba   :  { %7789 = vmatmul.mubr.msk.bf16.gmra.mrb[92].mxu0 %vm776_vm4, %v4860_v49  ;;  %v5517_v35 = vpop.f32.mrb[76].mxu1 }
0x12bb   :  { %v5518_v55 = vadd.f32 %v5517_v35, %v12715_v18  ;;  %v5519_v47 = vpop.f32.mrb[77].mxu1  ;;  %5218 = vmatprep.mubr.bf16.mxu0 %v13417_v9  ;;  %v4862_v18 = vpack.c.bf16 %v4852_v24, %v4851_v54 }
0x12bc   :  { %v12787_v61 = vadd.f32 %v5519_v47, %v12717_v59  ;;  %v5521_v11 = vpop.f32.mrb[78].mxu1  ;;  %v4854_v59 = vld [vmem:[#allocation4 + $0x68] sm:$0xff] }
0x12bd   :  { %v12789_v26 = vadd.f32 %v5529_v36, %v5518_v55  ;;  %v5522_v6 = vpop.f32.mrb[79].mxu1  ;;  %v4863_v52 = vpack.c.bf16 %v4854_v59, %v4853_v17 }
0x12c2   :  { %7790 = vmatmul.mubr.msk.bf16.gmra.mrb[96].mxu0 %vm776_vm4, %v4861_v4 }
0x12c3   :  { %5228 = vmatprep.mubr.bf16.mxu0 %v13417_v9 }
0x12ca   :  { %7791 = vmatmul.mubr.msk.bf16.gmra.mrb[100].mxu0 %vm776_vm4, %v4862_v18 }
0x12cb   :  { %5238 = vmatprep.mubr.bf16.mxu0 %v13417_v9 }
0x12d2   :  { %7792 = vmatmul.mubr.msk.bf16.gmra.mrb[104].mxu0 %vm776_vm4, %v4863_v52 }
0x12d3   :  { %5248 = vmatprep.mubr.bf16.mxu0 %v13417_v9 }
0x12da   :  { %7793 = vmatmul.mubr.msk.bf16.gmra.mrb[108].mxu0 %vm776_vm4, %v4864_v53 }
0x12db   :  { %6290 = vmatprep.mubr.f32.mxu0 %v13335_v27 }
0x12e3   :  { %v5644_v16 = vpop.f32.mrb[80].mxu1 }
0x12e4   :  { %v5646_v40 = vpop.f32.mrb[81].mxu1 }
0x1375   :  { %v5180_v9 = vpop.f32.mrb[80].mxu0 }
0x1376   :  { %v5271_v38 = vadd.f32 %v12803_v21, %v5180_v9  ;;  %v5182_v43 = vpop.f32.mrb[81].mxu0 }
0x1377   :  { %v5272_v14 = vadd.f32 %v12806_v3, %v5182_v43  ;;  %v5184_v13 = vpop.f32.mrb[82].mxu0 }
0x1378   :  { %v12811_v60 = vadd.f32 %v12803_v21, %v5184_v13  ;;  %v12813_v5 = vadd.f32 %v5644_v16, %v5271_v38  ;;  %v5186_v58 = vpop.f32.mrb[83].mxu0 }
0x1379   :  { %v12816_v23 = vadd.f32 %v12806_v3, %v5186_v58  ;;  %v12818_v41 = vadd.f32 %v5646_v40, %v5272_v14 }
0x137b   :  { %9785 = vtanh.f32 %v12818_v41 }
0x137d   :  { %v5190_v39 = vpop.f32.mrb[84].mxu0 }
0x137e   :  { %v12822_v42 = vadd.f32 %v12803_v21, %v5190_v39  ;;  %v5192_v50 = vpop.f32.mrb[85].mxu0 }
0x137f   :  { %v12825_v15 = vadd.f32 %v12806_v3, %v5192_v50  ;;  %v5194_v25 = vpop.f32.mrb[86].mxu0 }
0x1380   :  { %v12828_v48 = vadd.f32 %v12803_v21, %v5194_v25  ;;  %v5196_v51 = vpop.f32.mrb[87].mxu0 }
0x1381   :  { %v12831_v10 = vadd.f32 %v12806_v3, %v5196_v51 }
0x1385   :  { %v9786_v44 = vpop.eup %9785  ;;  %v5200_v30 = vpop.f32.mrb[88].mxu0 }
0x1386   :  { %v12834_v37 = vadd.f32 %v12803_v21, %v5200_v30  ;;  %5666 = vrot.lane.b32.xlu1 %v9786_v44, %s9997_s30  ;;  %v5202_v1 = vpop.f32.mrb[89].mxu0 }
0x1387   :  { %v12838_v7 = vadd.f32 %v12806_v3, %v5202_v1  ;;  %v5204_v12 = vpop.f32.mrb[90].mxu0 }
0x1388   :  { %v12841_v20 = vadd.f32 %v12803_v21, %v5204_v12  ;;  %v5206_v46 = vpop.f32.mrb[91].mxu0 }
0x1389   :  { %v12844_v8 = vadd.f32 %v12806_v3, %v5206_v46 }
0x138d   :  { %v5210_v49 = vpop.f32.mrb[92].mxu0 }
0x138e   :  { %v12847_v57 = vadd.f32 %v12803_v21, %v5210_v49  ;;  %v5212_v36 = vpop.f32.mrb[93].mxu0 }
0x138f   :  { %v12850_v35 = vadd.f32 %v12806_v3, %v5212_v36  ;;  %v5214_v55 = vpop.f32.mrb[94].mxu0 }
0x1390   :  { %v12853_v47 = vadd.f32 %v12803_v21, %v5214_v55  ;;  %v5216_v11 = vpop.f32.mrb[95].mxu0  ;;  %v7814_v55 = vmul.f32 -1.442695, %v12813_v5 }
0x1391   :  { %v12856_v6 = vadd.f32 %v12806_v3, %v5216_v11 }
0x1392   :  { %9787 = vpow2.f32 %v7814_v55 }
0x1395   :  { %v5220_v62 = vpop.f32.mrb[96].mxu0 }
0x1396   :  { %v12859_v56 = vadd.f32 %v12803_v21, %v5220_v62  ;;  %v5222_v4 = vpop.f32.mrb[97].mxu0 }
0x1397   :  { %v12862_v24 = vadd.f32 %v12806_v3, %v5222_v4  ;;  %v5224_v54 = vpop.f32.mrb[98].mxu0 }
0x1398   :  { %v12865_v18 = vadd.f32 %v12803_v21, %v5224_v54  ;;  %v5226_v59 = vpop.f32.mrb[99].mxu0 }
0x1399   :  { %v12868_v17 = vadd.f32 %v12806_v3, %v5226_v59 }
0x139c   :  { %v9788_v11 = vpop.eup %9787 }
0x139d   :  { %v5230_v52 = vpop.f32.mrb[100].mxu0  ;;  %v5657_v62 = vadd.f32 1.0, %v9788_v11 }
0x139e   :  { %v12871_v63 = vadd.f32 %v12803_v21, %v5230_v52  ;;  %v5232_v33 = vpop.f32.mrb[101].mxu0 }
0x139f   :  { %v12874_v53 = vadd.f32 %v12806_v3, %v5232_v33  ;;  %v5234_v16 = vpop.f32.mrb[102].mxu0  ;;  %9789 = vrcp.f32 %v5657_v62 }
0x13a0   :  { %v12877_v40 = vadd.f32 %v12803_v21, %v5234_v16  ;;  %v5236_v0 = vpop.f32.mrb[103].mxu0 }
0x13a1   :  { %v12880_v9 = vadd.f32 %v12806_v3, %v5236_v0 }
0x13a5   :  { %v5240_v38 = vpop.f32.mrb[104].mxu0 }
0x13a6   :  { %v12883_v43 = vadd.f32 %v12803_v21, %v5240_v38  ;;  %v5242_v14 = vpop.f32.mrb[105].mxu0 }
0x13a7   :  { %v12886_v13 = vadd.f32 %v12806_v3, %v5242_v14  ;;  %v5244_v58 = vpop.f32.mrb[106].mxu0 }
0x13a8   :  { %v12889_v39 = vadd.f32 %v12803_v21, %v5244_v58  ;;  %v5246_v50 = vpop.f32.mrb[107].mxu0 }
0x13a9   :  { %v12892_v25 = vadd.f32 %v12806_v3, %v5246_v50  ;;  %v9790_v4 = vpop.eup %9789 }
0x13aa   :  { %v5664_v52 = vmul.f32 0.0, %v9790_v4 }
0x13ad   :  { %v5250_v51 = vpop.f32.mrb[108].mxu0 }
0x13ae   :  { %v12895_v44 = vadd.f32 %v12803_v21, %v5250_v51  ;;  %v5252_v30 = vpop.f32.mrb[109].mxu0 }
0x13af   :  { %v12898_v1 = vadd.f32 %v12806_v3, %v5252_v30  ;;  %v5254_v12 = vpop.f32.mrb[110].mxu0 }
0x13b0   :  { %v12901_v46 = vadd.f32 %v12803_v21, %v5254_v12  ;;  %v5256_v49 = vpop.f32.mrb[111].mxu0 }
0x13b1   :  { %v12904_v36 = vadd.f32 %v12806_v3, %v5256_v49  ;;  %v7815_v3 = vmul.f32 -1.442695, %v12818_v41 }
0x13f8   :  { %v5667_v54 = vpop.permute.xlu1 %5666 }
0x13f9   :  { %v5669_v59 = vmul.f32 %v9790_v4, %v5667_v54 }
0x13fb   :  { %5671 = vrot.lane.b32.xlu0 %v5669_v59, %s9997_s30 }
0x146d   :  { %v5672_v33 = vpop.permute.xlu0 %5671 }
0x146e   :  { %v5674_v16 = vadd.f32 %v5672_v33, %v5664_v52 }
0x1470   :  { %9791 = vtanh.f32 %v5674_v16 }
0x1471   :  { %9793 = vpow2.f32 %v7815_v3 }
0x147a   :  { %v9792_v21 = vpop.eup %9791 }
0x147b   :  { %5677 = vrot.lane.b32.xlu1 %v9792_v21, %s9997_s30  ;;  %v9794_v5 = vpop.eup %9793 }
0x147c   :  { %v5658_v0 = vadd.f32 1.0, %v9794_v5 }
0x147e   :  { %9795 = vrcp.f32 %v5658_v0 }
0x1488   :  { %v9796_v38 = vpop.eup %9795 }
0x14ed   :  { %v5678_v14 = vpop.permute.xlu1 %5677 }
0x14ee   :  { %v5680_v58 = vmul.f32 %v9796_v38, %v5678_v14 }
0x14f0   :  { %7816 = vmatmul.mubr.msk.f32.vlgmr.msra.gmra.mrb[82].mxu1 %vm776_vm4, %v5680_v58 }
0x14f1   :  { %9102 = vmatpush1.bf16.msra.mxu1 %v12652_v19  ;;  %5858 = vmatprep.mubr.f32.mxu1 %v13335_v27 }
0x14f2   :  { %9104 = vmatprep.subr.bf16.mxu1 %v12654_v2 }
0x14f5   :  { %9106 = vmatpush1.bf16.msra.mxu1 %v12664_v29 }
0x14f6   :  { %9108 = vmatprep.subr.bf16.mxu1 %v12677_v31 }
0x14f9   :  { %9110 = vmatpush1.bf16.msra.mxu1 %v12688_v22 }
0x14fa   :  { %9112 = vmatprep.subr.bf16.mxu1 %v12690_v34 }
0x14fd   :  { %9114 = vmatpush1.bf16.msra.mxu1 %v12700_v28 }
0x14fe   :  { %9116 = vmatprep.subr.bf16.mxu1 %v12641_v32 }
0x15c3   :  { %v5752_v41 = vpop.f32.mrb[82].mxu1 }
0x15c4   :  { %v5757_v50 = vadd.f32 %v5752_v41, %v12811_v60  ;;  %v5754_v51 = vpop.f32.mrb[83].mxu1 }
0x15c5   :  { %v5758_v30 = vadd.f32 %v5754_v51, %v12816_v23 }
0x15c6   :  { %v7817_v49 = vmul.f32 -1.442695, %v5757_v50 }
0x15c7   :  { %9797 = vtanh.f32 %v5758_v30  ;;  %v7818_v23 = vmul.f32 -1.442695, %v5758_v30 }
0x15c8   :  { %9799 = vpow2.f32 %v7817_v49 }
0x15d1   :  { %v9798_v12 = vpop.eup %9797 }
0x15d2   :  { %5774 = vrot.lane.b32.xlu0 %v9798_v12, %s9997_s30  ;;  %v9800_v55 = vpop.eup %9799 }
0x15d3   :  { %v5765_v11 = vadd.f32 1.0, %v9800_v55 }
0x15d5   :  { %9801 = vrcp.f32 %v5765_v11 }
0x15df   :  { %v9802_v62 = vpop.eup %9801 }
0x15e0   :  { %v5772_v59 = vmul.f32 %v9802_v62, %v5674_v16 }
0x1644   :  { %v5775_v4 = vpop.permute.xlu0 %5774 }
0x1645   :  { %v5777_v54 = vmul.f32 %v9802_v62, %v5775_v4 }
0x1647   :  { %5779 = vrot.lane.b32.xlu1 %v5777_v54, %s9997_s30 }
0x16b9   :  { %v5780_v52 = vpop.permute.xlu1 %5779 }
0x16ba   :  { %v5782_v60 = vadd.f32 %v5780_v52, %v5772_v59 }
0x16bc   :  { %9803 = vtanh.f32 %v5782_v60 }
0x16bd   :  { %9805 = vpow2.f32 %v7818_v23 }
0x16c6   :  { %v9804_v33 = vpop.eup %9803 }
0x16c7   :  { %5785 = vrot.lane.b32.xlu0 %v9804_v33, %s9997_s30  ;;  %v9806_v21 = vpop.eup %9805 }
0x16c8   :  { %v5766_v3 = vadd.f32 1.0, %v9806_v21 }
0x16ca   :  { %9807 = vrcp.f32 %v5766_v3 }
0x16d4   :  { %v9808_v5 = vpop.eup %9807 }
0x1739   :  { %v5786_v0 = vpop.permute.xlu0 %5785 }
0x173a   :  { %v5788_v38 = vmul.f32 %v9808_v5, %v5786_v0 }
0x173c   :  { %7819 = vmatmul.mubr.msk.f32.vlgmr.msra.gmra.mrb[84].mxu1 %vm776_vm4, %v5788_v38 }
0x173d   :  { %9118 = vmatpush1.bf16.msra.mxu1 %v12652_v19  ;;  %5966 = vmatprep.mubr.f32.mxu1 %v13335_v27 }
0x173e   :  { %9120 = vmatprep.subr.bf16.mxu1 %v12654_v2 }
0x1741   :  { %9122 = vmatpush1.bf16.msra.mxu1 %v12664_v29 }
0x1742   :  { %9124 = vmatprep.subr.bf16.mxu1 %v12677_v31 }
0x1745   :  { %9126 = vmatpush1.bf16.msra.mxu1 %v12688_v22 }
0x1746   :  { %9128 = vmatprep.subr.bf16.mxu1 %v12690_v34 }
0x1749   :  { %9130 = vmatpush1.bf16.msra.mxu1 %v12700_v28 }
0x174a   :  { %9132 = vmatprep.subr.bf16.mxu1 %v12641_v32 }
0x180f   :  { %v5860_v16 = vpop.f32.mrb[84].mxu1 }
0x1810   :  { %v5865_v14 = vadd.f32 %v5860_v16, %v12822_v42  ;;  %v5862_v58 = vpop.f32.mrb[85].mxu1 }
0x1811   :  { %v5866_v41 = vadd.f32 %v5862_v58, %v12825_v15 }
0x1812   :  { %v7820_v51 = vmul.f32 -1.442695, %v5865_v14 }
0x1813   :  { %9809 = vtanh.f32 %v5866_v41  ;;  %v7821_v15 = vmul.f32 -1.442695, %v5866_v41 }
0x1814   :  { %9811 = vpow2.f32 %v7820_v51 }
0x181d   :  { %v9810_v50 = vpop.eup %9809 }
0x181e   :  { %5882 = vrot.lane.b32.xlu1 %v9810_v50, %s9997_s30  ;;  %v9812_v30 = vpop.eup %9811 }
0x181f   :  { %v5873_v12 = vadd.f32 1.0, %v9812_v30 }
0x1821   :  { %9813 = vrcp.f32 %v5873_v12 }
0x182b   :  { %v9814_v49 = vpop.eup %9813 }
0x182c   :  { %v5880_v62 = vmul.f32 %v9814_v49, %v5782_v60 }
0x1890   :  { %v5883_v55 = vpop.permute.xlu1 %5882 }
0x1891   :  { %v5885_v11 = vmul.f32 %v9814_v49, %v5883_v55 }
0x1893   :  { %5887 = vrot.lane.b32.xlu0 %v5885_v11, %s9997_s30 }
0x1905   :  { %v5888_v4 = vpop.permute.xlu0 %5887 }
0x1906   :  { %v5890_v42 = vadd.f32 %v5888_v4, %v5880_v62 }
0x1908   :  { %9815 = vtanh.f32 %v5890_v42 }
0x1909   :  { %9817 = vpow2.f32 %v7821_v15 }
0x1912   :  { %v9816_v54 = vpop.eup %9815 }
0x1913   :  { %5893 = vrot.lane.b32.xlu1 %v9816_v54, %s9997_s30  ;;  %v9818_v59 = vpop.eup %9817 }
0x1914   :  { %v5874_v52 = vadd.f32 1.0, %v9818_v59 }
0x1916   :  { %9819 = vrcp.f32 %v5874_v52 }
0x1920   :  { %v9820_v33 = vpop.eup %9819 }
0x1985   :  { %v5894_v23 = vpop.permute.xlu1 %5893 }
0x1986   :  { %v5896_v21 = vmul.f32 %v9820_v33, %v5894_v23 }
0x1988   :  { %7822 = vmatmul.mubr.msk.f32.vlgmr.msra.gmra.mrb[86].mxu1 %vm776_vm4, %v5896_v21 }
0x1989   :  { %9134 = vmatpush1.bf16.msra.mxu1 %v12652_v19  ;;  %6074 = vmatprep.mubr.f32.mxu1 %v13335_v27 }
0x198a   :  { %9136 = vmatprep.subr.bf16.mxu1 %v12654_v2 }
0x198d   :  { %9138 = vmatpush1.bf16.msra.mxu1 %v12664_v29 }
0x198e   :  { %9140 = vmatprep.subr.bf16.mxu1 %v12677_v31 }
0x1991   :  { %9142 = vmatpush1.bf16.msra.mxu1 %v12688_v22 }
0x1992   :  { %9144 = vmatprep.subr.bf16.mxu1 %v12690_v34 }
0x1995   :  { %9146 = vmatpush1.bf16.msra.mxu1 %v12700_v28 }
0x1996   :  { %9148 = vmatprep.subr.bf16.mxu1 %v12641_v32 }
0x1a5b   :  { %v5968_v60 = vpop.f32.mrb[86].mxu1 }
0x1a5c   :  { %v5973_v3 = vadd.f32 %v5968_v60, %v12828_v48  ;;  %v5970_v5 = vpop.f32.mrb[87].mxu1 }
0x1a5d   :  { %v5974_v0 = vadd.f32 %v5970_v5, %v12831_v10 }
0x1a5e   :  { %v7823_v16 = vmul.f32 -1.442695, %v5973_v3 }
0x1a5f   :  { %9821 = vtanh.f32 %v5974_v0  ;;  %v7824_v10 = vmul.f32 -1.442695, %v5974_v0 }
0x1a60   :  { %9823 = vpow2.f32 %v7823_v16 }
0x1a69   :  { %v9822_v38 = vpop.eup %9821 }
0x1a6a   :  { %5990 = vrot.lane.b32.xlu0 %v9822_v38, %s9997_s30  ;;  %v9824_v14 = vpop.eup %9823 }
0x1a6b   :  { %v5981_v58 = vadd.f32 1.0, %v9824_v14 }
0x1a6d   :  { %9825 = vrcp.f32 %v5981_v58 }
0x1a77   :  { %v9826_v41 = vpop.eup %9825 }
0x1a78   :  { %v5988_v30 = vmul.f32 %v9826_v41, %v5890_v42 }
0x1adc   :  { %v5991_v50 = vpop.permute.xlu0 %5990 }
0x1add   :  { %v5993_v51 = vmul.f32 %v9826_v41, %v5991_v50 }
0x1adf   :  { %5995 = vrot.lane.b32.xlu1 %v5993_v51, %s9997_s30 }
0x1b51   :  { %v5996_v12 = vpop.permute.xlu1 %5995 }
0x1b52   :  { %v5998_v48 = vadd.f32 %v5996_v12, %v5988_v30 }
0x1b54   :  { %9827 = vtanh.f32 %v5998_v48 }
0x1b55   :  { %9829 = vpow2.f32 %v7824_v10 }
0x1b5e   :  { %v9828_v49 = vpop.eup %9827 }
0x1b5f   :  { %6001 = vrot.lane.b32.xlu0 %v9828_v49, %s9997_s30  ;;  %v9830_v55 = vpop.eup %9829 }
0x1b60   :  { %v5982_v11 = vadd.f32 1.0, %v9830_v55 }
0x1b62   :  { %9831 = vrcp.f32 %v5982_v11 }
0x1b6c   :  { %v9832_v62 = vpop.eup %9831 }
0x1bd1   :  { %v6002_v4 = vpop.permute.xlu0 %6001 }
0x1bd2   :  { %v6004_v54 = vmul.f32 %v9832_v62, %v6002_v4 }
0x1bd4   :  { %7825 = vmatmul.mubr.msk.f32.vlgmr.msra.gmra.mrb[88].mxu1 %vm776_vm4, %v6004_v54 }
0x1bd5   :  { %9150 = vmatpush1.bf16.msra.mxu1 %v12652_v19  ;;  %6182 = vmatprep.mubr.f32.mxu1 %v13335_v27 }
0x1bd6   :  { %9152 = vmatprep.subr.bf16.mxu1 %v12654_v2 }
0x1bd9   :  { %9154 = vmatpush1.bf16.msra.mxu1 %v12664_v29 }
0x1bda   :  { %9156 = vmatprep.subr.bf16.mxu1 %v12677_v31 }
0x1bdd   :  { %9158 = vmatpush1.bf16.msra.mxu1 %v12688_v22 }
0x1bde   :  { %9160 = vmatprep.subr.bf16.mxu1 %v12690_v34 }
0x1be1   :  { %9162 = vmatpush1.bf16.msra.mxu1 %v12700_v28 }
0x1be2   :  { %9180 = vmatprep.subr.bf16.mxu1 %v12641_v32 }
0x1ca7   :  { %v6076_v42 = vpop.f32.mrb[88].mxu1 }
0x1ca8   :  { %v6081_v15 = vadd.f32 %v6076_v42, %v12834_v37  ;;  %v6078_v59 = vpop.f32.mrb[89].mxu1 }
0x1ca9   :  { %v6082_v52 = vadd.f32 %v6078_v59, %v12838_v7 }
0x1caa   :  { %v7826_v23 = vmul.f32 -1.442695, %v6081_v15 }
0x1cab   :  { %9833 = vtanh.f32 %v6082_v52  ;;  %v7827_v7 = vmul.f32 -1.442695, %v6082_v52 }
0x1cac   :  { %9835 = vpow2.f32 %v7826_v23 }
0x1cb5   :  { %v9834_v33 = vpop.eup %9833 }
0x1cb6   :  { %6098 = vrot.lane.b32.xlu1 %v9834_v33, %s9997_s30  ;;  %v9836_v21 = vpop.eup %9835 }
0x1cb7   :  { %v6089_v60 = vadd.f32 1.0, %v9836_v21 }
0x1cb9   :  { %9837 = vrcp.f32 %v6089_v60 }
0x1cc3   :  { %v9838_v3 = vpop.eup %9837 }
0x1cc4   :  { %v6096_v38 = vmul.f32 %v9838_v3, %v5998_v48 }
0x1d28   :  { %v6099_v5 = vpop.permute.xlu1 %6098 }
0x1d29   :  { %v6101_v0 = vmul.f32 %v9838_v3, %v6099_v5 }
0x1d2b   :  { %6103 = vrot.lane.b32.xlu0 %v6101_v0, %s9997_s30 }
0x1d9d   :  { %v6104_v16 = vpop.permute.xlu0 %6103 }
0x1d9e   :  { %v6106_v37 = vadd.f32 %v6104_v16, %v6096_v38 }
0x1da0   :  { %9839 = vtanh.f32 %v6106_v37 }
0x1da1   :  { %9841 = vpow2.f32 %v7827_v7 }
0x1daa   :  { %v9840_v14 = vpop.eup %9839 }
0x1dab   :  { %6109 = vrot.lane.b32.xlu1 %v9840_v14, %s9997_s30  ;;  %v9842_v58 = vpop.eup %9841 }
0x1dac   :  { %v6090_v41 = vadd.f32 1.0, %v9842_v58 }
0x1dae   :  { %9843 = vrcp.f32 %v6090_v41 }
0x1db8   :  { %v9844_v50 = vpop.eup %9843 }
0x1e1d   :  { %v6110_v51 = vpop.permute.xlu1 %6109 }
0x1e1e   :  { %v6112_v30 = vmul.f32 %v9844_v50, %v6110_v51 }
0x1e20   :  { %7828 = vmatmul.mubr.msk.f32.vlgmr.msra.gmra.mrb[90].mxu1 %vm776_vm4, %v6112_v30 }
0x1e21   :  { %9182 = vmatpush1.bf16.msra.mxu1 %v12652_v19  ;;  %6398 = vmatprep.mubr.f32.mxu1 %v13335_v27 }
0x1e22   :  { %9184 = vmatprep.subr.bf16.mxu1 %v12654_v2 }
0x1e25   :  { %9186 = vmatpush1.bf16.msra.mxu1 %v12664_v29 }
0x1e26   :  { %9188 = vmatprep.subr.bf16.mxu1 %v12677_v31 }
0x1e29   :  { %9190 = vmatpush1.bf16.msra.mxu1 %v12688_v22 }
0x1e2a   :  { %9192 = vmatprep.subr.bf16.mxu1 %v12690_v34 }
0x1e2d   :  { %9194 = vmatpush1.bf16.msra.mxu1 %v12700_v28 }
0x1e2e   :  { %9212 = vmatprep.subr.bf16.mxu1 %v12641_v32 }
0x1ef3   :  { %v6184_v12 = vpop.f32.mrb[90].mxu1 }
0x1ef4   :  { %v6189_v48 = vadd.f32 %v6184_v12, %v12841_v20  ;;  %v6186_v49 = vpop.f32.mrb[91].mxu1 }
0x1ef5   :  { %v6190_v10 = vadd.f32 %v6186_v49, %v12844_v8 }
0x1ef6   :  { %v7829_v11 = vmul.f32 -1.442695, %v6189_v48 }
0x1ef7   :  { %9845 = vtanh.f32 %v6190_v10  ;;  %v7830_v8 = vmul.f32 -1.442695, %v6190_v10 }
0x1ef8   :  { %9847 = vpow2.f32 %v7829_v11 }
0x1f01   :  { %v9846_v55 = vpop.eup %9845 }
0x1f02   :  { %6206 = vrot.lane.b32.xlu0 %v9846_v55, %s9997_s30  ;;  %v9848_v62 = vpop.eup %9847 }
0x1f03   :  { %v6197_v4 = vadd.f32 1.0, %v9848_v62 }
0x1f05   :  { %9849 = vrcp.f32 %v6197_v4 }
0x1f0f   :  { %v9850_v54 = vpop.eup %9849 }
0x1f10   :  { %v6204_v59 = vmul.f32 %v9850_v54, %v6106_v37 }
0x1f74   :  { %v6207_v42 = vpop.permute.xlu0 %6206 }
0x1f75   :  { %v6209_v15 = vmul.f32 %v9850_v54, %v6207_v42 }
0x1f77   :  { %6211 = vrot.lane.b32.xlu1 %v6209_v15, %s9997_s30 }
0x1fe9   :  { %v6212_v52 = vpop.permute.xlu1 %6211 }
0x1fea   :  { %v6214_v20 = vadd.f32 %v6212_v52, %v6204_v59 }
0x1fec   :  { %9851 = vtanh.f32 %v6214_v20 }
0x1fed   :  { %9853 = vpow2.f32 %v7830_v8 }
0x1ff6   :  { %v9852_v33 = vpop.eup %9851 }
0x1ff7   :  { %6217 = vrot.lane.b32.xlu0 %v9852_v33, %s9997_s30  ;;  %v9854_v23 = vpop.eup %9853 }
0x1ff8   :  { %v6198_v21 = vadd.f32 1.0, %v9854_v23 }
0x1ffa   :  { %9855 = vrcp.f32 %v6198_v21 }
0x2004   :  { %v9856_v60 = vpop.eup %9855 }
0x2069   :  { %v6218_v3 = vpop.permute.xlu0 %6217 }
0x206a   :  { %v6220_v5 = vmul.f32 %v9856_v60, %v6218_v3 }
0x206c   :  { %7831 = vmatmul.mubr.msk.f32.vlgmr.msra.gmra.mrb[112].mxu0 %vm776_vm4, %v6220_v5 }
0x206d   :  { %9198 = vmatpush1.bf16.msra.mxu0 %v12652_v19  ;;  %6506 = vmatprep.mubr.f32.mxu0 %v13335_v27 }
0x206e   :  { %9200 = vmatprep.subr.bf16.mxu0 %v12654_v2 }
0x2071   :  { %9202 = vmatpush1.bf16.msra.mxu0 %v12664_v29 }
0x2072   :  { %9204 = vmatprep.subr.bf16.mxu0 %v12677_v31 }
0x2075   :  { %9206 = vmatpush1.bf16.msra.mxu0 %v12688_v22 }
0x2076   :  { %9208 = vmatprep.subr.bf16.mxu0 %v12690_v34 }
0x2079   :  { %9210 = vmatpush1.bf16.msra.mxu0 %v12700_v28 }
0x207a   :  { %9228 = vmatprep.subr.bf16.mxu0 %v12641_v32 }
0x213f   :  { %v6292_v0 = vpop.f32.mrb[112].mxu0 }
0x2140   :  { %v6297_v38 = vadd.f32 %v6292_v0, %v12847_v57  ;;  %v6294_v16 = vpop.f32.mrb[113].mxu0 }
0x2141   :  { %v6298_v37 = vadd.f32 %v6294_v16, %v12850_v35 }
0x2142   :  { %v7832_v7 = vmul.f32 -1.442695, %v6297_v38 }
0x2143   :  { %9857 = vtanh.f32 %v6298_v37  ;;  %v7833_v35 = vmul.f32 -1.442695, %v6298_v37 }
0x2144   :  { %9859 = vpow2.f32 %v7832_v7 }
0x214d   :  { %v9858_v14 = vpop.eup %9857 }
0x214e   :  { %6314 = vrot.lane.b32.xlu1 %v9858_v14, %s9997_s30  ;;  %v9860_v58 = vpop.eup %9859 }
0x214f   :  { %v6305_v41 = vadd.f32 1.0, %v9860_v58 }
0x2151   :  { %9861 = vrcp.f32 %v6305_v41 }
0x215b   :  { %v9862_v50 = vpop.eup %9861 }
0x215c   :  { %v6312_v12 = vmul.f32 %v9862_v50, %v6214_v20 }
0x21c0   :  { %v6315_v51 = vpop.permute.xlu1 %6314 }
0x21c1   :  { %v6317_v30 = vmul.f32 %v9862_v50, %v6315_v51 }
0x21c3   :  { %6319 = vrot.lane.b32.xlu0 %v6317_v30, %s9997_s30 }
0x2235   :  { %v6320_v48 = vpop.permute.xlu0 %6319 }
0x2236   :  { %v6322_v57 = vadd.f32 %v6320_v48, %v6312_v12 }
0x2238   :  { %9863 = vtanh.f32 %v6322_v57 }
0x2239   :  { %9865 = vpow2.f32 %v7833_v35 }
0x2242   :  { %v9864_v49 = vpop.eup %9863 }
0x2243   :  { %6325 = vrot.lane.b32.xlu1 %v9864_v49, %s9997_s30  ;;  %v9866_v10 = vpop.eup %9865 }
0x2244   :  { %v6306_v55 = vadd.f32 1.0, %v9866_v10 }
0x2246   :  { %9867 = vrcp.f32 %v6306_v55 }
0x2250   :  { %v9868_v11 = vpop.eup %9867 }
0x22b5   :  { %v6326_v62 = vpop.permute.xlu1 %6325 }
0x22b6   :  { %v6328_v4 = vmul.f32 %v9868_v11, %v6326_v62 }
0x22b8   :  { %7834 = vmatmul.mubr.msk.f32.vlgmr.msra.gmra.mrb[92].mxu1 %vm776_vm4, %v6328_v4 }
0x22b9   :  { %9214 = vmatpush1.bf16.msra.mxu1 %v12652_v19  ;;  %6614 = vmatprep.mubr.f32.mxu1 %v13335_v27 }
0x22ba   :  { %9216 = vmatprep.subr.bf16.mxu1 %v12654_v2 }
0x22bd   :  { %9218 = vmatpush1.bf16.msra.mxu1 %v12664_v29 }
0x22be   :  { %9220 = vmatprep.subr.bf16.mxu1 %v12677_v31 }
0x22c1   :  { %9222 = vmatpush1.bf16.msra.mxu1 %v12688_v22 }
0x22c2   :  { %9224 = vmatprep.subr.bf16.mxu1 %v12690_v34 }
0x22c5   :  { %9226 = vmatpush1.bf16.msra.mxu1 %v12700_v28 }
0x22c6   :  { %9244 = vmatprep.subr.bf16.mxu1 %v12641_v32 }
0x238b   :  { %v6400_v54 = vpop.f32.mrb[92].mxu1 }
0x238c   :  { %v6405_v42 = vadd.f32 %v6400_v54, %v12853_v47  ;;  %v6402_v15 = vpop.f32.mrb[93].mxu1 }
0x238d   :  { %v6406_v59 = vadd.f32 %v6402_v15, %v12856_v6 }
0x238e   :  { %v7835_v20 = vmul.f32 -1.442695, %v6405_v42 }
0x238f   :  { %9869 = vtanh.f32 %v6406_v59  ;;  %v7836_v6 = vmul.f32 -1.442695, %v6406_v59 }
0x2390   :  { %9871 = vpow2.f32 %v7835_v20 }
0x2399   :  { %v9870_v52 = vpop.eup %9869 }
0x239a   :  { %6422 = vrot.lane.b32.xlu0 %v9870_v52, %s9997_s30  ;;  %v9872_v33 = vpop.eup %9871 }
0x239b   :  { %v6413_v8 = vadd.f32 1.0, %v9872_v33 }
0x239d   :  { %9873 = vrcp.f32 %v6413_v8 }
0x23a7   :  { %v9874_v23 = vpop.eup %9873 }
0x23a8   :  { %v6420_v3 = vmul.f32 %v9874_v23, %v6322_v57 }
0x240c   :  { %v6423_v21 = vpop.permute.xlu0 %6422 }
0x240d   :  { %v6425_v60 = vmul.f32 %v9874_v23, %v6423_v21 }
0x240f   :  { %6427 = vrot.lane.b32.xlu1 %v6425_v60, %s9997_s30 }
0x2481   :  { %v6428_v5 = vpop.permute.xlu1 %6427 }
0x2482   :  { %v6430_v47 = vadd.f32 %v6428_v5, %v6420_v3 }
0x2484   :  { %9875 = vtanh.f32 %v6430_v47 }
0x2485   :  { %9877 = vpow2.f32 %v7836_v6 }
0x248e   :  { %v9876_v0 = vpop.eup %9875 }
0x248f   :  { %6433 = vrot.lane.b32.xlu0 %v9876_v0, %s9997_s30  ;;  %v9878_v38 = vpop.eup %9877 }
0x2490   :  { %v6414_v16 = vadd.f32 1.0, %v9878_v38 }
0x2492   :  { %9879 = vrcp.f32 %v6414_v16 }
0x249c   :  { %v9880_v37 = vpop.eup %9879 }
0x2501   :  { %v6434_v14 = vpop.permute.xlu0 %6433 }
0x2502   :  { %v6436_v7 = vmul.f32 %v9880_v37, %v6434_v14 }
0x2504   :  { %7837 = vmatmul.mubr.msk.f32.vlgmr.msra.gmra.mrb[114].mxu0 %vm776_vm4, %v6436_v7 }
0x2505   :  { %9230 = vmatpush1.bf16.msra.mxu0 %v12652_v19  ;;  %6722 = vmatprep.mubr.f32.mxu0 %v13335_v27 }
0x2506   :  { %9232 = vmatprep.subr.bf16.mxu0 %v12654_v2 }
0x2509   :  { %9234 = vmatpush1.bf16.msra.mxu0 %v12664_v29 }
0x250a   :  { %9236 = vmatprep.subr.bf16.mxu0 %v12677_v31 }
0x250d   :  { %9238 = vmatpush1.bf16.msra.mxu0 %v12688_v22 }
0x250e   :  { %9240 = vmatprep.subr.bf16.mxu0 %v12690_v34 }
0x2511   :  { %9242 = vmatpush1.bf16.msra.mxu0 %v12700_v28 }
0x2512   :  { %9260 = vmatprep.subr.bf16.mxu0 %v12641_v32 }
0x25d7   :  { %v6508_v58 = vpop.f32.mrb[114].mxu0 }
0x25d8   :  { %v6513_v41 = vadd.f32 %v6508_v58, %v12859_v56  ;;  %v6510_v50 = vpop.f32.mrb[115].mxu0 }
0x25d9   :  { %v6514_v51 = vadd.f32 %v6510_v50, %v12862_v24 }
0x25da   :  { %v7838_v12 = vmul.f32 -1.442695, %v6513_v41 }
0x25db   :  { %9881 = vtanh.f32 %v6514_v51  ;;  %v7839_v24 = vmul.f32 -1.442695, %v6514_v51 }
0x25dc   :  { %9883 = vpow2.f32 %v7838_v12 }
0x25e5   :  { %v9882_v30 = vpop.eup %9881 }
0x25e6   :  { %6530 = vrot.lane.b32.xlu1 %v9882_v30, %s9997_s30  ;;  %v9884_v48 = vpop.eup %9883 }
0x25e7   :  { %v6521_v57 = vadd.f32 1.0, %v9884_v48 }
0x25e9   :  { %9885 = vrcp.f32 %v6521_v57 }
0x25f3   :  { %v9886_v49 = vpop.eup %9885 }
0x25f4   :  { %v6528_v55 = vmul.f32 %v9886_v49, %v6430_v47 }
0x2658   :  { %v6531_v35 = vpop.permute.xlu1 %6530 }
0x2659   :  { %v6533_v10 = vmul.f32 %v9886_v49, %v6531_v35 }
0x265b   :  { %6535 = vrot.lane.b32.xlu0 %v6533_v10, %s9997_s30 }
0x26cd   :  { %v6536_v11 = vpop.permute.xlu0 %6535 }
0x26ce   :  { %v6538_v56 = vadd.f32 %v6536_v11, %v6528_v55 }
0x26d0   :  { %9887 = vtanh.f32 %v6538_v56 }
0x26d1   :  { %9889 = vpow2.f32 %v7839_v24 }
0x26da   :  { %v9888_v62 = vpop.eup %9887 }
0x26db   :  { %6541 = vrot.lane.b32.xlu1 %v9888_v62, %s9997_s30  ;;  %v9890_v4 = vpop.eup %9889 }
0x26dc   :  { %v6522_v54 = vadd.f32 1.0, %v9890_v4 }
0x26de   :  { %9891 = vrcp.f32 %v6522_v54 }
0x26e8   :  { %v9892_v42 = vpop.eup %9891 }
0x274d   :  { %v6542_v15 = vpop.permute.xlu1 %6541 }
0x274e   :  { %v6544_v59 = vmul.f32 %v9892_v42, %v6542_v15 }
0x2750   :  { %7840 = vmatmul.mubr.msk.f32.vlgmr.msra.gmra.mrb[94].mxu1 %vm776_vm4, %v6544_v59 }
0x2751   :  { %9246 = vmatpush1.bf16.msra.mxu1 %v12652_v19  ;;  %6830 = vmatprep.mubr.f32.mxu1 %v13335_v27 }
0x2752   :  { %9248 = vmatprep.subr.bf16.mxu1 %v12654_v2 }
0x2755   :  { %9250 = vmatpush1.bf16.msra.mxu1 %v12664_v29 }
0x2756   :  { %9252 = vmatprep.subr.bf16.mxu1 %v12677_v31 }
0x2759   :  { %9254 = vmatpush1.bf16.msra.mxu1 %v12688_v22 }
0x275a   :  { %9256 = vmatprep.subr.bf16.mxu1 %v12690_v34 }
0x275d   :  { %9258 = vmatpush1.bf16.msra.mxu1 %v12700_v28 }
0x275e   :  { %9276 = vmatprep.subr.bf16.mxu1 %v12641_v32 }
0x2823   :  { %v6616_v52 = vpop.f32.mrb[94].mxu1 }
0x2824   :  { %v6621_v20 = vadd.f32 %v6616_v52, %v12865_v18  ;;  %v6618_v33 = vpop.f32.mrb[95].mxu1 }
0x2825   :  { %v6622_v8 = vadd.f32 %v6618_v33, %v12868_v17 }
0x2826   :  { %v7841_v21 = vmul.f32 -1.442695, %v6621_v20 }
0x2827   :  { %9893 = vtanh.f32 %v6622_v8  ;;  %v7842_v17 = vmul.f32 -1.442695, %v6622_v8 }
0x2828   :  { %9895 = vpow2.f32 %v7841_v21 }
0x2831   :  { %v9894_v23 = vpop.eup %9893 }
0x2832   :  { %6638 = vrot.lane.b32.xlu0 %v9894_v23, %s9997_s30  ;;  %v9896_v60 = vpop.eup %9895 }
0x2833   :  { %v6629_v3 = vadd.f32 1.0, %v9896_v60 }
0x2835   :  { %9897 = vrcp.f32 %v6629_v3 }
0x283f   :  { %v9898_v5 = vpop.eup %9897 }
0x2840   :  { %v6636_v6 = vmul.f32 %v9898_v5, %v6538_v56 }
0x28a4   :  { %v6639_v47 = vpop.permute.xlu0 %6638 }
0x28a5   :  { %v6641_v0 = vmul.f32 %v9898_v5, %v6639_v47 }
0x28a7   :  { %6643 = vrot.lane.b32.xlu1 %v6641_v0, %s9997_s30 }
0x2919   :  { %v6644_v38 = vpop.permute.xlu1 %6643 }
0x291a   :  { %v6646_v18 = vadd.f32 %v6644_v38, %v6636_v6 }
0x291c   :  { %9899 = vtanh.f32 %v6646_v18 }
0x291d   :  { %9901 = vpow2.f32 %v7842_v17 }
0x2926   :  { %v9900_v16 = vpop.eup %9899 }
0x2927   :  { %6649 = vrot.lane.b32.xlu0 %v9900_v16, %s9997_s30  ;;  %v9902_v37 = vpop.eup %9901 }
0x2928   :  { %v6630_v14 = vadd.f32 1.0, %v9902_v37 }
0x292a   :  { %9903 = vrcp.f32 %v6630_v14 }
0x2934   :  { %v9904_v7 = vpop.eup %9903 }
0x2999   :  { %v6650_v58 = vpop.permute.xlu0 %6649 }
0x299a   :  { %v6652_v41 = vmul.f32 %v9904_v7, %v6650_v58 }
0x299c   :  { %7843 = vmatmul.mubr.msk.f32.vlgmr.msra.gmra.mrb[116].mxu0 %vm776_vm4, %v6652_v41 }
0x299d   :  { %9262 = vmatpush1.bf16.msra.mxu0 %v12652_v19  ;;  %6938 = vmatprep.mubr.f32.mxu0 %v13335_v27 }
0x299e   :  { %9264 = vmatprep.subr.bf16.mxu0 %v12654_v2 }
0x29a1   :  { %9266 = vmatpush1.bf16.msra.mxu0 %v12664_v29 }
0x29a2   :  { %9268 = vmatprep.subr.bf16.mxu0 %v12677_v31 }
0x29a5   :  { %9270 = vmatpush1.bf16.msra.mxu0 %v12688_v22 }
0x29a6   :  { %9272 = vmatprep.subr.bf16.mxu0 %v12690_v34 }
0x29a9   :  { %9274 = vmatpush1.bf16.msra.mxu0 %v12700_v28 }
0x29aa   :  { %9292 = vmatprep.subr.bf16.mxu0 %v12641_v32 }
0x2a6f   :  { %v6724_v50 = vpop.f32.mrb[116].mxu0 }
0x2a70   :  { %v6729_v51 = vadd.f32 %v6724_v50, %v12871_v63  ;;  %v6726_v30 = vpop.f32.mrb[117].mxu0 }
0x2a71   :  { %v6730_v12 = vadd.f32 %v6726_v30, %v12874_v53 }
0x2a72   :  { %v7844_v57 = vmul.f32 -1.442695, %v6729_v51 }
0x2a73   :  { %9905 = vtanh.f32 %v6730_v12  ;;  %v7845_v53 = vmul.f32 -1.442695, %v6730_v12 }
0x2a74   :  { %9907 = vpow2.f32 %v7844_v57 }
0x2a7d   :  { %v9906_v48 = vpop.eup %9905 }
0x2a7e   :  { %6746 = vrot.lane.b32.xlu1 %v9906_v48, %s9997_s30  ;;  %v9908_v49 = vpop.eup %9907 }
0x2a7f   :  { %v6737_v35 = vadd.f32 1.0, %v9908_v49 }
0x2a81   :  { %9909 = vrcp.f32 %v6737_v35 }
0x2a8b   :  { %v9910_v10 = vpop.eup %9909 }
0x2a8c   :  { %v6744_v56 = vmul.f32 %v9910_v10, %v6646_v18 }
0x2af0   :  { %v6747_v55 = vpop.permute.xlu1 %6746 }
0x2af1   :  { %v6749_v11 = vmul.f32 %v9910_v10, %v6747_v55 }
0x2af3   :  { %6751 = vrot.lane.b32.xlu0 %v6749_v11, %s9997_s30 }
0x2b65   :  { %v6752_v62 = vpop.permute.xlu0 %6751 }
0x2b66   :  { %v6754_v63 = vadd.f32 %v6752_v62, %v6744_v56 }
0x2b68   :  { %9911 = vtanh.f32 %v6754_v63 }
0x2b69   :  { %9913 = vpow2.f32 %v7845_v53 }
0x2b72   :  { %v9912_v24 = vpop.eup %9911 }
0x2b73   :  { %6757 = vrot.lane.b32.xlu1 %v9912_v24, %s9997_s30  ;;  %v9914_v4 = vpop.eup %9913 }
0x2b74   :  { %v6738_v54 = vadd.f32 1.0, %v9914_v4 }
0x2b76   :  { %9915 = vrcp.f32 %v6738_v54 }
0x2b80   :  { %v9916_v42 = vpop.eup %9915 }
0x2be5   :  { %v6758_v15 = vpop.permute.xlu1 %6757 }
0x2be6   :  { %v6760_v59 = vmul.f32 %v9916_v42, %v6758_v15 }
0x2be8   :  { %7846 = vmatmul.mubr.msk.f32.vlgmr.msra.gmra.mrb[96].mxu1 %vm776_vm4, %v6760_v59 }
0x2be9   :  { %9278 = vmatpush1.bf16.msra.mxu1 %v12652_v19  ;;  %7046 = vmatprep.mubr.f32.mxu1 %v13335_v27 }
0x2bea   :  { %9280 = vmatprep.subr.bf16.mxu1 %v12654_v2 }
0x2bed   :  { %9282 = vmatpush1.bf16.msra.mxu1 %v12664_v29 }
0x2bee   :  { %9284 = vmatprep.subr.bf16.mxu1 %v12677_v31 }
0x2bf1   :  { %9286 = vmatpush1.bf16.msra.mxu1 %v12688_v22 }
0x2bf2   :  { %9288 = vmatprep.subr.bf16.mxu1 %v12690_v34 }
0x2bf5   :  { %9290 = vmatpush1.bf16.msra.mxu1 %v12700_v28 }
0x2bf6   :  { %9308 = vmatprep.subr.bf16.mxu1 %v12641_v32 }
0x2cbb   :  { %v6832_v52 = vpop.f32.mrb[96].mxu1 }
0x2cbc   :  { %v6837_v20 = vadd.f32 %v6832_v52, %v12877_v40  ;;  %v6834_v33 = vpop.f32.mrb[97].mxu1 }
0x2cbd   :  { %v6838_v8 = vadd.f32 %v6834_v33, %v12880_v9 }
0x2cbe   :  { %v7847_v21 = vmul.f32 -1.442695, %v6837_v20 }
0x2cbf   :  { %9917 = vtanh.f32 %v6838_v8  ;;  %v7848_v9 = vmul.f32 -1.442695, %v6838_v8 }
0x2cc0   :  { %9919 = vpow2.f32 %v7847_v21 }
0x2cc9   :  { %v9918_v23 = vpop.eup %9917 }
0x2cca   :  { %6854 = vrot.lane.b32.xlu0 %v9918_v23, %s9997_s30  ;;  %v9920_v60 = vpop.eup %9919 }
0x2ccb   :  { %v6845_v3 = vadd.f32 1.0, %v9920_v60 }
0x2ccd   :  { %9921 = vrcp.f32 %v6845_v3 }
0x2cd7   :  { %v9922_v5 = vpop.eup %9921 }
0x2cd8   :  { %v6852_v32 = vmul.f32 %v9922_v5, %v6754_v63 }
0x2d3c   :  { %v6855_v47 = vpop.permute.xlu0 %6854 }
0x2d3d   :  { %v6857_v0 = vmul.f32 %v9922_v5, %v6855_v47 }
0x2d3f   :  { %6859 = vrot.lane.b32.xlu1 %v6857_v0, %s9997_s30 }
0x2db1   :  { %v6860_v6 = vpop.permute.xlu1 %6859 }
0x2db2   :  { %v6862_v40 = vadd.f32 %v6860_v6, %v6852_v32 }
0x2db4   :  { %9923 = vtanh.f32 %v6862_v40 }
0x2db5   :  { %9925 = vpow2.f32 %v7848_v9 }
0x2dbe   :  { %v9924_v38 = vpop.eup %9923 }
0x2dbf   :  { %6865 = vrot.lane.b32.xlu0 %v9924_v38, %s9997_s30  ;;  %v9926_v18 = vpop.eup %9925 }
0x2dc0   :  { %v6846_v16 = vadd.f32 1.0, %v9926_v18 }
0x2dc2   :  { %9927 = vrcp.f32 %v6846_v16 }
0x2dcc   :  { %v9928_v17 = vpop.eup %9927 }
0x2e31   :  { %v6866_v37 = vpop.permute.xlu0 %6865 }
0x2e32   :  { %v6868_v14 = vmul.f32 %v9928_v17, %v6866_v37 }
0x2e34   :  { %7849 = vmatmul.mubr.msk.f32.vlgmr.msra.gmra.mrb[118].mxu0 %vm776_vm4, %v6868_v14  ;;  %v9998_v14 = vmov 0.0|0.0  }
0x2e35   :  { %9294 = vmatpush1.bf16.msra.mxu0 %v12652_v19  ;;  %7154 = vmatprep.mubr.f32.mxu0 %v13335_v27 }
0x2e36   :  { %9296 = vmatprep.subr.bf16.mxu0 %v12654_v2 }
0x2e39   :  { %9298 = vmatpush1.bf16.msra.mxu0 %v12664_v29 }
0x2e3a   :  { %9300 = vmatprep.subr.bf16.mxu0 %v12677_v31 }
0x2e3d   :  { %9302 = vmatpush1.bf16.msra.mxu0 %v12688_v22 }
0x2e3e   :  { %9304 = vmatprep.subr.bf16.mxu0 %v12690_v34 }
0x2e41   :  { %9306 = vmatpush1.bf16.msra.mxu0 %v12700_v28 }
0x2e42   :  { %9323 = vmatprep.subr.bf16.mxu0 %v9998_v14 }
0x2f07   :  { %v6940_v7 = vpop.f32.mrb[118].mxu0 }
0x2f08   :  { %v6945_v58 = vadd.f32 %v6940_v7, %v12883_v43  ;;  %v6942_v41 = vpop.f32.mrb[119].mxu0 }
0x2f09   :  { %v6946_v50 = vadd.f32 %v6942_v41, %v12886_v13 }
0x2f0a   :  { %v7850_v30 = vmul.f32 -1.442695, %v6945_v58 }
0x2f0b   :  { %9929 = vtanh.f32 %v6946_v50  ;;  %v7851_v13 = vmul.f32 -1.442695, %v6946_v50  ;;  %v7301_v50 = vld [vmem:[%s13281_s14] sm:$0xff] }
0x2f0c   :  { %9931 = vpow2.f32 %v7850_v30 }
0x2f15   :  { %v9930_v51 = vpop.eup %9929 }
0x2f16   :  { %6962 = vrot.lane.b32.xlu1 %v9930_v51, %s9997_s30  ;;  %v9932_v12 = vpop.eup %9931  ;;  %v7302_v51 = vld [vmem:[%s13281_s14 + $0x8] sm:$0xff] }
0x2f17   :  { %v6953_v48 = vadd.f32 1.0, %v9932_v12 }
0x2f19   :  { %9933 = vrcp.f32 %v6953_v48  ;;  %v9336_v48 = vpack.c.bf16 %v7302_v51, %v7301_v50 }
0x2f23   :  { %v9934_v57 = vpop.eup %9933 }
0x2f24   :  { %v6960_v10 = vmul.f32 %v9934_v57, %v6862_v40 }
0x2f88   :  { %v6963_v49 = vpop.permute.xlu1 %6962 }
0x2f89   :  { %v6965_v35 = vmul.f32 %v9934_v57, %v6963_v49  ;;  %v7303_v49 = vld [vmem:[%s13281_s14 + $0x10] sm:$0xff] }
0x2f8b   :  { %6967 = vrot.lane.b32.xlu0 %v6965_v35, %s9997_s30  ;;  %v7304_v35 = vld [vmem:[%s13281_s14 + $0x18] sm:$0xff] }
0x2ffd   :  { %v6968_v55 = vpop.permute.xlu0 %6967 }
0x2ffe   :  { %v6970_v43 = vadd.f32 %v6968_v55, %v6960_v10  ;;  %v9339_v10 = vpack.c.bf16 %v7304_v35, %v7303_v49  ;;  %v7305_v55 = vld [vmem:[%s13281_s14 + $0x20] sm:$0xff] }
0x3000   :  { %9935 = vtanh.f32 %v6970_v43 }
0x3001   :  { %9937 = vpow2.f32 %v7851_v13  ;;  %v7307_v13 = vld [vmem:[%s13281_s14 + $0x30] sm:$0xff] }
0x300a   :  { %v9936_v11 = vpop.eup %9935 }
0x300b   :  { %6973 = vrot.lane.b32.xlu1 %v9936_v11, %s9997_s30  ;;  %v9938_v56 = vpop.eup %9937 }
0x300c   :  { %v6954_v62 = vadd.f32 1.0, %v9938_v56  ;;  %v7308_v56 = vld [vmem:[%s13281_s14 + $0x38] sm:$0xff] }
0x300e   :  { %9939 = vrcp.f32 %v6954_v62  ;;  %v9345_v62 = vpack.c.bf16 %v7308_v56, %v7307_v13  ;;  %v7468_v13 = vld [vmem:[%s13281_s14 + $0xa8] sm:$0xff] }
0x3018   :  { %v9940_v63 = vpop.eup %9939 }
0x307d   :  { %v6974_v24 = vpop.permute.xlu1 %6973 }
0x307e   :  { %v6976_v53 = vmul.f32 %v9940_v63, %v6974_v24  ;;  %v13424_v63 = vld [vmem:[#allocation65_spill] sm:$0xff] }
0x3080   :  { %7852 = vmatmul.mubr.msk.f32.vlgmr.msra.gmra.mrb[98].mxu1 %vm776_vm4, %v6976_v53 }
0x3081   :  { %9310 = vmatpush1.bf16.msra.mxu1 %v12652_v19  ;;  %7262 = vmatprep.mubr.f32.mxu1 %v13335_v27 }
0x3082   :  { %9312 = vmatprep.subr.bf16.mxu1 %v12654_v2 }
0x3085   :  { %9314 = vmatpush1.bf16.msra.mxu1 %v12664_v29 }
0x3086   :  { %9316 = vmatprep.subr.bf16.mxu1 %v12677_v31 }
0x3089   :  { %9318 = vmatpush1.bf16.msra.mxu1 %v12688_v22 }
0x308a   :  { %9320 = vmatprep.subr.bf16.mxu1 %v12690_v34 }
0x308d   :  { %9322 = vmatpush1.bf16.msra.mxu1 %v12700_v28 }
0x308e   :  { %9335 = vmatprep.subr.bf16.mxu1 %v9998_v14 }
0x3153   :  { %v7048_v4 = vpop.f32.mrb[98].mxu1 }
0x3154   :  { %v7053_v54 = vadd.f32 %v7048_v4, %v12889_v39  ;;  %v7050_v42 = vpop.f32.mrb[99].mxu1 }
0x3155   :  { %v7054_v19 = vadd.f32 %v7050_v42, %v12892_v25 }
0x3156   :  { %v7853_v2 = vmul.f32 -1.442695, %v7053_v54 }
0x3157   :  { %9941 = vtanh.f32 %v7054_v19  ;;  %v7854_v25 = vmul.f32 -1.442695, %v7054_v19 }
0x3158   :  { %9943 = vpow2.f32 %v7853_v2 }
0x3161   :  { %v9942_v15 = vpop.eup %9941 }
0x3162   :  { %7070 = vrot.lane.b32.xlu0 %v9942_v15, %s9997_s30  ;;  %v9944_v29 = vpop.eup %9943 }
0x3163   :  { %v7061_v31 = vadd.f32 1.0, %v9944_v29 }
0x3165   :  { %9945 = vrcp.f32 %v7061_v31 }
0x316f   :  { %v9946_v22 = vpop.eup %9945 }
0x3170   :  { %v7068_v28 = vmul.f32 %v9946_v22, %v6970_v43  ;;  %v7306_v43 = vld [vmem:[%s13281_s14 + $0x28] sm:$0xff] }
0x3171   :  { %v9342_v11 = vpack.c.bf16 %v7306_v43, %v7305_v55  ;;  %v7466_v55 = vld [vmem:[%s13281_s14 + $0x98] sm:$0xff] }
0x31d4   :  { %v7071_v59 = vpop.permute.xlu0 %7070 }
0x31d5   :  { %v7073_v34 = vmul.f32 %v9946_v22, %v7071_v59 }
0x31d7   :  { %7075 = vrot.lane.b32.xlu1 %v7073_v34, %s9997_s30 }
0x3249   :  { %v7076_v52 = vpop.permute.xlu1 %7075 }
0x324a   :  { %v7078_v39 = vadd.f32 %v7076_v52, %v7068_v28  ;;  %v7309_v52 = vld [vmem:[%s13281_s14 + $0x40] sm:$0xff] }
0x324c   :  { %9947 = vtanh.f32 %v7078_v39 }
0x324d   :  { %9949 = vpow2.f32 %v7854_v25 }
0x3256   :  { %v9948_v20 = vpop.eup %9947 }
0x3257   :  { %7081 = vrot.lane.b32.xlu0 %v9948_v20, %s9997_s30  ;;  %v9950_v33 = vpop.eup %9949 }
0x3258   :  { %v7062_v8 = vadd.f32 1.0, %v9950_v33 }
0x325a   :  { %9951 = vrcp.f32 %v7062_v8  ;;  %v7313_v8 = vld [vmem:[%s13281_s14 + $0x60] sm:$0xff] }
0x3264   :  { %v9952_v23 = vpop.eup %9951 }
0x32c9   :  { %v7082_v21 = vpop.permute.xlu0 %7081 }
0x32ca   :  { %v7084_v60 = vmul.f32 %v9952_v23, %v7082_v21  ;;  %v7314_v23 = vld [vmem:[%s13281_s14 + $0x68] sm:$0xff] }
0x32cb   :  { %v9330_v21 = vpack.c.bf16 %v7314_v23, %v7313_v8 }
0x32cc   :  { %7855 = vmatmul.mubr.msk.f32.vlgmr.msra.gmra.mrb[120].mxu0 %vm776_vm4, %v7084_v60  ;;  %v7315_v60 = vld [vmem:[%s13281_s14 + $0x70] sm:$0xff] }
0x32cd   :  { %7983 = vmatprep.mubr.msk.f32.mxu0 %vm9999_vm6, %v13335_v27 }
0x339f   :  { %v7156_v3 = vpop.f32.mrb[120].mxu0 }
0x33a0   :  { %v7161_v5 = vadd.f32 %v7156_v3, %v12895_v44  ;;  %v7158_v47 = vpop.f32.mrb[121].mxu0  ;;  %v7316_v3 = vld [vmem:[%s13281_s14 + $0x78] sm:$0xff] }
0x33a1   :  { %v7162_v0 = vadd.f32 %v7158_v47, %v12898_v1  ;;  %v7812_v47 = vmul.f32 -1.442695, %v12789_v26 }
0x33a2   :  { %v7856_v6 = vmul.f32 -1.442695, %v7161_v5  ;;  %v9333_v5 = vpack.c.bf16 %v7316_v3, %v7315_v60 }
0x33a3   :  { %9953 = vtanh.f32 %v7162_v0  ;;  %v7857_v7 = vmul.f32 -1.442695, %v7162_v0 }
0x33a4   :  { %9955 = vpow2.f32 %v7856_v6 }
0x33ad   :  { %v9954_v32 = vpop.eup %9953 }
0x33ae   :  { %7178 = vrot.lane.b32.xlu1 %v9954_v32, %s9997_s30  ;;  %v9956_v40 = vpop.eup %9955 }
0x33af   :  { %v7169_v38 = vadd.f32 1.0, %v9956_v40 }
0x33b1   :  { %9957 = vrcp.f32 %v7169_v38 }
0x33bb   :  { %v9958_v9 = vpop.eup %9957 }
0x33bc   :  { %v7176_v17 = vmul.f32 %v9958_v9, %v7078_v39  ;;  %v7310_v39 = vld [vmem:[%s13281_s14 + $0x48] sm:$0xff] }
0x33bd   :  { %v9324_v20 = vpack.c.bf16 %v7310_v39, %v7309_v52  ;;  %v7864_v39 = vld [vmem:[%s13283_s15] ss:$0 sm:$0xff] }
0x33bf   :  { %9325 = vmatpush3.bf16.msra.mxu0 %v9324_v20 }
0x33c0   :  { %9326 = vmatprep.subr.bf16.mxu0 %v9998_v14 }
0x3420   :  { %v7179_v18 = vpop.permute.xlu1 %7178 }
0x3421   :  { %v7181_v16 = vmul.f32 %v9958_v9, %v7179_v18 }
0x3423   :  { %7183 = vrot.lane.b32.xlu0 %v7181_v16, %s9997_s30 }
0x3495   :  { %v7184_v37 = vpop.permute.xlu0 %7183 }
0x3496   :  { %v13108_v44 = vadd.f32 %v7184_v37, %v7176_v17 }
0x3498   :  { %9959 = vtanh.f32 %v13108_v44 }
0x3499   :  { %9961 = vpow2.f32 %v7857_v7 }
0x34a2   :  { %v9960_v1 = vpop.eup %9959 }
0x34a3   :  { %7189 = vrot.lane.b32.xlu1 %v9960_v1, %s9997_s30  ;;  %v9962_v58 = vpop.eup %9961 }
0x34a4   :  { %v7170_v41 = vadd.f32 1.0, %v9962_v58 }
0x34a6   :  { %9963 = vrcp.f32 %v7170_v41 }
0x34b0   :  { %v9964_v30 = vpop.eup %9963 }
0x3515   :  { %v7190_v12 = vpop.permute.xlu1 %7189 }
0x3516   :  { %v7192_v57 = vmul.f32 %v9964_v30, %v7190_v12  ;;  %v7463_v30 = vld [vmem:[%s13281_s14 + $0x80] sm:$0xff]  ;;  %v7464_v12 = vld [vmem:[%s13281_s14 + $0x88] sm:$0xff] }
0x3517   :  { %v9348_v49 = vpack.c.bf16 %v7464_v12, %v7463_v30 }
0x3518   :  { %7858 = vmatmul.mubr.msk.f32.vlgmr.msra.gmra.mrb[100].mxu1 %vm776_vm4, %v7192_v57 }
0x3519   :  { %9337 = vmatpush3.bf16.msra.mxu1 %v9336_v48  ;;  %8002 = vmatprep.mubr.msk.f32.mxu1 %vm9999_vm6, %v13335_v27 }
0x351a   :  { %9338 = vmatprep.subr.bf16.mxu1 %v9998_v14 }
0x351d   :  { %9340 = vmatpush3.bf16.msra.mxu1 %v9339_v10  ;;  %v7465_v10 = vld [vmem:[%s13281_s14 + $0x90] sm:$0xff] }
0x351e   :  { %9341 = vmatprep.subr.bf16.mxu1 %v9998_v14  ;;  %v9351_v43 = vpack.c.bf16 %v7466_v55, %v7465_v10 }
0x3521   :  { %9343 = vmatpush3.bf16.msra.mxu1 %v9342_v11  ;;  %v7467_v11 = vld [vmem:[%s13281_s14 + $0xa0] sm:$0xff] }
0x3522   :  { %9344 = vmatprep.subr.bf16.mxu1 %v9998_v14  ;;  %v9354_v56 = vpack.c.bf16 %v7468_v13, %v7467_v11 }
0x3525   :  { %9346 = vmatpush3.bf16.msra.mxu1 %v9345_v62  ;;  %v7469_v62 = vld [vmem:[%s13281_s14 + $0xb0] sm:$0xff] }
0x3526   :  { %9359 = vmatprep.subr.bf16.mxu1 %v9998_v14 }
0x3528   :  { %8003 = vmatmul.mubr.msk.f32.vlgmr.msra.gmra.mrb[102].mxu1 %vm776_vm4, %v13424_v63 }
0x3529   :  { %8040 = vmatprep.mubr.msk.f32.mxu1 %vm9999_vm6, %v13335_v27 }
0x35eb   :  { %v7264_v24 = vpop.f32.mrb[100].mxu1 }
0x35ec   :  { %v7269_v53 = vadd.f32 %v7264_v24, %v12901_v46  ;;  %v7266_v4 = vpop.f32.mrb[101].mxu1  ;;  %v9993_v46 = vld [vmem:[%s13279_s13] sm:$0x3] }
0x35ed   :  { %v13153_v54 = vadd.f32 %v7266_v4, %v12904_v36  ;;  %v5533_v22 = vrot.slane %v9993_v46, %v13423_v45  ;;  %v7311_v45 = vld [vmem:[%s13281_s14 + $0x50] sm:$0xff]  ;;  %v7554_v24 = vld [vmem:[%s13282_s16] sm:$0xff] }
0x35ee   :  { %v7859_v2 = vmul.f32 -1.442695, %v7269_v53  ;;  %v7555_v53 = vld [vmem:[%s13282_s16 + $0x8] sm:$0xff]  ;;  %v7556_v4 = vld [vmem:[%s13282_s16 + $0x10] sm:$0xff] }
0x35ef   :  { %9965 = vtanh.f32 %v13153_v54  ;;  %v5537_v36 = vadd.f32 %v5533_v22, %v12787_v61  ;;  %v7312_v61 = vld [vmem:[%s13281_s14 + $0x58] sm:$0xff]  ;;  %v7860_v50 = vmul.f32 -1.442695, %v13153_v54  ;;  %v9360_v54 = vpack.c.bf16 %v7555_v53, %v7554_v24  ;;  %v7560_v46 = vld [vmem:[%s13282_s16 + $0x30] sm:$0xff] }
0x35f0   :  { %9967 = vpow2.f32 %v7859_v2  ;;  %v9327_v33 = vpack.c.bf16 %v7312_v61, %v7311_v45  ;;  %v7558_v2 = vld [vmem:[%s13282_s16 + $0x20] sm:$0xff]  ;;  %v7561_v22 = vld [vmem:[%s13282_s16 + $0x38] sm:$0xff] }
0x35f1   :  { %v7813_v0 = vmul.f32 -1.442695, %v5537_v36  ;;  %9361 = vmatpush3.bf16.msra.mxu1 %v9360_v54 }
0x35f2   :  { %9328 = vmatpush3.bf16.msra.mxu0 %v9327_v33  ;;  %9362 = vmatprep.subr.bf16.mxu1 %v9998_v14 }
0x35f3   :  { %9329 = vmatprep.subr.bf16.mxu0 %v9998_v14 }
0x35f6   :  { %9331 = vmatpush3.bf16.msra.mxu0 %v9330_v21 }
0x35f7   :  { %9332 = vmatprep.subr.bf16.mxu0 %v9998_v14 }
0x35f9   :  { %v9966_v42 = vpop.eup %9965 }
0x35fa   :  { %7286 = vrot.lane.b32.xlu0 %v9966_v42, %s9997_s30  ;;  %v9968_v29 = vpop.eup %9967  ;;  %9334 = vmatpush3.bf16.msra.mxu0 %v9333_v5  ;;  %v7557_v42 = vld [vmem:[%s13282_s16 + $0x18] sm:$0xff] }
0x35fb   :  { %v13157_v19 = vpop.f32.mrb[102].mxu1  ;;  %v7277_v31 = vadd.f32 1.0, %v9968_v29  ;;  %9347 = vmatprep.subr.bf16.mxu0 %v9998_v14  ;;  %v7559_v29 = vld [vmem:[%s13282_s16 + $0x28] sm:$0xff] }
0x35fc   :  { %v8004_v15 = vpop.f32.mrb[103].mxu1 }
0x35fd   :  { %9969 = vrcp.f32 %v7277_v31  ;;  %v9363_v15 = vpack.c.bf16 %v7557_v42, %v7556_v4  ;;  %v9366_v31 = vpack.c.bf16 %v7559_v29, %v7558_v2 }
0x35fe   :  { %9971 = vtanh.f32 %v5537_v36  ;;  %v9369_v36 = vpack.c.bf16 %v7561_v22, %v7560_v46 }
0x35ff   :  { %9973 = vpow2.f32 %v7812_v47  ;;  %9364 = vmatpush3.bf16.msra.mxu1 %v9363_v15 }
0x3600   :  { %9975 = vpow2.f32 %v7813_v0  ;;  %9365 = vmatprep.subr.bf16.mxu1 %v9998_v14 }
0x3603   :  { %9367 = vmatpush3.bf16.msra.mxu1 %v9366_v31 }
0x3604   :  { %9368 = vmatprep.subr.bf16.mxu1 %v9998_v14 }
0x3607   :  { %v9970_v59 = vpop.eup %9969  ;;  %9370 = vmatpush3.bf16.msra.mxu1 %v9369_v36 }
0x3608   :  { %v9972_v25 = vpop.eup %9971  ;;  %v7284_v38 = vmul.f32 %v9970_v59, %v13108_v44 }
0x3609   :  { %v9974_v32 = vpop.eup %9973 }
0x360a   :  { %v5541_v6 = vadd.f32 1.0, %v9974_v32  ;;  %v9976_v40 = vpop.eup %9975 }
0x360b   :  { %v5547_v16 = vadd.f32 1.0, %v9976_v40 }
0x360c   :  { %9977 = vrcp.f32 %v5541_v6 }
0x3616   :  { %v9978_v17 = vpop.eup %9977 }
0x366c   :  { %v7287_v34 = vpop.permute.xlu0 %7286 }
0x366d   :  { %v7289_v28 = vmul.f32 %v9970_v59, %v7287_v34 }
0x366f   :  { %7291 = vrot.lane.b32.xlu1 %v7289_v28, %s9997_s30 }
0x3673   :  { %5552 = vrot.lane.b32.xlu1 %v9972_v25, %s9997_s30  ;;  %v7865_v25 = vld [vmem:[%s13284_s17] ss:$0 sm:$0xff] }
0x36e1   :  { %v7292_v9 = vpop.permute.xlu1 %7291 }
0x36e2   :  { %v7294_v18 = vadd.f32 %v7292_v9, %v7284_v38 }
0x36e4   :  { %9979 = vtanh.f32 %v7294_v18 }
0x36e5   :  { %v5553_v37 = vpop.permute.xlu1 %5552  ;;  %9981 = vrcp.f32 %v5547_v16 }
0x36e6   :  { %v5555_v1 = vmul.f32 %v9978_v17, %v5553_v37 }
0x36e8   :  { %9983 = vtanh.f32 %v5555_v1 }
0x36e9   :  { %9985 = vpow2.f32 %v7860_v50 }
0x36ee   :  { %v9980_v7 = vpop.eup %9979 }
0x36ef   :  { %7297 = vrot.lane.b32.xlu0 %v9980_v7, %s9997_s30  ;;  %v9982_v26 = vpop.eup %9981 }
0x36f2   :  { %v9984_v58 = vpop.eup %9983 }
0x36f3   :  { %v5557_v41 = vmul.f32 %v9984_v58, %v9982_v26  ;;  %v9986_v51 = vpop.eup %9985 }
0x36f4   :  { %v7278_v44 = vadd.f32 1.0, %v9986_v51 }
0x36f6   :  { %9987 = vrcp.f32 %v7278_v44 }
0x3700   :  { %v9988_v48 = vpop.eup %9987 }
0x3761   :  { %v7298_v57 = vpop.permute.xlu0 %7297 }
0x3762   :  { %v7300_v35 = vmul.f32 %v9988_v48, %v7298_v57 }
0x3764   :  { %7984 = vmatmul.mubr.msk.f32.vlgmr.msra.gmra.mrb[122].mxu0 %vm776_vm4, %v7300_v35 }
0x3765   :  { %9349 = vmatpush3.bf16.msra.mxu0 %v9348_v49  ;;  %8021 = vmatprep.mubr.msk.f32.mxu0 %vm9999_vm6, %v13335_v27  ;;  %v7470_v27 = vld [vmem:[%s13281_s14 + $0xb8] sm:$0xff] }
0x3766   :  { %9350 = vmatprep.subr.bf16.mxu0 %v9998_v14  ;;  %v9357_v63 = vpack.c.bf16 %v7470_v27, %v7469_v62 }
0x3769   :  { %9352 = vmatpush3.bf16.msra.mxu0 %v9351_v43 }
0x376a   :  { %9353 = vmatprep.subr.bf16.mxu0 %v9998_v14 }
0x376d   :  { %9355 = vmatpush3.bf16.msra.mxu0 %v9354_v56 }
0x376e   :  { %9356 = vmatprep.subr.bf16.mxu0 %v9998_v14 }
0x3771   :  { %9358 = vmatpush3.bf16.msra.mxu0 %v9357_v63 }
0x3774   :  { %8022 = vmatmul.mubr.msk.f32.vlgmr.msra.gmra.mrb[124].mxu0 %vm776_vm4, %v5557_v41 }
0x3837   :  { %v7386_v59 = vpop.f32.mrb[122].mxu0 }
0x3838   :  { %v7460_v34 = vadd.f32 %v13157_v19, %v7386_v59  ;;  %v7985_v28 = vpop.f32.mrb[123].mxu0 }
0x3847   :  { %v7540_v52 = vpop.f32.mrb[124].mxu0 }
0x3848   :  { %v7544_v14 = vadd.f32 %v7540_v52, %v7460_v34  ;;  %v8023_v45 = vpop.f32.mrb[125].mxu0 }
0x384a   :  { %v7552_v20 = vadd.f32 %v7864_v39, %v7544_v14 }
0x384c   :  { %v7553_v61 = vmax.f32 %v7552_v20, 0.0 }
0x384e   :  { %8041 = vmatmul.mubr.msk.f32.vlgmr.msra.gmra.mrb[104].mxu1 %vm776_vm4, %v7553_v61 }
0x3921   :  { %v7638_v33 = vpop.f32.mrb[104].mxu1 }
0x3922   :  { %v7639_v8 = vadd.f32 %v7865_v25, %v7638_v33  ;;  %v8042_v23 = vpop.f32.mrb[105].mxu1 }
0x3924   :  { %v7867_v19 = vmul.f32 -1.442695, %v7639_v8 }
0x3926   :  { %9989 = vpow2.f32 %v7867_v19 }
0x3930   :  { %v9990_v21 = vpop.eup %9989 }
0x3931   :  { %v7645_v60 = vadd.f32 1.0, %v9990_v21 }
0x3933   :  { %9991 = vrcp.f32 %v7645_v60 }
0x393d   :  { %v9992_v3 = vpop.eup %9991 }
0x393e   :  { %v7648_v5 = vmul.f32 90.0, %v9992_v3 }
0x3940   :  { %7650 = vst.msk [vmem:[%s13285_s18] sm:$0xff] %vm7649_vm7, %v7648_v5 }

</bundles_post_ra>
